<compile_context>
chip_gen: v7x
topology: tpu7x:2x2x1
jax: 0.10.0
libtpu: 0.0.40
codegen_flags: <defaults>
</compile_context>

<pallas_src>
import jax
import jax.numpy as jnp
import numpy as np
from jax.experimental import pallas as pl
from jax.experimental.pallas import tpu as pltpu

# ----- module constants (from ObjectClassifier.__init__) ---------------------
OBJ_DIM = 2048          # self.obj_dim
EMB_DIM = 200           # GloVe obj_embed dim
POS_DIM = 128           # pos_embed Linear(4, 128)
HID_DIM = 1024          # decoder_lin hidden
NUM_CLASSES = 36        # len(obj_classes)  (small, AG-like)
BN_EPS = 1e-5


def _obj_classifier_kernel(feat_ref, dist_ref, box_ref,
                           mpos_ref, bpos_ref,
                           w1f_ref, wdist_ref, w1p_ref, b1_ref,
                           w2_ref, b2_ref,
                           out_ref):
    # Cast here (not in the wrapper) so features travel HBM->VMEM once as f32
    # and the MXU still sees a bf16 x bf16 matmul against the bf16 weight.
    feats = feat_ref[...].astype(jnp.bfloat16)      # (TM, 2048)
    dist = dist_ref[...]                            # (TM, C-1)  f32
    boxes = box_ref[...]                            # (TM, 5) = [img_idx, x1, y1, x2, y2]
    tm = feats.shape[0]

    # ---- pos_embed -----------------------------------------------------------
    # center_size + BatchNorm1d(4) + Linear(4,128) pre-folded (in glue) into a
    # single affine map:  pos_pre = boxes[:, 1:5] @ m_pos + b_pos.
    # Realized as 4 rank-1 updates (VPU); ReLU here; Dropout = identity (eval).
    mpos = mpos_ref[...]                            # (4, 128)
    pos = jnp.broadcast_to(bpos_ref[...], (tm, POS_DIM))
    for k in range(4):
        pos = pos + boxes[:, k + 1:k + 2] * mpos[k:k + 1, :]
    pos = jnp.maximum(pos, 0.0)

    # ---- decoder_lin ---------------------------------------------------------
    # Linear(2376,1024) over cat([features, obj_embed, pos_embed]) done as three
    # partial matmuls (weight row-blocks) summed.  The obj_embed hop is folded
    # into wdist = obj_embed_w @ W1_emb and BatchNorm1d(1024) (eval) is folded
    # into the weight columns / bias — so no extra elementwise pass is needed.
    hidden = (jnp.dot(feats, w1f_ref[...], preferred_element_type=jnp.float32)
              + jnp.dot(dist, wdist_ref[...], preferred_element_type=jnp.float32)
              + jnp.dot(pos, w1p_ref[...], preferred_element_type=jnp.float32)
              + b1_ref[...])
    hidden = jnp.maximum(hidden, 0.0)               # ReLU

    # Linear(1024, num_classes) — head padded to 128 lanes for unmasked stores.
    out_ref[...] = (jnp.dot(hidden, w2_ref[...], preferred_element_type=jnp.float32)
                    + b2_ref[...])


def object_classifier_forward(features, distribution, boxes, fused, *, block_rows=256):
    """Runs the fused ObjectClassifier decoder as a single row-tiled Pallas kernel."""
    n = features.shape[0]
    cm1 = distribution.shape[1]
    c = fused["w2"].shape[1]

    # Pad rows so the tile size is a multiple of 8 (sublane constraint).
    n8 = ((n + 7) // 8) * 8
    tm = min(block_rows, n8)
    n_pad = ((n8 + tm - 1) // tm) * tm
    pad = n_pad - n
    if pad:
        features = jnp.pad(features, ((0, pad), (0, 0)))
        distribution = jnp.pad(distribution, ((0, pad), (0, 0)))
        boxes = jnp.pad(boxes, ((0, pad), (0, 0)))
    # Padded rows produce garbage logits; they are sliced off below.

    # Lane-dense output head: pad class dim to a multiple of 128 so the kernel's
    # output stores are full-lane `vst` (no masked partial stores).
    c_pad = ((c + 127) // 128) * 128
    w2 = jnp.pad(fused["w2"], ((0, 0), (0, c_pad - c)))
    b2 = jnp.pad(fused["b2"], ((0, 0), (0, c_pad - c)))

    def row_spec(cols):
        return pl.BlockSpec((tm, cols), lambda i: (i, 0))

    def full_spec(shape):
        return pl.BlockSpec(shape, lambda i: (0,) * len(shape))

    weights = (fused["m_pos"], fused["b_pos"],
               fused["w1_feat"], fused["w_dist"], fused["w1_pos"], fused["b1"],
               w2, b2)

    out = pl.pallas_call(
        _obj_classifier_kernel,
        out_shape=jax.ShapeDtypeStruct((n_pad, c_pad), jnp.float32),
        grid_spec=pltpu.PrefetchScalarGridSpec(
            num_scalar_prefetch=0,
            grid=(n_pad // tm,),
            in_specs=([row_spec(OBJ_DIM), row_spec(cm1), row_spec(5)]
                      + [full_spec(w.shape) for w in weights]),
            out_specs=row_spec(c_pad),
        ),
        compiler_params=pltpu.CompilerParams(
            dimension_semantics=("parallel",),
            vmem_limit_bytes=32 * 1024 * 1024,   # fits v5e/v6e/v7x scoped VMEM
        ),
    )(features, distribution, boxes, *weights)
    return out[:n, :c]


def make_raw_params(key):
    """Deterministic synthetic module parameters (shapes from ObjectClassifier.__init__)."""
    ks = jax.random.split(key, 16)
    scale = 0.02
    p = {}
    # nn.Embedding(C-1, 200) weight (GloVe vectors in the original)
    p["obj_embed_w"] = scale * jax.random.normal(ks[0], (NUM_CLASSES - 1, EMB_DIM), jnp.float32)

    # pos_embed: BatchNorm1d(4) (eval stats) + Linear(4, 128)
    p["bn4_gamma"] = 1.0 + 0.1 * jax.random.normal(ks[1], (4,), jnp.float32)
    p["bn4_beta"] = 0.1 * jax.random.normal(ks[2], (4,), jnp.float32)
    p["bn4_mean"] = 0.5 * jax.random.normal(ks[3], (4,), jnp.float32)
    p["bn4_var"] = 1.0 + jax.random.uniform(ks[4], (4,), jnp.float32)
    p["w_pos"] = scale * jax.random.normal(ks[5], (4, POS_DIM), jnp.float32)
    p["b_pos"] = scale * jax.random.normal(ks[6], (1, POS_DIM), jnp.float32)

    # decoder_lin: Linear(2376, 1024) stored as [feat | emb | pos] row-blocks
    p["w1_feat"] = scale * jax.random.normal(ks[7], (OBJ_DIM, HID_DIM), jnp.float32)
    p["w1_emb"] = scale * jax.random.normal(ks[8], (EMB_DIM, HID_DIM), jnp.float32)
    p["w1_pos"] = scale * jax.random.normal(ks[9], (POS_DIM, HID_DIM), jnp.float32)
    p["b1"] = scale * jax.random.normal(ks[10], (1, HID_DIM), jnp.float32)

    # BatchNorm1d(1024) (eval stats)
    p["bn1024_gamma"] = 1.0 + 0.05 * jax.random.normal(ks[11], (HID_DIM,), jnp.float32)
    p["bn1024_beta"] = 0.05 * jax.random.normal(ks[12], (HID_DIM,), jnp.float32)
    p["bn1024_mean"] = 0.1 * jax.random.normal(ks[13], (HID_DIM,), jnp.float32)
    p["bn1024_var"] = 1.0 + jax.random.uniform(ks[14], (HID_DIM,), jnp.float32)

    # Linear(1024, num_classes)
    p["w2"] = scale * jax.random.normal(ks[15], (HID_DIM, NUM_CLASSES), jnp.float32)
    p["b2"] = jnp.zeros((1, NUM_CLASSES), jnp.float32)
    return p


def fuse_params(p):
    """Plain-JAX glue: algebraic folds so the kernel is matmuls + ReLU only."""
    # --- fold center_size + BN(4) into the Linear(4,128) ---------------------
    s4 = p["bn4_gamma"] / jnp.sqrt(p["bn4_var"] + BN_EPS)
    b4 = p["bn4_beta"] - p["bn4_mean"] * s4
    # center_size([x1,y1,x2,y2]) = coords @ T + c  ->  (cx, cy, w, h)
    T = jnp.array([[0.5, 0.0, -1.0, 0.0],
                   [0.0, 0.5, 0.0, -1.0],
                   [0.5, 0.0, 1.0, 0.0],
                   [0.0, 0.5, 0.0, 1.0]], jnp.float32)
    c = jnp.array([[0.5, 0.5, 1.0, 1.0]], jnp.float32)
    m_pos = (T * s4[None, :]) @ p["w_pos"]                                 # (4, 128)
    b_pos = (c * s4[None, :] + b4[None, :]) @ p["w_pos"] + p["b_pos"]      # (1, 128)

    # --- fold BN(1024) into decoder weight columns / bias ---------------------
    s1024 = p["bn1024_gamma"] / jnp.sqrt(p["bn1024_var"] + BN_EPS)
    sh1024 = p["bn1024_beta"] - p["bn1024_mean"] * s1024

    return {
        "m_pos": m_pos,
        "b_pos": b_pos,
        # dominant weight block in bf16 (halves HBM traffic); others stay f32
        "w1_feat": (p["w1_feat"] * s1024[None, :]).astype(jnp.bfloat16),
        # obj_embed hop folded: dist @ (obj_embed_w @ W1_emb)
        "w_dist": (p["obj_embed_w"] @ p["w1_emb"]) * s1024[None, :],
        "w1_pos": p["w1_pos"] * s1024[None, :],
        "b1": p["b1"] * s1024[None, :] + sh1024[None, :],
        "w2": p["w2"],
        "b2": p["b2"],
    }


def reference_forward(features, distribution, boxes, p):
    """Plain-JAX reference replicating the PyTorch forward (eval BN / no dropout)."""
    obj_emb = distribution @ p["obj_embed_w"]
    b = boxes[:, 1:]
    wh = b[:, 2:4] - b[:, 0:2] + 1.0
    cs = jnp.concatenate([b[:, 0:2] + 0.5 * wh, wh], axis=1)            # (cx, cy, w, h)
    s4 = p["bn4_gamma"] / jnp.sqrt(p["bn4_var"] + BN_EPS)
    cs = (cs - p["bn4_mean"]) * s4 + p["bn4_beta"]
    pos_emb = jnp.maximum(cs @ p["w_pos"] + p["b_pos"], 0.0)
    hidden = (features @ p["w1_feat"] + obj_emb @ p["w1_emb"]
              + pos_emb @ p["w1_pos"] + p["b1"])
    s1024 = p["bn1024_gamma"] / jnp.sqrt(p["bn1024_var"] + BN_EPS)
    hidden = (hidden - p["bn1024_mean"]) * s1024 + p["bn1024_beta"]
    hidden = jnp.maximum(hidden, 0.0)
    return hidden @ p["w2"] + p["b2"]


if __name__ == "__main__":
    key = jax.random.PRNGKey(0)
    k_param, k_feat, k_dist, k_box = jax.random.split(key, 4)

    N = 13  # number of detected boxes (small; exercises the row-padding path)
    raw_params = make_raw_params(k_param)
    fused_params = fuse_params(raw_params)

    features = jax.random.normal(k_feat, (N, OBJ_DIM), jnp.float32)
    distribution = jax.nn.softmax(
        jax.random.normal(k_dist, (N, NUM_CLASSES - 1), jnp.float32), axis=-1)
    # boxes: [img_idx, x1, y1, x2, y2]
    xy = jax.random.uniform(k_box, (N, 4), jnp.float32, 0.0, 300.0)
    x1y1 = jnp.minimum(xy[:, :2], xy[:, 2:])
    x2y2 = jnp.maximum(xy[:, :2], xy[:, 2:]) + 1.0
    img_idx = jnp.minimum(jnp.arange(N, dtype=jnp.float32) // (N // 2), 1.0).reshape(N, 1)
    boxes = jnp.concatenate([img_idx, x1y1, x2y2], axis=1)

    out = object_classifier_forward(features, distribution, boxes, fused_params)
    out = jax.block_until_ready(out)

    ref = reference_forward(features, distribution, boxes, raw_params)
    np.testing.assert_allclose(np.asarray(out), np.asarray(ref), rtol=2e-2, atol=2e-2)

    print("KERNEL_OK")
</pallas_src>

<mosaic_0001>
module attributes {stable_mosaic.version = 11 : i64} {
  func.func @_obj_classifier_kernel(%arg0: i32, %arg1: memref<16x2048xf32, #tpu.memory_space<vmem>>, %arg2: memref<16x35xf32, #tpu.memory_space<vmem>>, %arg3: memref<16x5xf32, #tpu.memory_space<vmem>>, %arg4: memref<4x128xf32, #tpu.memory_space<vmem>>, %arg5: memref<1x128xf32, #tpu.memory_space<vmem>>, %arg6: memref<2048x1024xbf16, #tpu.memory_space<vmem>>, %arg7: memref<35x1024xf32, #tpu.memory_space<vmem>>, %arg8: memref<128x1024xf32, #tpu.memory_space<vmem>>, %arg9: memref<1x1024xf32, #tpu.memory_space<vmem>>, %arg10: memref<1024x128xf32, #tpu.memory_space<vmem>>, %arg11: memref<1x128xf32, #tpu.memory_space<vmem>>, %arg12: memref<16x128xf32, #tpu.memory_space<vmem>>) attributes {dimension_semantics = [#tpu.dimension_semantics<parallel>], iteration_bounds = array<i64: 1>, scalar_prefetch = 0 : i64, scratch_operands = 0 : i64, tpu.core_type = #tpu.core_type<tc>, window_params = [{transform_indices = @transform_0, window_bounds = array<i64: 16, 2048>}, {transform_indices = @transform_1, window_bounds = array<i64: 16, 35>}, {transform_indices = @transform_2, window_bounds = array<i64: 16, 5>}, {pipeline_mode = #tpu.pipeline_mode<synchronous>, transform_indices = @transform_3, window_bounds = array<i64: 4, 128>}, {pipeline_mode = #tpu.pipeline_mode<synchronous>, transform_indices = @transform_4, window_bounds = array<i64: 1, 128>}, {pipeline_mode = #tpu.pipeline_mode<synchronous>, transform_indices = @transform_5, window_bounds = array<i64: 2048, 1024>}, {pipeline_mode = #tpu.pipeline_mode<synchronous>, transform_indices = @transform_6, window_bounds = array<i64: 35, 1024>}, {pipeline_mode = #tpu.pipeline_mode<synchronous>, transform_indices = @transform_7, window_bounds = array<i64: 128, 1024>}, {pipeline_mode = #tpu.pipeline_mode<synchronous>, transform_indices = @transform_8, window_bounds = array<i64: 1, 1024>}, {pipeline_mode = #tpu.pipeline_mode<synchronous>, transform_indices = @transform_9, window_bounds = array<i64: 1024, 128>}, {pipeline_mode = #tpu.pipeline_mode<synchronous>, transform_indices = @transform_10, window_bounds = array<i64: 1, 128>}, {transform_indices = @transform_11, window_bounds = array<i64: 16, 128>}]} {
    %c0 = arith.constant 0 : index
    %c0_0 = arith.constant 0 : index
    %0 = vector.load %arg1[%c0, %c0_0] : memref<16x2048xf32, #tpu.memory_space<vmem>>, vector<16x2048xf32>
    %1 = arith.truncf %0 : vector<16x2048xf32> to vector<16x2048xbf16>
    %c0_1 = arith.constant 0 : index
    %c0_2 = arith.constant 0 : index
    %2 = vector.load %arg2[%c0_1, %c0_2] : memref<16x35xf32, #tpu.memory_space<vmem>>, vector<16x35xf32>
    %c0_3 = arith.constant 0 : index
    %c0_4 = arith.constant 0 : index
    %3 = vector.load %arg3[%c0_3, %c0_4] : memref<16x5xf32, #tpu.memory_space<vmem>>, vector<16x5xf32>
    %c0_5 = arith.constant 0 : index
    %c0_6 = arith.constant 0 : index
    %4 = vector.load %arg4[%c0_5, %c0_6] : memref<4x128xf32, #tpu.memory_space<vmem>>, vector<4x128xf32>
    %c0_7 = arith.constant 0 : index
    %c0_8 = arith.constant 0 : index
    %5 = vector.load %arg5[%c0_7, %c0_8] : memref<1x128xf32, #tpu.memory_space<vmem>>, vector<1x128xf32>
    %6 = vector.shape_cast %5 : vector<1x128xf32> to vector<1x128xf32>
    %7 = vector.broadcast %6 : vector<1x128xf32> to vector<16x128xf32>
    %8 = vector.extract_strided_slice %3 {offsets = [0, 1], sizes = [16, 1], strides = [1, 1]} : vector<16x5xf32> to vector<16x1xf32>
    %9 = vector.extract_strided_slice %4 {offsets = [0, 0], sizes = [1, 128], strides = [1, 1]} : vector<4x128xf32> to vector<1x128xf32>
    %10 = vector.broadcast %8 : vector<16x1xf32> to vector<16x128xf32>
    %11 = vector.broadcast %9 : vector<1x128xf32> to vector<16x128xf32>
    %12 = arith.mulf %10, %11 : vector<16x128xf32>
    %13 = arith.addf %7, %12 : vector<16x128xf32>
    %14 = vector.extract_strided_slice %3 {offsets = [0, 2], sizes = [16, 1], strides = [1, 1]} : vector<16x5xf32> to vector<16x1xf32>
    %15 = vector.extract_strided_slice %4 {offsets = [1, 0], sizes = [1, 128], strides = [1, 1]} : vector<4x128xf32> to vector<1x128xf32>
    %16 = vector.broadcast %14 : vector<16x1xf32> to vector<16x128xf32>
    %17 = vector.broadcast %15 : vector<1x128xf32> to vector<16x128xf32>
    %18 = arith.mulf %16, %17 : vector<16x128xf32>
    %19 = arith.addf %13, %18 : vector<16x128xf32>
    %20 = vector.extract_strided_slice %3 {offsets = [0, 3], sizes = [16, 1], strides = [1, 1]} : vector<16x5xf32> to vector<16x1xf32>
    %21 = vector.extract_strided_slice %4 {offsets = [2, 0], sizes = [1, 128], strides = [1, 1]} : vector<4x128xf32> to vector<1x128xf32>
    %22 = vector.broadcast %20 : vector<16x1xf32> to vector<16x128xf32>
    %23 = vector.broadcast %21 : vector<1x128xf32> to vector<16x128xf32>
    %24 = arith.mulf %22, %23 : vector<16x128xf32>
    %25 = arith.addf %19, %24 : vector<16x128xf32>
    %26 = vector.extract_strided_slice %3 {offsets = [0, 4], sizes = [16, 1], strides = [1, 1]} : vector<16x5xf32> to vector<16x1xf32>
    %27 = vector.extract_strided_slice %4 {offsets = [3, 0], sizes = [1, 128], strides = [1, 1]} : vector<4x128xf32> to vector<1x128xf32>
    %28 = vector.broadcast %26 : vector<16x1xf32> to vector<16x128xf32>
    %29 = vector.broadcast %27 : vector<1x128xf32> to vector<16x128xf32>
    %30 = arith.mulf %28, %29 : vector<16x128xf32>
    %31 = arith.addf %25, %30 : vector<16x128xf32>
    %cst = arith.constant 0.000000e+00 : f32
    %32 = vector.broadcast %cst : f32 to vector<16x128xf32>
    %33 = arith.maximumf %31, %32 : vector<16x128xf32>
    %c0_9 = arith.constant 0 : index
    %c0_10 = arith.constant 0 : index
    %34 = vector.load %arg6[%c0_9, %c0_10] : memref<2048x1024xbf16, #tpu.memory_space<vmem>>, vector<2048x1024xbf16>
    %cst_11 = arith.constant dense<0.000000e+00> : vector<16x1024xf32>
    %35 = tpu.matmul %1, %34, %cst_11 {dimension_numbers = #tpu.dot_dimension_numbers<[1], [0], [0], [1], [0, 0, 1, 1], [], []>} : vector<16x2048xbf16>, vector<2048x1024xbf16>, vector<16x1024xf32> -> vector<16x1024xf32>
    %c0_12 = arith.constant 0 : index
    %c0_13 = arith.constant 0 : index
    %36 = vector.load %arg7[%c0_12, %c0_13] : memref<35x1024xf32, #tpu.memory_space<vmem>>, vector<35x1024xf32>
    %cst_14 = arith.constant dense<0.000000e+00> : vector<16x1024xf32>
    %37 = tpu.matmul %2, %36, %cst_14 {dimension_numbers = #tpu.dot_dimension_numbers<[1], [0], [0], [1], [0, 0, 1, 1], [], []>} : vector<16x35xf32>, vector<35x1024xf32>, vector<16x1024xf32> -> vector<16x1024xf32>
    %38 = arith.addf %35, %37 : vector<16x1024xf32>
    %c0_15 = arith.constant 0 : index
    %c0_16 = arith.constant 0 : index
    %39 = vector.load %arg8[%c0_15, %c0_16] : memref<128x1024xf32, #tpu.memory_space<vmem>>, vector<128x1024xf32>
    %cst_17 = arith.constant dense<0.000000e+00> : vector<16x1024xf32>
    %40 = tpu.matmul %33, %39, %cst_17 {dimension_numbers = #tpu.dot_dimension_numbers<[1], [0], [0], [1], [0, 0, 1, 1], [], []>} : vector<16x128xf32>, vector<128x1024xf32>, vector<16x1024xf32> -> vector<16x1024xf32>
    %41 = arith.addf %38, %40 : vector<16x1024xf32>
    %c0_18 = arith.constant 0 : index
    %c0_19 = arith.constant 0 : index
    %42 = vector.load %arg9[%c0_18, %c0_19] : memref<1x1024xf32, #tpu.memory_space<vmem>>, vector<1x1024xf32>
    %43 = vector.broadcast %42 : vector<1x1024xf32> to vector<16x1024xf32>
    %44 = arith.addf %41, %43 : vector<16x1024xf32>
    %cst_20 = arith.constant 0.000000e+00 : f32
    %45 = vector.broadcast %cst_20 : f32 to vector<16x1024xf32>
    %46 = arith.maximumf %44, %45 : vector<16x1024xf32>
    %c0_21 = arith.constant 0 : index
    %c0_22 = arith.constant 0 : index
    %47 = vector.load %arg10[%c0_21, %c0_22] : memref<1024x128xf32, #tpu.memory_space<vmem>>, vector<1024x128xf32>
    %cst_23 = arith.constant dense<0.000000e+00> : vector<16x128xf32>
    %48 = tpu.matmul %46, %47, %cst_23 {dimension_numbers = #tpu.dot_dimension_numbers<[1], [0], [0], [1], [0, 0, 1, 1], [], []>} : vector<16x1024xf32>, vector<1024x128xf32>, vector<16x128xf32> -> vector<16x128xf32>
    %c0_24 = arith.constant 0 : index
    %c0_25 = arith.constant 0 : index
    %49 = vector.load %arg11[%c0_24, %c0_25] : memref<1x128xf32, #tpu.memory_space<vmem>>, vector<1x128xf32>
    %50 = vector.broadcast %49 : vector<1x128xf32> to vector<16x128xf32>
    %51 = arith.addf %48, %50 : vector<16x128xf32>
    %c0_26 = arith.constant 0 : index
    %c0_27 = arith.constant 0 : index
    %52 = vector.load %arg12[%c0_26, %c0_27] : memref<16x128xf32, #tpu.memory_space<vmem>>, vector<16x128xf32>
    tpu.vector_store %arg12[%c0_26, %c0_27], %51 {strides = array<i32>} : memref<16x128xf32, #tpu.memory_space<vmem>>, vector<16x128xf32>,
    return
  }
  func.func @transform_0(%arg0: i32) -> (i32, i32) {
    %c0_i32 = arith.constant 0 : i32
    %c0_i32_0 = arith.constant 0 : i32
    return %arg0, %c0_i32 : i32, i32
  }
  func.func @transform_1(%arg0: i32) -> (i32, i32) {
    %c0_i32 = arith.constant 0 : i32
    %c0_i32_0 = arith.constant 0 : i32
    return %arg0, %c0_i32 : i32, i32
  }
  func.func @transform_2(%arg0: i32) -> (i32, i32) {
    %c0_i32 = arith.constant 0 : i32
    %c0_i32_0 = arith.constant 0 : i32
    return %arg0, %c0_i32 : i32, i32
  }
  func.func @transform_3(%arg0: i32) -> (i32, i32) {
    %c0_i32 = arith.constant 0 : i32
    %c0_i32_0 = arith.constant 0 : i32
    %c0_i32_1 = arith.constant 0 : i32
    return %c0_i32, %c0_i32_0 : i32, i32
  }
  func.func @transform_4(%arg0: i32) -> (i32, i32) {
    %c0_i32 = arith.constant 0 : i32
    %c0_i32_0 = arith.constant 0 : i32
    %c0_i32_1 = arith.constant 0 : i32
    return %c0_i32, %c0_i32_0 : i32, i32
  }
  func.func @transform_5(%arg0: i32) -> (i32, i32) {
    %c0_i32 = arith.constant 0 : i32
    %c0_i32_0 = arith.constant 0 : i32
    %c0_i32_1 = arith.constant 0 : i32
    return %c0_i32, %c0_i32_0 : i32, i32
  }
  func.func @transform_6(%arg0: i32) -> (i32, i32) {
    %c0_i32 = arith.constant 0 : i32
    %c0_i32_0 = arith.constant 0 : i32
    %c0_i32_1 = arith.constant 0 : i32
    return %c0_i32, %c0_i32_0 : i32, i32
  }
  func.func @transform_7(%arg0: i32) -> (i32, i32) {
    %c0_i32 = arith.constant 0 : i32
    %c0_i32_0 = arith.constant 0 : i32
    %c0_i32_1 = arith.constant 0 : i32
    return %c0_i32, %c0_i32_0 : i32, i32
  }
  func.func @transform_8(%arg0: i32) -> (i32, i32) {
    %c0_i32 = arith.constant 0 : i32
    %c0_i32_0 = arith.constant 0 : i32
    %c0_i32_1 = arith.constant 0 : i32
    return %c0_i32, %c0_i32_0 : i32, i32
  }
  func.func @transform_9(%arg0: i32) -> (i32, i32) {
    %c0_i32 = arith.constant 0 : i32
    %c0_i32_0 = arith.constant 0 : i32
    %c0_i32_1 = arith.constant 0 : i32
    return %c0_i32, %c0_i32_0 : i32, i32
  }
  func.func @transform_10(%arg0: i32) -> (i32, i32) {
    %c0_i32 = arith.constant 0 : i32
    %c0_i32_0 = arith.constant 0 : i32
    %c0_i32_1 = arith.constant 0 : i32
    return %c0_i32, %c0_i32_0 : i32, i32
  }
  func.func @transform_11(%arg0: i32) -> (i32, i32) {
    %c0_i32 = arith.constant 0 : i32
    %c0_i32_0 = arith.constant 0 : i32
    return %arg0, %c0_i32 : i32, i32
  }
}

</mosaic_0001>

<bundles_post_ra>
// kernel: tpu_custom_call.1
= control target key start
LH: loop header
LB: loop body
LE: loop exit
PB: predicated region body
PF: predicated region fallthrough
CT: control target
= control target key end

     0   :  { %16 = vsyncpa [#allocation3], 0  ;;  %s11647_s0 = inlined_call_operand.hbm [shape: f32[16,2048], index: 0, kind: input, shape index: {}]   ;;  %s11648_s1 = inlined_call_operand.hbm [shape: f32[16,35], index: 1, kind: input, shape index: {}]   ;;  %s11649_s2 = inlined_call_operand.vmem [shape: f32[16,5], index: 2, kind: input, shape index: {}]   ;;  %s11650_s3 = inlined_call_operand.hbm [shape: f32[4,128], index: 3, kind: input, shape index: {}]   ;;  %s11651_s4 = inlined_call_operand.hbm [shape: f32[1,128], index: 4, kind: input, shape index: {}]   ;;  %s11652_s5 = inlined_call_operand.hbm [shape: bf16[2048,1024], index: 5, kind: input, shape index: {}]   ;;  %s11653_s6 = inlined_call_operand.hbm [shape: f32[35,1024], index: 6, kind: input, shape index: {}]   ;;  %s11654_s7 = inlined_call_operand.hbm [shape: f32[128,1024], index: 7, kind: input, shape index: {}]   ;;  %s11655_s8 = inlined_call_operand.hbm [shape: f32[1,1024], index: 8, kind: input, shape index: {}]   ;;  %s11656_s9 = inlined_call_operand.hbm [shape: f32[1024,128], index: 9, kind: input, shape index: {}]   ;;  %s11657_s10 = inlined_call_operand.hbm [shape: f32[1,128], index: 10, kind: input, shape index: {}]   ;;  %s11658_s11 = inlined_call_operand.hbm [shape: f32[16,128], index: 11, kind: output, shape index: {}]  }
   0x1   :  { %17 = vsyncpa [#allocation6], 0 }
   0x2   :  { %18 = vsyncpa [#allocation9], 0 }
   0x3   :  { %19 = vsyncpa [#allocation12], 0 }
   0x4   :  { %20 = vsyncpa [#allocation15], 0 }
   0x5   :  { %21 = vsyncpa [#allocation18], 0 }
   0x6   :  { %22 = vsyncpa [#allocation4], 0  ;;  %s11060_s17 = smov [#allocation5]   ;;  %s10804_s21 = scalar_lea.hbm %s11648_s1, 256 }
   0x7   :  { %s40_s18 = sshll.u32 %s11060_s17, 4  ;;  %p10805_p0 = scmp.ne.s32.totalorder %s11648_s1, %s10804_s21  ;;  %s41_s18 = int_to_ptr.vmem [resolvable:$true] %s40_s18 }
   0x8   :  { %p10808_p1 = scmp.lt.u32.totalorder %s10804_s21, %s11648_s1 }
   0xa   :  { %p10810_p2 = pnand %p10808_p1, %p10805_p0 }
   0xc   :  { %10813 = shalt.err (!%p10810_p2)
}
   0xd   :  { %s10814_s26 = scalar_lea.vmem %s41_s18, 256  ;;  %p10819_p4 = scmp.lt.s32.totalorder %s41_s18, %s41_s18 }
   0xe   :  { %p10815_p3 = scmp.ne.s32.totalorder %s41_s18, %s10814_s26  ;;  %p10820_p5 = scmp.lt.s32.totalorder %s10814_s26, %s10814_s26 }
  0x10   :  { %p10821_p6 = por %p10820_p5, %p10819_p4 }
  0x12   :  { %p10822_p7 = pnand %p10821_p6, %p10815_p3 }
  0x14   :  { %10825 = shalt.err (!%p10822_p7)
}
  0x15   :  { %s11061_s27 = smov 128   ;;  %s11062_s28 = smov 8  }
  0x16   :  { %46 = dma.hbm_to_vmem [thread:$0]  %s11648_s1, 256, %s41_s18, [#allocation6], %s11061_s27, %s11061_s27, %s11062_s28  }
  0x17   :  { %s11063_s12 = smov [#allocation8]   ;;  %s11064_s14 = smov [#allocation11]  }
  0x18   :  { %s65_s13 = sshll.u32 %s11063_s12, 4  ;;  %s86_s15 = sshll.u32 %s11064_s14, 4  ;;  %s66_s13 = int_to_ptr.vmem [resolvable:$true] %s65_s13  ;;  %s87_s15 = int_to_ptr.vmem [resolvable:$true] %s86_s15 }
  0x19   :  { %s10826_s19 = scalar_lea.hbm %s11651_s4, 16 }
  0x1a   :  { %p10827_p8 = scmp.ne.s32.totalorder %s11651_s4, %s10826_s19  ;;  %p10830_p9 = scmp.lt.u32.totalorder %s10826_s19, %s11651_s4 }
  0x1c   :  { %p10832_p10 = pnand %p10830_p9, %p10827_p8 }
  0x1e   :  { %10835 = shalt.err (!%p10832_p10)
}
  0x1f   :  { %s10836_s1 = scalar_lea.vmem %s66_s13, 16  ;;  %s10840_s18 = scalar_lea.vmem %s66_s13, 32 }
  0x20   :  { %p10837_p11 = scmp.ne.s32.totalorder %s66_s13, %s10836_s1  ;;  %p10841_p12 = scmp.lt.s32.totalorder %s66_s13, %s66_s13 }
  0x21   :  { %p10842_p13 = scmp.lt.s32.totalorder %s10840_s18, %s10836_s1 }
  0x23   :  { %p10843_p0 = por %p10842_p13, %p10841_p12 }
  0x25   :  { %p10844_p1 = pnand %p10843_p0, %p10837_p11 }
  0x27   :  { %10847 = shalt.err (!%p10844_p1)
}
  0x28   :  { %68 = dma.hbm_to_vmem [thread:$0]  %s11651_s4, 16, %s66_s13, [#allocation9]  }
  0x29   :  { %s10848_s30 = scalar_lea.hbm %s11653_s6, 5120 }
  0x2a   :  { %p10849_p2 = scmp.ne.s32.totalorder %s11653_s6, %s10848_s30  ;;  %p10852_p3 = scmp.lt.u32.totalorder %s10848_s30, %s11653_s6 }
  0x2c   :  { %p10854_p4 = pnand %p10852_p3, %p10849_p2 }
  0x2e   :  { %10857 = shalt.err (!%p10854_p4)
}
  0x2f   :  { %s10858_s19 = scalar_lea.vmem %s87_s15, 5120  ;;  %p10863_p6 = scmp.lt.s32.totalorder %s87_s15, %s87_s15 }
  0x30   :  { %p10859_p5 = scmp.ne.s32.totalorder %s87_s15, %s10858_s19  ;;  %p10864_p7 = scmp.lt.s32.totalorder %s10858_s19, %s10858_s19 }
  0x32   :  { %p10865_p8 = por %p10864_p7, %p10863_p6 }
  0x34   :  { %p10866_p9 = pnand %p10865_p8, %p10859_p5 }
  0x36   :  { %10869 = shalt.err (!%p10866_p9)
}
  0x37   :  { %s11065_s4 = smov 1024   ;;  %s11066_s13 = smov 64  }
  0x38   :  { %92 = dma.hbm_to_vmem [thread:$0]  %s11653_s6, 5120, %s87_s15, [#allocation12], %s11065_s4, %s11065_s4, %s11066_s13  }
  0x39   :  { %s11067_s22 = smov [#allocation14]   ;;  %s11068_s1 = smov [#allocation2]  }
  0x3a   :  { %s111_s23 = sshll.u32 %s11067_s22, 4  ;;  %s28_s18 = sshll.u32 %s11068_s1, 4  ;;  %s112_s23 = int_to_ptr.vmem [resolvable:$true] %s111_s23  ;;  %s29_s18 = int_to_ptr.vmem [resolvable:$true] %s28_s18 }
  0x3b   :  { %s10870_s26 = scalar_lea.hbm %s11655_s8, 128 }
  0x3c   :  { %p10871_p10 = scmp.ne.s32.totalorder %s11655_s8, %s10870_s26  ;;  %p10874_p11 = scmp.lt.u32.totalorder %s10870_s26, %s11655_s8 }
  0x3e   :  { %p10876_p12 = pnand %p10874_p11, %p10871_p10 }
  0x40   :  { %10879 = shalt.err (!%p10876_p12)
}
  0x41   :  { %s10880_s6 = scalar_lea.vmem %s112_s23, 128  ;;  %p10885_p0 = scmp.lt.s32.totalorder %s112_s23, %s112_s23 }
  0x42   :  { %p10881_p13 = scmp.ne.s32.totalorder %s112_s23, %s10880_s6  ;;  %p10886_p1 = scmp.lt.s32.totalorder %s10880_s6, %s10880_s6 }
  0x44   :  { %p10887_p2 = por %p10886_p1, %p10885_p0 }
  0x46   :  { %p10888_p3 = pnand %p10887_p2, %p10881_p13 }
  0x48   :  { %10891 = shalt.err (!%p10888_p3)
}
  0x49   :  { %114 = dma.hbm_to_vmem [thread:$0]  %s11655_s8, 128, %s112_s23, [#allocation15]  }
  0x4a   :  { %s10892_s20 = scalar_lea.hbm %s11647_s0, 4096 }
  0x4b   :  { %p10893_p4 = scmp.ne.s32.totalorder %s11647_s0, %s10892_s20  ;;  %p10896_p5 = scmp.lt.u32.totalorder %s10892_s20, %s11647_s0 }
  0x4d   :  { %p10898_p6 = pnand %p10896_p5, %p10893_p4 }
  0x4f   :  { %10901 = shalt.err (!%p10898_p6)
}
  0x50   :  { %s10902_s25 = scalar_lea.vmem %s29_s18, 4096  ;;  %p10907_p8 = scmp.lt.s32.totalorder %s29_s18, %s29_s18 }
  0x51   :  { %p10903_p7 = scmp.ne.s32.totalorder %s29_s18, %s10902_s25  ;;  %p10908_p9 = scmp.lt.s32.totalorder %s10902_s25, %s10902_s25 }
  0x53   :  { %p10909_p10 = por %p10908_p9, %p10907_p8 }
  0x55   :  { %p10910_p11 = pnand %p10909_p10, %p10903_p7 }
  0x57   :  { %10913 = shalt.err (!%p10910_p11)
}
  0x58   :  { %s11069_s8 = smov 2048   ;;  %s11070_s29 = smov [#allocation7]  }
  0x59   :  { %34 = dma.hbm_to_vmem [thread:$0]  %s11647_s0, 4096, %s29_s18, [#allocation3], %s11069_s8, %s11069_s8, %s11061_s27  }
  0x5a   :  { %s55_s30 = sshll.u32 %s11070_s29, 4  ;;  %s11071_s12 = smov [#allocation10]   ;;  %s56_s30 = int_to_ptr.vmem [resolvable:$true] %s55_s30 }
  0x5b   :  { %s74_s14 = sshll.u32 %s11071_s12, 4  ;;  %s10914_s16 = scalar_lea.hbm %s11650_s3, 64  ;;  %s11210_s14 = int_to_ptr.vmem [resolvable:$true] %s74_s14 }
  0x5c   :  { %p10915_p12 = scmp.ne.s32.totalorder %s11650_s3, %s10914_s16  ;;  %p10918_p13 = scmp.lt.u32.totalorder %s10914_s16, %s11650_s3 }
  0x5e   :  { %p10920_p0 = pnand %p10918_p13, %p10915_p12 }
  0x60   :  { %10923 = shalt.err (!%p10920_p0)
}
  0x61   :  { %s10924_s0 = scalar_lea.vmem %s56_s30, 64  ;;  %p10929_p2 = scmp.lt.s32.totalorder %s56_s30, %s56_s30 }
  0x62   :  { %p10925_p1 = scmp.ne.s32.totalorder %s56_s30, %s10924_s0  ;;  %p10930_p3 = scmp.lt.s32.totalorder %s10924_s0, %s10924_s0 }
  0x64   :  { %p10931_p4 = por %p10930_p3, %p10929_p2 }
  0x66   :  { %p10932_p5 = pnand %p10931_p4, %p10925_p1 }
  0x68   :  { %10935 = shalt.err (!%p10932_p5)
}
  0x69   :  { %58 = dma.hbm_to_vmem [thread:$0]  %s11650_s3, 64, %s56_s30, [#allocation6]  }
  0x6a   :  { %s10936_s25 = scalar_lea.hbm %s11652_s5, 131072 }
  0x6b   :  { %p10937_p6 = scmp.ne.s32.totalorder %s11652_s5, %s10936_s25  ;;  %p10940_p7 = scmp.lt.u32.totalorder %s10936_s25, %s11652_s5 }
  0x6d   :  { %p10942_p8 = pnand %p10940_p7, %p10937_p6 }
  0x6f   :  { %10945 = shalt.err (!%p10942_p8)
}
  0x70   :  { %s10946_s12 = scalar_lea.vmem %s11210_s14, 131072  ;;  %p10951_p10 = scmp.lt.s32.totalorder %s11210_s14, %s11210_s14 }
  0x71   :  { %p10947_p9 = scmp.ne.s32.totalorder %s11210_s14, %s10946_s12  ;;  %p10952_p11 = scmp.lt.s32.totalorder %s10946_s12, %s10946_s12 }
  0x73   :  { %p10953_p12 = por %p10952_p11, %p10951_p10 }
  0x75   :  { %p10954_p13 = pnand %p10953_p12, %p10947_p9 }
  0x77   :  { %10957 = shalt.err (!%p10954_p13)
}
  0x78   :  { %s11072_s3 = smov 512   ;;  %s11073_s30 = smov 32  }
  0x79   :  { %80 = dma.hbm_to_vmem [thread:$0]  %s11652_s5, 131072, %s11210_s14, [#allocation9], %s11072_s3, %s11072_s3, %s11073_s30  }
  0x7a   :  { %s11074_s16 = smov [#allocation13]   ;;  %s11075_s19 = smov [#allocation16]  }
  0x7b   :  { %s98_s17 = sshll.u32 %s11074_s16, 4  ;;  %s120_s20 = sshll.u32 %s11075_s19, 4  ;;  %s99_s17 = int_to_ptr.vmem [resolvable:$true] %s98_s17  ;;  %s11241_s20 = int_to_ptr.vmem [resolvable:$true] %s120_s20 }
  0x7c   :  { %s10958_s18 = scalar_lea.hbm %s11654_s7, 16384 }
  0x7d   :  { %p10959_p0 = scmp.ne.s32.totalorder %s11654_s7, %s10958_s18  ;;  %p10962_p1 = scmp.lt.u32.totalorder %s10958_s18, %s11654_s7 }
  0x7f   :  { %p10964_p2 = pnand %p10962_p1, %p10959_p0 }
  0x81   :  { %10967 = shalt.err (!%p10964_p2)
}
  0x82   :  { %s10968_s5 = scalar_lea.vmem %s99_s17, 16384  ;;  %p10973_p4 = scmp.lt.s32.totalorder %s99_s17, %s99_s17 }
  0x83   :  { %p10969_p3 = scmp.ne.s32.totalorder %s99_s17, %s10968_s5  ;;  %p10974_p5 = scmp.lt.s32.totalorder %s10968_s5, %s10968_s5 }
  0x85   :  { %p10975_p6 = por %p10974_p5, %p10973_p4 }
  0x87   :  { %p10976_p7 = pnand %p10975_p6, %p10969_p3 }
  0x89   :  { %10979 = shalt.err (!%p10976_p7)
}
  0x8a   :  { %104 = dma.hbm_to_vmem [thread:$0]  %s11654_s7, 16384, %s99_s17, [#allocation12], %s11065_s4, %s11065_s4, %s11066_s13  }
  0x8b   :  { %s10980_s29 = scalar_lea.hbm %s11656_s9, 16384 }
  0x8c   :  { %p10981_p8 = scmp.ne.s32.totalorder %s11656_s9, %s10980_s29  ;;  %p10984_p9 = scmp.lt.u32.totalorder %s10980_s29, %s11656_s9 }
  0x8e   :  { %p10986_p10 = pnand %p10984_p9, %p10981_p8 }
  0x90   :  { %10989 = shalt.err (!%p10986_p10)
}
  0x91   :  { %s10990_s15 = scalar_lea.vmem %s11241_s20, 16384  ;;  %p10995_p12 = scmp.lt.s32.totalorder %s11241_s20, %s11241_s20 }
  0x92   :  { %p10991_p11 = scmp.ne.s32.totalorder %s11241_s20, %s10990_s15  ;;  %p10996_p13 = scmp.lt.s32.totalorder %s10990_s15, %s10990_s15 }
  0x94   :  { %p10997_p0 = por %p10996_p13, %p10995_p12 }
  0x96   :  { %p10998_p1 = pnand %p10997_p0, %p10991_p11 }
  0x98   :  { %11001 = shalt.err (!%p10998_p1)
}
  0x99   :  { %126 = dma.hbm_to_vmem [thread:$0]  %s11656_s9, 16384, %s11241_s20, [#allocation15], %s11061_s27, %s11061_s27, %s11062_s28  }
  0x9a   :  { %s11076_s13 = smov [#allocation17]   ;;  %s11002_s21 = scalar_lea.hbm %s11657_s10, 16 }
  0x9b   :  { %s133_s16 = sshll.u32 %s11076_s13, 4  ;;  %p11003_p2 = scmp.ne.s32.totalorder %s11657_s10, %s11002_s21  ;;  %s134_s16 = int_to_ptr.vmem [resolvable:$true] %s133_s16 }
  0x9c   :  { %p11006_p3 = scmp.lt.u32.totalorder %s11002_s21, %s11657_s10 }
  0x9e   :  { %p11008_p4 = pnand %p11006_p3, %p11003_p2 }
  0xa0   :  { %11011 = shalt.err (!%p11008_p4)
}
  0xa1   :  { %s11012_s24 = scalar_lea.vmem %s134_s16, 16  ;;  %s11016_s9 = scalar_lea.vmem %s134_s16, 32 }
  0xa2   :  { %p11013_p5 = scmp.ne.s32.totalorder %s134_s16, %s11012_s24  ;;  %p11017_p6 = scmp.lt.s32.totalorder %s134_s16, %s134_s16 }
  0xa3   :  { %p11018_p7 = scmp.lt.s32.totalorder %s11016_s9, %s11012_s24 }
  0xa5   :  { %p11019_p8 = por %p11018_p7, %p11017_p6 }
  0xa7   :  { %p11020_p9 = pnand %p11019_p8, %p11013_p5 }
  0xa9   :  { %11023 = shalt.err (!%p11020_p9)
}
  0xaa   :  { %136 = dma.hbm_to_vmem [thread:$0]  %s11657_s10, 16, %s134_s16, [#allocation18]  }
  0xab   :  { %11046 = dma.done.wait [#allocation3], 4096  }
  0xac   :  { %11047 = vsyncadd [#allocation3], 4294963200 }
  0xad   :  { %11048 = dma.done.wait [#allocation6], 320  }
  0xae   :  { %11049 = vsyncadd [#allocation6], 4294966976 }
  0xaf   :  { %11050 = dma.done.wait [#allocation9], 131088  }
  0xb0   :  { %11051 = vsyncadd [#allocation9], 4294836208 }
  0xb1   :  { %11052 = dma.done.wait [#allocation12], 21504  }
  0xb2   :  { %11053 = vsyncadd [#allocation12], 4294945792 }
  0xb3   :  { %11054 = dma.done.wait [#allocation15], 16512  }
  0xb4   :  { %11055 = vsyncadd [#allocation15], 4294950784 }
  0xb5   :  { %11056 = dma.done.wait [#allocation18], 16  }
  0xb6   :  { %11057 = vsyncadd [#allocation18], 4294967280  ;;  %v11077_v0 = vmov 0.0   ;;  %v1320_v1 = vld [vmem:[#allocation11 + $0x8] sm:$0xff]  ;;  %v1322_v3 = vld [vmem:[#allocation11 + $0x18] sm:$0xff]  ;;  %vm1366_vm0 = vcmask 1042432  }
  0xb7   :  { %1455 = vmatprep.mubr.f32.mxu0 %v11077_v0  ;;  %1532 = vmatprep.mubr.f32.mxu1 %v11077_v0  ;;  %v1328_v2 = vld [vmem:[#allocation11 + $0x48] sm:$0xff]  ;;  %v1330_v5 = vld [vmem:[#allocation11 + $0x58] sm:$0xff]  ;;  %v1319_v6 = vld [vmem:[#allocation11] sm:$0xff]  ;;  %vm1359_vm1 = vcmask 285696  }
  0xb8   :  { %v10374_v4 = vpack.c.bf16 %v1328_v2, %v1320_v1  ;;  %v1327_v7 = vld [vmem:[#allocation11 + $0x40] sm:$0xff]  ;;  %v10382_v8 = vpack.c.bf16 %v1330_v5, %v1322_v3  ;;  %v1321_v10 = vld [vmem:[#allocation11 + $0x10] sm:$0xff]  ;;  %v1336_v12 = vld [vmem:[#allocation11 + $0x88] sm:$0xff] }
  0xb9   :  { %v10376_v9 = vpack.c.bf16 %v1327_v7, %v1319_v6  ;;  %v1329_v11 = vld [vmem:[#allocation11 + $0x50] sm:$0xff]  ;;  %v1344_v14 = vld [vmem:[#allocation11 + $0xc8] sm:$0xff]  ;;  %v1338_v15 = vld [vmem:[#allocation11 + $0x98] sm:$0xff] }
  0xba   :  { %10375 = vmatprep.subr.bf16.mxu0 %v10374_v4  ;;  %v10384_v13 = vpack.c.bf16 %v1329_v11, %v1321_v10  ;;  %v1346_v16 = vld [vmem:[#allocation11 + $0xd8] sm:$0xff]  ;;  %10383 = vmatprep.subr.bf16.mxu1 %v10382_v8  ;;  %v10378_v17 = vpack.c.bf16 %v1344_v14, %v1336_v12  ;;  %v1335_v19 = vld [vmem:[#allocation11 + $0x80] sm:$0xff]  ;;  %v1337_v21 = vld [vmem:[#allocation11 + $0x90] sm:$0xff] }
  0xbb   :  { %10377 = vmatpush1.bf16.msra.mxu0 %v10376_v9  ;;  %v10386_v18 = vpack.c.bf16 %v1346_v16, %v1338_v15  ;;  %v1343_v20 = vld [vmem:[#allocation11 + $0xc0] sm:$0xff]  ;;  %v1345_v23 = vld [vmem:[#allocation11 + $0xd0] sm:$0xff]  ;;  %v1352_v25 = vld [vmem:[#allocation11 + $0x108] sm:$0x7] }
  0xbc   :  { %10385 = vmatpush1.bf16.msra.mxu1 %v10384_v13  ;;  %v10380_v22 = vpack.c.bf16 %v1343_v20, %v1335_v19  ;;  %10379 = vmatprep.subr.bf16.mxu0 %v10378_v17  ;;  %v10388_v24 = vpack.c.bf16 %v1345_v23, %v1337_v21  ;;  %v1354_v26 = vld [vmem:[#allocation11 + $0x118] sm:$0x7]  ;;  %v1351_v27 = vld [vmem:[#allocation11 + $0x100] sm:$0x7]  ;;  %v1324_v28 = vld [vmem:[#allocation11 + $0x28] sm:$0xff] }
  0xbd   :  { %10387 = vmatprep.subr.bf16.mxu1 %v10386_v18  ;;  %v1332_v29 = vld [vmem:[#allocation11 + $0x68] sm:$0xff]  ;;  %v1326_v30 = vld [vmem:[#allocation11 + $0x38] sm:$0xff]  ;;  %v1353_v31 = vld [vmem:[#allocation11 + $0x110] sm:$0x7] }
  0xbe   :  { %v11292_v32 = vld [vmem:[#allocation5] sm:$0xff]  ;;  %v1334_v33 = vld [vmem:[#allocation11 + $0x78] sm:$0xff]  ;;  %v1323_v34 = vld [vmem:[#allocation11 + $0x20] sm:$0xff]  ;;  %v10390_v39 = vpack.c.bf16 %v1332_v29, %v1324_v28 }
  0xbf   :  { %10381 = vmatpush1.bf16.msra.mxu0 %v10380_v22  ;;  %v1331_v35 = vld [vmem:[#allocation11 + $0x60] sm:$0xff]  ;;  %v1325_v36 = vld [vmem:[#allocation11 + $0x30] sm:$0xff]  ;;  %v1340_v38 = vld [vmem:[#allocation11 + $0xa8] sm:$0xff]  ;;  %v10398_v40 = vpack.c.bf16 %v1334_v33, %v1326_v30 }
  0xc0   :  { %10389 = vmatpush1.bf16.msra.mxu1 %v10388_v24  ;;  %9181 = vmatprep.subr.msk.mxu0 %vm1366_vm0, %v1352_v25  ;;  %v1333_v37 = vld [vmem:[#allocation11 + $0x70] sm:$0xff]  ;;  %v1348_v41 = vld [vmem:[#allocation11 + $0xe8] sm:$0xff]  ;;  %v1342_v42 = vld [vmem:[#allocation11 + $0xb8] sm:$0xff]  ;;  %v10392_v44 = vpack.c.bf16 %v1331_v35, %v1323_v34 }
  0xc1   :  { %9185 = vmatprep.subr.msk.mxu1 %vm1366_vm0, %v1354_v26  ;;  %v1350_v43 = vld [vmem:[#allocation11 + $0xf8] sm:$0xff]  ;;  %v10400_v45 = vpack.c.bf16 %v1333_v37, %v1325_v36  ;;  %v10394_v46 = vpack.c.bf16 %v1348_v41, %v1340_v38  ;;  %v1339_v47 = vld [vmem:[#allocation11 + $0xa0] sm:$0xff]  ;;  %v1341_v50 = vld [vmem:[#allocation11 + $0xb0] sm:$0xff] }
  0xc2   :  { %v1347_v48 = vld [vmem:[#allocation11 + $0xe0] sm:$0xff]  ;;  %v10402_v49 = vpack.c.bf16 %v1350_v43, %v1342_v42  ;;  %v1349_v51 = vld [vmem:[#allocation11 + $0xf0] sm:$0xff]  ;;  %v1356_v55 = vld [vmem:[#allocation11 + $0x128] sm:$0x7] }
  0xc3   :  { %9182 = vmatpush1.msk.msra.mxu0 %vm1366_vm0, %v1351_v27  ;;  %v10396_v52 = vpack.c.bf16 %v1347_v48, %v1339_v47  ;;  %v11302_v53 = vld [vmem:[#allocation5 + $0x8] sm:$0xff]  ;;  %v10404_v54 = vpack.c.bf16 %v1349_v51, %v1341_v50  ;;  %v295_v57 = vld [vmem:[#allocation10] sm:$0xff] }
  0xc4   :  { %9186 = vmatpush1.msk.msra.mxu1 %vm1366_vm0, %v1353_v31  ;;  %9183 = vmatmul.mubr.msk.f32.vlgmr.msra.gmra.mrb[0].mxu0 %vm1359_vm1, %v11292_v32  ;;  %v1358_v56 = vld [vmem:[#allocation11 + $0x138] sm:$0x7]  ;;  %v299_v58 = vld [vmem:[#allocation10 + $0x20] sm:$0xff]  ;;  %v1357_v1 = vld [vmem:[#allocation11 + $0x130] sm:$0x7] }
  0xc5   :  { %10391 = vmatprep.subr.bf16.mxu0 %v10390_v39  ;;  %10399 = vmatprep.subr.bf16.mxu1 %v10398_v40  ;;  %v423_v59 = vld [vmem:[#allocation10 + $0x400] sm:$0xff]  ;;  %v9198_v2 = vcombine.high %v295_v57, %v299_v58  ;;  %v9197_v6 = vcombine.low %v295_v57, %v299_v58  ;;  %v168_v33 = vld [vmem:[#allocation2 + $0x8] sm:$0xff] }
  0xc6   :  { %9187 = vmatmul.mubr.msk.f32.vlgmr.msra.gmra.mrb[0].mxu1 %vm1359_vm1, %v11292_v32  ;;  %10393 = vmatpush1.bf16.msra.mxu0 %v10392_v44  ;;  %v427_v60 = vld [vmem:[#allocation10 + $0x420] sm:$0xff]  ;;  %v184_v34 = vld [vmem:[#allocation2 + $0x88] sm:$0xff] }
  0xc7   :  { %10401 = vmatpush1.bf16.msra.mxu1 %v10400_v45  ;;  %10395 = vmatprep.subr.bf16.mxu0 %v10394_v46  ;;  %v1355_v61 = vld [vmem:[#allocation11 + $0x120] sm:$0x7]  ;;  %v9326_v3 = vcombine.high %v423_v59, %v427_v60  ;;  %v9325_v7 = vcombine.low %v423_v59, %v427_v60  ;;  %v11326_v38 = vpack.c.bf16 %v184_v34, %v168_v33 }
  0xc8   :  { %10403 = vmatprep.subr.bf16.mxu1 %v10402_v49  ;;  %1461 = vmatprep.mubr.f32.mxu0 %v11077_v0  ;;  %v303_v62 = vld [vmem:[#allocation10 + $0x40] sm:$0xff] }
  0xc9   :  { %9184 = vmatmul.mubr.msk.f32.gmra.mrb[2].mxu0 %vm1359_vm1, %v11302_v53  ;;  %1538 = vmatprep.mubr.f32.mxu1 %v11077_v0  ;;  %v307_v63 = vld [vmem:[#allocation10 + $0x60] sm:$0xff] }
  0xca   :  { %10397 = vmatpush1.bf16.msra.mxu0 %v10396_v52  ;;  %9188 = vmatmul.mubr.msk.f32.gmra.mrb[2].mxu1 %vm1359_vm1, %v11302_v53  ;;  %v431_v4 = vld [vmem:[#allocation10 + $0x440] sm:$0xff]  ;;  %v9206_v8 = vcombine.high %v303_v62, %v307_v63  ;;  %v9205_v14 = vcombine.low %v303_v62, %v307_v63 }
  0xcb   :  { %10405 = vmatpush1.bf16.msra.mxu1 %v10404_v54  ;;  %9189 = vmatprep.subr.msk.mxu0 %vm1366_vm0, %v1356_v55  ;;  %v435_v5 = vld [vmem:[#allocation10 + $0x460] sm:$0xff] }
  0xcc   :  { %9193 = vmatprep.subr.msk.mxu1 %vm1366_vm0, %v1358_v56  ;;  %1609 = vmatprep.mubr.f32.mxu0 %v11077_v0  ;;  %v9334_v9 = vcombine.high %v431_v4, %v435_v5  ;;  %v311_v10 = vld [vmem:[#allocation10 + $0x80] sm:$0xff]  ;;  %v9333_v15 = vcombine.low %v431_v4, %v435_v5 }
  0xcd   :  { %1686 = vmatprep.mubr.f32.mxu1 %v11077_v0  ;;  %v315_v11 = vld [vmem:[#allocation10 + $0xa0] sm:$0xff] }
  0xce   :  { %9190 = vmatpush1.msk.msra.mxu0 %vm1366_vm0, %v1355_v61  ;;  %v439_v12 = vld [vmem:[#allocation10 + $0x480] sm:$0xff]  ;;  %v9214_v16 = vcombine.high %v311_v10, %v315_v11  ;;  %v9213_v22 = vcombine.low %v311_v10, %v315_v11 }
  0xcf   :  { %9194 = vmatpush1.msk.msra.mxu1 %vm1366_vm0, %v1357_v1  ;;  %9191 = vmatmul.mubr.msk.f32.vlgmr.msra.gmra.mrb[4].mxu0 %vm1359_vm1, %v11292_v32  ;;  %v443_v13 = vld [vmem:[#allocation10 + $0x4a0] sm:$0xff] }
  0xd0   :  { %6819 = vmatprep.subr.bf16.mxu0 %v9198_v2  ;;  %6862 = vmatprep.subr.bf16.mxu1 %v9326_v3  ;;  %v9342_v17 = vcombine.high %v439_v12, %v443_v13  ;;  %v319_v18 = vld [vmem:[#allocation10 + $0xc0] sm:$0xff]  ;;  %v9341_v23 = vcombine.low %v439_v12, %v443_v13 }
  0xd1   :  { %9195 = vmatmul.mubr.msk.f32.vlgmr.msra.gmra.mrb[4].mxu1 %vm1359_vm1, %v11292_v32  ;;  %6820 = vmatpush1.bf16.msra.mxu0 %v9197_v6  ;;  %v323_v19 = vld [vmem:[#allocation10 + $0xe0] sm:$0xff] }
  0xd2   :  { %6863 = vmatpush1.bf16.msra.mxu1 %v9325_v7  ;;  %6821 = vmatprep.subr.bf16.mxu0 %v9206_v8  ;;  %v447_v20 = vld [vmem:[#allocation10 + $0x4c0] sm:$0xff]  ;;  %v9222_v24 = vcombine.high %v319_v18, %v323_v19  ;;  %v9221_v30 = vcombine.low %v319_v18, %v323_v19 }
  0xd3   :  { %6864 = vmatprep.subr.bf16.mxu1 %v9334_v9  ;;  %v451_v21 = vld [vmem:[#allocation10 + $0x4e0] sm:$0xff]  ;;  %1615 = vmatprep.mubr.f32.mxu0 %v11077_v0 }
  0xd4   :  { %1692 = vmatprep.mubr.f32.mxu1 %v11077_v0  ;;  %v9350_v25 = vcombine.high %v447_v20, %v451_v21  ;;  %v327_v26 = vld [vmem:[#allocation10 + $0x100] sm:$0xff]  ;;  %9192 = vmatmul.mubr.msk.f32.gmra.mrb[6].mxu0 %vm1359_vm1, %v11302_v53  ;;  %v9349_v31 = vcombine.low %v447_v20, %v451_v21 }
  0xd5   :  { %6822 = vmatpush1.bf16.msra.mxu0 %v9205_v14  ;;  %v331_v27 = vld [vmem:[#allocation10 + $0x120] sm:$0xff]  ;;  %9196 = vmatmul.mubr.msk.f32.gmra.mrb[6].mxu1 %vm1359_vm1, %v11302_v53 }
  0xd6   :  { %6865 = vmatpush1.bf16.msra.mxu1 %v9333_v15  ;;  %6823 = vmatprep.subr.bf16.mxu0 %v9214_v16  ;;  %v455_v28 = vld [vmem:[#allocation10 + $0x500] sm:$0xff]  ;;  %v9230_v32 = vcombine.high %v327_v26, %v331_v27  ;;  %v9229_v43 = vcombine.low %v327_v26, %v331_v27 }
  0xd7   :  { %6866 = vmatprep.subr.bf16.mxu1 %v9342_v17  ;;  %v459_v29 = vld [vmem:[#allocation10 + $0x520] sm:$0xff]  ;;  %6851 = vmatprep.mubr.bf16.mxu0 %v11326_v38 }
  0xd8   :  { %v9358_v35 = vcombine.high %v455_v28, %v459_v29  ;;  %v335_v36 = vld [vmem:[#allocation10 + $0x140] sm:$0xff]  ;;  %v9357_v45 = vcombine.low %v455_v28, %v459_v29 }
  0xd9   :  { %6824 = vmatpush1.bf16.msra.mxu0 %v9213_v22  ;;  %v339_v37 = vld [vmem:[#allocation10 + $0x160] sm:$0xff] }
  0xda   :  { %6867 = vmatpush1.bf16.msra.mxu1 %v9341_v23  ;;  %6825 = vmatprep.subr.bf16.mxu0 %v9222_v24  ;;  %v170_v39 = vld [vmem:[#allocation2 + $0x18] sm:$0xff]  ;;  %v9238_v46 = vcombine.high %v335_v36, %v339_v37  ;;  %v9237_v52 = vcombine.low %v335_v36, %v339_v37 }
  0xdb   :  { %6868 = vmatprep.subr.bf16.mxu1 %v9350_v25  ;;  %v463_v40 = vld [vmem:[#allocation10 + $0x540] sm:$0xff] }
  0xdc   :  { %v467_v41 = vld [vmem:[#allocation10 + $0x560] sm:$0xff] }
  0xdd   :  { %v186_v42 = vld [vmem:[#allocation2 + $0x98] sm:$0xff]  ;;  %6826 = vmatpush1.bf16.msra.mxu0 %v9221_v30  ;;  %v9366_v47 = vcombine.high %v463_v40, %v467_v41  ;;  %v9365_v53 = vcombine.low %v463_v40, %v467_v41 }
  0xde   :  { %v11329_v44 = vpack.c.bf16 %v186_v42, %v170_v39  ;;  %6869 = vmatpush1.bf16.msra.mxu1 %v9349_v31  ;;  %6827 = vmatprep.subr.bf16.mxu0 %v9230_v32  ;;  %v343_v48 = vld [vmem:[#allocation10 + $0x180] sm:$0xff] }
  0xdf   :  { %6870 = vmatprep.subr.bf16.mxu1 %v9358_v35  ;;  %v347_v49 = vld [vmem:[#allocation10 + $0x1a0] sm:$0xff] }
  0xe0   :  { %6894 = vmatprep.mubr.bf16.mxu1 %v11329_v44  ;;  %v471_v50 = vld [vmem:[#allocation10 + $0x580] sm:$0xff]  ;;  %v9246_v54 = vcombine.high %v343_v48, %v347_v49  ;;  %v9245_v60 = vcombine.low %v343_v48, %v347_v49 }
  0xe1   :  { %v475_v51 = vld [vmem:[#allocation10 + $0x5a0] sm:$0xff]  ;;  %6828 = vmatpush1.bf16.msra.mxu0 %v9229_v43 }
  0xe2   :  { %6871 = vmatpush1.bf16.msra.mxu1 %v9357_v45  ;;  %6829 = vmatprep.subr.bf16.mxu0 %v9238_v46  ;;  %v9374_v55 = vcombine.high %v471_v50, %v475_v51  ;;  %v351_v56 = vld [vmem:[#allocation10 + $0x1c0] sm:$0xff]  ;;  %v9373_v61 = vcombine.low %v471_v50, %v475_v51 }
  0xe3   :  { %6872 = vmatprep.subr.bf16.mxu1 %v9366_v47  ;;  %v355_v57 = vld [vmem:[#allocation10 + $0x1e0] sm:$0xff] }
  0xe4   :  { %v479_v58 = vld [vmem:[#allocation10 + $0x5c0] sm:$0xff]  ;;  %v9254_v62 = vcombine.high %v351_v56, %v355_v57  ;;  %v9253_v5 = vcombine.low %v351_v56, %v355_v57 }
  0xe5   :  { %v483_v59 = vld [vmem:[#allocation10 + $0x5e0] sm:$0xff]  ;;  %6830 = vmatpush1.bf16.msra.mxu0 %v9237_v52 }
  0xe6   :  { %6873 = vmatpush1.bf16.msra.mxu1 %v9365_v53  ;;  %6831 = vmatprep.subr.bf16.mxu0 %v9246_v54  ;;  %v9382_v63 = vcombine.high %v479_v58, %v483_v59  ;;  %v359_v1 = vld [vmem:[#allocation10 + $0x200] sm:$0xff]  ;;  %v9381_v6 = vcombine.low %v479_v58, %v483_v59 }
  0xe7   :  { %6874 = vmatprep.subr.bf16.mxu1 %v9374_v55  ;;  %v363_v2 = vld [vmem:[#allocation10 + $0x220] sm:$0xff] }
  0xe8   :  { %v487_v3 = vld [vmem:[#allocation10 + $0x600] sm:$0xff]  ;;  %v9262_v7 = vcombine.high %v359_v1, %v363_v2  ;;  %v9261_v13 = vcombine.low %v359_v1, %v363_v2 }
  0xe9   :  { %v491_v4 = vld [vmem:[#allocation10 + $0x620] sm:$0xff]  ;;  %6832 = vmatpush1.bf16.msra.mxu0 %v9245_v60 }
  0xea   :  { %6875 = vmatpush1.bf16.msra.mxu1 %v9373_v61  ;;  %6833 = vmatprep.subr.bf16.mxu0 %v9254_v62  ;;  %v9390_v8 = vcombine.high %v487_v3, %v491_v4  ;;  %v367_v9 = vld [vmem:[#allocation10 + $0x240] sm:$0xff]  ;;  %v9389_v14 = vcombine.low %v487_v3, %v491_v4  ;;  %v296_v4 = vld [vmem:[#allocation10 + $0x8] sm:$0xff] }
  0xeb   :  { %6876 = vmatprep.subr.bf16.mxu1 %v9382_v63  ;;  %v371_v10 = vld [vmem:[#allocation10 + $0x260] sm:$0xff] }
  0xec   :  { %v495_v11 = vld [vmem:[#allocation10 + $0x640] sm:$0xff]  ;;  %v9270_v15 = vcombine.high %v367_v9, %v371_v10  ;;  %v9269_v21 = vcombine.low %v367_v9, %v371_v10  ;;  %v167_v9 = vld [vmem:[#allocation2] sm:$0xff] }
  0xed   :  { %v499_v12 = vld [vmem:[#allocation10 + $0x660] sm:$0xff]  ;;  %6834 = vmatpush1.bf16.msra.mxu0 %v9253_v5  ;;  %v300_v5 = vld [vmem:[#allocation10 + $0x28] sm:$0xff] }
  0xee   :  { %6877 = vmatpush1.bf16.msra.mxu1 %v9381_v6  ;;  %6835 = vmatprep.subr.bf16.mxu0 %v9262_v7  ;;  %v9398_v16 = vcombine.high %v495_v11, %v499_v12  ;;  %v375_v17 = vld [vmem:[#allocation10 + $0x280] sm:$0xff]  ;;  %v9397_v22 = vcombine.low %v495_v11, %v499_v12  ;;  %v183_v10 = vld [vmem:[#allocation2 + $0x80] sm:$0xff]  ;;  %v9200_v12 = vcombine.high %v296_v4, %v300_v5 }
  0xef   :  { %6878 = vmatprep.subr.bf16.mxu1 %v9390_v8  ;;  %v379_v18 = vld [vmem:[#allocation10 + $0x2a0] sm:$0xff] }
  0xf0   :  { %v503_v19 = vld [vmem:[#allocation10 + $0x680] sm:$0xff]  ;;  %v9278_v23 = vcombine.high %v375_v17, %v379_v18  ;;  %v9277_v29 = vcombine.low %v375_v17, %v379_v18  ;;  %v308_v17 = vld [vmem:[#allocation10 + $0x68] sm:$0xff]  ;;  %v11332_v18 = vpack.c.bf16 %v183_v10, %v167_v9 }
  0xf1   :  { %v507_v20 = vld [vmem:[#allocation10 + $0x6a0] sm:$0xff]  ;;  %6836 = vmatpush1.bf16.msra.mxu0 %v9261_v13  ;;  %v356_v9 = vld [vmem:[#allocation10 + $0x1e8] sm:$0xff] }
  0xf2   :  { %6879 = vmatpush1.bf16.msra.mxu1 %v9389_v14  ;;  %6837 = vmatprep.subr.bf16.mxu0 %v9270_v15  ;;  %v9406_v24 = vcombine.high %v503_v19, %v507_v20  ;;  %v383_v25 = vld [vmem:[#allocation10 + $0x2c0] sm:$0xff]  ;;  %v9405_v30 = vcombine.low %v503_v19, %v507_v20 }
  0xf3   :  { %6880 = vmatprep.subr.bf16.mxu1 %v9398_v16  ;;  %v387_v26 = vld [vmem:[#allocation10 + $0x2e0] sm:$0xff]  ;;  %v304_v16 = vld [vmem:[#allocation10 + $0x48] sm:$0xff] }
  0xf4   :  { %v511_v27 = vld [vmem:[#allocation10 + $0x6c0] sm:$0xff]  ;;  %v9286_v31 = vcombine.high %v383_v25, %v387_v26  ;;  %v9285_v37 = vcombine.low %v383_v25, %v387_v26  ;;  %v9208_v26 = vcombine.high %v304_v16, %v308_v17 }
  0xf5   :  { %v515_v28 = vld [vmem:[#allocation10 + $0x6e0] sm:$0xff]  ;;  %6838 = vmatpush1.bf16.msra.mxu0 %v9269_v21  ;;  %v9199_v21 = vcombine.low %v296_v4, %v300_v5 }
  0xf6   :  { %6881 = vmatpush1.bf16.msra.mxu1 %v9397_v22  ;;  %6839 = vmatprep.subr.bf16.mxu0 %v9278_v23  ;;  %v9414_v32 = vcombine.high %v511_v27, %v515_v28  ;;  %v391_v33 = vld [vmem:[#allocation10 + $0x300] sm:$0xff]  ;;  %v9413_v39 = vcombine.low %v511_v27, %v515_v28  ;;  %v172_v23 = vld [vmem:[#allocation2 + $0x28] sm:$0xff]  ;;  %v312_v28 = vld [vmem:[#allocation10 + $0x88] sm:$0xff] }
  0xf7   :  { %6882 = vmatprep.subr.bf16.mxu1 %v9406_v24  ;;  %v395_v34 = vld [vmem:[#allocation10 + $0x320] sm:$0xff]  ;;  %v188_v24 = vld [vmem:[#allocation2 + $0xa8] sm:$0xff] }
  0xf8   :  { %v519_v35 = vld [vmem:[#allocation10 + $0x700] sm:$0xff]  ;;  %v9294_v40 = vcombine.high %v391_v33, %v395_v34  ;;  %v9293_v47 = vcombine.low %v391_v33, %v395_v34  ;;  %v9207_v33 = vcombine.low %v304_v16, %v308_v17  ;;  %v360_v16 = vld [vmem:[#allocation10 + $0x208] sm:$0xff] }
  0xf9   :  { %v523_v36 = vld [vmem:[#allocation10 + $0x720] sm:$0xff]  ;;  %6840 = vmatpush1.bf16.msra.mxu0 %v9277_v29  ;;  %v316_v29 = vld [vmem:[#allocation10 + $0xa8] sm:$0xff] }
  0xfa   :  { %6883 = vmatpush1.bf16.msra.mxu1 %v9405_v30  ;;  %6841 = vmatprep.subr.bf16.mxu0 %v9286_v31  ;;  %v9422_v41 = vcombine.high %v519_v35, %v523_v36  ;;  %v399_v42 = vld [vmem:[#allocation10 + $0x340] sm:$0xff]  ;;  %v9421_v48 = vcombine.low %v519_v35, %v523_v36  ;;  %v9216_v35 = vcombine.high %v312_v28, %v316_v29  ;;  %v364_v17 = vld [vmem:[#allocation10 + $0x228] sm:$0xff] }
  0xfb   :  { %6884 = vmatprep.subr.bf16.mxu1 %v9414_v32  ;;  %v403_v43 = vld [vmem:[#allocation10 + $0x360] sm:$0xff]  ;;  %v11337_v32 = vpack.c.bf16 %v188_v24, %v172_v23  ;;  %v9264_v24 = vcombine.high %v360_v16, %v364_v17 }
  0xfc   :  { %v527_v45 = vld [vmem:[#allocation10 + $0x740] sm:$0xff]  ;;  %v9302_v49 = vcombine.high %v399_v42, %v403_v43  ;;  %v9301_v55 = vcombine.low %v399_v42, %v403_v43  ;;  %v9215_v42 = vcombine.low %v312_v28, %v316_v29 }
  0xfd   :  { %v531_v46 = vld [vmem:[#allocation10 + $0x760] sm:$0xff]  ;;  %6842 = vmatpush1.bf16.msra.mxu0 %v9285_v37  ;;  %v320_v37 = vld [vmem:[#allocation10 + $0xc8] sm:$0xff] }
  0xfe   :  { %6885 = vmatpush1.bf16.msra.mxu1 %v9413_v39  ;;  %6843 = vmatprep.subr.bf16.mxu0 %v9294_v40  ;;  %v9430_v50 = vcombine.high %v527_v45, %v531_v46  ;;  %v407_v51 = vld [vmem:[#allocation10 + $0x380] sm:$0xff]  ;;  %v9429_v56 = vcombine.low %v527_v45, %v531_v46  ;;  %v324_v39 = vld [vmem:[#allocation10 + $0xe8] sm:$0xff] }
  0xff   :  { %6886 = vmatprep.subr.bf16.mxu1 %v9422_v41  ;;  %v411_v52 = vld [vmem:[#allocation10 + $0x3a0] sm:$0xff]  ;;  %v9224_v45 = vcombine.high %v320_v37, %v324_v39 }
 0x100   :  { %v535_v53 = vld [vmem:[#allocation10 + $0x780] sm:$0xff]  ;;  %v9310_v57 = vcombine.high %v407_v51, %v411_v52  ;;  %v9309_v63 = vcombine.low %v407_v51, %v411_v52  ;;  %v9223_v51 = vcombine.low %v320_v37, %v324_v39 }
 0x101   :  { %v539_v54 = vld [vmem:[#allocation10 + $0x7a0] sm:$0xff]  ;;  %6844 = vmatpush1.bf16.msra.mxu0 %v9293_v47  ;;  %v328_v47 = vld [vmem:[#allocation10 + $0x108] sm:$0xff] }
 0x102   :  { %6887 = vmatpush1.bf16.msra.mxu1 %v9421_v48  ;;  %6845 = vmatprep.subr.bf16.mxu0 %v9302_v49  ;;  %v9438_v58 = vcombine.high %v535_v53, %v539_v54  ;;  %v415_v59 = vld [vmem:[#allocation10 + $0x3c0] sm:$0xff]  ;;  %v9437_v1 = vcombine.low %v535_v53, %v539_v54  ;;  %v332_v48 = vld [vmem:[#allocation10 + $0x128] sm:$0xff] }
 0x103   :  { %6888 = vmatprep.subr.bf16.mxu1 %v9430_v50  ;;  %v419_v60 = vld [vmem:[#allocation10 + $0x3e0] sm:$0xff]  ;;  %v9232_v53 = vcombine.high %v328_v47, %v332_v48 }
 0x104   :  { %v543_v61 = vld [vmem:[#allocation10 + $0x7c0] sm:$0xff]  ;;  %v9318_v2 = vcombine.high %v415_v59, %v419_v60  ;;  %v9317_v8 = vcombine.low %v415_v59, %v419_v60  ;;  %v9231_v59 = vcombine.low %v328_v47, %v332_v48 }
 0x105   :  { %v547_v62 = vld [vmem:[#allocation10 + $0x7e0] sm:$0xff]  ;;  %6846 = vmatpush1.bf16.msra.mxu0 %v9301_v55  ;;  %v336_v55 = vld [vmem:[#allocation10 + $0x148] sm:$0xff] }
 0x106   :  { %6889 = vmatpush1.bf16.msra.mxu1 %v9429_v56  ;;  %6847 = vmatprep.subr.bf16.mxu0 %v9310_v57  ;;  %v9446_v3 = vcombine.high %v543_v61, %v547_v62  ;;  %v551_v6 = vld [vmem:[#allocation10 + $0x800] sm:$0xff]  ;;  %v9445_v11 = vcombine.low %v543_v61, %v547_v62  ;;  %v340_v56 = vld [vmem:[#allocation10 + $0x168] sm:$0xff] }
 0x107   :  { %6890 = vmatprep.subr.bf16.mxu1 %v9438_v58  ;;  %v555_v7 = vld [vmem:[#allocation10 + $0x820] sm:$0xff]  ;;  %v9240_v61 = vcombine.high %v336_v55, %v340_v56  ;;  %v9239_v4 = vcombine.low %v336_v55, %v340_v56 }
 0x108   :  { %v169_v13 = vld [vmem:[#allocation2 + $0x10] sm:$0xff]  ;;  %v9454_v15 = vcombine.high %v551_v6, %v555_v7  ;;  %v9453_v25 = vcombine.low %v551_v6, %v555_v7 }
 0x109   :  { %6848 = vmatpush1.bf16.msra.mxu0 %v9309_v63  ;;  %v185_v14 = vld [vmem:[#allocation2 + $0x90] sm:$0xff]  ;;  %v344_v63 = vld [vmem:[#allocation10 + $0x188] sm:$0xff] }
 0x10a   :  { %6891 = vmatpush1.bf16.msra.mxu1 %v9437_v1  ;;  %6849 = vmatprep.subr.bf16.mxu0 %v9318_v2  ;;  %v559_v19 = vld [vmem:[#allocation10 + $0x840] sm:$0xff]  ;;  %v11334_v22 = vpack.c.bf16 %v185_v14, %v169_v13  ;;  %v348_v1 = vld [vmem:[#allocation10 + $0x1a8] sm:$0xff] }
 0x10b   :  { %6892 = vmatprep.subr.bf16.mxu1 %v9446_v3  ;;  %v563_v20 = vld [vmem:[#allocation10 + $0x860] sm:$0xff]  ;;  %v9248_v6 = vcombine.high %v344_v63, %v348_v1 }
 0x10c   :  { %v9462_v27 = vcombine.high %v559_v19, %v563_v20  ;;  %v567_v30 = vld [vmem:[#allocation10 + $0x880] sm:$0xff]  ;;  %v9461_v34 = vcombine.low %v559_v19, %v563_v20 }
 0x10d   :  { %6850 = vmatpush1.bf16.msra.mxu0 %v9317_v8  ;;  %v571_v31 = vld [vmem:[#allocation10 + $0x8a0] sm:$0xff]  ;;  %v352_v8 = vld [vmem:[#allocation10 + $0x1c8] sm:$0xff] }
 0x10e   :  { %6893 = vmatpush1.bf16.msra.mxu1 %v9445_v11  ;;  %7163 = vmatprep.subr.bf16.mxu0 %v9200_v12  ;;  %v9470_v36 = vcombine.high %v567_v30, %v571_v31  ;;  %v575_v40 = vld [vmem:[#allocation10 + $0x8c0] sm:$0xff]  ;;  %v9469_v43 = vcombine.low %v567_v30, %v571_v31  ;;  %v9247_v12 = vcombine.low %v344_v63, %v348_v1 }
 0x10f   :  { %6905 = vmatprep.subr.bf16.mxu1 %v9454_v15  ;;  %v579_v41 = vld [vmem:[#allocation10 + $0x8e0] sm:$0xff]  ;;  %v9256_v14 = vcombine.high %v352_v8, %v356_v9  ;;  %v9263_v30 = vcombine.low %v360_v16, %v364_v17 }
 0x110   :  { %6852 = vmatmul.mubr.bf16.vlgmr.msra.gmra.mrb[8].mxu0 %v11332_v18  ;;  %v9478_v46 = vcombine.high %v575_v40, %v579_v41  ;;  %v583_v49 = vld [vmem:[#allocation10 + $0x900] sm:$0xff]  ;;  %v9477_v52 = vcombine.low %v575_v40, %v579_v41 }
 0x111   :  { %6895 = vmatmul.mubr.bf16.vlgmr.msra.gmra.mrb[8].mxu1 %v11334_v22  ;;  %7164 = vmatpush1.bf16.msra.mxu0 %v9199_v21  ;;  %v587_v50 = vld [vmem:[#allocation10 + $0x920] sm:$0xff]  ;;  %v9255_v21 = vcombine.low %v352_v8, %v356_v9 }
 0x112   :  { %6906 = vmatpush1.bf16.msra.mxu1 %v9453_v25  ;;  %7165 = vmatprep.subr.bf16.mxu0 %v9208_v26  ;;  %v9486_v54 = vcombine.high %v583_v49, %v587_v50  ;;  %v591_v57 = vld [vmem:[#allocation10 + $0x940] sm:$0xff]  ;;  %v9485_v60 = vcombine.low %v583_v49, %v587_v50  ;;  %v368_v26 = vld [vmem:[#allocation10 + $0x248] sm:$0xff] }
 0x113   :  { %6907 = vmatprep.subr.bf16.mxu1 %v9462_v27  ;;  %7195 = vmatprep.mubr.bf16.mxu0 %v11326_v38  ;;  %v595_v58 = vld [vmem:[#allocation10 + $0x960] sm:$0xff]  ;;  %v372_v27 = vld [vmem:[#allocation10 + $0x268] sm:$0xff] }
 0x114   :  { %6937 = vmatprep.mubr.bf16.mxu1 %v11337_v32  ;;  %v9494_v62 = vcombine.high %v591_v57, %v595_v58  ;;  %v599_v2 = vld [vmem:[#allocation10 + $0x980] sm:$0xff]  ;;  %v9493_v5 = vcombine.low %v591_v57, %v595_v58  ;;  %v9271_v40 = vcombine.low %v368_v26, %v372_v27 }
 0x115   :  { %7166 = vmatpush1.bf16.msra.mxu0 %v9207_v33  ;;  %v603_v3 = vld [vmem:[#allocation10 + $0x9a0] sm:$0xff]  ;;  %v9272_v33 = vcombine.high %v368_v26, %v372_v27 }
 0x116   :  { %6908 = vmatpush1.bf16.msra.mxu1 %v9461_v34  ;;  %7167 = vmatprep.subr.bf16.mxu0 %v9216_v35  ;;  %v9502_v7 = vcombine.high %v599_v2, %v603_v3  ;;  %v607_v10 = vld [vmem:[#allocation10 + $0x9c0] sm:$0xff]  ;;  %v9501_v13 = vcombine.low %v599_v2, %v603_v3  ;;  %v376_v35 = vld [vmem:[#allocation10 + $0x288] sm:$0xff] }
 0x117   :  { %6909 = vmatprep.subr.bf16.mxu1 %v9470_v36  ;;  %v611_v11 = vld [vmem:[#allocation10 + $0x9e0] sm:$0xff]  ;;  %v380_v36 = vld [vmem:[#allocation10 + $0x2a8] sm:$0xff] }
 0x118   :  { %v9510_v15 = vcombine.high %v607_v10, %v611_v11  ;;  %v615_v19 = vld [vmem:[#allocation10 + $0xa00] sm:$0xff]  ;;  %v9509_v23 = vcombine.low %v607_v10, %v611_v11  ;;  %v9279_v49 = vcombine.low %v376_v35, %v380_v36 }
 0x119   :  { %7168 = vmatpush1.bf16.msra.mxu0 %v9215_v42  ;;  %v619_v20 = vld [vmem:[#allocation10 + $0xa20] sm:$0xff]  ;;  %v9280_v42 = vcombine.high %v376_v35, %v380_v36  ;;  %v432_v36 = vld [vmem:[#allocation10 + $0x448] sm:$0xff] }
 0x11a   :  { %6910 = vmatpush1.bf16.msra.mxu1 %v9469_v43  ;;  %7169 = vmatprep.subr.bf16.mxu0 %v9224_v45  ;;  %v9518_v25 = vcombine.high %v615_v19, %v619_v20  ;;  %v623_v28 = vld [vmem:[#allocation10 + $0xa40] sm:$0xff]  ;;  %v9517_v31 = vcombine.low %v615_v19, %v619_v20  ;;  %v384_v45 = vld [vmem:[#allocation10 + $0x2c8] sm:$0xff] }
 0x11b   :  { %6911 = vmatprep.subr.bf16.mxu1 %v9478_v46  ;;  %v627_v29 = vld [vmem:[#allocation10 + $0xa60] sm:$0xff]  ;;  %v388_v46 = vld [vmem:[#allocation10 + $0x2e8] sm:$0xff] }
 0x11c   :  { %v9526_v34 = vcombine.high %v623_v28, %v627_v29  ;;  %v631_v37 = vld [vmem:[#allocation10 + $0xa80] sm:$0xff]  ;;  %v9525_v41 = vcombine.low %v623_v28, %v627_v29  ;;  %v9287_v57 = vcombine.low %v384_v45, %v388_v46 }
 0x11d   :  { %7170 = vmatpush1.bf16.msra.mxu0 %v9223_v51  ;;  %v635_v39 = vld [vmem:[#allocation10 + $0xaa0] sm:$0xff]  ;;  %v9288_v51 = vcombine.high %v384_v45, %v388_v46 }
 0x11e   :  { %6912 = vmatpush1.bf16.msra.mxu1 %v9477_v52  ;;  %7171 = vmatprep.subr.bf16.mxu0 %v9232_v53  ;;  %v9534_v43 = vcombine.high %v631_v37, %v635_v39  ;;  %v639_v47 = vld [vmem:[#allocation10 + $0xac0] sm:$0xff]  ;;  %v9533_v50 = vcombine.low %v631_v37, %v635_v39  ;;  %v392_v53 = vld [vmem:[#allocation10 + $0x308] sm:$0xff] }
 0x11f   :  { %6913 = vmatprep.subr.bf16.mxu1 %v9486_v54  ;;  %v643_v48 = vld [vmem:[#allocation10 + $0xae0] sm:$0xff]  ;;  %v396_v54 = vld [vmem:[#allocation10 + $0x328] sm:$0xff] }
 0x120   :  { %v9542_v52 = vcombine.high %v639_v47, %v643_v48  ;;  %v647_v55 = vld [vmem:[#allocation10 + $0xb00] sm:$0xff]  ;;  %v9541_v58 = vcombine.low %v639_v47, %v643_v48  ;;  %v9295_v2 = vcombine.low %v392_v53, %v396_v54  ;;  %v436_v37 = vld [vmem:[#allocation10 + $0x468] sm:$0xff] }
 0x121   :  { %7172 = vmatpush1.bf16.msra.mxu0 %v9231_v59  ;;  %v651_v56 = vld [vmem:[#allocation10 + $0xb20] sm:$0xff]  ;;  %v9296_v59 = vcombine.high %v392_v53, %v396_v54  ;;  %v9336_v46 = vcombine.high %v432_v36, %v436_v37  ;;  %v440_v48 = vld [vmem:[#allocation10 + $0x488] sm:$0xff]  ;;  %v9335_v53 = vcombine.low %v432_v36, %v436_v37 }
 0x122   :  { %6914 = vmatpush1.bf16.msra.mxu1 %v9485_v60  ;;  %7173 = vmatprep.subr.bf16.mxu0 %v9240_v61  ;;  %v9550_v60 = vcombine.high %v647_v55, %v651_v56  ;;  %v400_v61 = vld [vmem:[#allocation10 + $0x348] sm:$0xff]  ;;  %v655_v63 = vld [vmem:[#allocation10 + $0xb40] sm:$0xff]  ;;  %v9549_v3 = vcombine.low %v647_v55, %v651_v56 }
 0x123   :  { %6915 = vmatprep.subr.bf16.mxu1 %v9494_v62  ;;  %v404_v62 = vld [vmem:[#allocation10 + $0x368] sm:$0xff]  ;;  %v659_v1 = vld [vmem:[#allocation10 + $0xb60] sm:$0xff] }
 0x124   :  { %v663_v8 = vld [vmem:[#allocation10 + $0xb80] sm:$0xff]  ;;  %v9303_v10 = vcombine.low %v400_v61, %v404_v62  ;;  %v9557_v11 = vcombine.low %v655_v63, %v659_v1  ;;  %v488_v37 = vld [vmem:[#allocation10 + $0x608] sm:$0xff] }
 0x125   :  { %7174 = vmatpush1.bf16.msra.mxu0 %v9239_v4  ;;  %v9304_v4 = vcombine.high %v400_v61, %v404_v62  ;;  %v667_v9 = vld [vmem:[#allocation10 + $0xba0] sm:$0xff] }
 0x126   :  { %6916 = vmatpush1.bf16.msra.mxu1 %v9493_v5  ;;  %7175 = vmatprep.subr.bf16.mxu0 %v9248_v6  ;;  %v9558_v5 = vcombine.high %v655_v63, %v659_v1  ;;  %v408_v6 = vld [vmem:[#allocation10 + $0x388] sm:$0xff]  ;;  %v671_v16 = vld [vmem:[#allocation10 + $0xbc0] sm:$0xff]  ;;  %v9565_v20 = vcombine.low %v663_v8, %v667_v9 }
 0x127   :  { %6917 = vmatprep.subr.bf16.mxu1 %v9502_v7  ;;  %v412_v7 = vld [vmem:[#allocation10 + $0x3a8] sm:$0xff]  ;;  %v675_v17 = vld [vmem:[#allocation10 + $0xbe0] sm:$0xff] }
 0x128   :  { %v9311_v19 = vcombine.low %v408_v6, %v412_v7  ;;  %v679_v26 = vld [vmem:[#allocation10 + $0xc00] sm:$0xff]  ;;  %v9573_v29 = vcombine.low %v671_v16, %v675_v17 }
 0x129   :  { %7176 = vmatpush1.bf16.msra.mxu0 %v9247_v12  ;;  %v9312_v12 = vcombine.high %v408_v6, %v412_v7  ;;  %v683_v27 = vld [vmem:[#allocation10 + $0xc20] sm:$0xff] }
 0x12a   :  { %6918 = vmatpush1.bf16.msra.mxu1 %v9501_v13  ;;  %7177 = vmatprep.subr.bf16.mxu0 %v9256_v14  ;;  %v9566_v13 = vcombine.high %v663_v8, %v667_v9  ;;  %v416_v14 = vld [vmem:[#allocation10 + $0x3c8] sm:$0xff]  ;;  %v687_v35 = vld [vmem:[#allocation10 + $0xc40] sm:$0xff]  ;;  %v9581_v45 = vcombine.low %v679_v26, %v683_v27 }
 0x12b   :  { %6919 = vmatprep.subr.bf16.mxu1 %v9510_v15  ;;  %v420_v15 = vld [vmem:[#allocation10 + $0x3e8] sm:$0xff]  ;;  %v691_v39 = vld [vmem:[#allocation10 + $0xc60] sm:$0xff] }
 0x12c   :  { %v9319_v28 = vcombine.low %v416_v14, %v420_v15  ;;  %v9590_v47 = vcombine.high %v687_v35, %v691_v39  ;;  %v9589_v54 = vcombine.low %v687_v35, %v691_v39  ;;  %v492_v39 = vld [vmem:[#allocation10 + $0x628] sm:$0xff] }
 0x12d   :  { %7178 = vmatpush1.bf16.msra.mxu0 %v9255_v21  ;;  %v9320_v21 = vcombine.high %v416_v14, %v420_v15 }
 0x12e   :  { %6920 = vmatpush1.bf16.msra.mxu1 %v9509_v23  ;;  %7179 = vmatprep.subr.bf16.mxu0 %v9264_v24  ;;  %v9574_v23 = vcombine.high %v671_v16, %v675_v17  ;;  %v424_v24 = vld [vmem:[#allocation10 + $0x408] sm:$0xff] }
 0x12f   :  { %6921 = vmatprep.subr.bf16.mxu1 %v9518_v25  ;;  %v428_v25 = vld [vmem:[#allocation10 + $0x428] sm:$0xff] }
 0x131   :  { %7180 = vmatpush1.bf16.msra.mxu0 %v9263_v30  ;;  %v9328_v30 = vcombine.high %v424_v24, %v428_v25 }
 0x132   :  { %6922 = vmatpush1.bf16.msra.mxu1 %v9517_v31  ;;  %7181 = vmatprep.subr.bf16.mxu0 %v9272_v33  ;;  %v171_v31 = vld [vmem:[#allocation2 + $0x20] sm:$0xff] }
 0x133   :  { %6923 = vmatprep.subr.bf16.mxu1 %v9526_v34  ;;  %v187_v33 = vld [vmem:[#allocation2 + $0xa0] sm:$0xff]  ;;  %v9582_v34 = vcombine.high %v679_v26, %v683_v27 }
 0x135   :  { %7182 = vmatpush1.bf16.msra.mxu0 %v9271_v40  ;;  %v174_v40 = vld [vmem:[#allocation2 + $0x38] sm:$0xff] }
 0x136   :  { %6924 = vmatpush1.bf16.msra.mxu1 %v9525_v41  ;;  %7183 = vmatprep.subr.bf16.mxu0 %v9280_v42  ;;  %v190_v41 = vld [vmem:[#allocation2 + $0xb8] sm:$0xff]  ;;  %v9327_v42 = vcombine.low %v424_v24, %v428_v25 }
 0x137   :  { %6925 = vmatprep.subr.bf16.mxu1 %v9534_v43  ;;  %v11342_v43 = vpack.c.bf16 %v187_v33, %v171_v31  ;;  %v739_v31 = vld [vmem:[#allocation10 + $0xde0] sm:$0xff] }
 0x139   :  { %7184 = vmatpush1.bf16.msra.mxu0 %v9279_v49  ;;  %v444_v49 = vld [vmem:[#allocation10 + $0x4a8] sm:$0xff] }
 0x13a   :  { %6926 = vmatpush1.bf16.msra.mxu1 %v9533_v50  ;;  %7185 = vmatprep.subr.bf16.mxu0 %v9288_v51  ;;  %v11344_v50 = vpack.c.bf16 %v190_v41, %v174_v40  ;;  %v695_v51 = vld [vmem:[#allocation10 + $0xc80] sm:$0xff]  ;;  %v9344_v55 = vcombine.high %v440_v48, %v444_v49  ;;  %v9343_v61 = vcombine.low %v440_v48, %v444_v49  ;;  %v496_v48 = vld [vmem:[#allocation10 + $0x648] sm:$0xff] }
 0x13b   :  { %6927 = vmatprep.subr.bf16.mxu1 %v9542_v52  ;;  %v699_v52 = vld [vmem:[#allocation10 + $0xca0] sm:$0xff]  ;;  %v500_v49 = vld [vmem:[#allocation10 + $0x668] sm:$0xff] }
 0x13c   :  { %v9598_v56 = vcombine.high %v695_v51, %v699_v52  ;;  %v9597_v62 = vcombine.low %v695_v51, %v699_v52  ;;  %v743_v40 = vld [vmem:[#allocation10 + $0xe00] sm:$0xff] }
 0x13d   :  { %7186 = vmatpush1.bf16.msra.mxu0 %v9287_v57  ;;  %v448_v57 = vld [vmem:[#allocation10 + $0x4c8] sm:$0xff]  ;;  %v747_v41 = vld [vmem:[#allocation10 + $0xe20] sm:$0xff] }
 0x13e   :  { %6928 = vmatpush1.bf16.msra.mxu1 %v9541_v58  ;;  %7187 = vmatprep.subr.bf16.mxu0 %v9296_v59  ;;  %v452_v58 = vld [vmem:[#allocation10 + $0x4e8] sm:$0xff]  ;;  %v703_v59 = vld [vmem:[#allocation10 + $0xcc0] sm:$0xff] }
 0x13f   :  { %6929 = vmatprep.subr.bf16.mxu1 %v9550_v60  ;;  %v707_v60 = vld [vmem:[#allocation10 + $0xce0] sm:$0xff]  ;;  %v9352_v63 = vcombine.high %v448_v57, %v452_v58  ;;  %v9351_v6 = vcombine.low %v448_v57, %v452_v58  ;;  %v504_v57 = vld [vmem:[#allocation10 + $0x688] sm:$0xff] }
 0x140   :  { %v9606_v1 = vcombine.high %v703_v59, %v707_v60  ;;  %v9605_v7 = vcombine.low %v703_v59, %v707_v60  ;;  %v751_v51 = vld [vmem:[#allocation10 + $0xe40] sm:$0xff]  ;;  %v508_v58 = vld [vmem:[#allocation10 + $0x6a8] sm:$0xff] }
 0x141   :  { %7188 = vmatpush1.bf16.msra.mxu0 %v9295_v2  ;;  %v456_v2 = vld [vmem:[#allocation10 + $0x508] sm:$0xff]  ;;  %v755_v52 = vld [vmem:[#allocation10 + $0xe60] sm:$0xff] }
 0x142   :  { %6930 = vmatpush1.bf16.msra.mxu1 %v9549_v3  ;;  %7189 = vmatprep.subr.bf16.mxu0 %v9304_v4  ;;  %v460_v3 = vld [vmem:[#allocation10 + $0x528] sm:$0xff]  ;;  %v711_v4 = vld [vmem:[#allocation10 + $0xd00] sm:$0xff] }
 0x143   :  { %6931 = vmatprep.subr.bf16.mxu1 %v9558_v5  ;;  %v715_v5 = vld [vmem:[#allocation10 + $0xd20] sm:$0xff]  ;;  %v9360_v8 = vcombine.high %v456_v2, %v460_v3  ;;  %v9359_v14 = vcombine.low %v456_v2, %v460_v3  ;;  %v512_v2 = vld [vmem:[#allocation10 + $0x6c8] sm:$0xff] }
 0x144   :  { %v9614_v9 = vcombine.high %v711_v4, %v715_v5  ;;  %v9613_v15 = vcombine.low %v711_v4, %v715_v5  ;;  %v759_v59 = vld [vmem:[#allocation10 + $0xe80] sm:$0xff]  ;;  %v516_v3 = vld [vmem:[#allocation10 + $0x6e8] sm:$0xff] }
 0x145   :  { %7190 = vmatpush1.bf16.msra.mxu0 %v9303_v10  ;;  %v464_v10 = vld [vmem:[#allocation10 + $0x548] sm:$0xff]  ;;  %v763_v60 = vld [vmem:[#allocation10 + $0xea0] sm:$0xff] }
 0x146   :  { %6932 = vmatpush1.bf16.msra.mxu1 %v9557_v11  ;;  %7191 = vmatprep.subr.bf16.mxu0 %v9312_v12  ;;  %v468_v11 = vld [vmem:[#allocation10 + $0x568] sm:$0xff]  ;;  %v719_v12 = vld [vmem:[#allocation10 + $0xd40] sm:$0xff] }
 0x147   :  { %6933 = vmatprep.subr.bf16.mxu1 %v9566_v13  ;;  %v723_v13 = vld [vmem:[#allocation10 + $0xd60] sm:$0xff]  ;;  %v9368_v16 = vcombine.high %v464_v10, %v468_v11  ;;  %v9367_v24 = vcombine.low %v464_v10, %v468_v11  ;;  %v520_v10 = vld [vmem:[#allocation10 + $0x708] sm:$0xff] }
 0x148   :  { %v9622_v17 = vcombine.high %v719_v12, %v723_v13  ;;  %v9621_v25 = vcombine.low %v719_v12, %v723_v13  ;;  %v767_v4 = vld [vmem:[#allocation10 + $0xec0] sm:$0xff]  ;;  %v524_v11 = vld [vmem:[#allocation10 + $0x728] sm:$0xff] }
 0x149   :  { %7192 = vmatpush1.bf16.msra.mxu0 %v9311_v19  ;;  %v472_v19 = vld [vmem:[#allocation10 + $0x588] sm:$0xff]  ;;  %v771_v5 = vld [vmem:[#allocation10 + $0xee0] sm:$0xff] }
 0x14a   :  { %6934 = vmatpush1.bf16.msra.mxu1 %v9565_v20  ;;  %7193 = vmatprep.subr.bf16.mxu0 %v9320_v21  ;;  %v476_v20 = vld [vmem:[#allocation10 + $0x5a8] sm:$0xff]  ;;  %v727_v21 = vld [vmem:[#allocation10 + $0xd80] sm:$0xff] }
 0x14b   :  { %6935 = vmatprep.subr.bf16.mxu1 %v9574_v23  ;;  %v731_v23 = vld [vmem:[#allocation10 + $0xda0] sm:$0xff]  ;;  %v9376_v26 = vcombine.high %v472_v19, %v476_v20  ;;  %v9375_v33 = vcombine.low %v472_v19, %v476_v20  ;;  %v528_v19 = vld [vmem:[#allocation10 + $0x748] sm:$0xff] }
 0x14c   :  { %v9630_v27 = vcombine.high %v727_v21, %v731_v23  ;;  %v775_v12 = vld [vmem:[#allocation10 + $0xf00] sm:$0xff]  ;;  %v532_v20 = vld [vmem:[#allocation10 + $0x768] sm:$0xff] }
 0x14d   :  { %7194 = vmatpush1.bf16.msra.mxu0 %v9319_v28  ;;  %v480_v28 = vld [vmem:[#allocation10 + $0x5c8] sm:$0xff]  ;;  %v779_v13 = vld [vmem:[#allocation10 + $0xf20] sm:$0xff] }
 0x14e   :  { %6936 = vmatpush1.bf16.msra.mxu1 %v9573_v29  ;;  %7206 = vmatprep.subr.bf16.mxu0 %v9328_v30  ;;  %v484_v29 = vld [vmem:[#allocation10 + $0x5e8] sm:$0xff]  ;;  %v735_v30 = vld [vmem:[#allocation10 + $0xdc0] sm:$0xff] }
 0x14f   :  { %6948 = vmatprep.subr.bf16.mxu1 %v9582_v34  ;;  %v9629_v34 = vcombine.low %v727_v21, %v731_v23  ;;  %v9384_v35 = vcombine.high %v480_v28, %v484_v29  ;;  %v9638_v36 = vcombine.high %v735_v30, %v739_v31  ;;  %v783_v21 = vld [vmem:[#allocation10 + $0xf40] sm:$0xff] }
 0x150   :  { %7196 = vmatmul.mubr.bf16.vlgmr.msra.gmra.mrb[12].mxu0 %v11332_v18  ;;  %v787_v23 = vld [vmem:[#allocation10 + $0xf60] sm:$0xff] }
 0x151   :  { %6938 = vmatmul.mubr.bf16.vlgmr.msra.gmra.mrb[8].mxu1 %v11342_v43  ;;  %7207 = vmatpush1.bf16.msra.mxu0 %v9327_v42  ;;  %v9383_v42 = vcombine.low %v480_v28, %v484_v29  ;;  %v536_v28 = vld [vmem:[#allocation10 + $0x788] sm:$0xff] }
 0x152   :  { %6949 = vmatpush1.bf16.msra.mxu1 %v9581_v45  ;;  %7208 = vmatprep.subr.bf16.mxu0 %v9336_v46  ;;  %v9637_v45 = vcombine.low %v735_v30, %v739_v31  ;;  %v9392_v46 = vcombine.high %v488_v37, %v492_v39  ;;  %v540_v29 = vld [vmem:[#allocation10 + $0x7a8] sm:$0xff]  ;;  %v791_v30 = vld [vmem:[#allocation10 + $0xf80] sm:$0xff] }
 0x153   :  { %6950 = vmatprep.subr.bf16.mxu1 %v9590_v47  ;;  %6980 = vmatprep.mubr.bf16.mxu1 %v11344_v50  ;;  %v9646_v47 = vcombine.high %v743_v40, %v747_v41  ;;  %v795_v31 = vld [vmem:[#allocation10 + $0xfa0] sm:$0xff] }
 0x154   :  { %7238 = vmatprep.mubr.bf16.mxu0 %v11329_v44 }
 0x155   :  { %7209 = vmatpush1.bf16.msra.mxu0 %v9335_v53  ;;  %v9391_v53 = vcombine.low %v488_v37, %v492_v39  ;;  %v544_v37 = vld [vmem:[#allocation10 + $0x7c8] sm:$0xff] }
 0x156   :  { %6951 = vmatpush1.bf16.msra.mxu1 %v9589_v54  ;;  %7210 = vmatprep.subr.bf16.mxu0 %v9344_v55  ;;  %v9645_v54 = vcombine.low %v743_v40, %v747_v41  ;;  %v9400_v55 = vcombine.high %v496_v48, %v500_v49  ;;  %v548_v39 = vld [vmem:[#allocation10 + $0x7e8] sm:$0xff]  ;;  %v799_v40 = vld [vmem:[#allocation10 + $0xfc0] sm:$0xff] }
 0x157   :  { %6952 = vmatprep.subr.bf16.mxu1 %v9598_v56  ;;  %v9654_v56 = vcombine.high %v751_v51, %v755_v52  ;;  %v803_v41 = vld [vmem:[#allocation10 + $0xfe0] sm:$0xff] }
 0x159   :  { %7211 = vmatpush1.bf16.msra.mxu0 %v9343_v61  ;;  %v9399_v61 = vcombine.low %v496_v48, %v500_v49  ;;  %v552_v48 = vld [vmem:[#allocation10 + $0x808] sm:$0xff] }
 0x15a   :  { %6953 = vmatpush1.bf16.msra.mxu1 %v9597_v62  ;;  %7212 = vmatprep.subr.bf16.mxu0 %v9352_v63  ;;  %v9653_v62 = vcombine.low %v751_v51, %v755_v52  ;;  %v9408_v63 = vcombine.high %v504_v57, %v508_v58  ;;  %v556_v49 = vld [vmem:[#allocation10 + $0x828] sm:$0xff]  ;;  %v807_v51 = vld [vmem:[#allocation10 + $0x1000] sm:$0xff] }
 0x15b   :  { %6954 = vmatprep.subr.bf16.mxu1 %v9606_v1  ;;  %v9662_v1 = vcombine.high %v759_v59, %v763_v60  ;;  %v811_v52 = vld [vmem:[#allocation10 + $0x1020] sm:$0xff] }
 0x15d   :  { %7213 = vmatpush1.bf16.msra.mxu0 %v9351_v6  ;;  %v9407_v6 = vcombine.low %v504_v57, %v508_v58  ;;  %v189_v57 = vld [vmem:[#allocation2 + $0xb0] sm:$0xff]  ;;  %v9710_v58 = vcombine.high %v807_v51, %v811_v52 }
 0x15e   :  { %6955 = vmatpush1.bf16.msra.mxu1 %v9605_v7  ;;  %7214 = vmatprep.subr.bf16.mxu0 %v9360_v8  ;;  %v9661_v7 = vcombine.low %v759_v59, %v763_v60  ;;  %v9416_v8 = vcombine.high %v512_v2, %v516_v3  ;;  %v815_v59 = vld [vmem:[#allocation10 + $0x1040] sm:$0xff]  ;;  %v560_v60 = vld [vmem:[#allocation10 + $0x848] sm:$0xff] }
 0x15f   :  { %6956 = vmatprep.subr.bf16.mxu1 %v9614_v9  ;;  %v9670_v9 = vcombine.high %v767_v4, %v771_v5 }
 0x161   :  { %7215 = vmatpush1.bf16.msra.mxu0 %v9359_v14  ;;  %v9415_v14 = vcombine.low %v512_v2, %v516_v3  ;;  %v9455_v2 = vcombine.low %v552_v48, %v556_v49 }
 0x162   :  { %6957 = vmatpush1.bf16.msra.mxu1 %v9613_v15  ;;  %7216 = vmatprep.subr.bf16.mxu0 %v9368_v16  ;;  %v9669_v15 = vcombine.low %v767_v4, %v771_v5  ;;  %v9424_v16 = vcombine.high %v520_v10, %v524_v11  ;;  %v9709_v4 = vcombine.low %v807_v51, %v811_v52 }
 0x163   :  { %6958 = vmatprep.subr.bf16.mxu1 %v9622_v17  ;;  %v9678_v17 = vcombine.high %v775_v12, %v779_v13 }
 0x165   :  { %7217 = vmatpush1.bf16.msra.mxu0 %v9367_v24  ;;  %v9423_v24 = vcombine.low %v520_v10, %v524_v11  ;;  %v823_v10 = vld [vmem:[#allocation10 + $0x1080] sm:$0xff] }
 0x166   :  { %6959 = vmatpush1.bf16.msra.mxu1 %v9621_v25  ;;  %7218 = vmatprep.subr.bf16.mxu0 %v9376_v26  ;;  %v9677_v25 = vcombine.low %v775_v12, %v779_v13  ;;  %v9432_v26 = vcombine.high %v528_v19, %v532_v20  ;;  %v827_v11 = vld [vmem:[#allocation10 + $0x10a0] sm:$0xff] }
 0x167   :  { %6960 = vmatprep.subr.bf16.mxu1 %v9630_v27  ;;  %v9686_v27 = vcombine.high %v783_v21, %v787_v23 }
 0x169   :  { %7219 = vmatpush1.bf16.msra.mxu0 %v9375_v33  ;;  %v9431_v33 = vcombine.low %v528_v19, %v532_v20  ;;  %v831_v19 = vld [vmem:[#allocation10 + $0x10c0] sm:$0xff] }
 0x16a   :  { %6961 = vmatpush1.bf16.msra.mxu1 %v9629_v34  ;;  %7220 = vmatprep.subr.bf16.mxu0 %v9384_v35  ;;  %v9685_v34 = vcombine.low %v783_v21, %v787_v23  ;;  %v9440_v35 = vcombine.high %v536_v28, %v540_v29  ;;  %v835_v20 = vld [vmem:[#allocation10 + $0x10e0] sm:$0xff]  ;;  %v9725_v23 = vcombine.low %v823_v10, %v827_v11 }
 0x16b   :  { %6962 = vmatprep.subr.bf16.mxu1 %v9638_v36  ;;  %v9694_v36 = vcombine.high %v791_v30, %v795_v31 }
 0x16d   :  { %7221 = vmatpush1.bf16.msra.mxu0 %v9383_v42  ;;  %v9439_v42 = vcombine.low %v536_v28, %v540_v29  ;;  %v588_v28 = vld [vmem:[#allocation10 + $0x928] sm:$0xff] }
 0x16e   :  { %6963 = vmatpush1.bf16.msra.mxu1 %v9637_v45  ;;  %7222 = vmatprep.subr.bf16.mxu0 %v9392_v46  ;;  %v9693_v45 = vcombine.low %v791_v30, %v795_v31  ;;  %v9448_v46 = vcombine.high %v544_v37, %v548_v39  ;;  %v839_v30 = vld [vmem:[#allocation10 + $0x1100] sm:$0xff] }
 0x16f   :  { %6964 = vmatprep.subr.bf16.mxu1 %v9646_v47  ;;  %v9702_v47 = vcombine.high %v799_v40, %v803_v41  ;;  %v843_v31 = vld [vmem:[#allocation10 + $0x1120] sm:$0xff] }
 0x170   :  { %v9741_v51 = vcombine.low %v839_v30, %v843_v31 }
 0x171   :  { %7223 = vmatpush1.bf16.msra.mxu0 %v9391_v53  ;;  %v9447_v53 = vcombine.low %v544_v37, %v548_v39  ;;  %v9742_v39 = vcombine.high %v839_v30, %v843_v31  ;;  %v879_v30 = vld [vmem:[#allocation10 + $0x1240] sm:$0xff] }
 0x172   :  { %6965 = vmatpush1.bf16.msra.mxu1 %v9645_v54  ;;  %7224 = vmatprep.subr.bf16.mxu0 %v9400_v55  ;;  %v9701_v54 = vcombine.low %v799_v40, %v803_v41  ;;  %v9456_v55 = vcombine.high %v552_v48, %v556_v49  ;;  %v592_v40 = vld [vmem:[#allocation10 + $0x948] sm:$0xff]  ;;  %v883_v31 = vld [vmem:[#allocation10 + $0x1260] sm:$0xff] }
 0x173   :  { %6966 = vmatprep.subr.bf16.mxu1 %v9654_v56  ;;  %v173_v56 = vld [vmem:[#allocation2 + $0x30] sm:$0xff]  ;;  %v596_v41 = vld [vmem:[#allocation10 + $0x968] sm:$0xff] }
 0x174   :  { %v11350_v3 = vpack.c.bf16 %v189_v57, %v173_v56  ;;  %v604_v56 = vld [vmem:[#allocation10 + $0x9a8] sm:$0xff]  ;;  %v855_v57 = vld [vmem:[#allocation10 + $0x1180] sm:$0xff] }
 0x175   :  { %7225 = vmatpush1.bf16.msra.mxu0 %v9399_v61  ;;  %v564_v61 = vld [vmem:[#allocation10 + $0x868] sm:$0xff] }
 0x176   :  { %6967 = vmatpush1.bf16.msra.mxu1 %v9653_v62  ;;  %7226 = vmatprep.subr.bf16.mxu0 %v9408_v63  ;;  %v819_v62 = vld [vmem:[#allocation10 + $0x1060] sm:$0xff]  ;;  %v176_v63 = vld [vmem:[#allocation2 + $0x48] sm:$0xff]  ;;  %v9464_v5 = vcombine.high %v560_v60, %v564_v61  ;;  %v9463_v12 = vcombine.low %v560_v60, %v564_v61 }
 0x177   :  { %6968 = vmatprep.subr.bf16.mxu1 %v9662_v1  ;;  %v192_v1 = vld [vmem:[#allocation2 + $0xc8] sm:$0xff]  ;;  %v9717_v13 = vcombine.low %v815_v59, %v819_v62 }
 0x179   :  { %7227 = vmatpush1.bf16.msra.mxu0 %v9407_v6  ;;  %v9718_v6 = vcombine.high %v815_v59, %v819_v62  ;;  %v9495_v59 = vcombine.low %v592_v40, %v596_v41 }
 0x17a   :  { %6969 = vmatpush1.bf16.msra.mxu1 %v9661_v7  ;;  %7228 = vmatprep.subr.bf16.mxu0 %v9416_v8  ;;  %v568_v7 = vld [vmem:[#allocation10 + $0x888] sm:$0xff] }
 0x17b   :  { %6970 = vmatprep.subr.bf16.mxu1 %v9670_v9  ;;  %v572_v8 = vld [vmem:[#allocation10 + $0x8a8] sm:$0xff]  ;;  %v11352_v9 = vpack.c.bf16 %v192_v1, %v176_v63 }
 0x17c   :  { %v9471_v21 = vcombine.low %v568_v7, %v572_v8 }
 0x17d   :  { %7229 = vmatpush1.bf16.msra.mxu0 %v9415_v14  ;;  %v9472_v14 = vcombine.high %v568_v7, %v572_v8  ;;  %v867_v7 = vld [vmem:[#allocation10 + $0x11e0] sm:$0xff] }
 0x17e   :  { %6971 = vmatpush1.bf16.msra.mxu1 %v9669_v15  ;;  %7230 = vmatprep.subr.bf16.mxu0 %v9424_v16  ;;  %v9726_v15 = vcombine.high %v823_v10, %v827_v11  ;;  %v576_v16 = vld [vmem:[#allocation10 + $0x8c8] sm:$0xff] }
 0x17f   :  { %6972 = vmatprep.subr.bf16.mxu1 %v9678_v17  ;;  %v580_v17 = vld [vmem:[#allocation10 + $0x8e8] sm:$0xff] }
 0x181   :  { %7231 = vmatpush1.bf16.msra.mxu0 %v9423_v24  ;;  %v9480_v24 = vcombine.high %v576_v16, %v580_v17 }
 0x182   :  { %6973 = vmatpush1.bf16.msra.mxu1 %v9677_v25  ;;  %7232 = vmatprep.subr.bf16.mxu0 %v9432_v26  ;;  %v9734_v26 = vcombine.high %v831_v19, %v835_v20 }
 0x183   :  { %6974 = vmatprep.subr.bf16.mxu1 %v9686_v27  ;;  %v584_v27 = vld [vmem:[#allocation10 + $0x908] sm:$0xff] }
 0x184   :  { %v9488_v37 = vcombine.high %v584_v27, %v588_v28  ;;  %v9487_v48 = vcombine.low %v584_v27, %v588_v28 }
 0x185   :  { %7233 = vmatpush1.bf16.msra.mxu0 %v9431_v33 }
 0x186   :  { %6975 = vmatpush1.bf16.msra.mxu1 %v9685_v34  ;;  %7234 = vmatprep.subr.bf16.mxu0 %v9440_v35  ;;  %v9479_v34 = vcombine.low %v576_v16, %v580_v17  ;;  %v871_v16 = vld [vmem:[#allocation10 + $0x1200] sm:$0xff] }
 0x187   :  { %6976 = vmatprep.subr.bf16.mxu1 %v9694_v36  ;;  %v9733_v36 = vcombine.low %v831_v19, %v835_v20  ;;  %v875_v17 = vld [vmem:[#allocation10 + $0x1220] sm:$0xff] }
 0x189   :  { %7235 = vmatpush1.bf16.msra.mxu0 %v9439_v42 }
 0x18a   :  { %6977 = vmatpush1.bf16.msra.mxu1 %v9693_v45  ;;  %7236 = vmatprep.subr.bf16.mxu0 %v9448_v46  ;;  %v847_v45 = vld [vmem:[#allocation10 + $0x1140] sm:$0xff] }
 0x18b   :  { %6978 = vmatprep.subr.bf16.mxu1 %v9702_v47  ;;  %v851_v46 = vld [vmem:[#allocation10 + $0x1160] sm:$0xff] }
 0x18c   :  { %v9749_v61 = vcombine.low %v847_v45, %v851_v46 }
 0x18d   :  { %7237 = vmatpush1.bf16.msra.mxu0 %v9447_v53  ;;  %v9496_v53 = vcombine.high %v592_v40, %v596_v41  ;;  %v9782_v41 = vcombine.high %v879_v30, %v883_v31 }
 0x18e   :  { %6979 = vmatpush1.bf16.msra.mxu1 %v9701_v54  ;;  %7249 = vmatprep.subr.bf16.mxu0 %v9456_v55  ;;  %v9750_v54 = vcombine.high %v847_v45, %v851_v46  ;;  %v600_v55 = vld [vmem:[#allocation10 + $0x988] sm:$0xff] }
 0x18f   :  { %6991 = vmatprep.subr.bf16.mxu1 %v9710_v58  ;;  %v859_v58 = vld [vmem:[#allocation10 + $0x11a0] sm:$0xff]  ;;  %v9504_v62 = vcombine.high %v600_v55, %v604_v56  ;;  %v9503_v10 = vcombine.low %v600_v55, %v604_v56  ;;  %v632_v45 = vld [vmem:[#allocation10 + $0xa88] sm:$0xff] }
 0x190   :  { %7239 = vmatmul.mubr.bf16.vlgmr.msra.gmra.mrb[16].mxu0 %v11334_v22  ;;  %v9758_v1 = vcombine.high %v855_v57, %v859_v58  ;;  %v9757_v11 = vcombine.low %v855_v57, %v859_v58  ;;  %v636_v46 = vld [vmem:[#allocation10 + $0xaa8] sm:$0xff] }
 0x191   :  { %6981 = vmatmul.mubr.bf16.vlgmr.msra.gmra.mrb[8].mxu1 %v11350_v3  ;;  %7250 = vmatpush1.bf16.msra.mxu0 %v9455_v2  ;;  %v608_v2 = vld [vmem:[#allocation10 + $0x9c8] sm:$0xff]  ;;  %v9536_v55 = vcombine.high %v632_v45, %v636_v46 }
 0x192   :  { %6992 = vmatpush1.bf16.msra.mxu1 %v9709_v4  ;;  %7251 = vmatprep.subr.bf16.mxu0 %v9464_v5  ;;  %v612_v4 = vld [vmem:[#allocation10 + $0x9e8] sm:$0xff] }
 0x193   :  { %6993 = vmatprep.subr.bf16.mxu1 %v9718_v6  ;;  %7023 = vmatprep.mubr.bf16.mxu1 %v11352_v9  ;;  %v863_v6 = vld [vmem:[#allocation10 + $0x11c0] sm:$0xff]  ;;  %v9511_v19 = vcombine.low %v608_v2, %v612_v4  ;;  %v640_v57 = vld [vmem:[#allocation10 + $0xac8] sm:$0xff] }
 0x194   :  { %7281 = vmatprep.mubr.bf16.mxu0 %v11337_v32  ;;  %v9765_v20 = vcombine.low %v863_v6, %v867_v7  ;;  %v644_v58 = vld [vmem:[#allocation10 + $0xae8] sm:$0xff] }
 0x195   :  { %7252 = vmatpush1.bf16.msra.mxu0 %v9463_v12  ;;  %v9512_v12 = vcombine.high %v608_v2, %v612_v4  ;;  %v9544_v2 = vcombine.high %v640_v57, %v644_v58 }
 0x196   :  { %6994 = vmatpush1.bf16.msra.mxu1 %v9717_v13  ;;  %7253 = vmatprep.subr.bf16.mxu0 %v9472_v14  ;;  %v9766_v13 = vcombine.high %v863_v6, %v867_v7  ;;  %v616_v14 = vld [vmem:[#allocation10 + $0xa08] sm:$0xff] }
 0x197   :  { %6995 = vmatprep.subr.bf16.mxu1 %v9726_v15  ;;  %v11358_v25 = vpop.f32.mrb[0].mxu0  ;;  %v620_v15 = vld [vmem:[#allocation10 + $0xa28] sm:$0xff] }
 0x198   :  { %v11360_v29 = vpop.f32.mrb[1].mxu0  ;;  %v648_v6 = vld [vmem:[#allocation10 + $0xb08] sm:$0xff] }
 0x199   :  { %7254 = vmatpush1.bf16.msra.mxu0 %v9471_v21  ;;  %v11362_v33 = vpop.f32.mrb[0].mxu1  ;;  %v9520_v21 = vcombine.high %v616_v14, %v620_v15  ;;  %v652_v7 = vld [vmem:[#allocation10 + $0xb28] sm:$0xff] }
 0x19a   :  { %6996 = vmatpush1.bf16.msra.mxu1 %v9725_v23  ;;  %v11364_v35 = vpop.f32.mrb[1].mxu1  ;;  %7255 = vmatprep.subr.bf16.mxu0 %v9480_v24  ;;  %v9774_v23 = vcombine.high %v871_v16, %v875_v17  ;;  %v624_v24 = vld [vmem:[#allocation10 + $0xa48] sm:$0xff] }
 0x19b   :  { %6997 = vmatprep.subr.bf16.mxu1 %v9734_v26  ;;  %v628_v26 = vld [vmem:[#allocation10 + $0xa68] sm:$0xff] }
 0x19c   :  { %v11366_v42 = vpop.f32.mrb[2].mxu0  ;;  %v9528_v40 = vcombine.high %v624_v24, %v628_v26 }
 0x19d   :  { %7256 = vmatpush1.bf16.msra.mxu0 %v9479_v34  ;;  %v11368_v47 = vpop.f32.mrb[3].mxu0  ;;  %v11370_v49 = vpop.f32.mrb[2].mxu1 }
 0x19e   :  { %6998 = vmatpush1.bf16.msra.mxu1 %v9733_v36  ;;  %7257 = vmatprep.subr.bf16.mxu0 %v9488_v37  ;;  %v11372_v52 = vpop.f32.mrb[3].mxu1  ;;  %v9519_v37 = vcombine.low %v616_v14, %v620_v15  ;;  %v9552_v14 = vcombine.high %v648_v6, %v652_v7 }
 0x19f   :  { %6999 = vmatprep.subr.bf16.mxu1 %v9742_v39  ;;  %v9773_v39 = vcombine.low %v871_v16, %v875_v17  ;;  %v656_v16 = vld [vmem:[#allocation10 + $0xb48] sm:$0xff] }
 0x1a0   :  { %v660_v17 = vld [vmem:[#allocation10 + $0xb68] sm:$0xff] }
 0x1a1   :  { %7258 = vmatpush1.bf16.msra.mxu0 %v9487_v48  ;;  %v887_v48 = vld [vmem:[#allocation10 + $0x1280] sm:$0xff] }
 0x1a2   :  { %7000 = vmatpush1.bf16.msra.mxu1 %v9741_v51  ;;  %v11374_v60 = vpop.f32.mrb[4].mxu0  ;;  %7259 = vmatprep.subr.bf16.mxu0 %v9496_v53  ;;  %v891_v51 = vld [vmem:[#allocation10 + $0x12a0] sm:$0xff]  ;;  %v9527_v53 = vcombine.low %v624_v24, %v628_v26  ;;  %v9560_v24 = vcombine.high %v656_v16, %v660_v17 }
 0x1a3   :  { %v11376_v63 = vpop.f32.mrb[5].mxu0  ;;  %7001 = vmatprep.subr.bf16.mxu1 %v9750_v54  ;;  %v9781_v54 = vcombine.low %v879_v30, %v883_v31  ;;  %v9790_v56 = vcombine.high %v887_v48, %v891_v51  ;;  %v664_v30 = vld [vmem:[#allocation10 + $0xb88] sm:$0xff] }
 0x1a4   :  { %v11378_v5 = vpop.f32.mrb[4].mxu1  ;;  %v668_v31 = vld [vmem:[#allocation10 + $0xba8] sm:$0xff] }
 0x1a5   :  { %7260 = vmatpush1.bf16.msra.mxu0 %v9495_v59  ;;  %v11380_v8 = vpop.f32.mrb[5].mxu1  ;;  %v895_v59 = vld [vmem:[#allocation10 + $0x12c0] sm:$0xff] }
 0x1a6   :  { %7002 = vmatpush1.bf16.msra.mxu1 %v9749_v61  ;;  %7261 = vmatprep.subr.bf16.mxu0 %v9504_v62  ;;  %v899_v61 = vld [vmem:[#allocation10 + $0x12e0] sm:$0xff]  ;;  %v9535_v62 = vcombine.low %v632_v45, %v636_v46  ;;  %v9568_v45 = vcombine.high %v664_v30, %v668_v31 }
 0x1a7   :  { %7003 = vmatprep.subr.bf16.mxu1 %v9758_v1  ;;  %v11382_v27 = vpop.f32.mrb[6].mxu0  ;;  %v9789_v1 = vcombine.low %v887_v48, %v891_v51  ;;  %v9798_v4 = vcombine.high %v895_v59, %v899_v61  ;;  %v672_v48 = vld [vmem:[#allocation10 + $0xbc8] sm:$0xff] }
 0x1a8   :  { %v11384_v28 = vpop.f32.mrb[6].mxu1  ;;  %v11386_v34 = vpop.f32.mrb[7].mxu0  ;;  %v676_v51 = vld [vmem:[#allocation10 + $0xbe8] sm:$0xff] }
 0x1a9   :  { %7262 = vmatpush1.bf16.msra.mxu0 %v9503_v10  ;;  %v11388_v36 = vpop.f32.mrb[7].mxu1  ;;  %v903_v10 = vld [vmem:[#allocation10 + $0x1300] sm:$0xff] }
 0x1aa   :  { %7004 = vmatpush1.bf16.msra.mxu1 %v9757_v11  ;;  %7263 = vmatprep.subr.bf16.mxu0 %v9512_v12  ;;  %v907_v11 = vld [vmem:[#allocation10 + $0x1320] sm:$0xff]  ;;  %v9543_v12 = vcombine.low %v640_v57, %v644_v58  ;;  %v9576_v57 = vcombine.high %v672_v48, %v676_v51 }
 0x1ab   :  { %7005 = vmatprep.subr.bf16.mxu1 %v9766_v13  ;;  %v9797_v13 = vcombine.low %v895_v59, %v899_v61  ;;  %v9806_v15 = vcombine.high %v903_v10, %v907_v11  ;;  %v680_v59 = vld [vmem:[#allocation10 + $0xc08] sm:$0xff] }
 0x1ac   :  { %v684_v61 = vld [vmem:[#allocation10 + $0xc28] sm:$0xff] }
 0x1ad   :  { %7264 = vmatpush1.bf16.msra.mxu0 %v9511_v19  ;;  %v911_v19 = vld [vmem:[#allocation10 + $0x1340] sm:$0xff] }
 0x1ae   :  { %7006 = vmatpush1.bf16.msra.mxu1 %v9765_v20  ;;  %7265 = vmatprep.subr.bf16.mxu0 %v9520_v21  ;;  %v915_v20 = vld [vmem:[#allocation10 + $0x1360] sm:$0xff]  ;;  %v9551_v21 = vcombine.low %v648_v6, %v652_v7  ;;  %v9584_v6 = vcombine.high %v680_v59, %v684_v61  ;;  %v175_v7 = vld [vmem:[#allocation2 + $0x40] sm:$0xff] }
 0x1af   :  { %7007 = vmatprep.subr.bf16.mxu1 %v9774_v23  ;;  %v9805_v23 = vcombine.low %v903_v10, %v907_v11  ;;  %v9814_v26 = vcombine.high %v911_v19, %v915_v20  ;;  %v191_v10 = vld [vmem:[#allocation2 + $0xc0] sm:$0xff] }
 0x1b1   :  { %7266 = vmatpush1.bf16.msra.mxu0 %v9519_v37  ;;  %v919_v37 = vld [vmem:[#allocation10 + $0x1380] sm:$0xff] }
 0x1b2   :  { %7008 = vmatpush1.bf16.msra.mxu1 %v9773_v39  ;;  %7267 = vmatprep.subr.bf16.mxu0 %v9528_v40  ;;  %v923_v39 = vld [vmem:[#allocation10 + $0x13a0] sm:$0xff]  ;;  %v9559_v40 = vcombine.low %v656_v16, %v660_v17 }
 0x1b3   :  { %7009 = vmatprep.subr.bf16.mxu1 %v9782_v41  ;;  %v9813_v41 = vcombine.low %v911_v19, %v915_v20  ;;  %v9822_v46 = vcombine.high %v919_v37, %v923_v39  ;;  %v178_v16 = vld [vmem:[#allocation2 + $0x58] sm:$0xff]  ;;  %v9583_v19 = vcombine.low %v680_v59, %v684_v61  ;;  %v11390_v20 = vpack.c.bf16 %v191_v10, %v175_v7 }
 0x1b4   :  { %v194_v17 = vld [vmem:[#allocation2 + $0xd8] sm:$0xff] }
 0x1b5   :  { %7268 = vmatpush1.bf16.msra.mxu0 %v9527_v53  ;;  %v927_v53 = vld [vmem:[#allocation10 + $0x13c0] sm:$0xff]  ;;  %v712_v59 = vld [vmem:[#allocation10 + $0xd08] sm:$0xff] }
 0x1b6   :  { %7010 = vmatpush1.bf16.msra.mxu1 %v9781_v54  ;;  %7269 = vmatprep.subr.bf16.mxu0 %v9536_v55  ;;  %v931_v54 = vld [vmem:[#allocation10 + $0x13e0] sm:$0xff]  ;;  %v9567_v55 = vcombine.low %v664_v30, %v668_v31  ;;  %v700_v30 = vld [vmem:[#allocation10 + $0xca8] sm:$0xff]  ;;  %v11392_v31 = vpack.c.bf16 %v194_v17, %v178_v16 }
 0x1b7   :  { %7011 = vmatprep.subr.bf16.mxu1 %v9790_v56  ;;  %v9821_v56 = vcombine.low %v919_v37, %v923_v39  ;;  %v9830_v58 = vcombine.high %v927_v53, %v931_v54  ;;  %v951_v37 = vld [vmem:[#allocation10 + $0x1480] sm:$0xff]  ;;  %v716_v61 = vld [vmem:[#allocation10 + $0xd28] sm:$0xff] }
 0x1b8   :  { %v955_v39 = vld [vmem:[#allocation10 + $0x14a0] sm:$0xff]  ;;  %v720_v10 = vld [vmem:[#allocation10 + $0xd48] sm:$0xff] }
 0x1b9   :  { %7270 = vmatpush1.bf16.msra.mxu0 %v9535_v62  ;;  %v935_v62 = vld [vmem:[#allocation10 + $0x1400] sm:$0xff] }
 0x1ba   :  { %7012 = vmatpush1.bf16.msra.mxu1 %v9789_v1  ;;  %7271 = vmatprep.subr.bf16.mxu0 %v9544_v2  ;;  %v939_v1 = vld [vmem:[#allocation10 + $0x1420] sm:$0xff]  ;;  %v9575_v2 = vcombine.low %v672_v48, %v676_v51  ;;  %v704_v48 = vld [vmem:[#allocation10 + $0xcc8] sm:$0xff] }
 0x1bb   :  { %7013 = vmatprep.subr.bf16.mxu1 %v9798_v4  ;;  %v9829_v4 = vcombine.low %v927_v53, %v931_v54  ;;  %v9838_v11 = vcombine.high %v935_v62, %v939_v1  ;;  %v708_v51 = vld [vmem:[#allocation10 + $0xce8] sm:$0xff]  ;;  %v959_v53 = vld [vmem:[#allocation10 + $0x14c0] sm:$0xff] }
 0x1bc   :  { %v963_v54 = vld [vmem:[#allocation10 + $0x14e0] sm:$0xff] }
 0x1bd   :  { %7272 = vmatpush1.bf16.msra.mxu0 %v9543_v12  ;;  %v943_v12 = vld [vmem:[#allocation10 + $0x1440] sm:$0xff] }
 0x1be   :  { %7014 = vmatpush1.bf16.msra.mxu1 %v9797_v13  ;;  %7273 = vmatprep.subr.bf16.mxu0 %v9552_v14  ;;  %v688_v13 = vld [vmem:[#allocation10 + $0xc48] sm:$0xff] }
 0x1bf   :  { %7015 = vmatprep.subr.bf16.mxu1 %v9806_v15  ;;  %v692_v14 = vld [vmem:[#allocation10 + $0xc68] sm:$0xff]  ;;  %v947_v15 = vld [vmem:[#allocation10 + $0x1460] sm:$0xff] }
 0x1c1   :  { %7274 = vmatpush1.bf16.msra.mxu0 %v9551_v21  ;;  %v9837_v21 = vcombine.low %v935_v62, %v939_v1  ;;  %v967_v62 = vld [vmem:[#allocation10 + $0x1500] sm:$0xff] }
 0x1c2   :  { %7016 = vmatpush1.bf16.msra.mxu1 %v9805_v23  ;;  %7275 = vmatprep.subr.bf16.mxu0 %v9560_v24  ;;  %v9592_v23 = vcombine.high %v688_v13, %v692_v14  ;;  %v9846_v24 = vcombine.high %v943_v12, %v947_v15  ;;  %v971_v1 = vld [vmem:[#allocation10 + $0x1520] sm:$0xff] }
 0x1c3   :  { %7017 = vmatprep.subr.bf16.mxu1 %v9814_v26  ;;  %v696_v26 = vld [vmem:[#allocation10 + $0xc88] sm:$0xff]  ;;  %v9870_v7 = vcombine.high %v967_v62, %v971_v1 }
 0x1c5   :  { %7276 = vmatpush1.bf16.msra.mxu0 %v9559_v40  ;;  %v9591_v40 = vcombine.low %v688_v13, %v692_v14  ;;  %v979_v13 = vld [vmem:[#allocation10 + $0x1560] sm:$0xff]  ;;  %v9615_v14 = vcombine.low %v712_v59, %v716_v61 }
 0x1c6   :  { %7018 = vmatpush1.bf16.msra.mxu1 %v9813_v41  ;;  %7277 = vmatprep.subr.bf16.mxu0 %v9568_v45  ;;  %v9845_v41 = vcombine.low %v943_v12, %v947_v15  ;;  %v9600_v45 = vcombine.high %v696_v26, %v700_v30  ;;  %v975_v12 = vld [vmem:[#allocation10 + $0x1540] sm:$0xff]  ;;  %v9869_v15 = vcombine.low %v967_v62, %v971_v1  ;;  %v744_v1 = vld [vmem:[#allocation10 + $0xe08] sm:$0xff] }
 0x1c7   :  { %7019 = vmatprep.subr.bf16.mxu1 %v9822_v46  ;;  %v9854_v46 = vcombine.high %v951_v37, %v955_v39  ;;  %v9878_v17 = vcombine.high %v975_v12, %v979_v13 }
 0x1c9   :  { %7278 = vmatpush1.bf16.msra.mxu0 %v9567_v55  ;;  %v9599_v55 = vcombine.low %v696_v26, %v700_v30  ;;  %v9877_v30 = vcombine.low %v975_v12, %v979_v13  ;;  %v756_v12 = vld [vmem:[#allocation10 + $0xe68] sm:$0xff]  ;;  %v1007_v13 = vld [vmem:[#allocation10 + $0x1640] sm:$0xff] }
 0x1ca   :  { %7020 = vmatpush1.bf16.msra.mxu1 %v9821_v56  ;;  %7279 = vmatprep.subr.bf16.mxu0 %v9576_v57  ;;  %v9853_v56 = vcombine.low %v951_v37, %v955_v39  ;;  %v9608_v57 = vcombine.high %v704_v48, %v708_v51 }
 0x1cb   :  { %7021 = vmatprep.subr.bf16.mxu1 %v9830_v58  ;;  %v9862_v58 = vcombine.high %v959_v53, %v963_v54 }
 0x1cd   :  { %7280 = vmatpush1.bf16.msra.mxu0 %v9575_v2  ;;  %v9607_v2 = vcombine.low %v704_v48, %v708_v51  ;;  %v991_v51 = vld [vmem:[#allocation10 + $0x15c0] sm:$0xff] }
 0x1ce   :  { %7022 = vmatpush1.bf16.msra.mxu1 %v9829_v4  ;;  %7292 = vmatprep.subr.bf16.mxu0 %v9584_v6  ;;  %v9861_v4 = vcombine.low %v959_v53, %v963_v54  ;;  %v9616_v6 = vcombine.high %v712_v59, %v716_v61  ;;  %v995_v53 = vld [vmem:[#allocation10 + $0x15e0] sm:$0xff] }
 0x1cf   :  { %7034 = vmatprep.subr.bf16.mxu1 %v9838_v11  ;;  %v724_v11 = vld [vmem:[#allocation10 + $0xd68] sm:$0xff]  ;;  %v9894_v62 = vcombine.high %v991_v51, %v995_v53 }
 0x1d0   :  { %7282 = vmatmul.mubr.bf16.vlgmr.msra.gmra.mrb[16].mxu0 %v11342_v43  ;;  %v9624_v16 = vcombine.high %v720_v10, %v724_v11  ;;  %v9623_v26 = vcombine.low %v720_v10, %v724_v11  ;;  %v752_v11 = vld [vmem:[#allocation10 + $0xe48] sm:$0xff] }
 0x1d1   :  { %7024 = vmatmul.mubr.bf16.vlgmr.msra.gmra.mrb[8].mxu1 %v11390_v20  ;;  %7293 = vmatpush1.bf16.msra.mxu0 %v9583_v19  ;;  %v728_v19 = vld [vmem:[#allocation10 + $0xd88] sm:$0xff] }
 0x1d2   :  { %7035 = vmatpush1.bf16.msra.mxu1 %v9837_v21  ;;  %7294 = vmatprep.subr.bf16.mxu0 %v9592_v23  ;;  %v732_v21 = vld [vmem:[#allocation10 + $0xda8] sm:$0xff]  ;;  %v983_v23 = vld [vmem:[#allocation10 + $0x1580] sm:$0xff] }
 0x1d3   :  { %7036 = vmatprep.subr.bf16.mxu1 %v9846_v24  ;;  %7066 = vmatprep.mubr.bf16.mxu1 %v11392_v31  ;;  %v987_v24 = vld [vmem:[#allocation10 + $0x15a0] sm:$0xff]  ;;  %v9632_v37 = vcombine.high %v728_v19, %v732_v21 }
 0x1d4   :  { %7324 = vmatprep.mubr.bf16.mxu0 %v11344_v50  ;;  %v9885_v59 = vcombine.low %v983_v23, %v987_v24 }
 0x1d5   :  { %7295 = vmatpush1.bf16.msra.mxu0 %v9591_v40  ;;  %v9886_v40 = vcombine.high %v983_v23, %v987_v24  ;;  %v1015_v23 = vld [vmem:[#allocation10 + $0x1680] sm:$0xff] }
 0x1d6   :  { %7037 = vmatpush1.bf16.msra.mxu1 %v9845_v41  ;;  %7296 = vmatprep.subr.bf16.mxu0 %v9600_v45  ;;  %v736_v41 = vld [vmem:[#allocation10 + $0xdc8] sm:$0xff]  ;;  %v1019_v24 = vld [vmem:[#allocation10 + $0x16a0] sm:$0xff] }
 0x1d7   :  { %7038 = vmatprep.subr.bf16.mxu1 %v9854_v46  ;;  %v740_v45 = vld [vmem:[#allocation10 + $0xde8] sm:$0xff] }
 0x1d8   :  { %v9640_v61 = vcombine.high %v736_v41, %v740_v45 }
 0x1d9   :  { %7297 = vmatpush1.bf16.msra.mxu0 %v9599_v55 }
 0x1da   :  { %7039 = vmatpush1.bf16.msra.mxu1 %v9853_v56  ;;  %7298 = vmatprep.subr.bf16.mxu0 %v9608_v57  ;;  %v9631_v56 = vcombine.low %v728_v19, %v732_v21  ;;  %v760_v19 = vld [vmem:[#allocation10 + $0xe88] sm:$0xff] }
 0x1db   :  { %7040 = vmatprep.subr.bf16.mxu1 %v9862_v58  ;;  %v764_v21 = vld [vmem:[#allocation10 + $0xea8] sm:$0xff] }
 0x1dd   :  { %7299 = vmatpush1.bf16.msra.mxu0 %v9607_v2  ;;  %v748_v2 = vld [vmem:[#allocation10 + $0xe28] sm:$0xff] }
 0x1de   :  { %7041 = vmatpush1.bf16.msra.mxu1 %v9861_v4  ;;  %7300 = vmatprep.subr.bf16.mxu0 %v9616_v6  ;;  %v1003_v4 = vld [vmem:[#allocation10 + $0x1620] sm:$0xff]  ;;  %v9639_v6 = vcombine.low %v736_v41, %v740_v45  ;;  %v772_v41 = vld [vmem:[#allocation10 + $0xee8] sm:$0xff] }
 0x1df   :  { %7042 = vmatprep.subr.bf16.mxu1 %v9870_v7  ;;  %v9893_v7 = vcombine.low %v991_v51, %v995_v53  ;;  %v1023_v45 = vld [vmem:[#allocation10 + $0x16c0] sm:$0xff]  ;;  %v9663_v51 = vcombine.low %v760_v19, %v764_v21  ;;  %v9917_v53 = vcombine.low %v1015_v23, %v1019_v24 }
 0x1e1   :  { %7301 = vmatpush1.bf16.msra.mxu0 %v9615_v14  ;;  %v1011_v14 = vld [vmem:[#allocation10 + $0x1660] sm:$0xff] }
 0x1e2   :  { %7043 = vmatpush1.bf16.msra.mxu1 %v9869_v15  ;;  %7302 = vmatprep.subr.bf16.mxu0 %v9624_v16  ;;  %v9656_v16 = vcombine.high %v752_v11, %v756_v12 }
 0x1e3   :  { %v6853_v39 = vpop.f32.mrb[8].mxu0  ;;  %7044 = vmatprep.subr.bf16.mxu1 %v9878_v17  ;;  %v9910_v17 = vcombine.high %v1007_v13, %v1011_v14 }
 0x1e4   :  { %v11399_v46 = vadd.f32 %v6853_v39, %v11358_v25  ;;  %v6855_v48 = vpop.f32.mrb[9].mxu0  ;;  %v9918_v39 = vcombine.high %v1015_v23, %v1019_v24 }
 0x1e5   :  { %v11402_v54 = vadd.f32 %v6855_v48, %v11360_v29  ;;  %v6857_v55 = vpop.f32.mrb[10].mxu0  ;;  %7303 = vmatpush1.bf16.msra.mxu0 %v9623_v26  ;;  %v999_v29 = vld [vmem:[#allocation10 + $0x1600] sm:$0xff]  ;;  %v9655_v26 = vcombine.low %v752_v11, %v756_v12 }
 0x1e6   :  { %v11405_v57 = vadd.f32 %v6857_v55, %v11366_v42  ;;  %7045 = vmatpush1.bf16.msra.mxu1 %v9877_v30  ;;  %v6859_v58 = vpop.f32.mrb[11].mxu0  ;;  %7304 = vmatprep.subr.bf16.mxu0 %v9632_v37  ;;  %v9648_v42 = vcombine.high %v744_v1, %v748_v2  ;;  %v9902_v10 = vcombine.high %v999_v29, %v1003_v4  ;;  %v1027_v48 = vld [vmem:[#allocation10 + $0x16e0] sm:$0xff] }
 0x1e7   :  { %v11408_v25 = vadd.f32 %v6859_v58, %v11368_v47  ;;  %7046 = vmatprep.subr.bf16.mxu1 %v9886_v40  ;;  %v9647_v47 = vcombine.low %v744_v1, %v748_v2  ;;  %v9901_v15 = vcombine.low %v999_v29, %v1003_v4  ;;  %v9909_v30 = vcombine.low %v1007_v13, %v1011_v14  ;;  %v768_v40 = vld [vmem:[#allocation10 + $0xec8] sm:$0xff] }
 0x1e8   :  { %v9664_v37 = vcombine.high %v760_v19, %v764_v21  ;;  %v9672_v55 = vcombine.high %v768_v40, %v772_v41  ;;  %v776_v58 = vld [vmem:[#allocation10 + $0xf08] sm:$0xff]  ;;  %v9671_v1 = vcombine.low %v768_v40, %v772_v41  ;;  %v9925_v2 = vcombine.low %v1023_v45, %v1027_v48 }
 0x1e9   :  { %7305 = vmatpush1.bf16.msra.mxu0 %v9631_v56  ;;  %v9926_v56 = vcombine.high %v1023_v45, %v1027_v48 }
 0x1ea   :  { %7047 = vmatpush1.bf16.msra.mxu1 %v9885_v59  ;;  %7306 = vmatprep.subr.bf16.mxu0 %v9640_v61  ;;  %v780_v59 = vld [vmem:[#allocation10 + $0xf28] sm:$0xff]  ;;  %v1031_v61 = vld [vmem:[#allocation10 + $0x1700] sm:$0xff] }
 0x1eb   :  { %7048 = vmatprep.subr.bf16.mxu1 %v9894_v62  ;;  %v1035_v62 = vld [vmem:[#allocation10 + $0x1720] sm:$0xff]  ;;  %v9680_v29 = vcombine.high %v776_v58, %v780_v59  ;;  %v9679_v11 = vcombine.low %v776_v58, %v780_v59 }
 0x1ec   :  { %v9934_v4 = vcombine.high %v1031_v61, %v1035_v62  ;;  %v9933_v12 = vcombine.low %v1031_v61, %v1035_v62  ;;  %v177_v62 = vld [vmem:[#allocation2 + $0x50] sm:$0xff] }
 0x1ed   :  { %7307 = vmatpush1.bf16.msra.mxu0 %v9639_v6  ;;  %v784_v6 = vld [vmem:[#allocation10 + $0xf48] sm:$0xff] }
 0x1ee   :  { %7049 = vmatpush1.bf16.msra.mxu1 %v9893_v7  ;;  %7308 = vmatprep.subr.bf16.mxu0 %v9648_v42  ;;  %v788_v7 = vld [vmem:[#allocation10 + $0xf68] sm:$0xff]  ;;  %v1039_v42 = vld [vmem:[#allocation10 + $0x1740] sm:$0xff] }
 0x1ef   :  { %7050 = vmatprep.subr.bf16.mxu1 %v9902_v10  ;;  %v1043_v10 = vld [vmem:[#allocation10 + $0x1760] sm:$0xff]  ;;  %v9688_v13 = vcombine.high %v784_v6, %v788_v7  ;;  %v9687_v19 = vcombine.low %v784_v6, %v788_v7  ;;  %v820_v6 = vld [vmem:[#allocation10 + $0x1068] sm:$0xff] }
 0x1f0   :  { %v9942_v14 = vcombine.high %v1039_v42, %v1043_v10  ;;  %v9941_v21 = vcombine.low %v1039_v42, %v1043_v10  ;;  %v1075_v7 = vld [vmem:[#allocation10 + $0x1860] sm:$0xff]  ;;  %v180_v42 = vld [vmem:[#allocation2 + $0x68] sm:$0xff] }
 0x1f1   :  { %7309 = vmatpush1.bf16.msra.mxu0 %v9647_v47  ;;  %v792_v47 = vld [vmem:[#allocation10 + $0xf88] sm:$0xff]  ;;  %v196_v10 = vld [vmem:[#allocation2 + $0xe8] sm:$0xff] }
 0x1f2   :  { %7051 = vmatpush1.bf16.msra.mxu1 %v9901_v15  ;;  %7310 = vmatprep.subr.bf16.mxu0 %v9656_v16  ;;  %v796_v15 = vld [vmem:[#allocation10 + $0xfa8] sm:$0xff]  ;;  %v1047_v16 = vld [vmem:[#allocation10 + $0x1780] sm:$0xff] }
 0x1f3   :  { %7052 = vmatprep.subr.bf16.mxu1 %v9910_v17  ;;  %v1051_v17 = vld [vmem:[#allocation10 + $0x17a0] sm:$0xff]  ;;  %v9696_v23 = vcombine.high %v792_v47, %v796_v15  ;;  %v9695_v40 = vcombine.low %v792_v47, %v796_v15  ;;  %v824_v15 = vld [vmem:[#allocation10 + $0x1088] sm:$0xff] }
 0x1f4   :  { %v9950_v24 = vcombine.high %v1047_v16, %v1051_v17  ;;  %v9949_v41 = vcombine.low %v1047_v16, %v1051_v17  ;;  %v828_v16 = vld [vmem:[#allocation10 + $0x10a8] sm:$0xff]  ;;  %v11412_v17 = vpack.c.bf16 %v196_v10, %v180_v42 }
 0x1f5   :  { %7311 = vmatpush1.bf16.msra.mxu0 %v9655_v26  ;;  %v800_v26 = vld [vmem:[#allocation10 + $0xfc8] sm:$0xff] }
 0x1f6   :  { %7053 = vmatpush1.bf16.msra.mxu1 %v9909_v30  ;;  %7312 = vmatprep.subr.bf16.mxu0 %v9664_v37  ;;  %v804_v30 = vld [vmem:[#allocation10 + $0xfe8] sm:$0xff]  ;;  %v1055_v37 = vld [vmem:[#allocation10 + $0x17c0] sm:$0xff] }
 0x1f7   :  { %7054 = vmatprep.subr.bf16.mxu1 %v9918_v39  ;;  %v1059_v39 = vld [vmem:[#allocation10 + $0x17e0] sm:$0xff]  ;;  %v9704_v45 = vcombine.high %v800_v26, %v804_v30  ;;  %v9703_v58 = vcombine.low %v800_v26, %v804_v30  ;;  %v9728_v26 = vcombine.high %v824_v15, %v828_v16 }
 0x1f8   :  { %v9958_v48 = vcombine.high %v1055_v37, %v1059_v39  ;;  %v9957_v59 = vcombine.low %v1055_v37, %v1059_v39  ;;  %v832_v37 = vld [vmem:[#allocation10 + $0x10c8] sm:$0xff] }
 0x1f9   :  { %7313 = vmatpush1.bf16.msra.mxu0 %v9663_v51  ;;  %v808_v51 = vld [vmem:[#allocation10 + $0x1008] sm:$0xff] }
 0x1fa   :  { %7055 = vmatpush1.bf16.msra.mxu1 %v9917_v53  ;;  %7314 = vmatprep.subr.bf16.mxu0 %v9672_v55  ;;  %v812_v53 = vld [vmem:[#allocation10 + $0x1028] sm:$0xff]  ;;  %v1063_v55 = vld [vmem:[#allocation10 + $0x1800] sm:$0xff] }
 0x1fb   :  { %7056 = vmatprep.subr.bf16.mxu1 %v9926_v56  ;;  %v1067_v56 = vld [vmem:[#allocation10 + $0x1820] sm:$0xff]  ;;  %v9712_v61 = vcombine.high %v808_v51, %v812_v53  ;;  %v836_v39 = vld [vmem:[#allocation10 + $0x10e8] sm:$0xff] }
 0x1fd   :  { %7315 = vmatpush1.bf16.msra.mxu0 %v9671_v1  ;;  %v193_v1 = vld [vmem:[#allocation2 + $0xd0] sm:$0xff] }
 0x1fe   :  { %7057 = vmatpush1.bf16.msra.mxu1 %v9925_v2  ;;  %7316 = vmatprep.subr.bf16.mxu0 %v9680_v29  ;;  %v9966_v2 = vcombine.high %v1063_v55, %v1067_v56  ;;  %v1071_v29 = vld [vmem:[#allocation10 + $0x1840] sm:$0xff] }
 0x1ff   :  { %7058 = vmatprep.subr.bf16.mxu1 %v9934_v4  ;;  %v816_v4 = vld [vmem:[#allocation10 + $0x1048] sm:$0xff]  ;;  %v9974_v47 = vcombine.high %v1071_v29, %v1075_v7 }
 0x201   :  { %7317 = vmatpush1.bf16.msra.mxu0 %v9679_v11  ;;  %v9711_v11 = vcombine.low %v808_v51, %v812_v53  ;;  %v9736_v51 = vcombine.high %v832_v37, %v836_v39 }
 0x202   :  { %7059 = vmatpush1.bf16.msra.mxu1 %v9933_v12  ;;  %7318 = vmatprep.subr.bf16.mxu0 %v9688_v13  ;;  %v11410_v12 = vpack.c.bf16 %v193_v1, %v177_v62  ;;  %v9965_v13 = vcombine.low %v1063_v55, %v1067_v56  ;;  %v840_v55 = vld [vmem:[#allocation10 + $0x1108] sm:$0xff] }
 0x203   :  { %7060 = vmatprep.subr.bf16.mxu1 %v9942_v14  ;;  %v9720_v14 = vcombine.high %v816_v4, %v820_v6  ;;  %v844_v56 = vld [vmem:[#allocation10 + $0x1128] sm:$0xff] }
 0x204   :  { %v9744_v1 = vcombine.high %v840_v55, %v844_v56  ;;  %v9743_v42 = vcombine.low %v840_v55, %v844_v56 }
 0x205   :  { %7319 = vmatpush1.bf16.msra.mxu0 %v9687_v19  ;;  %v1079_v19 = vld [vmem:[#allocation10 + $0x1880] sm:$0xff] }
 0x206   :  { %7061 = vmatpush1.bf16.msra.mxu1 %v9941_v21  ;;  %7320 = vmatprep.subr.bf16.mxu0 %v9696_v23  ;;  %v1083_v21 = vld [vmem:[#allocation10 + $0x18a0] sm:$0xff]  ;;  %v9719_v23 = vcombine.low %v816_v4, %v820_v6  ;;  %v852_v4 = vld [vmem:[#allocation10 + $0x1168] sm:$0xff] }
 0x207   :  { %7062 = vmatprep.subr.bf16.mxu1 %v9950_v24  ;;  %v9973_v24 = vcombine.low %v1071_v29, %v1075_v7  ;;  %v9982_v30 = vcombine.high %v1079_v19, %v1083_v21  ;;  %v848_v29 = vld [vmem:[#allocation10 + $0x1148] sm:$0xff]  ;;  %v1103_v6 = vld [vmem:[#allocation10 + $0x1940] sm:$0xff] }
 0x208   :  { %v1107_v7 = vld [vmem:[#allocation10 + $0x1960] sm:$0xff] }
 0x209   :  { %7321 = vmatpush1.bf16.msra.mxu0 %v9695_v40  ;;  %v1087_v40 = vld [vmem:[#allocation10 + $0x18c0] sm:$0xff] }
 0x20a   :  { %7063 = vmatpush1.bf16.msra.mxu1 %v9949_v41  ;;  %7322 = vmatprep.subr.bf16.mxu0 %v9704_v45  ;;  %v1091_v41 = vld [vmem:[#allocation10 + $0x18e0] sm:$0xff]  ;;  %v9727_v45 = vcombine.low %v824_v15, %v828_v16 }
 0x20b   :  { %7064 = vmatprep.subr.bf16.mxu1 %v9958_v48  ;;  %v9981_v48 = vcombine.low %v1079_v19, %v1083_v21  ;;  %v9990_v53 = vcombine.high %v1087_v40, %v1091_v41  ;;  %v9989_v62 = vcombine.low %v1087_v40, %v1091_v41  ;;  %v1111_v15 = vld [vmem:[#allocation10 + $0x1980] sm:$0xff]  ;;  %v9751_v19 = vcombine.low %v848_v29, %v852_v4 }
 0x20c   :  { %v1115_v16 = vld [vmem:[#allocation10 + $0x19a0] sm:$0xff]  ;;  %v10005_v21 = vcombine.low %v1103_v6, %v1107_v7 }
 0x20d   :  { %7323 = vmatpush1.bf16.msra.mxu0 %v9703_v58  ;;  %v1095_v58 = vld [vmem:[#allocation10 + $0x1900] sm:$0xff] }
 0x20e   :  { %7065 = vmatpush1.bf16.msra.mxu1 %v9957_v59  ;;  %7335 = vmatprep.subr.bf16.mxu0 %v9712_v61  ;;  %v1099_v59 = vld [vmem:[#allocation10 + $0x1920] sm:$0xff]  ;;  %v9735_v61 = vcombine.low %v832_v37, %v836_v39  ;;  %v868_v37 = vld [vmem:[#allocation10 + $0x11e8] sm:$0xff] }
 0x20f   :  { %7077 = vmatprep.subr.bf16.mxu1 %v9966_v2  ;;  %v9998_v2 = vcombine.high %v1095_v58, %v1099_v59  ;;  %v9997_v10 = vcombine.low %v1095_v58, %v1099_v59  ;;  %v1119_v41 = vld [vmem:[#allocation10 + $0x19c0] sm:$0xff]  ;;  %v10013_v58 = vcombine.low %v1111_v15, %v1115_v16 }
 0x210   :  { %7325 = vmatmul.mubr.bf16.vlgmr.msra.gmra.mrb[16].mxu0 %v11350_v3 }
 0x211   :  { %7067 = vmatmul.mubr.bf16.vlgmr.msra.gmra.mrb[8].mxu1 %v11410_v12  ;;  %7336 = vmatpush1.bf16.msra.mxu0 %v9711_v11  ;;  %v9752_v11 = vcombine.high %v848_v29, %v852_v4 }
 0x212   :  { %7078 = vmatpush1.bf16.msra.mxu1 %v9965_v13  ;;  %7337 = vmatprep.subr.bf16.mxu0 %v9720_v14  ;;  %v10006_v13 = vcombine.high %v1103_v6, %v1107_v7  ;;  %v856_v14 = vld [vmem:[#allocation10 + $0x1188] sm:$0xff] }
 0x213   :  { %7079 = vmatprep.subr.bf16.mxu1 %v9974_v47  ;;  %7109 = vmatprep.mubr.bf16.mxu1 %v11412_v17  ;;  %v860_v47 = vld [vmem:[#allocation10 + $0x11a8] sm:$0xff] }
 0x214   :  { %7367 = vmatprep.mubr.bf16.mxu0 %v11352_v9  ;;  %v880_v7 = vld [vmem:[#allocation10 + $0x1248] sm:$0xff] }
 0x215   :  { %7338 = vmatpush1.bf16.msra.mxu0 %v9719_v23  ;;  %v9760_v23 = vcombine.high %v856_v14, %v860_v47 }
 0x216   :  { %7080 = vmatpush1.bf16.msra.mxu1 %v9973_v24  ;;  %7339 = vmatprep.subr.bf16.mxu0 %v9728_v26  ;;  %v10014_v26 = vcombine.high %v1111_v15, %v1115_v16  ;;  %v888_v15 = vld [vmem:[#allocation10 + $0x1288] sm:$0xff] }
 0x217   :  { %7081 = vmatprep.subr.bf16.mxu1 %v9982_v30  ;;  %v864_v30 = vld [vmem:[#allocation10 + $0x11c8] sm:$0xff] }
 0x218   :  { %v9768_v59 = vcombine.high %v864_v30, %v868_v37  ;;  %v9767_v29 = vcombine.low %v864_v30, %v868_v37  ;;  %v892_v16 = vld [vmem:[#allocation10 + $0x12a8] sm:$0xff] }
 0x219   :  { %7340 = vmatpush1.bf16.msra.mxu0 %v9727_v45  ;;  %v1123_v45 = vld [vmem:[#allocation10 + $0x19e0] sm:$0xff]  ;;  %v896_v37 = vld [vmem:[#allocation10 + $0x12c8] sm:$0xff] }
 0x21a   :  { %7082 = vmatpush1.bf16.msra.mxu1 %v9981_v48  ;;  %7341 = vmatprep.subr.bf16.mxu0 %v9736_v51  ;;  %v10021_v4 = vcombine.low %v1119_v41, %v1123_v45 }
 0x21b   :  { %7083 = vmatprep.subr.bf16.mxu1 %v9990_v53  ;;  %v9759_v53 = vcombine.low %v856_v14, %v860_v47 }
 0x21d   :  { %7342 = vmatpush1.bf16.msra.mxu0 %v9735_v61  ;;  %v10022_v61 = vcombine.high %v1119_v41, %v1123_v45  ;;  %v1151_v41 = vld [vmem:[#allocation10 + $0x1ac0] sm:$0xff] }
 0x21e   :  { %7084 = vmatpush1.bf16.msra.mxu1 %v9989_v62  ;;  %7343 = vmatprep.subr.bf16.mxu0 %v9744_v1  ;;  %v872_v62 = vld [vmem:[#allocation10 + $0x1208] sm:$0xff]  ;;  %v1155_v45 = vld [vmem:[#allocation10 + $0x1ae0] sm:$0xff] }
 0x21f   :  { %7085 = vmatprep.subr.bf16.mxu1 %v9998_v2  ;;  %v876_v1 = vld [vmem:[#allocation10 + $0x1228] sm:$0xff]  ;;  %v1131_v2 = vld [vmem:[#allocation10 + $0x1a20] sm:$0xff] }
 0x221   :  { %7344 = vmatpush1.bf16.msra.mxu0 %v9743_v42  ;;  %v884_v42 = vld [vmem:[#allocation10 + $0x1268] sm:$0xff] }
 0x222   :  { %7086 = vmatpush1.bf16.msra.mxu1 %v9997_v10  ;;  %7345 = vmatprep.subr.bf16.mxu0 %v9752_v11  ;;  %v1135_v10 = vld [vmem:[#allocation10 + $0x1a40] sm:$0xff]  ;;  %v9784_v14 = vcombine.high %v880_v7, %v884_v42 }
 0x223   :  { %v7197_v24 = vpop.f32.mrb[12].mxu0  ;;  %7087 = vmatprep.subr.bf16.mxu1 %v10006_v13  ;;  %v1139_v11 = vld [vmem:[#allocation10 + $0x1a60] sm:$0xff] }
 0x224   :  { %v11419_v39 = vadd.f32 %v7197_v24, %v11362_v33  ;;  %v7199_v40 = vpop.f32.mrb[13].mxu0  ;;  %v10038_v47 = vcombine.high %v1135_v10, %v1139_v11  ;;  %v10037_v24 = vcombine.low %v1135_v10, %v1139_v11 }
 0x225   :  { %v11422_v48 = vadd.f32 %v7199_v40, %v11364_v35  ;;  %v7201_v51 = vpop.f32.mrb[14].mxu0  ;;  %7346 = vmatpush1.bf16.msra.mxu0 %v9751_v19  ;;  %v1127_v35 = vld [vmem:[#allocation10 + $0x1a00] sm:$0xff]  ;;  %v900_v40 = vld [vmem:[#allocation10 + $0x12e8] sm:$0xff] }
 0x226   :  { %7088 = vmatpush1.bf16.msra.mxu1 %v10005_v21  ;;  %v11425_v55 = vadd.f32 %v7201_v51, %v11370_v49  ;;  %v7203_v56 = vpop.f32.mrb[15].mxu0  ;;  %7347 = vmatprep.subr.bf16.mxu0 %v9760_v23  ;;  %v9776_v49 = vcombine.high %v872_v62, %v876_v1  ;;  %v10030_v6 = vcombine.high %v1127_v35, %v1131_v2  ;;  %v1143_v19 = vld [vmem:[#allocation10 + $0x1a80] sm:$0xff] }
 0x227   :  { %v11428_v33 = vadd.f32 %v7203_v56, %v11372_v52  ;;  %7089 = vmatprep.subr.bf16.mxu1 %v10014_v26  ;;  %v9775_v52 = vcombine.low %v872_v62, %v876_v1  ;;  %v10029_v13 = vcombine.low %v1127_v35, %v1131_v2  ;;  %v1147_v21 = vld [vmem:[#allocation10 + $0x1aa0] sm:$0xff]  ;;  %v9783_v23 = vcombine.low %v880_v7, %v884_v42 }
 0x228   :  { %v9792_v26 = vcombine.high %v888_v15, %v892_v16  ;;  %v10046_v30 = vcombine.high %v1143_v19, %v1147_v21  ;;  %v9791_v51 = vcombine.low %v888_v15, %v892_v16  ;;  %v9800_v56 = vcombine.high %v896_v37, %v900_v40  ;;  %v1159_v62 = vld [vmem:[#allocation10 + $0x1b00] sm:$0xff] }
 0x229   :  { %7348 = vmatpush1.bf16.msra.mxu0 %v9759_v53  ;;  %v10045_v53 = vcombine.low %v1143_v19, %v1147_v21  ;;  %v1163_v1 = vld [vmem:[#allocation10 + $0x1b20] sm:$0xff]  ;;  %v9799_v35 = vcombine.low %v896_v37, %v900_v40  ;;  %v10053_v2 = vcombine.low %v1151_v41, %v1155_v45 }
 0x22a   :  { %7090 = vmatpush1.bf16.msra.mxu1 %v10013_v58  ;;  %7349 = vmatprep.subr.bf16.mxu0 %v9768_v59  ;;  %v10054_v58 = vcombine.high %v1151_v41, %v1155_v45  ;;  %v904_v59 = vld [vmem:[#allocation10 + $0x1308] sm:$0xff]  ;;  %v1167_v7 = vld [vmem:[#allocation10 + $0x1b40] sm:$0xff]  ;;  %v10061_v11 = vcombine.low %v1159_v62, %v1163_v1 }
 0x22b   :  { %7091 = vmatprep.subr.bf16.mxu1 %v10022_v61  ;;  %v908_v61 = vld [vmem:[#allocation10 + $0x1328] sm:$0xff]  ;;  %v1171_v42 = vld [vmem:[#allocation10 + $0x1b60] sm:$0xff] }
 0x22c   :  { %v9807_v10 = vcombine.low %v904_v59, %v908_v61  ;;  %v1175_v15 = vld [vmem:[#allocation10 + $0x1b80] sm:$0xff]  ;;  %v10069_v21 = vcombine.low %v1167_v7, %v1171_v42 }
 0x22d   :  { %7350 = vmatpush1.bf16.msra.mxu0 %v9767_v29  ;;  %v9808_v29 = vcombine.high %v904_v59, %v908_v61  ;;  %v1179_v16 = vld [vmem:[#allocation10 + $0x1ba0] sm:$0xff] }
 0x22e   :  { %7092 = vmatpush1.bf16.msra.mxu1 %v10021_v4  ;;  %7351 = vmatprep.subr.bf16.mxu0 %v9776_v49  ;;  %v10062_v4 = vcombine.high %v1159_v62, %v1163_v1  ;;  %v912_v49 = vld [vmem:[#allocation10 + $0x1348] sm:$0xff]  ;;  %v1183_v37 = vld [vmem:[#allocation10 + $0x1bc0] sm:$0xff]  ;;  %v10077_v45 = vcombine.low %v1175_v15, %v1179_v16 }
 0x22f   :  { %7093 = vmatprep.subr.bf16.mxu1 %v10030_v6  ;;  %v916_v6 = vld [vmem:[#allocation10 + $0x1368] sm:$0xff]  ;;  %v1187_v40 = vld [vmem:[#allocation10 + $0x1be0] sm:$0xff] }
 0x230   :  { %v9815_v19 = vcombine.low %v912_v49, %v916_v6  ;;  %v1191_v59 = vld [vmem:[#allocation10 + $0x1c00] sm:$0xff]  ;;  %v10085_v1 = vcombine.low %v1183_v37, %v1187_v40 }
 0x231   :  { %7352 = vmatpush1.bf16.msra.mxu0 %v9775_v52  ;;  %v9816_v52 = vcombine.high %v912_v49, %v916_v6  ;;  %v1195_v61 = vld [vmem:[#allocation10 + $0x1c20] sm:$0xff]  ;;  %v944_v6 = vld [vmem:[#allocation10 + $0x1448] sm:$0xff] }
 0x232   :  { %7094 = vmatpush1.bf16.msra.mxu1 %v10029_v13  ;;  %7353 = vmatprep.subr.bf16.mxu0 %v9784_v14  ;;  %v10070_v13 = vcombine.high %v1167_v7, %v1171_v42  ;;  %v920_v14 = vld [vmem:[#allocation10 + $0x1388] sm:$0xff]  ;;  %v1199_v49 = vld [vmem:[#allocation10 + $0x1c40] sm:$0xff] }
 0x233   :  { %7095 = vmatprep.subr.bf16.mxu1 %v10038_v47  ;;  %v924_v47 = vld [vmem:[#allocation10 + $0x13a8] sm:$0xff]  ;;  %v1203_v42 = vld [vmem:[#allocation10 + $0x1c60] sm:$0xff] }
 0x234   :  { %v9823_v41 = vcombine.low %v920_v14, %v924_v47  ;;  %v948_v7 = vld [vmem:[#allocation10 + $0x1468] sm:$0xff] }
 0x235   :  { %7354 = vmatpush1.bf16.msra.mxu0 %v9783_v23  ;;  %v9824_v23 = vcombine.high %v920_v14, %v924_v47  ;;  %v10093_v14 = vcombine.low %v1191_v59, %v1195_v61  ;;  %v9848_v47 = vcombine.high %v944_v6, %v948_v7 }
 0x236   :  { %7096 = vmatpush1.bf16.msra.mxu1 %v10037_v24  ;;  %7355 = vmatprep.subr.bf16.mxu0 %v9792_v26  ;;  %v10078_v24 = vcombine.high %v1175_v15, %v1179_v16  ;;  %v928_v26 = vld [vmem:[#allocation10 + $0x13c8] sm:$0xff]  ;;  %v10102_v15 = vcombine.high %v1199_v49, %v1203_v42 }
 0x237   :  { %7097 = vmatprep.subr.bf16.mxu1 %v10046_v30  ;;  %v932_v30 = vld [vmem:[#allocation10 + $0x13e8] sm:$0xff] }
 0x238   :  { %v9831_v62 = vcombine.low %v928_v26, %v932_v30  ;;  %v952_v16 = vld [vmem:[#allocation10 + $0x1488] sm:$0xff] }
 0x239   :  { %7356 = vmatpush1.bf16.msra.mxu0 %v9791_v51  ;;  %v9832_v51 = vcombine.high %v928_v26, %v932_v30  ;;  %v9847_v26 = vcombine.low %v944_v6, %v948_v7  ;;  %v10101_v30 = vcombine.low %v1199_v49, %v1203_v42  ;;  %v976_v7 = vld [vmem:[#allocation10 + $0x1548] sm:$0xff] }
 0x23a   :  { %7098 = vmatpush1.bf16.msra.mxu1 %v10045_v53  ;;  %7357 = vmatprep.subr.bf16.mxu0 %v9800_v56  ;;  %v10086_v53 = vcombine.high %v1183_v37, %v1187_v40  ;;  %v936_v56 = vld [vmem:[#allocation10 + $0x1408] sm:$0xff] }
 0x23b   :  { %7099 = vmatprep.subr.bf16.mxu1 %v10054_v58  ;;  %v940_v58 = vld [vmem:[#allocation10 + $0x1428] sm:$0xff] }
 0x23c   :  { %v980_v42 = vld [vmem:[#allocation10 + $0x1568] sm:$0xff] }
 0x23d   :  { %7358 = vmatpush1.bf16.msra.mxu0 %v9799_v35  ;;  %v9840_v35 = vcombine.high %v936_v56, %v940_v58 }
 0x23e   :  { %7100 = vmatpush1.bf16.msra.mxu1 %v10053_v2  ;;  %7359 = vmatprep.subr.bf16.mxu0 %v9808_v29  ;;  %v179_v2 = vld [vmem:[#allocation2 + $0x60] sm:$0xff] }
 0x23f   :  { %7101 = vmatprep.subr.bf16.mxu1 %v10062_v4  ;;  %v195_v29 = vld [vmem:[#allocation2 + $0xe0] sm:$0xff]  ;;  %v10094_v4 = vcombine.high %v1191_v59, %v1195_v61 }
 0x241   :  { %7360 = vmatpush1.bf16.msra.mxu0 %v9807_v10  ;;  %v182_v10 = vld [vmem:[#allocation2 + $0x78] sm:$0xff] }
 0x242   :  { %7102 = vmatpush1.bf16.msra.mxu1 %v10061_v11  ;;  %7361 = vmatprep.subr.bf16.mxu0 %v9816_v52  ;;  %v198_v11 = vld [vmem:[#allocation2 + $0xf8] sm:$0xff]  ;;  %v9839_v52 = vcombine.low %v936_v56, %v940_v58 }
 0x243   :  { %7103 = vmatprep.subr.bf16.mxu1 %v10070_v13  ;;  %v11430_v13 = vpack.c.bf16 %v195_v29, %v179_v2  ;;  %v1227_v2 = vld [vmem:[#allocation10 + $0x1d20] sm:$0xff] }
 0x245   :  { %7362 = vmatpush1.bf16.msra.mxu0 %v9815_v19  ;;  %v956_v19 = vld [vmem:[#allocation10 + $0x14a8] sm:$0xff] }
 0x246   :  { %7104 = vmatpush1.bf16.msra.mxu1 %v10069_v21  ;;  %7363 = vmatprep.subr.bf16.mxu0 %v9824_v23  ;;  %v11432_v21 = vpack.c.bf16 %v198_v11, %v182_v10  ;;  %v1207_v23 = vld [vmem:[#allocation10 + $0x1c80] sm:$0xff]  ;;  %v9856_v37 = vcombine.high %v952_v16, %v956_v19  ;;  %v9855_v56 = vcombine.low %v952_v16, %v956_v19  ;;  %v984_v16 = vld [vmem:[#allocation10 + $0x1588] sm:$0xff] }
 0x247   :  { %7105 = vmatprep.subr.bf16.mxu1 %v10078_v24  ;;  %v1211_v24 = vld [vmem:[#allocation10 + $0x1ca0] sm:$0xff]  ;;  %v988_v19 = vld [vmem:[#allocation10 + $0x15a8] sm:$0xff] }
 0x248   :  { %v10110_v40 = vcombine.high %v1207_v23, %v1211_v24  ;;  %v10109_v58 = vcombine.low %v1207_v23, %v1211_v24  ;;  %v1231_v10 = vld [vmem:[#allocation10 + $0x1d40] sm:$0xff] }
 0x249   :  { %7364 = vmatpush1.bf16.msra.mxu0 %v9823_v41  ;;  %v960_v41 = vld [vmem:[#allocation10 + $0x14c8] sm:$0xff]  ;;  %v1235_v11 = vld [vmem:[#allocation10 + $0x1d60] sm:$0xff] }
 0x24a   :  { %7106 = vmatpush1.bf16.msra.mxu1 %v10077_v45  ;;  %7365 = vmatprep.subr.bf16.mxu0 %v9832_v51  ;;  %v964_v45 = vld [vmem:[#allocation10 + $0x14e8] sm:$0xff]  ;;  %v1215_v51 = vld [vmem:[#allocation10 + $0x1cc0] sm:$0xff] }
 0x24b   :  { %7107 = vmatprep.subr.bf16.mxu1 %v10086_v53  ;;  %v1219_v53 = vld [vmem:[#allocation10 + $0x1ce0] sm:$0xff]  ;;  %v9864_v59 = vcombine.high %v960_v41, %v964_v45  ;;  %v9863_v29 = vcombine.low %v960_v41, %v964_v45  ;;  %v992_v41 = vld [vmem:[#allocation10 + $0x15c8] sm:$0xff] }
 0x24c   :  { %v10118_v61 = vcombine.high %v1215_v51, %v1219_v53  ;;  %v1239_v23 = vld [vmem:[#allocation10 + $0x1d80] sm:$0xff]  ;;  %v996_v45 = vld [vmem:[#allocation10 + $0x15e8] sm:$0xff] }
 0x24d   :  { %7366 = vmatpush1.bf16.msra.mxu0 %v9831_v62  ;;  %v968_v62 = vld [vmem:[#allocation10 + $0x1508] sm:$0xff]  ;;  %v1243_v24 = vld [vmem:[#allocation10 + $0x1da0] sm:$0xff] }
 0x24e   :  { %7108 = vmatpush1.bf16.msra.mxu1 %v10085_v1  ;;  %7378 = vmatprep.subr.bf16.mxu0 %v9840_v35  ;;  %v972_v1 = vld [vmem:[#allocation10 + $0x1528] sm:$0xff]  ;;  %v1223_v35 = vld [vmem:[#allocation10 + $0x1d00] sm:$0xff] }
 0x24f   :  { %7120 = vmatprep.subr.bf16.mxu1 %v10094_v4  ;;  %v10117_v4 = vcombine.low %v1215_v51, %v1219_v53  ;;  %v9872_v49 = vcombine.high %v968_v62, %v972_v1  ;;  %v10126_v6 = vcombine.high %v1223_v35, %v1227_v2  ;;  %v1247_v51 = vld [vmem:[#allocation10 + $0x1dc0] sm:$0xff] }
 0x250   :  { %7368 = vmatmul.mubr.bf16.vlgmr.msra.gmra.mrb[16].mxu0 %v11390_v20  ;;  %v1251_v53 = vld [vmem:[#allocation10 + $0x1de0] sm:$0xff] }
 0x251   :  { %7110 = vmatmul.mubr.bf16.vlgmr.msra.gmra.mrb[8].mxu1 %v11430_v13  ;;  %7379 = vmatpush1.bf16.msra.mxu0 %v9839_v52  ;;  %v9871_v52 = vcombine.low %v968_v62, %v972_v1  ;;  %v1000_v62 = vld [vmem:[#allocation10 + $0x1608] sm:$0xff] }
 0x252   :  { %7121 = vmatpush1.bf16.msra.mxu1 %v10093_v14  ;;  %7380 = vmatprep.subr.bf16.mxu0 %v9848_v47  ;;  %v10125_v14 = vcombine.low %v1223_v35, %v1227_v2  ;;  %v9880_v47 = vcombine.high %v976_v7, %v980_v42  ;;  %v1004_v1 = vld [vmem:[#allocation10 + $0x1628] sm:$0xff]  ;;  %v1255_v35 = vld [vmem:[#allocation10 + $0x1e00] sm:$0xff] }
 0x253   :  { %7122 = vmatprep.subr.bf16.mxu1 %v10102_v15  ;;  %7152 = vmatprep.mubr.bf16.mxu1 %v11432_v21  ;;  %v10134_v15 = vcombine.high %v1231_v10, %v1235_v11  ;;  %v1259_v2 = vld [vmem:[#allocation10 + $0x1e20] sm:$0xff] }
 0x254   :  { %7410 = vmatprep.mubr.bf16.mxu0 %v11392_v31 }
 0x255   :  { %7381 = vmatpush1.bf16.msra.mxu0 %v9847_v26  ;;  %v9879_v26 = vcombine.low %v976_v7, %v980_v42  ;;  %v1008_v7 = vld [vmem:[#allocation10 + $0x1648] sm:$0xff] }
 0x256   :  { %7123 = vmatpush1.bf16.msra.mxu1 %v10101_v30  ;;  %7382 = vmatprep.subr.bf16.mxu0 %v9856_v37  ;;  %v10133_v30 = vcombine.low %v1231_v10, %v1235_v11  ;;  %v9888_v37 = vcombine.high %v984_v16, %v988_v19  ;;  %v1012_v42 = vld [vmem:[#allocation10 + $0x1668] sm:$0xff]  ;;  %v1263_v10 = vld [vmem:[#allocation10 + $0x1e40] sm:$0xff] }
 0x257   :  { %7124 = vmatprep.subr.bf16.mxu1 %v10110_v40  ;;  %v10142_v40 = vcombine.high %v1239_v23, %v1243_v24  ;;  %v1267_v11 = vld [vmem:[#allocation10 + $0x1e60] sm:$0xff] }
 0x259   :  { %7383 = vmatpush1.bf16.msra.mxu0 %v9855_v56  ;;  %v9887_v56 = vcombine.low %v984_v16, %v988_v19  ;;  %v1016_v16 = vld [vmem:[#allocation10 + $0x1688] sm:$0xff] }
 0x25a   :  { %7125 = vmatpush1.bf16.msra.mxu1 %v10109_v58  ;;  %7384 = vmatprep.subr.bf16.mxu0 %v9864_v59  ;;  %v10141_v58 = vcombine.low %v1239_v23, %v1243_v24  ;;  %v9896_v59 = vcombine.high %v992_v41, %v996_v45  ;;  %v1020_v19 = vld [vmem:[#allocation10 + $0x16a8] sm:$0xff]  ;;  %v1271_v23 = vld [vmem:[#allocation10 + $0x1e80] sm:$0xff] }
 0x25b   :  { %7126 = vmatprep.subr.bf16.mxu1 %v10118_v61  ;;  %v10150_v61 = vcombine.high %v1247_v51, %v1251_v53  ;;  %v1275_v24 = vld [vmem:[#allocation10 + $0x1ea0] sm:$0xff] }
 0x25d   :  { %7385 = vmatpush1.bf16.msra.mxu0 %v9863_v29  ;;  %v9895_v29 = vcombine.low %v992_v41, %v996_v45  ;;  %v1024_v41 = vld [vmem:[#allocation10 + $0x16c8] sm:$0xff] }
 0x25e   :  { %7127 = vmatpush1.bf16.msra.mxu1 %v10117_v4  ;;  %7386 = vmatprep.subr.bf16.mxu0 %v9872_v49  ;;  %v10149_v4 = vcombine.low %v1247_v51, %v1251_v53  ;;  %v9904_v49 = vcombine.high %v1000_v62, %v1004_v1  ;;  %v1028_v45 = vld [vmem:[#allocation10 + $0x16e8] sm:$0xff]  ;;  %v1279_v51 = vld [vmem:[#allocation10 + $0x1ec0] sm:$0xff] }
 0x25f   :  { %7128 = vmatprep.subr.bf16.mxu1 %v10126_v6  ;;  %v10158_v6 = vcombine.high %v1255_v35, %v1259_v2  ;;  %v1283_v53 = vld [vmem:[#allocation10 + $0x1ee0] sm:$0xff] }
 0x261   :  { %7387 = vmatpush1.bf16.msra.mxu0 %v9871_v52  ;;  %v9903_v52 = vcombine.low %v1000_v62, %v1004_v1  ;;  %v1032_v62 = vld [vmem:[#allocation10 + $0x1708] sm:$0xff] }
 0x262   :  { %7129 = vmatpush1.bf16.msra.mxu1 %v10125_v14  ;;  %7388 = vmatprep.subr.bf16.mxu0 %v9880_v47  ;;  %v10157_v14 = vcombine.low %v1255_v35, %v1259_v2  ;;  %v9912_v47 = vcombine.high %v1008_v7, %v1012_v42  ;;  %v1036_v1 = vld [vmem:[#allocation10 + $0x1728] sm:$0xff]  ;;  %v1287_v35 = vld [vmem:[#allocation10 + $0x1f00] sm:$0xff] }
 0x263   :  { %7130 = vmatprep.subr.bf16.mxu1 %v10134_v15  ;;  %v10166_v15 = vcombine.high %v1263_v10, %v1267_v11  ;;  %v1291_v2 = vld [vmem:[#allocation10 + $0x1f20] sm:$0xff] }
 0x265   :  { %7389 = vmatpush1.bf16.msra.mxu0 %v9879_v26  ;;  %v9911_v26 = vcombine.low %v1008_v7, %v1012_v42  ;;  %v1040_v7 = vld [vmem:[#allocation10 + $0x1748] sm:$0xff] }
 0x266   :  { %7131 = vmatpush1.bf16.msra.mxu1 %v10133_v30  ;;  %7390 = vmatprep.subr.bf16.mxu0 %v9888_v37  ;;  %v10165_v30 = vcombine.low %v1263_v10, %v1267_v11  ;;  %v9920_v37 = vcombine.high %v1016_v16, %v1020_v19  ;;  %v1044_v42 = vld [vmem:[#allocation10 + $0x1768] sm:$0xff]  ;;  %v1295_v10 = vld [vmem:[#allocation10 + $0x1f40] sm:$0xff] }
 0x267   :  { %7132 = vmatprep.subr.bf16.mxu1 %v10142_v40  ;;  %v10174_v40 = vcombine.high %v1271_v23, %v1275_v24  ;;  %v1299_v11 = vld [vmem:[#allocation10 + $0x1f60] sm:$0xff] }
 0x269   :  { %7391 = vmatpush1.bf16.msra.mxu0 %v9887_v56  ;;  %v9919_v56 = vcombine.low %v1016_v16, %v1020_v19  ;;  %v1048_v16 = vld [vmem:[#allocation10 + $0x1788] sm:$0xff] }
 0x26a   :  { %7133 = vmatpush1.bf16.msra.mxu1 %v10141_v58  ;;  %7392 = vmatprep.subr.bf16.mxu0 %v9896_v59  ;;  %v10173_v58 = vcombine.low %v1271_v23, %v1275_v24  ;;  %v9928_v59 = vcombine.high %v1024_v41, %v1028_v45  ;;  %v1052_v19 = vld [vmem:[#allocation10 + $0x17a8] sm:$0xff]  ;;  %v1303_v23 = vld [vmem:[#allocation10 + $0x1f80] sm:$0xff] }
 0x26b   :  { %7134 = vmatprep.subr.bf16.mxu1 %v10150_v61  ;;  %v10182_v61 = vcombine.high %v1279_v51, %v1283_v53  ;;  %v1307_v24 = vld [vmem:[#allocation10 + $0x1fa0] sm:$0xff] }
 0x26d   :  { %7393 = vmatpush1.bf16.msra.mxu0 %v9895_v29  ;;  %v9927_v29 = vcombine.low %v1024_v41, %v1028_v45  ;;  %v1056_v41 = vld [vmem:[#allocation10 + $0x17c8] sm:$0xff] }
 0x26e   :  { %7135 = vmatpush1.bf16.msra.mxu1 %v10149_v4  ;;  %7394 = vmatprep.subr.bf16.mxu0 %v9904_v49  ;;  %v10181_v4 = vcombine.low %v1279_v51, %v1283_v53  ;;  %v9936_v49 = vcombine.high %v1032_v62, %v1036_v1  ;;  %v1060_v45 = vld [vmem:[#allocation10 + $0x17e8] sm:$0xff]  ;;  %v1311_v51 = vld [vmem:[#allocation10 + $0x1fc0] sm:$0xff] }
 0x26f   :  { %7136 = vmatprep.subr.bf16.mxu1 %v10158_v6  ;;  %v10190_v6 = vcombine.high %v1287_v35, %v1291_v2  ;;  %v1315_v53 = vld [vmem:[#allocation10 + $0x1fe0] sm:$0xff] }
 0x271   :  { %7395 = vmatpush1.bf16.msra.mxu0 %v9903_v52  ;;  %v9935_v52 = vcombine.low %v1032_v62, %v1036_v1  ;;  %v1064_v62 = vld [vmem:[#allocation10 + $0x1808] sm:$0xff] }
 0x272   :  { %7137 = vmatpush1.bf16.msra.mxu1 %v10157_v14  ;;  %7396 = vmatprep.subr.bf16.mxu0 %v9912_v47  ;;  %v10189_v14 = vcombine.low %v1287_v35, %v1291_v2  ;;  %v9944_v47 = vcombine.high %v1040_v7, %v1044_v42  ;;  %v1068_v1 = vld [vmem:[#allocation10 + $0x1828] sm:$0xff]  ;;  %v297_v35 = vld [vmem:[#allocation10 + $0x10] sm:$0xff] }
 0x273   :  { %7138 = vmatprep.subr.bf16.mxu1 %v10166_v15  ;;  %v10198_v15 = vcombine.high %v1295_v10, %v1299_v11  ;;  %v301_v2 = vld [vmem:[#allocation10 + $0x30] sm:$0xff] }
 0x275   :  { %7397 = vmatpush1.bf16.msra.mxu0 %v9911_v26  ;;  %v9943_v26 = vcombine.low %v1040_v7, %v1044_v42  ;;  %v9968_v7 = vcombine.high %v1064_v62, %v1068_v1  ;;  %v9202_v42 = vcombine.high %v297_v35, %v301_v2 }
 0x276   :  { %7139 = vmatpush1.bf16.msra.mxu1 %v10165_v30  ;;  %7398 = vmatprep.subr.bf16.mxu0 %v9920_v37  ;;  %v10197_v30 = vcombine.low %v1295_v10, %v1299_v11  ;;  %v9952_v37 = vcombine.high %v1048_v16, %v1052_v19  ;;  %v1072_v10 = vld [vmem:[#allocation10 + $0x1848] sm:$0xff] }
 0x277   :  { %7140 = vmatprep.subr.bf16.mxu1 %v10174_v40  ;;  %v10206_v40 = vcombine.high %v1303_v23, %v1307_v24  ;;  %v1076_v11 = vld [vmem:[#allocation10 + $0x1868] sm:$0xff] }
 0x279   :  { %7399 = vmatpush1.bf16.msra.mxu0 %v9919_v56  ;;  %v9951_v56 = vcombine.low %v1048_v16, %v1052_v19  ;;  %v9201_v16 = vcombine.low %v297_v35, %v301_v2  ;;  %v9976_v19 = vcombine.high %v1072_v10, %v1076_v11  ;;  %v1096_v2 = vld [vmem:[#allocation10 + $0x1908] sm:$0xff] }
 0x27a   :  { %7141 = vmatpush1.bf16.msra.mxu1 %v10173_v58  ;;  %7400 = vmatprep.subr.bf16.mxu0 %v9928_v59  ;;  %v10205_v58 = vcombine.low %v1303_v23, %v1307_v24  ;;  %v9960_v59 = vcombine.high %v1056_v41, %v1060_v45  ;;  %v1080_v24 = vld [vmem:[#allocation10 + $0x1888] sm:$0xff] }
 0x27b   :  { %7142 = vmatprep.subr.bf16.mxu1 %v10182_v61  ;;  %v10214_v61 = vcombine.high %v1311_v51, %v1315_v53 }
 0x27d   :  { %7401 = vmatpush1.bf16.msra.mxu0 %v9927_v29  ;;  %v9959_v29 = vcombine.low %v1056_v41, %v1060_v45 }
 0x27e   :  { %7143 = vmatpush1.bf16.msra.mxu1 %v10181_v4  ;;  %7402 = vmatprep.subr.bf16.mxu0 %v9936_v49  ;;  %v10213_v4 = vcombine.low %v1311_v51, %v1315_v53  ;;  %v181_v49 = vld [vmem:[#allocation2 + $0x70] sm:$0xff]  ;;  %v1088_v53 = vld [vmem:[#allocation10 + $0x18c8] sm:$0xff] }
 0x27f   :  { %7144 = vmatprep.subr.bf16.mxu1 %v10190_v6  ;;  %v197_v6 = vld [vmem:[#allocation2 + $0xf0] sm:$0xff] }
 0x281   :  { %7403 = vmatpush1.bf16.msra.mxu0 %v9935_v52  ;;  %v305_v52 = vld [vmem:[#allocation10 + $0x50] sm:$0xff] }
 0x282   :  { %7145 = vmatpush1.bf16.msra.mxu1 %v10189_v14  ;;  %7404 = vmatprep.subr.bf16.mxu0 %v9944_v47  ;;  %v309_v14 = vld [vmem:[#allocation10 + $0x70] sm:$0xff]  ;;  %v11438_v47 = vpack.c.bf16 %v197_v6, %v181_v49 }
 0x283   :  { %7146 = vmatprep.subr.bf16.mxu1 %v10198_v15  ;;  %v9967_v15 = vcombine.low %v1064_v62, %v1068_v1  ;;  %v9210_v23 = vcombine.high %v305_v52, %v309_v14  ;;  %v9209_v41 = vcombine.low %v305_v52, %v309_v14  ;;  %v333_v49 = vld [vmem:[#allocation10 + $0x130] sm:$0xff]  ;;  %v1108_v52 = vld [vmem:[#allocation10 + $0x1968] sm:$0xff] }
 0x284   :  { %v337_v14 = vld [vmem:[#allocation10 + $0x150] sm:$0xff] }
 0x285   :  { %7405 = vmatpush1.bf16.msra.mxu0 %v9943_v26  ;;  %v1084_v26 = vld [vmem:[#allocation10 + $0x18a8] sm:$0xff] }
 0x286   :  { %7147 = vmatpush1.bf16.msra.mxu1 %v10197_v30  ;;  %7406 = vmatprep.subr.bf16.mxu0 %v9952_v37  ;;  %v313_v30 = vld [vmem:[#allocation10 + $0x90] sm:$0xff]  ;;  %v9984_v45 = vcombine.high %v1080_v24, %v1084_v26 }
 0x287   :  { %7148 = vmatprep.subr.bf16.mxu1 %v10206_v40  ;;  %v317_v37 = vld [vmem:[#allocation10 + $0xb0] sm:$0xff]  ;;  %v9975_v40 = vcombine.low %v1072_v10, %v1076_v11  ;;  %v1104_v11 = vld [vmem:[#allocation10 + $0x1948] sm:$0xff] }
 0x288   :  { %v9218_v51 = vcombine.high %v313_v30, %v317_v37  ;;  %v9217_v62 = vcombine.low %v313_v30, %v317_v37  ;;  %v1116_v30 = vld [vmem:[#allocation10 + $0x19a8] sm:$0xff]  ;;  %v345_v37 = vld [vmem:[#allocation10 + $0x190] sm:$0xff] }
 0x289   :  { %7407 = vmatpush1.bf16.msra.mxu0 %v9951_v56  ;;  %v1092_v56 = vld [vmem:[#allocation10 + $0x18e8] sm:$0xff] }
 0x28a   :  { %7149 = vmatpush1.bf16.msra.mxu1 %v10205_v58  ;;  %7408 = vmatprep.subr.bf16.mxu0 %v9960_v59  ;;  %v321_v58 = vld [vmem:[#allocation10 + $0xd0] sm:$0xff]  ;;  %v9992_v1 = vcombine.high %v1088_v53, %v1092_v56  ;;  %v9991_v6 = vcombine.low %v1088_v53, %v1092_v56  ;;  %v1120_v56 = vld [vmem:[#allocation10 + $0x19c8] sm:$0xff] }
 0x28b   :  { %7150 = vmatprep.subr.bf16.mxu1 %v10214_v61  ;;  %v325_v59 = vld [vmem:[#allocation10 + $0xf0] sm:$0xff]  ;;  %v9983_v61 = vcombine.low %v1080_v24, %v1084_v26  ;;  %v1112_v26 = vld [vmem:[#allocation10 + $0x1988] sm:$0xff] }
 0x28c   :  { %v9226_v35 = vcombine.high %v321_v58, %v325_v59 }
 0x28d   :  { %7409 = vmatpush1.bf16.msra.mxu0 %v9959_v29  ;;  %v1100_v29 = vld [vmem:[#allocation10 + $0x1928] sm:$0xff] }
 0x28e   :  { %7151 = vmatpush1.bf16.msra.mxu1 %v10213_v4  ;;  %7421 = vmatprep.subr.bf16.mxu0 %v9968_v7  ;;  %v329_v4 = vld [vmem:[#allocation10 + $0x110] sm:$0xff]  ;;  %v9225_v7 = vcombine.low %v321_v58, %v325_v59  ;;  %v1124_v58 = vld [vmem:[#allocation10 + $0x19e8] sm:$0xff] }
 0x28f   :  { %7507 = vmatprep.subr.bf16.mxu1 %v9202_v42  ;;  %v10000_v42 = vcombine.high %v1096_v2, %v1100_v29  ;;  %v9234_v10 = vcombine.high %v329_v4, %v333_v49  ;;  %v353_v59 = vld [vmem:[#allocation10 + $0x1d0] sm:$0xff] }
 0x290   :  { %7411 = vmatmul.mubr.bf16.vlgmr.msra.gmra.mrb[16].mxu0 %v11410_v12 }
 0x291   :  { %7153 = vmatmul.mubr.bf16.vlgmr.msra.gmra.mrb[8].mxu1 %v11438_v47  ;;  %7422 = vmatpush1.bf16.msra.mxu0 %v9967_v15  ;;  %v341_v15 = vld [vmem:[#allocation10 + $0x170] sm:$0xff] }
 0x292   :  { %7508 = vmatpush1.bf16.msra.mxu1 %v9201_v16  ;;  %7423 = vmatprep.subr.bf16.mxu0 %v9976_v19  ;;  %v9999_v16 = vcombine.low %v1096_v2, %v1100_v29  ;;  %v9233_v19 = vcombine.low %v329_v4, %v333_v49  ;;  %v9242_v24 = vcombine.high %v337_v14, %v341_v15  ;;  %v1128_v29 = vld [vmem:[#allocation10 + $0x1a08] sm:$0xff]  ;;  %v361_v49 = vld [vmem:[#allocation10 + $0x210] sm:$0xff] }
 0x293   :  { %7509 = vmatprep.subr.bf16.mxu1 %v9210_v23  ;;  %7539 = vmatprep.mubr.bf16.mxu1 %v11326_v38  ;;  %v10008_v23 = vcombine.high %v1104_v11, %v1108_v52  ;;  %v1132_v4 = vld [vmem:[#allocation10 + $0x1a28] sm:$0xff] }
 0x294   :  { %7453 = vmatprep.mubr.bf16.mxu0 %v11412_v17 }
 0x295   :  { %7424 = vmatpush1.bf16.msra.mxu0 %v9975_v40  ;;  %v349_v40 = vld [vmem:[#allocation10 + $0x1b0] sm:$0xff] }
 0x296   :  { %7510 = vmatpush1.bf16.msra.mxu1 %v9209_v41  ;;  %7425 = vmatprep.subr.bf16.mxu0 %v9984_v45  ;;  %v10007_v41 = vcombine.low %v1104_v11, %v1108_v52  ;;  %v9241_v45 = vcombine.low %v337_v14, %v341_v15  ;;  %v9250_v53 = vcombine.high %v345_v37, %v349_v40  ;;  %v1136_v52 = vld [vmem:[#allocation10 + $0x1a48] sm:$0xff]  ;;  %v369_v15 = vld [vmem:[#allocation10 + $0x250] sm:$0xff] }
 0x297   :  { %7511 = vmatprep.subr.bf16.mxu1 %v9218_v51  ;;  %v10016_v51 = vcombine.high %v1112_v26, %v1116_v30  ;;  %v1140_v14 = vld [vmem:[#allocation10 + $0x1a68] sm:$0xff] }
 0x299   :  { %7426 = vmatpush1.bf16.msra.mxu0 %v9983_v61  ;;  %v357_v61 = vld [vmem:[#allocation10 + $0x1f0] sm:$0xff] }
 0x29a   :  { %7512 = vmatpush1.bf16.msra.mxu1 %v9217_v62  ;;  %7427 = vmatprep.subr.bf16.mxu0 %v9992_v1  ;;  %v10015_v62 = vcombine.low %v1112_v26, %v1116_v30  ;;  %v9249_v1 = vcombine.low %v345_v37, %v349_v40  ;;  %v9258_v2 = vcombine.high %v353_v59, %v357_v61  ;;  %v1144_v30 = vld [vmem:[#allocation10 + $0x1a88] sm:$0xff]  ;;  %v377_v40 = vld [vmem:[#allocation10 + $0x290] sm:$0xff] }
 0x29b   :  { %7513 = vmatprep.subr.bf16.mxu1 %v9226_v35  ;;  %v10024_v35 = vcombine.high %v1120_v56, %v1124_v58  ;;  %v1148_v37 = vld [vmem:[#allocation10 + $0x1aa8] sm:$0xff] }
 0x29d   :  { %7428 = vmatpush1.bf16.msra.mxu0 %v9991_v6  ;;  %v365_v6 = vld [vmem:[#allocation10 + $0x230] sm:$0xff] }
 0x29e   :  { %7514 = vmatpush1.bf16.msra.mxu1 %v9225_v7  ;;  %7429 = vmatprep.subr.bf16.mxu0 %v10000_v42  ;;  %v10023_v7 = vcombine.low %v1120_v56, %v1124_v58  ;;  %v9257_v42 = vcombine.low %v353_v59, %v357_v61  ;;  %v9266_v11 = vcombine.high %v361_v49, %v365_v6  ;;  %v1152_v58 = vld [vmem:[#allocation10 + $0x1ac8] sm:$0xff]  ;;  %v385_v61 = vld [vmem:[#allocation10 + $0x2d0] sm:$0xff] }
 0x29f   :  { %7515 = vmatprep.subr.bf16.mxu1 %v9234_v10  ;;  %v10032_v10 = vcombine.high %v1128_v29, %v1132_v4  ;;  %v1156_v59 = vld [vmem:[#allocation10 + $0x1ae8] sm:$0xff] }
 0x2a1   :  { %7430 = vmatpush1.bf16.msra.mxu0 %v9999_v16  ;;  %v373_v16 = vld [vmem:[#allocation10 + $0x270] sm:$0xff] }
 0x2a2   :  { %7516 = vmatpush1.bf16.msra.mxu1 %v9233_v19  ;;  %7431 = vmatprep.subr.bf16.mxu0 %v10008_v23  ;;  %v10031_v19 = vcombine.low %v1128_v29, %v1132_v4  ;;  %v9265_v23 = vcombine.low %v361_v49, %v365_v6  ;;  %v9274_v26 = vcombine.high %v369_v15, %v373_v16  ;;  %v1160_v4 = vld [vmem:[#allocation10 + $0x1b08] sm:$0xff]  ;;  %v393_v6 = vld [vmem:[#allocation10 + $0x310] sm:$0xff] }
 0x2a3   :  { %7517 = vmatprep.subr.bf16.mxu1 %v9242_v24  ;;  %v10040_v24 = vcombine.high %v1136_v52, %v1140_v14  ;;  %v1164_v49 = vld [vmem:[#allocation10 + $0x1b28] sm:$0xff] }
 0x2a5   :  { %7432 = vmatpush1.bf16.msra.mxu0 %v10007_v41  ;;  %v381_v41 = vld [vmem:[#allocation10 + $0x2b0] sm:$0xff] }
 0x2a6   :  { %7518 = vmatpush1.bf16.msra.mxu1 %v9241_v45  ;;  %7433 = vmatprep.subr.bf16.mxu0 %v10016_v51  ;;  %v10039_v45 = vcombine.low %v1136_v52, %v1140_v14  ;;  %v9273_v51 = vcombine.low %v369_v15, %v373_v16  ;;  %v9282_v56 = vcombine.high %v377_v40, %v381_v41  ;;  %v1168_v14 = vld [vmem:[#allocation10 + $0x1b48] sm:$0xff]  ;;  %v401_v16 = vld [vmem:[#allocation10 + $0x350] sm:$0xff] }
 0x2a7   :  { %7519 = vmatprep.subr.bf16.mxu1 %v9250_v53  ;;  %v10048_v53 = vcombine.high %v1144_v30, %v1148_v37  ;;  %v1172_v15 = vld [vmem:[#allocation10 + $0x1b68] sm:$0xff] }
 0x2a9   :  { %7434 = vmatpush1.bf16.msra.mxu0 %v10015_v62  ;;  %v389_v62 = vld [vmem:[#allocation10 + $0x2f0] sm:$0xff] }
 0x2aa   :  { %7520 = vmatpush1.bf16.msra.mxu1 %v9249_v1  ;;  %7435 = vmatprep.subr.bf16.mxu0 %v10024_v35  ;;  %v10047_v1 = vcombine.low %v1144_v30, %v1148_v37  ;;  %v9281_v35 = vcombine.low %v377_v40, %v381_v41  ;;  %v9290_v29 = vcombine.high %v385_v61, %v389_v62  ;;  %v1176_v37 = vld [vmem:[#allocation10 + $0x1b88] sm:$0xff]  ;;  %v409_v41 = vld [vmem:[#allocation10 + $0x390] sm:$0xff] }
 0x2ab   :  { %7521 = vmatprep.subr.bf16.mxu1 %v9258_v2  ;;  %v10056_v2 = vcombine.high %v1152_v58, %v1156_v59  ;;  %v1180_v40 = vld [vmem:[#allocation10 + $0x1ba8] sm:$0xff] }
 0x2ad   :  { %7436 = vmatpush1.bf16.msra.mxu0 %v10023_v7  ;;  %v397_v7 = vld [vmem:[#allocation10 + $0x330] sm:$0xff] }
 0x2ae   :  { %7522 = vmatpush1.bf16.msra.mxu1 %v9257_v42  ;;  %7437 = vmatprep.subr.bf16.mxu0 %v10032_v10  ;;  %v10055_v42 = vcombine.low %v1152_v58, %v1156_v59  ;;  %v9289_v10 = vcombine.low %v385_v61, %v389_v62  ;;  %v9298_v52 = vcombine.high %v393_v6, %v397_v7  ;;  %v1184_v59 = vld [vmem:[#allocation10 + $0x1bc8] sm:$0xff]  ;;  %v417_v62 = vld [vmem:[#allocation10 + $0x3d0] sm:$0xff] }
 0x2af   :  { %7523 = vmatprep.subr.bf16.mxu1 %v9266_v11  ;;  %v10064_v11 = vcombine.high %v1160_v4, %v1164_v49  ;;  %v1188_v61 = vld [vmem:[#allocation10 + $0x1be8] sm:$0xff] }
 0x2b1   :  { %7438 = vmatpush1.bf16.msra.mxu0 %v10031_v19  ;;  %v405_v19 = vld [vmem:[#allocation10 + $0x370] sm:$0xff] }
 0x2b2   :  { %7524 = vmatpush1.bf16.msra.mxu1 %v9265_v23  ;;  %7439 = vmatprep.subr.bf16.mxu0 %v10040_v24  ;;  %v10063_v23 = vcombine.low %v1160_v4, %v1164_v49  ;;  %v9297_v24 = vcombine.low %v393_v6, %v397_v7  ;;  %v9306_v30 = vcombine.high %v401_v16, %v405_v19  ;;  %v1192_v49 = vld [vmem:[#allocation10 + $0x1c08] sm:$0xff]  ;;  %v425_v7 = vld [vmem:[#allocation10 + $0x410] sm:$0xff] }
 0x2b3   :  { %7525 = vmatprep.subr.bf16.mxu1 %v9274_v26  ;;  %v10072_v26 = vcombine.high %v1168_v14, %v1172_v15  ;;  %v1196_v6 = vld [vmem:[#allocation10 + $0x1c28] sm:$0xff] }
 0x2b5   :  { %7440 = vmatpush1.bf16.msra.mxu0 %v10039_v45  ;;  %v413_v45 = vld [vmem:[#allocation10 + $0x3b0] sm:$0xff] }
 0x2b6   :  { %7526 = vmatpush1.bf16.msra.mxu1 %v9273_v51  ;;  %7441 = vmatprep.subr.bf16.mxu0 %v10048_v53  ;;  %v10071_v51 = vcombine.low %v1168_v14, %v1172_v15  ;;  %v9305_v53 = vcombine.low %v401_v16, %v405_v19  ;;  %v9314_v58 = vcombine.high %v409_v41, %v413_v45  ;;  %v1200_v15 = vld [vmem:[#allocation10 + $0x1c48] sm:$0xff]  ;;  %v433_v19 = vld [vmem:[#allocation10 + $0x450] sm:$0xff] }
 0x2b7   :  { %7527 = vmatprep.subr.bf16.mxu1 %v9282_v56  ;;  %v10080_v56 = vcombine.high %v1176_v37, %v1180_v40  ;;  %v1204_v16 = vld [vmem:[#allocation10 + $0x1c68] sm:$0xff] }
 0x2b9   :  { %7442 = vmatpush1.bf16.msra.mxu0 %v10047_v1  ;;  %v421_v1 = vld [vmem:[#allocation10 + $0x3f0] sm:$0xff] }
 0x2ba   :  { %7528 = vmatpush1.bf16.msra.mxu1 %v9281_v35  ;;  %7443 = vmatprep.subr.bf16.mxu0 %v10056_v2  ;;  %v10079_v35 = vcombine.low %v1176_v37, %v1180_v40  ;;  %v9313_v2 = vcombine.low %v409_v41, %v413_v45  ;;  %v9322_v4 = vcombine.high %v417_v62, %v421_v1  ;;  %v1208_v40 = vld [vmem:[#allocation10 + $0x1c88] sm:$0xff]  ;;  %v441_v45 = vld [vmem:[#allocation10 + $0x490] sm:$0xff] }
 0x2bb   :  { %7529 = vmatprep.subr.bf16.mxu1 %v9290_v29  ;;  %v10088_v29 = vcombine.high %v1184_v59, %v1188_v61  ;;  %v1212_v41 = vld [vmem:[#allocation10 + $0x1ca8] sm:$0xff] }
 0x2bd   :  { %7444 = vmatpush1.bf16.msra.mxu0 %v10055_v42  ;;  %v429_v42 = vld [vmem:[#allocation10 + $0x430] sm:$0xff] }
 0x2be   :  { %7530 = vmatpush1.bf16.msra.mxu1 %v9289_v10  ;;  %7445 = vmatprep.subr.bf16.mxu0 %v10064_v11  ;;  %v10087_v10 = vcombine.low %v1184_v59, %v1188_v61  ;;  %v9321_v11 = vcombine.low %v417_v62, %v421_v1  ;;  %v9330_v14 = vcombine.high %v425_v7, %v429_v42  ;;  %v1216_v61 = vld [vmem:[#allocation10 + $0x1cc8] sm:$0xff]  ;;  %v449_v1 = vld [vmem:[#allocation10 + $0x4d0] sm:$0xff] }
 0x2bf   :  { %7531 = vmatprep.subr.bf16.mxu1 %v9298_v52  ;;  %v10096_v52 = vcombine.high %v1192_v49, %v1196_v6  ;;  %v1220_v62 = vld [vmem:[#allocation10 + $0x1ce8] sm:$0xff] }
 0x2c1   :  { %7446 = vmatpush1.bf16.msra.mxu0 %v10063_v23  ;;  %v437_v23 = vld [vmem:[#allocation10 + $0x470] sm:$0xff] }
 0x2c2   :  { %7532 = vmatpush1.bf16.msra.mxu1 %v9297_v24  ;;  %7447 = vmatprep.subr.bf16.mxu0 %v10072_v26  ;;  %v10095_v24 = vcombine.low %v1192_v49, %v1196_v6  ;;  %v9329_v26 = vcombine.low %v425_v7, %v429_v42  ;;  %v9338_v37 = vcombine.high %v433_v19, %v437_v23  ;;  %v1224_v6 = vld [vmem:[#allocation10 + $0x1d08] sm:$0xff]  ;;  %v457_v42 = vld [vmem:[#allocation10 + $0x510] sm:$0xff] }
 0x2c3   :  { %7533 = vmatprep.subr.bf16.mxu1 %v9306_v30  ;;  %v10104_v30 = vcombine.high %v1200_v15, %v1204_v16  ;;  %v1228_v7 = vld [vmem:[#allocation10 + $0x1d28] sm:$0xff] }
 0x2c5   :  { %7448 = vmatpush1.bf16.msra.mxu0 %v10071_v51  ;;  %v445_v51 = vld [vmem:[#allocation10 + $0x4b0] sm:$0xff] }
 0x2c6   :  { %7534 = vmatpush1.bf16.msra.mxu1 %v9305_v53  ;;  %7449 = vmatprep.subr.bf16.mxu0 %v10080_v56  ;;  %v10103_v53 = vcombine.low %v1200_v15, %v1204_v16  ;;  %v9337_v56 = vcombine.low %v433_v19, %v437_v23  ;;  %v9346_v59 = vcombine.high %v441_v45, %v445_v51  ;;  %v1232_v16 = vld [vmem:[#allocation10 + $0x1d48] sm:$0xff]  ;;  %v465_v23 = vld [vmem:[#allocation10 + $0x550] sm:$0xff] }
 0x2c7   :  { %7535 = vmatprep.subr.bf16.mxu1 %v9314_v58  ;;  %v10112_v58 = vcombine.high %v1208_v40, %v1212_v41  ;;  %v1236_v19 = vld [vmem:[#allocation10 + $0x1d68] sm:$0xff] }
 0x2c9   :  { %7450 = vmatpush1.bf16.msra.mxu0 %v10079_v35  ;;  %v453_v35 = vld [vmem:[#allocation10 + $0x4f0] sm:$0xff] }
 0x2ca   :  { %7536 = vmatpush1.bf16.msra.mxu1 %v9313_v2  ;;  %7451 = vmatprep.subr.bf16.mxu0 %v10088_v29  ;;  %v10111_v2 = vcombine.low %v1208_v40, %v1212_v41  ;;  %v9345_v29 = vcombine.low %v441_v45, %v445_v51  ;;  %v9354_v49 = vcombine.high %v449_v1, %v453_v35  ;;  %v1240_v41 = vld [vmem:[#allocation10 + $0x1d88] sm:$0xff]  ;;  %v473_v51 = vld [vmem:[#allocation10 + $0x590] sm:$0xff] }
 0x2cb   :  { %7537 = vmatprep.subr.bf16.mxu1 %v9322_v4  ;;  %v10120_v4 = vcombine.high %v1216_v61, %v1220_v62  ;;  %v1244_v45 = vld [vmem:[#allocation10 + $0x1da8] sm:$0xff] }
 0x2cd   :  { %7452 = vmatpush1.bf16.msra.mxu0 %v10087_v10  ;;  %v461_v10 = vld [vmem:[#allocation10 + $0x530] sm:$0xff] }
 0x2ce   :  { %7538 = vmatpush1.bf16.msra.mxu1 %v9321_v11  ;;  %7464 = vmatprep.subr.bf16.mxu0 %v10096_v52  ;;  %v10119_v11 = vcombine.low %v1216_v61, %v1220_v62  ;;  %v9353_v52 = vcombine.low %v449_v1, %v453_v35  ;;  %v9362_v15 = vcombine.high %v457_v42, %v461_v10  ;;  %v1248_v62 = vld [vmem:[#allocation10 + $0x1dc8] sm:$0xff]  ;;  %v481_v35 = vld [vmem:[#allocation10 + $0x5d0] sm:$0xff] }
 0x2cf   :  { %7550 = vmatprep.subr.bf16.mxu1 %v9330_v14  ;;  %v10128_v14 = vcombine.high %v1224_v6, %v1228_v7  ;;  %v1252_v1 = vld [vmem:[#allocation10 + $0x1de8] sm:$0xff] }
 0x2d0   :  { %7454 = vmatmul.mubr.bf16.vlgmr.msra.gmra.mrb[16].mxu0 %v11430_v13 }
 0x2d1   :  { %7540 = vmatmul.mubr.bf16.vlgmr.msra.gmra.mrb[12].mxu1 %v11332_v18  ;;  %7465 = vmatpush1.bf16.msra.mxu0 %v10095_v24  ;;  %v469_v24 = vld [vmem:[#allocation10 + $0x570] sm:$0xff] }
 0x2d2   :  { %7551 = vmatpush1.bf16.msra.mxu1 %v9329_v26  ;;  %7466 = vmatprep.subr.bf16.mxu0 %v10104_v30  ;;  %v10127_v26 = vcombine.low %v1224_v6, %v1228_v7  ;;  %v9361_v30 = vcombine.low %v457_v42, %v461_v10  ;;  %v9370_v40 = vcombine.high %v465_v23, %v469_v24  ;;  %v1256_v7 = vld [vmem:[#allocation10 + $0x1e08] sm:$0xff]  ;;  %v489_v10 = vld [vmem:[#allocation10 + $0x610] sm:$0xff] }
 0x2d3   :  { %7552 = vmatprep.subr.bf16.mxu1 %v9338_v37  ;;  %7496 = vmatprep.mubr.bf16.mxu0 %v11432_v21  ;;  %v10136_v37 = vcombine.high %v1232_v16, %v1236_v19  ;;  %v1260_v42 = vld [vmem:[#allocation10 + $0x1e28] sm:$0xff] }
 0x2d4   :  { %7582 = vmatprep.mubr.bf16.mxu1 %v11329_v44 }
 0x2d5   :  { %7467 = vmatpush1.bf16.msra.mxu0 %v10103_v53  ;;  %v477_v53 = vld [vmem:[#allocation10 + $0x5b0] sm:$0xff] }
 0x2d6   :  { %7553 = vmatpush1.bf16.msra.mxu1 %v9337_v56  ;;  %7468 = vmatprep.subr.bf16.mxu0 %v10112_v58  ;;  %v10135_v56 = vcombine.low %v1232_v16, %v1236_v19  ;;  %v9369_v58 = vcombine.low %v465_v23, %v469_v24  ;;  %v9378_v61 = vcombine.high %v473_v51, %v477_v53  ;;  %v1264_v19 = vld [vmem:[#allocation10 + $0x1e48] sm:$0xff]  ;;  %v497_v24 = vld [vmem:[#allocation10 + $0x650] sm:$0xff] }
 0x2d7   :  { %7554 = vmatprep.subr.bf16.mxu1 %v9346_v59  ;;  %v10144_v59 = vcombine.high %v1240_v41, %v1244_v45  ;;  %v1268_v23 = vld [vmem:[#allocation10 + $0x1e68] sm:$0xff] }
 0x2d9   :  { %7469 = vmatpush1.bf16.msra.mxu0 %v10111_v2  ;;  %v485_v2 = vld [vmem:[#allocation10 + $0x5f0] sm:$0xff] }
 0x2da   :  { %7555 = vmatpush1.bf16.msra.mxu1 %v9345_v29  ;;  %7470 = vmatprep.subr.bf16.mxu0 %v10120_v4  ;;  %v10143_v29 = vcombine.low %v1240_v41, %v1244_v45  ;;  %v9377_v4 = vcombine.low %v473_v51, %v477_v53  ;;  %v9386_v6 = vcombine.high %v481_v35, %v485_v2  ;;  %v1272_v45 = vld [vmem:[#allocation10 + $0x1e88] sm:$0xff]  ;;  %v505_v53 = vld [vmem:[#allocation10 + $0x690] sm:$0xff] }
 0x2db   :  { %7556 = vmatprep.subr.bf16.mxu1 %v9354_v49  ;;  %v10152_v49 = vcombine.high %v1248_v62, %v1252_v1  ;;  %v1276_v51 = vld [vmem:[#allocation10 + $0x1ea8] sm:$0xff] }
 0x2dd   :  { %7471 = vmatpush1.bf16.msra.mxu0 %v10119_v11  ;;  %v493_v11 = vld [vmem:[#allocation10 + $0x630] sm:$0xff] }
 0x2de   :  { %7557 = vmatpush1.bf16.msra.mxu1 %v9353_v52  ;;  %7472 = vmatprep.subr.bf16.mxu0 %v10128_v14  ;;  %v10151_v52 = vcombine.low %v1248_v62, %v1252_v1  ;;  %v9385_v14 = vcombine.low %v481_v35, %v485_v2  ;;  %v9394_v16 = vcombine.high %v489_v10, %v493_v11  ;;  %v1280_v1 = vld [vmem:[#allocation10 + $0x1ec8] sm:$0xff]  ;;  %v513_v2 = vld [vmem:[#allocation10 + $0x6d0] sm:$0xff] }
 0x2df   :  { %7558 = vmatprep.subr.bf16.mxu1 %v9362_v15  ;;  %v10160_v15 = vcombine.high %v1256_v7, %v1260_v42  ;;  %v1284_v35 = vld [vmem:[#allocation10 + $0x1ee8] sm:$0xff] }
 0x2e1   :  { %7473 = vmatpush1.bf16.msra.mxu0 %v10127_v26  ;;  %v501_v26 = vld [vmem:[#allocation10 + $0x670] sm:$0xff] }
 0x2e2   :  { %7559 = vmatpush1.bf16.msra.mxu1 %v9361_v30  ;;  %7474 = vmatprep.subr.bf16.mxu0 %v10136_v37  ;;  %v10159_v30 = vcombine.low %v1256_v7, %v1260_v42  ;;  %v9393_v37 = vcombine.low %v489_v10, %v493_v11  ;;  %v9402_v41 = vcombine.high %v497_v24, %v501_v26  ;;  %v1288_v42 = vld [vmem:[#allocation10 + $0x1f08] sm:$0xff]  ;;  %v521_v11 = vld [vmem:[#allocation10 + $0x710] sm:$0xff] }
 0x2e3   :  { %7560 = vmatprep.subr.bf16.mxu1 %v9370_v40  ;;  %v10168_v40 = vcombine.high %v1264_v19, %v1268_v23  ;;  %v1292_v10 = vld [vmem:[#allocation10 + $0x1f28] sm:$0xff] }
 0x2e5   :  { %7475 = vmatpush1.bf16.msra.mxu0 %v10135_v56  ;;  %v509_v56 = vld [vmem:[#allocation10 + $0x6b0] sm:$0xff] }
 0x2e6   :  { %7561 = vmatpush1.bf16.msra.mxu1 %v9369_v58  ;;  %7476 = vmatprep.subr.bf16.mxu0 %v10144_v59  ;;  %v10167_v58 = vcombine.low %v1264_v19, %v1268_v23  ;;  %v9401_v59 = vcombine.low %v497_v24, %v501_v26  ;;  %v9410_v62 = vcombine.high %v505_v53, %v509_v56  ;;  %v1296_v23 = vld [vmem:[#allocation10 + $0x1f48] sm:$0xff]  ;;  %v529_v26 = vld [vmem:[#allocation10 + $0x750] sm:$0xff] }
 0x2e7   :  { %7562 = vmatprep.subr.bf16.mxu1 %v9378_v61  ;;  %v10176_v61 = vcombine.high %v1272_v45, %v1276_v51  ;;  %v1300_v24 = vld [vmem:[#allocation10 + $0x1f68] sm:$0xff] }
 0x2e9   :  { %7477 = vmatpush1.bf16.msra.mxu0 %v10143_v29  ;;  %v517_v29 = vld [vmem:[#allocation10 + $0x6f0] sm:$0xff] }
 0x2ea   :  { %7563 = vmatpush1.bf16.msra.mxu1 %v9377_v4  ;;  %7478 = vmatprep.subr.bf16.mxu0 %v10152_v49  ;;  %v10175_v4 = vcombine.low %v1272_v45, %v1276_v51  ;;  %v9409_v49 = vcombine.low %v505_v53, %v509_v56  ;;  %v9418_v7 = vcombine.high %v513_v2, %v517_v29  ;;  %v1304_v51 = vld [vmem:[#allocation10 + $0x1f88] sm:$0xff]  ;;  %v537_v56 = vld [vmem:[#allocation10 + $0x790] sm:$0xff] }
 0x2eb   :  { %7564 = vmatprep.subr.bf16.mxu1 %v9386_v6  ;;  %v10184_v6 = vcombine.high %v1280_v1, %v1284_v35  ;;  %v1308_v53 = vld [vmem:[#allocation10 + $0x1fa8] sm:$0xff] }
 0x2ed   :  { %7479 = vmatpush1.bf16.msra.mxu0 %v10151_v52  ;;  %v525_v52 = vld [vmem:[#allocation10 + $0x730] sm:$0xff] }
 0x2ee   :  { %7565 = vmatpush1.bf16.msra.mxu1 %v9385_v14  ;;  %7480 = vmatprep.subr.bf16.mxu0 %v10160_v15  ;;  %v10183_v14 = vcombine.low %v1280_v1, %v1284_v35  ;;  %v9417_v15 = vcombine.low %v513_v2, %v517_v29  ;;  %v9426_v19 = vcombine.high %v521_v11, %v525_v52  ;;  %v1312_v35 = vld [vmem:[#allocation10 + $0x1fc8] sm:$0xff]  ;;  %v545_v29 = vld [vmem:[#allocation10 + $0x7d0] sm:$0xff] }
 0x2ef   :  { %7566 = vmatprep.subr.bf16.mxu1 %v9394_v16  ;;  %v10192_v16 = vcombine.high %v1288_v42, %v1292_v10  ;;  %v1316_v2 = vld [vmem:[#allocation10 + $0x1fe8] sm:$0xff] }
 0x2f1   :  { %7481 = vmatpush1.bf16.msra.mxu0 %v10159_v30  ;;  %v533_v30 = vld [vmem:[#allocation10 + $0x770] sm:$0xff] }
 0x2f2   :  { %7567 = vmatpush1.bf16.msra.mxu1 %v9393_v37  ;;  %7482 = vmatprep.subr.bf16.mxu0 %v10168_v40  ;;  %v10191_v37 = vcombine.low %v1288_v42, %v1292_v10  ;;  %v9425_v40 = vcombine.low %v521_v11, %v525_v52  ;;  %v9434_v45 = vcombine.high %v529_v26, %v533_v30  ;;  %v298_v10 = vld [vmem:[#allocation10 + $0x18] sm:$0xff]  ;;  %v553_v52 = vld [vmem:[#allocation10 + $0x810] sm:$0xff] }
 0x2f3   :  { %7568 = vmatprep.subr.bf16.mxu1 %v9402_v41  ;;  %v10200_v41 = vcombine.high %v1296_v23, %v1300_v24  ;;  %v302_v11 = vld [vmem:[#allocation10 + $0x38] sm:$0xff] }
 0x2f5   :  { %7483 = vmatpush1.bf16.msra.mxu0 %v10167_v58  ;;  %v541_v58 = vld [vmem:[#allocation10 + $0x7b0] sm:$0xff] }
 0x2f6   :  { %7569 = vmatpush1.bf16.msra.mxu1 %v9401_v59  ;;  %7484 = vmatprep.subr.bf16.mxu0 %v10176_v61  ;;  %v10199_v59 = vcombine.low %v1296_v23, %v1300_v24  ;;  %v9433_v61 = vcombine.low %v529_v26, %v533_v30  ;;  %v9442_v1 = vcombine.high %v537_v56, %v541_v58  ;;  %v306_v24 = vld [vmem:[#allocation10 + $0x58] sm:$0xff]  ;;  %v561_v30 = vld [vmem:[#allocation10 + $0x850] sm:$0xff] }
 0x2f7   :  { %7570 = vmatprep.subr.bf16.mxu1 %v9410_v62  ;;  %v10208_v62 = vcombine.high %v1304_v51, %v1308_v53  ;;  %v310_v26 = vld [vmem:[#allocation10 + $0x78] sm:$0xff] }
 0x2f9   :  { %7485 = vmatpush1.bf16.msra.mxu0 %v10175_v4  ;;  %v549_v4 = vld [vmem:[#allocation10 + $0x7f0] sm:$0xff] }
 0x2fa   :  { %7571 = vmatpush1.bf16.msra.mxu1 %v9409_v49  ;;  %7486 = vmatprep.subr.bf16.mxu0 %v10184_v6  ;;  %v10207_v49 = vcombine.low %v1304_v51, %v1308_v53  ;;  %v9441_v6 = vcombine.low %v537_v56, %v541_v58  ;;  %v9450_v42 = vcombine.high %v545_v29, %v549_v4  ;;  %v314_v53 = vld [vmem:[#allocation10 + $0x98] sm:$0xff]  ;;  %v569_v58 = vld [vmem:[#allocation10 + $0x890] sm:$0xff] }
 0x2fb   :  { %7572 = vmatprep.subr.bf16.mxu1 %v9418_v7  ;;  %v10216_v7 = vcombine.high %v1312_v35, %v1316_v2  ;;  %v318_v56 = vld [vmem:[#allocation10 + $0xb8] sm:$0xff] }
 0x2fd   :  { %7487 = vmatpush1.bf16.msra.mxu0 %v10183_v14  ;;  %v557_v14 = vld [vmem:[#allocation10 + $0x830] sm:$0xff] }
 0x2fe   :  { %7573 = vmatpush1.bf16.msra.mxu1 %v9417_v15  ;;  %7488 = vmatprep.subr.bf16.mxu0 %v10192_v16  ;;  %v10215_v15 = vcombine.low %v1312_v35, %v1316_v2  ;;  %v9449_v16 = vcombine.low %v545_v29, %v549_v4  ;;  %v9458_v23 = vcombine.high %v553_v52, %v557_v14  ;;  %v322_v2 = vld [vmem:[#allocation10 + $0xd8] sm:$0xff]  ;;  %v577_v4 = vld [vmem:[#allocation10 + $0x8d0] sm:$0xff] }
 0x2ff   :  { %7574 = vmatprep.subr.bf16.mxu1 %v9426_v19  ;;  %v9204_v19 = vcombine.high %v298_v10, %v302_v11  ;;  %v326_v29 = vld [vmem:[#allocation10 + $0xf8] sm:$0xff] }
 0x301   :  { %7489 = vmatpush1.bf16.msra.mxu0 %v10191_v37  ;;  %v565_v37 = vld [vmem:[#allocation10 + $0x870] sm:$0xff] }
 0x302   :  { %7575 = vmatpush1.bf16.msra.mxu1 %v9425_v40  ;;  %7490 = vmatprep.subr.bf16.mxu0 %v10200_v41  ;;  %v9203_v40 = vcombine.low %v298_v10, %v302_v11  ;;  %v9457_v41 = vcombine.low %v553_v52, %v557_v14  ;;  %v9466_v51 = vcombine.high %v561_v30, %v565_v37  ;;  %v330_v11 = vld [vmem:[#allocation10 + $0x118] sm:$0xff]  ;;  %v585_v14 = vld [vmem:[#allocation10 + $0x910] sm:$0xff] }
 0x303   :  { %7576 = vmatprep.subr.bf16.mxu1 %v9434_v45  ;;  %v9212_v45 = vcombine.high %v306_v24, %v310_v26  ;;  %v334_v52 = vld [vmem:[#allocation10 + $0x138] sm:$0xff] }
 0x305   :  { %7491 = vmatpush1.bf16.msra.mxu0 %v10199_v59  ;;  %v573_v59 = vld [vmem:[#allocation10 + $0x8b0] sm:$0xff] }
 0x306   :  { %7577 = vmatpush1.bf16.msra.mxu1 %v9433_v61  ;;  %7492 = vmatprep.subr.bf16.mxu0 %v10208_v62  ;;  %v9211_v61 = vcombine.low %v306_v24, %v310_v26  ;;  %v9465_v62 = vcombine.low %v561_v30, %v565_v37  ;;  %v9474_v35 = vcombine.high %v569_v58, %v573_v59  ;;  %v338_v24 = vld [vmem:[#allocation10 + $0x158] sm:$0xff]  ;;  %v593_v30 = vld [vmem:[#allocation10 + $0x950] sm:$0xff] }
 0x307   :  { %7578 = vmatprep.subr.bf16.mxu1 %v9442_v1  ;;  %v9220_v1 = vcombine.high %v314_v53, %v318_v56  ;;  %v342_v26 = vld [vmem:[#allocation10 + $0x178] sm:$0xff]  ;;  %v597_v37 = vld [vmem:[#allocation10 + $0x970] sm:$0xff] }
 0x309   :  { %7493 = vmatpush1.bf16.msra.mxu0 %v10207_v49  ;;  %v581_v49 = vld [vmem:[#allocation10 + $0x8f0] sm:$0xff] }
 0x30a   :  { %7579 = vmatpush1.bf16.msra.mxu1 %v9441_v6  ;;  %7494 = vmatprep.subr.bf16.mxu0 %v10216_v7  ;;  %v9219_v6 = vcombine.low %v314_v53, %v318_v56  ;;  %v9473_v7 = vcombine.low %v569_v58, %v573_v59  ;;  %v9482_v10 = vcombine.high %v577_v4, %v581_v49  ;;  %v346_v53 = vld [vmem:[#allocation10 + $0x198] sm:$0xff]  ;;  %v601_v58 = vld [vmem:[#allocation10 + $0x990] sm:$0xff] }
 0x30b   :  { %7580 = vmatprep.subr.bf16.mxu1 %v9450_v42  ;;  %v9228_v42 = vcombine.high %v322_v2, %v326_v29  ;;  %v350_v56 = vld [vmem:[#allocation10 + $0x1b8] sm:$0xff]  ;;  %v605_v59 = vld [vmem:[#allocation10 + $0x9b0] sm:$0xff] }
 0x30d   :  { %7495 = vmatpush1.bf16.msra.mxu0 %v10215_v15  ;;  %v589_v15 = vld [vmem:[#allocation10 + $0x930] sm:$0xff] }
 0x30e   :  { %7581 = vmatpush1.bf16.msra.mxu1 %v9449_v16  ;;  %7851 = vmatprep.subr.bf16.mxu0 %v9204_v19  ;;  %v9227_v16 = vcombine.low %v322_v2, %v326_v29  ;;  %v9236_v19 = vcombine.high %v330_v11, %v334_v52  ;;  %v354_v2 = vld [vmem:[#allocation10 + $0x1d8] sm:$0xff] }
 0x30f   :  { %7593 = vmatprep.subr.bf16.mxu1 %v9458_v23  ;;  %v9490_v23 = vcombine.high %v585_v14, %v589_v15  ;;  %v358_v29 = vld [vmem:[#allocation10 + $0x1f8] sm:$0xff] }
 0x310   :  { %7497 = vmatmul.mubr.bf16.vlgmr.msra.gmra.mrb[16].mxu0 %v11438_v47 }
 0x311   :  { %7583 = vmatmul.mubr.bf16.vlgmr.msra.gmra.mrb[16].mxu1 %v11334_v22  ;;  %7852 = vmatpush1.bf16.msra.mxu0 %v9203_v40  ;;  %v9235_v40 = vcombine.low %v330_v11, %v334_v52  ;;  %v362_v11 = vld [vmem:[#allocation10 + $0x218] sm:$0xff] }
 0x312   :  { %7594 = vmatpush1.bf16.msra.mxu1 %v9457_v41  ;;  %7853 = vmatprep.subr.bf16.mxu0 %v9212_v45  ;;  %v9489_v41 = vcombine.low %v585_v14, %v589_v15  ;;  %v9244_v45 = vcombine.high %v338_v24, %v342_v26  ;;  %v366_v52 = vld [vmem:[#allocation10 + $0x238] sm:$0xff]  ;;  %v617_v14 = vld [vmem:[#allocation10 + $0xa10] sm:$0xff] }
 0x313   :  { %7595 = vmatprep.subr.bf16.mxu1 %v9466_v51  ;;  %7883 = vmatprep.mubr.bf16.mxu0 %v11326_v38  ;;  %v9481_v38 = vcombine.low %v577_v4, %v581_v49  ;;  %v9498_v51 = vcombine.high %v593_v30, %v597_v37  ;;  %v609_v4 = vld [vmem:[#allocation10 + $0x9d0] sm:$0xff] }
 0x314   :  { %7625 = vmatprep.mubr.bf16.mxu1 %v11337_v32  ;;  %v613_v49 = vld [vmem:[#allocation10 + $0x9f0] sm:$0xff] }
 0x315   :  { %7854 = vmatpush1.bf16.msra.mxu0 %v9211_v61  ;;  %v9243_v61 = vcombine.low %v338_v24, %v342_v26  ;;  %v621_v15 = vld [vmem:[#allocation10 + $0xa30] sm:$0xff]  ;;  %v370_v24 = vld [vmem:[#allocation10 + $0x258] sm:$0xff] }
 0x316   :  { %7596 = vmatpush1.bf16.msra.mxu1 %v9465_v62  ;;  %7855 = vmatprep.subr.bf16.mxu0 %v9220_v1  ;;  %v9497_v62 = vcombine.low %v593_v30, %v597_v37  ;;  %v9252_v1 = vcombine.high %v346_v53, %v350_v56  ;;  %v374_v26 = vld [vmem:[#allocation10 + $0x278] sm:$0xff]  ;;  %v625_v30 = vld [vmem:[#allocation10 + $0xa50] sm:$0xff] }
 0x317   :  { %7597 = vmatprep.subr.bf16.mxu1 %v9474_v35  ;;  %v9506_v35 = vcombine.high %v601_v58, %v605_v59  ;;  %v629_v37 = vld [vmem:[#allocation10 + $0xa70] sm:$0xff] }
 0x319   :  { %7856 = vmatpush1.bf16.msra.mxu0 %v9219_v6  ;;  %v9251_v6 = vcombine.low %v346_v53, %v350_v56  ;;  %v378_v53 = vld [vmem:[#allocation10 + $0x298] sm:$0xff] }
 0x31a   :  { %7598 = vmatpush1.bf16.msra.mxu1 %v9473_v7  ;;  %7857 = vmatprep.subr.bf16.mxu0 %v9228_v42  ;;  %v9505_v7 = vcombine.low %v601_v58, %v605_v59  ;;  %v9260_v42 = vcombine.high %v354_v2, %v358_v29  ;;  %v382_v56 = vld [vmem:[#allocation10 + $0x2b8] sm:$0xff]  ;;  %v633_v58 = vld [vmem:[#allocation10 + $0xa90] sm:$0xff] }
 0x31b   :  { %7599 = vmatprep.subr.bf16.mxu1 %v9482_v10  ;;  %v9514_v10 = vcombine.high %v609_v4, %v613_v49  ;;  %v637_v59 = vld [vmem:[#allocation10 + $0xab0] sm:$0xff] }
 0x31d   :  { %7858 = vmatpush1.bf16.msra.mxu0 %v9227_v16  ;;  %v9259_v16 = vcombine.low %v354_v2, %v358_v29  ;;  %v386_v2 = vld [vmem:[#allocation10 + $0x2d8] sm:$0xff] }
 0x31e   :  { %7600 = vmatpush1.bf16.msra.mxu1 %v9481_v38  ;;  %7859 = vmatprep.subr.bf16.mxu0 %v9236_v19  ;;  %v9513_v38 = vcombine.low %v609_v4, %v613_v49  ;;  %v9268_v19 = vcombine.high %v362_v11, %v366_v52  ;;  %v390_v29 = vld [vmem:[#allocation10 + $0x2f8] sm:$0xff]  ;;  %v641_v4 = vld [vmem:[#allocation10 + $0xad0] sm:$0xff] }
 0x31f   :  { %7601 = vmatprep.subr.bf16.mxu1 %v9490_v23  ;;  %v9522_v23 = vcombine.high %v617_v14, %v621_v15  ;;  %v645_v49 = vld [vmem:[#allocation10 + $0xaf0] sm:$0xff] }
 0x321   :  { %7860 = vmatpush1.bf16.msra.mxu0 %v9235_v40  ;;  %v9267_v40 = vcombine.low %v362_v11, %v366_v52  ;;  %v394_v11 = vld [vmem:[#allocation10 + $0x318] sm:$0xff] }
 0x322   :  { %7602 = vmatpush1.bf16.msra.mxu1 %v9489_v41  ;;  %7861 = vmatprep.subr.bf16.mxu0 %v9244_v45  ;;  %v9521_v41 = vcombine.low %v617_v14, %v621_v15  ;;  %v9276_v45 = vcombine.high %v370_v24, %v374_v26  ;;  %v398_v52 = vld [vmem:[#allocation10 + $0x338] sm:$0xff]  ;;  %v649_v14 = vld [vmem:[#allocation10 + $0xb10] sm:$0xff] }
 0x323   :  { %7603 = vmatprep.subr.bf16.mxu1 %v9498_v51  ;;  %v9530_v51 = vcombine.high %v625_v30, %v629_v37  ;;  %v653_v15 = vld [vmem:[#allocation10 + $0xb30] sm:$0xff] }
 0x325   :  { %7862 = vmatpush1.bf16.msra.mxu0 %v9243_v61  ;;  %v9275_v61 = vcombine.low %v370_v24, %v374_v26  ;;  %v402_v24 = vld [vmem:[#allocation10 + $0x358] sm:$0xff] }
 0x326   :  { %7604 = vmatpush1.bf16.msra.mxu1 %v9497_v62  ;;  %7863 = vmatprep.subr.bf16.mxu0 %v9252_v1  ;;  %v9529_v62 = vcombine.low %v625_v30, %v629_v37  ;;  %v9284_v1 = vcombine.high %v378_v53, %v382_v56  ;;  %v406_v26 = vld [vmem:[#allocation10 + $0x378] sm:$0xff]  ;;  %v657_v30 = vld [vmem:[#allocation10 + $0xb50] sm:$0xff] }
 0x327   :  { %7605 = vmatprep.subr.bf16.mxu1 %v9506_v35  ;;  %v9538_v35 = vcombine.high %v633_v58, %v637_v59  ;;  %v661_v37 = vld [vmem:[#allocation10 + $0xb70] sm:$0xff] }
 0x329   :  { %7864 = vmatpush1.bf16.msra.mxu0 %v9251_v6  ;;  %v9283_v6 = vcombine.low %v378_v53, %v382_v56  ;;  %v410_v53 = vld [vmem:[#allocation10 + $0x398] sm:$0xff] }
 0x32a   :  { %7606 = vmatpush1.bf16.msra.mxu1 %v9505_v7  ;;  %7865 = vmatprep.subr.bf16.mxu0 %v9260_v42  ;;  %v9537_v7 = vcombine.low %v633_v58, %v637_v59  ;;  %v9292_v42 = vcombine.high %v386_v2, %v390_v29  ;;  %v414_v56 = vld [vmem:[#allocation10 + $0x3b8] sm:$0xff]  ;;  %v665_v58 = vld [vmem:[#allocation10 + $0xb90] sm:$0xff] }
 0x32b   :  { %7607 = vmatprep.subr.bf16.mxu1 %v9514_v10  ;;  %v9546_v10 = vcombine.high %v641_v4, %v645_v49  ;;  %v669_v59 = vld [vmem:[#allocation10 + $0xbb0] sm:$0xff] }
 0x32d   :  { %7866 = vmatpush1.bf16.msra.mxu0 %v9259_v16  ;;  %v9291_v16 = vcombine.low %v386_v2, %v390_v29  ;;  %v418_v2 = vld [vmem:[#allocation10 + $0x3d8] sm:$0xff] }
 0x32e   :  { %7608 = vmatpush1.bf16.msra.mxu1 %v9513_v38  ;;  %7867 = vmatprep.subr.bf16.mxu0 %v9268_v19  ;;  %v9545_v38 = vcombine.low %v641_v4, %v645_v49  ;;  %v9300_v19 = vcombine.high %v394_v11, %v398_v52  ;;  %v422_v29 = vld [vmem:[#allocation10 + $0x3f8] sm:$0xff]  ;;  %v673_v4 = vld [vmem:[#allocation10 + $0xbd0] sm:$0xff] }
 0x32f   :  { %7609 = vmatprep.subr.bf16.mxu1 %v9522_v23  ;;  %v9554_v23 = vcombine.high %v649_v14, %v653_v15  ;;  %v677_v49 = vld [vmem:[#allocation10 + $0xbf0] sm:$0xff] }
 0x331   :  { %7868 = vmatpush1.bf16.msra.mxu0 %v9267_v40  ;;  %v9299_v40 = vcombine.low %v394_v11, %v398_v52  ;;  %v426_v11 = vld [vmem:[#allocation10 + $0x418] sm:$0xff] }
 0x332   :  { %7610 = vmatpush1.bf16.msra.mxu1 %v9521_v41  ;;  %7869 = vmatprep.subr.bf16.mxu0 %v9276_v45  ;;  %v9553_v41 = vcombine.low %v649_v14, %v653_v15  ;;  %v9308_v45 = vcombine.high %v402_v24, %v406_v26  ;;  %v430_v52 = vld [vmem:[#allocation10 + $0x438] sm:$0xff]  ;;  %v681_v14 = vld [vmem:[#allocation10 + $0xc10] sm:$0xff] }
 0x333   :  { %7611 = vmatprep.subr.bf16.mxu1 %v9530_v51  ;;  %v9562_v51 = vcombine.high %v657_v30, %v661_v37  ;;  %v685_v15 = vld [vmem:[#allocation10 + $0xc30] sm:$0xff] }
 0x335   :  { %7870 = vmatpush1.bf16.msra.mxu0 %v9275_v61  ;;  %v9307_v61 = vcombine.low %v402_v24, %v406_v26  ;;  %v434_v24 = vld [vmem:[#allocation10 + $0x458] sm:$0xff] }
 0x336   :  { %7612 = vmatpush1.bf16.msra.mxu1 %v9529_v62  ;;  %7871 = vmatprep.subr.bf16.mxu0 %v9284_v1  ;;  %v9561_v62 = vcombine.low %v657_v30, %v661_v37  ;;  %v9316_v1 = vcombine.high %v410_v53, %v414_v56  ;;  %v438_v26 = vld [vmem:[#allocation10 + $0x478] sm:$0xff]  ;;  %v689_v30 = vld [vmem:[#allocation10 + $0xc50] sm:$0xff] }
 0x337   :  { %7613 = vmatprep.subr.bf16.mxu1 %v9538_v35  ;;  %v9570_v35 = vcombine.high %v665_v58, %v669_v59  ;;  %v693_v37 = vld [vmem:[#allocation10 + $0xc70] sm:$0xff] }
 0x339   :  { %7872 = vmatpush1.bf16.msra.mxu0 %v9283_v6  ;;  %v9315_v6 = vcombine.low %v410_v53, %v414_v56  ;;  %v442_v53 = vld [vmem:[#allocation10 + $0x498] sm:$0xff] }
 0x33a   :  { %7614 = vmatpush1.bf16.msra.mxu1 %v9537_v7  ;;  %7873 = vmatprep.subr.bf16.mxu0 %v9292_v42  ;;  %v9569_v7 = vcombine.low %v665_v58, %v669_v59  ;;  %v9324_v42 = vcombine.high %v418_v2, %v422_v29  ;;  %v446_v56 = vld [vmem:[#allocation10 + $0x4b8] sm:$0xff]  ;;  %v697_v58 = vld [vmem:[#allocation10 + $0xc90] sm:$0xff] }
 0x33b   :  { %7615 = vmatprep.subr.bf16.mxu1 %v9546_v10  ;;  %v9578_v10 = vcombine.high %v673_v4, %v677_v49  ;;  %v701_v59 = vld [vmem:[#allocation10 + $0xcb0] sm:$0xff] }
 0x33d   :  { %7874 = vmatpush1.bf16.msra.mxu0 %v9291_v16  ;;  %v9323_v16 = vcombine.low %v418_v2, %v422_v29  ;;  %v450_v2 = vld [vmem:[#allocation10 + $0x4d8] sm:$0xff] }
 0x33e   :  { %7616 = vmatpush1.bf16.msra.mxu1 %v9545_v38  ;;  %7875 = vmatprep.subr.bf16.mxu0 %v9300_v19  ;;  %v9577_v38 = vcombine.low %v673_v4, %v677_v49  ;;  %v9332_v19 = vcombine.high %v426_v11, %v430_v52  ;;  %v454_v29 = vld [vmem:[#allocation10 + $0x4f8] sm:$0xff]  ;;  %v705_v4 = vld [vmem:[#allocation10 + $0xcd0] sm:$0xff] }
 0x33f   :  { %7617 = vmatprep.subr.bf16.mxu1 %v9554_v23  ;;  %v9586_v23 = vcombine.high %v681_v14, %v685_v15  ;;  %v709_v49 = vld [vmem:[#allocation10 + $0xcf0] sm:$0xff] }
 0x341   :  { %7876 = vmatpush1.bf16.msra.mxu0 %v9299_v40  ;;  %v9331_v40 = vcombine.low %v426_v11, %v430_v52  ;;  %v462_v11 = vld [vmem:[#allocation10 + $0x538] sm:$0xff]  ;;  %v713_v52 = vld [vmem:[#allocation10 + $0xd10] sm:$0xff] }
 0x342   :  { %7618 = vmatpush1.bf16.msra.mxu1 %v9553_v41  ;;  %7877 = vmatprep.subr.bf16.mxu0 %v9308_v45  ;;  %v9585_v41 = vcombine.low %v681_v14, %v685_v15  ;;  %v9340_v45 = vcombine.high %v434_v24, %v438_v26  ;;  %v717_v14 = vld [vmem:[#allocation10 + $0xd30] sm:$0xff]  ;;  %v9355_v15 = vcombine.low %v450_v2, %v454_v29 }
 0x343   :  { %7619 = vmatprep.subr.bf16.mxu1 %v9562_v51  ;;  %v9594_v51 = vcombine.high %v689_v30, %v693_v37 }
 0x345   :  { %7878 = vmatpush1.bf16.msra.mxu0 %v9307_v61  ;;  %v9339_v61 = vcombine.low %v434_v24, %v438_v26  ;;  %v721_v24 = vld [vmem:[#allocation10 + $0xd50] sm:$0xff] }
 0x346   :  { %7620 = vmatpush1.bf16.msra.mxu1 %v9561_v62  ;;  %7879 = vmatprep.subr.bf16.mxu0 %v9316_v1  ;;  %v9593_v62 = vcombine.low %v689_v30, %v693_v37  ;;  %v9348_v1 = vcombine.high %v442_v53, %v446_v56  ;;  %v725_v26 = vld [vmem:[#allocation10 + $0xd70] sm:$0xff]  ;;  %v9617_v37 = vcombine.low %v713_v52, %v717_v14 }
 0x347   :  { %7621 = vmatprep.subr.bf16.mxu1 %v9570_v35  ;;  %v9602_v35 = vcombine.high %v697_v58, %v701_v59 }
 0x349   :  { %7880 = vmatpush1.bf16.msra.mxu0 %v9315_v6  ;;  %v9601_v6 = vcombine.low %v697_v58, %v701_v59  ;;  %v9625_v59 = vcombine.low %v721_v24, %v725_v26 }
 0x34a   :  { %7622 = vmatpush1.bf16.msra.mxu1 %v9569_v7  ;;  %7881 = vmatprep.subr.bf16.mxu0 %v9324_v42  ;;  %v9356_v7 = vcombine.high %v450_v2, %v454_v29  ;;  %v9610_v42 = vcombine.high %v705_v4, %v709_v49  ;;  %v737_v29 = vld [vmem:[#allocation10 + $0xdd0] sm:$0xff] }
 0x34b   :  { %7623 = vmatprep.subr.bf16.mxu1 %v9578_v10  ;;  %v458_v10 = vld [vmem:[#allocation10 + $0x518] sm:$0xff] }
 0x34c   :  { %v9363_v30 = vcombine.low %v458_v10, %v462_v11 }
 0x34d   :  { %7882 = vmatpush1.bf16.msra.mxu0 %v9323_v16  ;;  %v9609_v16 = vcombine.low %v705_v4, %v709_v49  ;;  %v741_v4 = vld [vmem:[#allocation10 + $0xdf0] sm:$0xff] }
 0x34e   :  { %7624 = vmatpush1.bf16.msra.mxu1 %v9577_v38  ;;  %7894 = vmatprep.subr.bf16.mxu0 %v9332_v19  ;;  %v9364_v38 = vcombine.high %v458_v10, %v462_v11  ;;  %v466_v19 = vld [vmem:[#allocation10 + $0x558] sm:$0xff] }
 0x34f   :  { %7636 = vmatprep.subr.bf16.mxu1 %v9586_v23  ;;  %v470_v23 = vld [vmem:[#allocation10 + $0x578] sm:$0xff] }
 0x350   :  { %7884 = vmatmul.mubr.bf16.vlgmr.msra.gmra.mrb[20].mxu0 %v11332_v18  ;;  %v9347_v18 = vcombine.low %v442_v53, %v446_v56  ;;  %v729_v53 = vld [vmem:[#allocation10 + $0xd90] sm:$0xff]  ;;  %v9371_v58 = vcombine.low %v466_v19, %v470_v23 }
 0x351   :  { %7626 = vmatmul.mubr.bf16.vlgmr.msra.gmra.mrb[16].mxu1 %v11342_v43  ;;  %7895 = vmatpush1.bf16.msra.mxu0 %v9331_v40  ;;  %v9372_v40 = vcombine.high %v466_v19, %v470_v23  ;;  %v733_v56 = vld [vmem:[#allocation10 + $0xdb0] sm:$0xff]  ;;  %v9641_v23 = vcombine.low %v737_v29, %v741_v4 }
 0x352   :  { %7637 = vmatpush1.bf16.msra.mxu1 %v9585_v41  ;;  %7896 = vmatprep.subr.bf16.mxu0 %v9340_v45  ;;  %v9626_v41 = vcombine.high %v721_v24, %v725_v26  ;;  %v474_v45 = vld [vmem:[#allocation10 + $0x598] sm:$0xff]  ;;  %v9633_v10 = vcombine.low %v729_v53, %v733_v56  ;;  %v749_v19 = vld [vmem:[#allocation10 + $0xe30] sm:$0xff] }
 0x353   :  { %7638 = vmatprep.subr.bf16.mxu1 %v9594_v51  ;;  %7668 = vmatprep.mubr.bf16.mxu1 %v11344_v50  ;;  %v478_v51 = vld [vmem:[#allocation10 + $0x5b8] sm:$0xff] }
 0x354   :  { %7926 = vmatprep.mubr.bf16.mxu0 %v11329_v44  ;;  %v9618_v44 = vcombine.high %v713_v52, %v717_v14 }
 0x355   :  { %7897 = vmatpush1.bf16.msra.mxu0 %v9339_v61  ;;  %v9380_v61 = vcombine.high %v474_v45, %v478_v51 }
 0x356   :  { %7639 = vmatpush1.bf16.msra.mxu1 %v9593_v62  ;;  %7898 = vmatprep.subr.bf16.mxu0 %v9348_v1  ;;  %v9634_v62 = vcombine.high %v729_v53, %v733_v56  ;;  %v482_v1 = vld [vmem:[#allocation10 + $0x5d8] sm:$0xff] }
 0x357   :  { %7640 = vmatprep.subr.bf16.mxu1 %v9602_v35  ;;  %v486_v35 = vld [vmem:[#allocation10 + $0x5f8] sm:$0xff] }
 0x358   :  { %v9388_v11 = vcombine.high %v482_v1, %v486_v35  ;;  %v506_v53 = vld [vmem:[#allocation10 + $0x698] sm:$0xff] }
 0x359   :  { %7899 = vmatpush1.bf16.msra.mxu0 %v9347_v18  ;;  %v510_v56 = vld [vmem:[#allocation10 + $0x6b8] sm:$0xff] }
 0x35a   :  { %7641 = vmatpush1.bf16.msra.mxu1 %v9601_v6  ;;  %7900 = vmatprep.subr.bf16.mxu0 %v9356_v7  ;;  %v9379_v6 = vcombine.low %v474_v45, %v478_v51 }
 0x35b   :  { %7642 = vmatprep.subr.bf16.mxu1 %v9610_v42 }
 0x35d   :  { %7901 = vmatpush1.bf16.msra.mxu0 %v9355_v15  ;;  %v9642_v15 = vcombine.high %v737_v29, %v741_v4  ;;  %v518_v29 = vld [vmem:[#allocation10 + $0x6f8] sm:$0xff]  ;;  %v769_v4 = vld [vmem:[#allocation10 + $0xed0] sm:$0xff] }
 0x35e   :  { %7643 = vmatpush1.bf16.msra.mxu1 %v9609_v16  ;;  %7902 = vmatprep.subr.bf16.mxu0 %v9364_v38  ;;  %v490_v16 = vld [vmem:[#allocation10 + $0x618] sm:$0xff] }
 0x35f   :  { %7644 = vmatprep.subr.bf16.mxu1 %v9618_v44  ;;  %v745_v44 = vld [vmem:[#allocation10 + $0xe10] sm:$0xff] }
 0x360   :  { %v9650_v26 = vcombine.high %v745_v44, %v749_v19  ;;  %v9649_v45 = vcombine.low %v745_v44, %v749_v19 }
 0x361   :  { %7903 = vmatpush1.bf16.msra.mxu0 %v9363_v30  ;;  %v502_v30 = vld [vmem:[#allocation10 + $0x678] sm:$0xff] }
 0x362   :  { %7645 = vmatpush1.bf16.msra.mxu1 %v9617_v37  ;;  %7904 = vmatprep.subr.bf16.mxu0 %v9372_v40  ;;  %v753_v37 = vld [vmem:[#allocation10 + $0xe50] sm:$0xff] }
 0x363   :  { %7646 = vmatprep.subr.bf16.mxu1 %v9626_v41  ;;  %v757_v40 = vld [vmem:[#allocation10 + $0xe70] sm:$0xff] }
 0x364   :  { %v7154_v2 = vpop.f32.mrb[8].mxu1  ;;  %v9658_v51 = vcombine.high %v753_v37, %v757_v40 }
 0x365   :  { %v11457_v49 = vadd.f32 %v7154_v2, %v11399_v46  ;;  %v7156_v18 = vpop.f32.mrb[9].mxu1  ;;  %7905 = vmatpush1.bf16.msra.mxu0 %v9371_v58  ;;  %v494_v46 = vld [vmem:[#allocation10 + $0x638] sm:$0xff]  ;;  %v761_v58 = vld [vmem:[#allocation10 + $0xe90] sm:$0xff] }
 0x366   :  { %v11460_v7 = vadd.f32 %v7156_v18, %v11402_v54  ;;  %v7158_v42 = vpop.f32.mrb[10].mxu1  ;;  %7647 = vmatpush1.bf16.msra.mxu1 %v9625_v59  ;;  %7906 = vmatprep.subr.bf16.mxu0 %v9380_v61  ;;  %v9387_v54 = vcombine.low %v482_v1, %v486_v35  ;;  %v9396_v24 = vcombine.high %v490_v16, %v494_v46  ;;  %v765_v59 = vld [vmem:[#allocation10 + $0xeb0] sm:$0xff]  ;;  %v514_v2 = vld [vmem:[#allocation10 + $0x6d8] sm:$0xff] }
 0x367   :  { %v11463_v52 = vadd.f32 %v7158_v42, %v11405_v57  ;;  %v7160_v14 = vpop.f32.mrb[11].mxu1  ;;  %7648 = vmatprep.subr.bf16.mxu1 %v9634_v62  ;;  %v498_v57 = vld [vmem:[#allocation10 + $0x658] sm:$0xff]  ;;  %v9395_v41 = vcombine.low %v490_v16, %v494_v46  ;;  %v9657_v62 = vcombine.low %v753_v37, %v757_v40  ;;  %v9412_v1 = vcombine.high %v506_v53, %v510_v56  ;;  %v773_v18 = vld [vmem:[#allocation10 + $0xef0] sm:$0xff] }
 0x368   :  { %v11466_v38 = vadd.f32 %v7160_v14, %v11408_v25  ;;  %v9404_v25 = vcombine.high %v498_v57, %v502_v30  ;;  %v9403_v61 = vcombine.low %v498_v57, %v502_v30  ;;  %v9666_v35 = vcombine.high %v761_v58, %v765_v59  ;;  %v522_v14 = vld [vmem:[#allocation10 + $0x718] sm:$0xff]  ;;  %v777_v16 = vld [vmem:[#allocation10 + $0xf10] sm:$0xff] }
 0x369   :  { %7907 = vmatpush1.bf16.msra.mxu0 %v9379_v6  ;;  %v9411_v6 = vcombine.low %v506_v53, %v510_v56  ;;  %v9665_v42 = vcombine.low %v761_v58, %v765_v59  ;;  %v781_v46 = vld [vmem:[#allocation10 + $0xf30] sm:$0xff]  ;;  %v9419_v44 = vcombine.low %v514_v2, %v518_v29  ;;  %v9673_v19 = vcombine.low %v769_v4, %v773_v18 }
 0x36a   :  { %7649 = vmatpush1.bf16.msra.mxu1 %v9633_v10  ;;  %7908 = vmatprep.subr.bf16.mxu0 %v9388_v11  ;;  %v9420_v10 = vcombine.high %v514_v2, %v518_v29  ;;  %v9674_v11 = vcombine.high %v769_v4, %v773_v18  ;;  %v785_v57 = vld [vmem:[#allocation10 + $0xf50] sm:$0xff]  ;;  %v9681_v40 = vcombine.low %v777_v16, %v781_v46 }
 0x36b   :  { %7650 = vmatprep.subr.bf16.mxu1 %v9642_v15  ;;  %v526_v15 = vld [vmem:[#allocation10 + $0x738] sm:$0xff]  ;;  %v789_v30 = vld [vmem:[#allocation10 + $0xf70] sm:$0xff] }
 0x36c   :  { %v9427_v37 = vcombine.low %v522_v14, %v526_v15  ;;  %v793_v53 = vld [vmem:[#allocation10 + $0xf90] sm:$0xff]  ;;  %v9689_v59 = vcombine.low %v785_v57, %v789_v30 }
 0x36d   :  { %7909 = vmatpush1.bf16.msra.mxu0 %v9387_v54  ;;  %v9428_v54 = vcombine.high %v522_v14, %v526_v15  ;;  %v797_v56 = vld [vmem:[#allocation10 + $0xfb0] sm:$0xff] }
 0x36e   :  { %7651 = vmatpush1.bf16.msra.mxu1 %v9641_v23  ;;  %7910 = vmatprep.subr.bf16.mxu0 %v9396_v24  ;;  %v9682_v23 = vcombine.high %v777_v16, %v781_v46  ;;  %v530_v24 = vld [vmem:[#allocation10 + $0x758] sm:$0xff]  ;;  %v801_v2 = vld [vmem:[#allocation10 + $0xfd0] sm:$0xff]  ;;  %v9697_v18 = vcombine.low %v793_v53, %v797_v56 }
 0x36f   :  { %7652 = vmatprep.subr.bf16.mxu1 %v9650_v26  ;;  %v534_v26 = vld [vmem:[#allocation10 + $0x778] sm:$0xff]  ;;  %v805_v29 = vld [vmem:[#allocation10 + $0xff0] sm:$0xff] }
 0x370   :  { %v9435_v58 = vcombine.low %v530_v24, %v534_v26  ;;  %v809_v14 = vld [vmem:[#allocation10 + $0x1010] sm:$0xff]  ;;  %v9705_v46 = vcombine.low %v801_v2, %v805_v29 }
 0x371   :  { %7911 = vmatpush1.bf16.msra.mxu0 %v9395_v41  ;;  %v9436_v41 = vcombine.high %v530_v24, %v534_v26  ;;  %v813_v15 = vld [vmem:[#allocation10 + $0x1030] sm:$0xff] }
 0x372   :  { %7653 = vmatpush1.bf16.msra.mxu1 %v9649_v45  ;;  %7912 = vmatprep.subr.bf16.mxu0 %v9404_v25  ;;  %v9690_v45 = vcombine.high %v785_v57, %v789_v30  ;;  %v538_v25 = vld [vmem:[#allocation10 + $0x798] sm:$0xff]  ;;  %v817_v24 = vld [vmem:[#allocation10 + $0x1050] sm:$0xff]  ;;  %v9713_v30 = vcombine.low %v809_v14, %v813_v15 }
 0x373   :  { %7654 = vmatprep.subr.bf16.mxu1 %v9658_v51  ;;  %v542_v51 = vld [vmem:[#allocation10 + $0x7b8] sm:$0xff]  ;;  %v821_v26 = vld [vmem:[#allocation10 + $0x1070] sm:$0xff] }
 0x374   :  { %v9443_v4 = vcombine.low %v538_v25, %v542_v51 }
 0x375   :  { %7913 = vmatpush1.bf16.msra.mxu0 %v9403_v61  ;;  %v9444_v61 = vcombine.high %v538_v25, %v542_v51  ;;  %v825_v25 = vld [vmem:[#allocation10 + $0x1090] sm:$0xff] }
 0x376   :  { %7655 = vmatpush1.bf16.msra.mxu1 %v9657_v62  ;;  %7914 = vmatprep.subr.bf16.mxu0 %v9412_v1  ;;  %v9698_v62 = vcombine.high %v793_v53, %v797_v56  ;;  %v546_v1 = vld [vmem:[#allocation10 + $0x7d8] sm:$0xff]  ;;  %v829_v51 = vld [vmem:[#allocation10 + $0x10b0] sm:$0xff]  ;;  %v9721_v56 = vcombine.low %v817_v24, %v821_v26 }
 0x377   :  { %7656 = vmatprep.subr.bf16.mxu1 %v9666_v35  ;;  %v550_v35 = vld [vmem:[#allocation10 + $0x7f8] sm:$0xff] }
 0x378   :  { %v9451_v16 = vcombine.low %v546_v1, %v550_v35 }
 0x379   :  { %7915 = vmatpush1.bf16.msra.mxu0 %v9411_v6  ;;  %v9452_v6 = vcombine.high %v546_v1, %v550_v35  ;;  %v833_v1 = vld [vmem:[#allocation10 + $0x10d0] sm:$0xff] }
 0x37a   :  { %7657 = vmatpush1.bf16.msra.mxu1 %v9665_v42  ;;  %7916 = vmatprep.subr.bf16.mxu0 %v9420_v10  ;;  %v9706_v42 = vcombine.high %v801_v2, %v805_v29  ;;  %v554_v10 = vld [vmem:[#allocation10 + $0x818] sm:$0xff]  ;;  %v837_v35 = vld [vmem:[#allocation10 + $0x10f0] sm:$0xff]  ;;  %v9729_v2 = vcombine.low %v825_v25, %v829_v51 }
 0x37b   :  { %7658 = vmatprep.subr.bf16.mxu1 %v9674_v11  ;;  %v558_v11 = vld [vmem:[#allocation10 + $0x838] sm:$0xff] }
 0x37c   :  { %v9459_v57 = vcombine.low %v554_v10, %v558_v11 }
 0x37d   :  { %7917 = vmatpush1.bf16.msra.mxu0 %v9419_v44  ;;  %v9460_v44 = vcombine.high %v554_v10, %v558_v11  ;;  %v845_v10 = vld [vmem:[#allocation10 + $0x1130] sm:$0xff] }
 0x37e   :  { %7659 = vmatpush1.bf16.msra.mxu1 %v9673_v19  ;;  %7918 = vmatprep.subr.bf16.mxu0 %v9428_v54  ;;  %v9714_v19 = vcombine.high %v809_v14, %v813_v15  ;;  %v562_v54 = vld [vmem:[#allocation10 + $0x858] sm:$0xff]  ;;  %v9737_v14 = vcombine.low %v833_v1, %v837_v35 }
 0x37f   :  { %7660 = vmatprep.subr.bf16.mxu1 %v9682_v23  ;;  %v566_v23 = vld [vmem:[#allocation10 + $0x878] sm:$0xff] }
 0x380   :  { %v9467_v53 = vcombine.low %v562_v54, %v566_v23 }
 0x381   :  { %7919 = vmatpush1.bf16.msra.mxu0 %v9427_v37  ;;  %v9468_v37 = vcombine.high %v562_v54, %v566_v23  ;;  %v849_v54 = vld [vmem:[#allocation10 + $0x1150] sm:$0xff] }
 0x382   :  { %7661 = vmatpush1.bf16.msra.mxu1 %v9681_v40  ;;  %7920 = vmatprep.subr.bf16.mxu0 %v9436_v41  ;;  %v9722_v40 = vcombine.high %v817_v24, %v821_v26  ;;  %v570_v41 = vld [vmem:[#allocation10 + $0x898] sm:$0xff]  ;;  %v853_v23 = vld [vmem:[#allocation10 + $0x1170] sm:$0xff] }
 0x383   :  { %7662 = vmatprep.subr.bf16.mxu1 %v9690_v45  ;;  %v574_v45 = vld [vmem:[#allocation10 + $0x8b8] sm:$0xff] }
 0x385   :  { %7921 = vmatpush1.bf16.msra.mxu0 %v9435_v58  ;;  %v9476_v58 = vcombine.high %v570_v41, %v574_v45 }
 0x386   :  { %7663 = vmatpush1.bf16.msra.mxu1 %v9689_v59  ;;  %7922 = vmatprep.subr.bf16.mxu0 %v9444_v61  ;;  %v9730_v59 = vcombine.high %v825_v25, %v829_v51  ;;  %v578_v61 = vld [vmem:[#allocation10 + $0x8d8] sm:$0xff]  ;;  %v861_v25 = vld [vmem:[#allocation10 + $0x11b0] sm:$0xff]  ;;  %v11080_v51 = vmov 4  }
 0x387   :  { %7664 = vmatprep.subr.bf16.mxu1 %v9698_v62  ;;  %v582_v62 = vld [vmem:[#allocation10 + $0x8f8] sm:$0xff] }
 0x388   :  { %v9484_v29 = vcombine.high %v578_v61, %v582_v62  ;;  %v9483_v11 = vcombine.low %v578_v61, %v582_v62  ;;  %v610_v61 = vld [vmem:[#allocation10 + $0x9d8] sm:$0xff] }
 0x389   :  { %7923 = vmatpush1.bf16.msra.mxu0 %v9443_v4  ;;  %v9738_v4 = vcombine.high %v833_v1, %v837_v35  ;;  %v614_v62 = vld [vmem:[#allocation10 + $0x9f8] sm:$0xff]  ;;  %v865_v35 = vld [vmem:[#allocation10 + $0x11d0] sm:$0xff] }
 0x38a   :  { %7665 = vmatpush1.bf16.msra.mxu1 %v9697_v18  ;;  %7924 = vmatprep.subr.bf16.mxu0 %v9452_v6  ;;  %v586_v18 = vld [vmem:[#allocation10 + $0x918] sm:$0xff] }
 0x38b   :  { %7666 = vmatprep.subr.bf16.mxu1 %v9706_v42  ;;  %v590_v6 = vld [vmem:[#allocation10 + $0x938] sm:$0xff]  ;;  %v841_v42 = vld [vmem:[#allocation10 + $0x1110] sm:$0xff] }
 0x38c   :  { %v9492_v15 = vcombine.high %v586_v18, %v590_v6  ;;  %v9491_v24 = vcombine.low %v586_v18, %v590_v6  ;;  %v9745_v26 = vcombine.low %v841_v42, %v845_v10 }
 0x38d   :  { %7925 = vmatpush1.bf16.msra.mxu0 %v9451_v16  ;;  %v9746_v16 = vcombine.high %v841_v42, %v845_v10 }
 0x38e   :  { %7667 = vmatpush1.bf16.msra.mxu1 %v9705_v46  ;;  %7937 = vmatprep.subr.bf16.mxu0 %v9460_v44  ;;  %v594_v46 = vld [vmem:[#allocation10 + $0x958] sm:$0xff] }
 0x38f   :  { %7679 = vmatprep.subr.bf16.mxu1 %v9714_v19  ;;  %v598_v44 = vld [vmem:[#allocation10 + $0x978] sm:$0xff]  ;;  %v11078_v19 = vmov 3  }
 0x390   :  { %7927 = vmatmul.mubr.bf16.vlgmr.msra.gmra.mrb[24].mxu0 %v11334_v22  ;;  %v9475_v22 = vcombine.low %v570_v41, %v574_v45  ;;  %10799 = vset.pattern.permute.xlu1 %v11078_v19  ;;  %v11079_v41 = vmov 1   ;;  %v857_v45 = vld [vmem:[#allocation10 + $0x1190] sm:$0xff] }
 0x391   :  { %7669 = vmatmul.mubr.bf16.vlgmr.msra.gmra.mrb[16].mxu1 %v11350_v3  ;;  %7938 = vmatpush1.bf16.msra.mxu0 %v9459_v57  ;;  %v9500_v57 = vcombine.high %v594_v46, %v598_v44  ;;  %v9761_v10 = vcombine.low %v857_v45, %v861_v25 }
 0x392   :  { %7680 = vmatpush1.bf16.msra.mxu1 %v9713_v30  ;;  %7939 = vmatprep.subr.bf16.mxu0 %v9468_v37  ;;  %v9754_v30 = vcombine.high %v849_v54, %v853_v23  ;;  %v602_v37 = vld [vmem:[#allocation10 + $0x998] sm:$0xff] }
 0x393   :  { %7681 = vmatprep.subr.bf16.mxu1 %v9722_v40  ;;  %7711 = vmatprep.mubr.bf16.mxu1 %v11352_v9  ;;  %v606_v40 = vld [vmem:[#allocation10 + $0x9b8] sm:$0xff] }
 0x394   :  { %7969 = vmatprep.mubr.bf16.mxu0 %v11337_v32  ;;  %v217_v32 = vld [vmem:[%s11649_s2] sm:$0xff]  ;;  %10797 = vset.pattern.permute.xlu0 %v11079_v41  ;;  %v9507_v18 = vcombine.low %v602_v37, %v606_v40 }
 0x395   :  { %7940 = vmatpush1.bf16.msra.mxu0 %v9467_v53  ;;  %262 = vperm.xlu1 %10799, %v217_v32   ;;  %v9499_v53 = vcombine.low %v594_v46, %v598_v44  ;;  %v618_v46 = vld [vmem:[#allocation10 + $0xa18] sm:$0xff]  ;;  %v873_v44 = vld [vmem:[#allocation10 + $0x1210] sm:$0xff] }
 0x396   :  { %7682 = vmatpush1.bf16.msra.mxu1 %v9721_v56  ;;  %7941 = vmatprep.subr.bf16.mxu0 %v9476_v58  ;;  %v9753_v56 = vcombine.low %v849_v54, %v853_v23  ;;  %v9508_v58 = vcombine.high %v602_v37, %v606_v40  ;;  %v877_v54 = vld [vmem:[#allocation10 + $0x1230] sm:$0xff]  ;;  %v9515_v23 = vcombine.low %v610_v61, %v614_v62 }
 0x397   :  { %7683 = vmatprep.subr.bf16.mxu1 %v9730_v59  ;;  %229 = vperm.xlu0 %10797, %v217_v32   ;;  %v9762_v59 = vcombine.high %v857_v45, %v861_v25  ;;  %v881_v37 = vld [vmem:[#allocation10 + $0x1250] sm:$0xff] }
 0x398   :  { %v885_v40 = vld [vmem:[#allocation10 + $0x1270] sm:$0xff] }
 0x399   :  { %7942 = vmatpush1.bf16.msra.mxu0 %v9475_v22  ;;  %10800 = vset.pattern.permute.xlu1 %v11080_v51  ;;  %v869_v22 = vld [vmem:[#allocation10 + $0x11f0] sm:$0xff]  ;;  %v9786_v25 = vcombine.high %v881_v37, %v885_v40 }
 0x39a   :  { %7684 = vmatpush1.bf16.msra.mxu1 %v9729_v2  ;;  %7943 = vmatprep.subr.bf16.mxu0 %v9484_v29  ;;  %v11081_v2 = vmov 2  }
 0x39b   :  { %7685 = vmatprep.subr.bf16.mxu1 %v9738_v4  ;;  %278 = vperm.xlu1 %10800, %v217_v32  }
 0x39c   :  { %10798 = vset.pattern.permute.xlu0 %v11081_v2  ;;  %v897_v2 = vld [vmem:[#allocation10 + $0x12d0] sm:$0xff] }
 0x39d   :  { %7944 = vmatpush1.bf16.msra.mxu0 %v9483_v11  ;;  %246 = vperm.xlu0 %10798, %v217_v32   ;;  %v9516_v11 = vcombine.high %v610_v61, %v614_v62  ;;  %v622_v32 = vld [vmem:[#allocation10 + $0xa38] sm:$0xff] }
 0x39e   :  { %7686 = vmatpush1.bf16.msra.mxu1 %v9737_v14  ;;  %7945 = vmatprep.subr.bf16.mxu0 %v9492_v15  ;;  %v218_v14 = vld [vmem:[%s11649_s2 + $0x8] sm:$0xff]  ;;  %s11082_s2 = smov [#allocation19]  }
 0x39f   :  { %7687 = vmatprep.subr.bf16.mxu1 %v9746_v16  ;;  %v9770_v16 = vcombine.high %v865_v35, %v869_v22  ;;  %10801 = vset.pattern.permute.xlu1 %v11079_v41  ;;  %v9777_v41 = vcombine.low %v873_v44, %v877_v54  ;;  %s9163_s23 = sshll.u32 %s11082_s2, 4  ;;  %s9164_s23 = int_to_ptr.vmem [resolvable:$true] %s9163_s23 }
 0x3a0   :  { %234 = vperm.xlu1 %10801, %v218_v14   ;;  %s11024_s26 = scalar_lea.vmem %s9164_s23, 256  ;;  %p11029_p11 = scmp.lt.s32.totalorder %s9164_s23, %s9164_s23 }
 0x3a1   :  { %7946 = vmatpush1.bf16.msra.mxu0 %v9491_v24  ;;  %250 = vperm.xlu0 %10798, %v218_v14   ;;  %v9769_v24 = vcombine.low %v865_v35, %v869_v22  ;;  %v642_v35 = vld [vmem:[#allocation10 + $0xad8] sm:$0xff]  ;;  %p11025_p10 = scmp.ne.s32.totalorder %s9164_s23, %s11024_s26  ;;  %p11030_p12 = scmp.lt.s32.totalorder %s11024_s26, %s11024_s26 }
 0x3a2   :  { %7688 = vmatpush1.bf16.msra.mxu1 %v9745_v26  ;;  %7947 = vmatprep.subr.bf16.mxu0 %v9500_v57  ;;  %v9778_v26 = vcombine.high %v873_v44, %v877_v54  ;;  %v626_v57 = vld [vmem:[#allocation10 + $0xa58] sm:$0xff] }
 0x3a3   :  { %7689 = vmatprep.subr.bf16.mxu1 %v9754_v30  ;;  %v630_v30 = vld [vmem:[#allocation10 + $0xa78] sm:$0xff]  ;;  %p11031_p13 = por %p11030_p12, %p11029_p11 }
 0x3a4   :  { %v7541_v1 = vpop.f32.mrb[12].mxu1  ;;  %10802 = vset.pattern.permute.xlu1 %v11078_v19  ;;  %v9532_v45 = vcombine.high %v626_v57, %v630_v30  ;;  %v9531_v61 = vcombine.low %v626_v57, %v630_v30  ;;  %v9785_v19 = vcombine.low %v881_v37, %v885_v40  ;;  %v646_v22 = vld [vmem:[#allocation10 + $0xaf8] sm:$0xff] }
 0x3a5   :  { %v11478_v29 = vadd.f32 %v7541_v1, %v11374_v60  ;;  %v7543_v4 = vpop.f32.mrb[13].mxu1  ;;  %7948 = vmatpush1.bf16.msra.mxu0 %v9499_v53  ;;  %266 = vperm.xlu1 %10802, %v218_v14   ;;  %v634_v53 = vld [vmem:[#allocation10 + $0xa98] sm:$0xff]  ;;  %p11032_p0 = pnand %p11031_p13, %p11025_p10 }
 0x3a6   :  { %v11481_v6 = vadd.f32 %v7543_v4, %v11376_v63  ;;  %v7545_v42 = vpop.f32.mrb[14].mxu1  ;;  %7690 = vmatpush1.bf16.msra.mxu1 %v9753_v56  ;;  %7949 = vmatprep.subr.bf16.mxu0 %v9508_v58  ;;  %v638_v56 = vld [vmem:[#allocation10 + $0xab8] sm:$0xff]  ;;  %v889_v58 = vld [vmem:[#allocation10 + $0x1290] sm:$0xff] }
 0x3a7   :  { %v11487_v15 = vadd.f32 %v7545_v42, %v11382_v27  ;;  %v7547_v60 = vpop.f32.mrb[15].mxu1  ;;  %7691 = vmatprep.subr.bf16.mxu1 %v9762_v59  ;;  %v9524_v27 = vcombine.high %v618_v46, %v622_v32  ;;  %10803 = vset.pattern.permute.xlu0 %v11080_v51  ;;  %v893_v59 = vld [vmem:[#allocation10 + $0x12b0] sm:$0xff]  ;;  %v9540_v62 = vcombine.high %v634_v53, %v638_v56 }
 0x3a8   :  { %v11490_v63 = vadd.f32 %v7547_v60, %v11386_v34  ;;  %v9523_v34 = vcombine.low %v618_v46, %v622_v32  ;;  %282 = vperm.xlu0 %10803, %v218_v14   ;;  %v9794_v1 = vcombine.high %v889_v58, %v893_v59  ;;  %v901_v4 = vld [vmem:[#allocation10 + $0x12f0] sm:$0xff]  ;;  %v9793_v42 = vcombine.low %v889_v58, %v893_v59  ;;  %v654_v14 = vld [vmem:[#allocation10 + $0xb38] sm:$0xff] }
 0x3a9   :  { %7950 = vmatpush1.bf16.msra.mxu0 %v9507_v18  ;;  %v9539_v18 = vcombine.low %v634_v53, %v638_v56  ;;  %v9548_v51 = vcombine.high %v642_v35, %v646_v22  ;;  %v905_v60 = vld [vmem:[#allocation10 + $0x1310] sm:$0xff]  ;;  %v9547_v46 = vcombine.low %v642_v35, %v646_v22  ;;  %v9801_v32 = vcombine.low %v897_v2, %v901_v4 }
 0x3aa   :  { %7692 = vmatpush1.bf16.msra.mxu1 %v9761_v10  ;;  %7951 = vmatprep.subr.bf16.mxu0 %v9516_v11  ;;  %v9802_v10 = vcombine.high %v897_v2, %v901_v4  ;;  %v650_v11 = vld [vmem:[#allocation10 + $0xb18] sm:$0xff] }
 0x3ab   :  { %7693 = vmatprep.subr.bf16.mxu1 %v9770_v16  ;;  %v909_v16 = vld [vmem:[#allocation10 + $0x1330] sm:$0xff]  ;;  %v9556_v44 = vcombine.high %v650_v11, %v654_v14  ;;  %v9555_v57 = vcombine.low %v650_v11, %v654_v14 }
 0x3ac   :  { %v9810_v54 = vcombine.high %v905_v60, %v909_v16  ;;  %v9809_v30 = vcombine.low %v905_v60, %v909_v16 }
 0x3ad   :  { %7952 = vmatpush1.bf16.msra.mxu0 %v9515_v23  ;;  %v658_v23 = vld [vmem:[#allocation10 + $0xb58] sm:$0xff] }
 0x3ae   :  { %7694 = vmatpush1.bf16.msra.mxu1 %v9769_v24  ;;  %7953 = vmatprep.subr.bf16.mxu0 %v9524_v27  ;;  %v662_v24 = vld [vmem:[#allocation10 + $0xb78] sm:$0xff]  ;;  %v913_v27 = vld [vmem:[#allocation10 + $0x1350] sm:$0xff] }
 0x3af   :  { %7695 = vmatprep.subr.bf16.mxu1 %v9778_v26  ;;  %v917_v26 = vld [vmem:[#allocation10 + $0x1370] sm:$0xff]  ;;  %v9564_v37 = vcombine.high %v658_v23, %v662_v24  ;;  %v9563_v53 = vcombine.low %v658_v23, %v662_v24 }
 0x3b0   :  { %v9818_v40 = vcombine.high %v913_v27, %v917_v26  ;;  %v9817_v56 = vcombine.low %v913_v27, %v917_v26 }
 0x3b1   :  { %7954 = vmatpush1.bf16.msra.mxu0 %v9523_v34  ;;  %v666_v34 = vld [vmem:[#allocation10 + $0xb98] sm:$0xff] }
 0x3b2   :  { %7696 = vmatpush1.bf16.msra.mxu1 %v9777_v41  ;;  %7955 = vmatprep.subr.bf16.mxu0 %v9532_v45  ;;  %v670_v41 = vld [vmem:[#allocation10 + $0xbb8] sm:$0xff]  ;;  %v921_v45 = vld [vmem:[#allocation10 + $0x1390] sm:$0xff] }
 0x3b3   :  { %7697 = vmatprep.subr.bf16.mxu1 %v9786_v25  ;;  %v925_v25 = vld [vmem:[#allocation10 + $0x13b0] sm:$0xff]  ;;  %v9572_v58 = vcombine.high %v666_v34, %v670_v41  ;;  %v9571_v35 = vcombine.low %v666_v34, %v670_v41 }
 0x3b4   :  { %v9826_v59 = vcombine.high %v921_v45, %v925_v25  ;;  %v9825_v22 = vcombine.low %v921_v45, %v925_v25 }
 0x3b5   :  { %7956 = vmatpush1.bf16.msra.mxu0 %v9531_v61  ;;  %v674_v61 = vld [vmem:[#allocation10 + $0xbd8] sm:$0xff] }
 0x3b6   :  { %7698 = vmatpush1.bf16.msra.mxu1 %v9785_v19  ;;  %7957 = vmatprep.subr.bf16.mxu0 %v9540_v62  ;;  %v678_v19 = vld [vmem:[#allocation10 + $0xbf8] sm:$0xff]  ;;  %v929_v62 = vld [vmem:[#allocation10 + $0x13d0] sm:$0xff] }
 0x3b7   :  { %7699 = vmatprep.subr.bf16.mxu1 %v9794_v1  ;;  %v933_v1 = vld [vmem:[#allocation10 + $0x13f0] sm:$0xff]  ;;  %v9580_v2 = vcombine.high %v674_v61, %v678_v19  ;;  %v9579_v11 = vcombine.low %v674_v61, %v678_v19 }
 0x3b8   :  { %v9834_v4 = vcombine.high %v929_v62, %v933_v1  ;;  %v9833_v14 = vcombine.low %v929_v62, %v933_v1  ;;  %v714_v1 = vld [vmem:[#allocation10 + $0xd18] sm:$0xff] }
 0x3b9   :  { %7958 = vmatpush1.bf16.msra.mxu0 %v9539_v18  ;;  %v682_v18 = vld [vmem:[#allocation10 + $0xc18] sm:$0xff] }
 0x3ba   :  { %7700 = vmatpush1.bf16.msra.mxu1 %v9793_v42  ;;  %7959 = vmatprep.subr.bf16.mxu0 %v9548_v51  ;;  %v686_v42 = vld [vmem:[#allocation10 + $0xc38] sm:$0xff]  ;;  %v937_v51 = vld [vmem:[#allocation10 + $0x1410] sm:$0xff] }
 0x3bb   :  { %7701 = vmatprep.subr.bf16.mxu1 %v9802_v10  ;;  %v941_v10 = vld [vmem:[#allocation10 + $0x1430] sm:$0xff]  ;;  %v9588_v60 = vcombine.high %v682_v18, %v686_v42  ;;  %v9587_v23 = vcombine.low %v682_v18, %v686_v42 }
 0x3bc   :  { %v9842_v16 = vcombine.high %v937_v51, %v941_v10  ;;  %v9841_v24 = vcombine.low %v937_v51, %v941_v10  ;;  %v722_v51 = vld [vmem:[#allocation10 + $0xd58] sm:$0xff] }
 0x3bd   :  { %7960 = vmatpush1.bf16.msra.mxu0 %v9547_v46  ;;  %v690_v46 = vld [vmem:[#allocation10 + $0xc58] sm:$0xff] }
 0x3be   :  { %7702 = vmatpush1.bf16.msra.mxu1 %v9801_v32  ;;  %7961 = vmatprep.subr.bf16.mxu0 %v9556_v44  ;;  %v694_v32 = vld [vmem:[#allocation10 + $0xc78] sm:$0xff]  ;;  %v945_v44 = vld [vmem:[#allocation10 + $0x1450] sm:$0xff] }
 0x3bf   :  { %7703 = vmatprep.subr.bf16.mxu1 %v9810_v54  ;;  %v949_v54 = vld [vmem:[#allocation10 + $0x1470] sm:$0xff]  ;;  %v9596_v27 = vcombine.high %v690_v46, %v694_v32  ;;  %v9595_v34 = vcombine.low %v690_v46, %v694_v32  ;;  %v726_v10 = vld [vmem:[#allocation10 + $0xd78] sm:$0xff] }
 0x3c0   :  { %v9850_v26 = vcombine.high %v945_v44, %v949_v54  ;;  %v9849_v41 = vcombine.low %v945_v44, %v949_v54  ;;  %v9628_v46 = vcombine.high %v722_v51, %v726_v10  ;;  %v730_v44 = vld [vmem:[#allocation10 + $0xd98] sm:$0xff] }
 0x3c1   :  { %7962 = vmatpush1.bf16.msra.mxu0 %v9555_v57  ;;  %v698_v57 = vld [vmem:[#allocation10 + $0xc98] sm:$0xff] }
 0x3c2   :  { %7704 = vmatpush1.bf16.msra.mxu1 %v9809_v30  ;;  %7963 = vmatprep.subr.bf16.mxu0 %v9564_v37  ;;  %v702_v30 = vld [vmem:[#allocation10 + $0xcb8] sm:$0xff]  ;;  %v953_v37 = vld [vmem:[#allocation10 + $0x1490] sm:$0xff] }
 0x3c3   :  { %7705 = vmatprep.subr.bf16.mxu1 %v9818_v40  ;;  %v957_v40 = vld [vmem:[#allocation10 + $0x14b0] sm:$0xff]  ;;  %v9604_v45 = vcombine.high %v698_v57, %v702_v30  ;;  %v734_v54 = vld [vmem:[#allocation10 + $0xdb8] sm:$0xff] }
 0x3c4   :  { %v9858_v25 = vcombine.high %v953_v37, %v957_v40  ;;  %v9857_v61 = vcombine.low %v953_v37, %v957_v40  ;;  %v738_v40 = vld [vmem:[#allocation10 + $0xdd8] sm:$0xff] }
 0x3c5   :  { %7964 = vmatpush1.bf16.msra.mxu0 %v9563_v53  ;;  %v706_v53 = vld [vmem:[#allocation10 + $0xcd8] sm:$0xff] }
 0x3c6   :  { %7706 = vmatpush1.bf16.msra.mxu1 %v9817_v56  ;;  %7965 = vmatprep.subr.bf16.mxu0 %v9572_v58  ;;  %v710_v56 = vld [vmem:[#allocation10 + $0xcf8] sm:$0xff]  ;;  %v961_v58 = vld [vmem:[#allocation10 + $0x14d0] sm:$0xff] }
 0x3c7   :  { %7707 = vmatprep.subr.bf16.mxu1 %v9826_v59  ;;  %v965_v59 = vld [vmem:[#allocation10 + $0x14f0] sm:$0xff]  ;;  %v9612_v19 = vcombine.high %v706_v53, %v710_v56 }
 0x3c8   :  { %v9866_v62 = vcombine.high %v961_v58, %v965_v59  ;;  %v9865_v18 = vcombine.low %v961_v58, %v965_v59  ;;  %v9635_v59 = vcombine.low %v730_v44, %v734_v54 }
 0x3c9   :  { %7966 = vmatpush1.bf16.msra.mxu0 %v9571_v35  ;;  %v718_v35 = vld [vmem:[#allocation10 + $0xd38] sm:$0xff] }
 0x3ca   :  { %7708 = vmatpush1.bf16.msra.mxu1 %v9825_v22  ;;  %7967 = vmatprep.subr.bf16.mxu0 %v9580_v2  ;;  %v969_v22 = vld [vmem:[#allocation10 + $0x1510] sm:$0xff]  ;;  %v9620_v42 = vcombine.high %v714_v1, %v718_v35 }
 0x3cb   :  { %7709 = vmatprep.subr.bf16.mxu1 %v9834_v4  ;;  %v973_v2 = vld [vmem:[#allocation10 + $0x1530] sm:$0xff]  ;;  %v9611_v4 = vcombine.low %v706_v53, %v710_v56 }
 0x3cc   :  { %v997_v53 = vld [vmem:[#allocation10 + $0x15f0] sm:$0xff] }
 0x3cd   :  { %7968 = vmatpush1.bf16.msra.mxu0 %v9579_v11  ;;  %v977_v11 = vld [vmem:[#allocation10 + $0x1550] sm:$0xff] }
 0x3ce   :  { %7710 = vmatpush1.bf16.msra.mxu1 %v9833_v14  ;;  %7980 = vmatprep.subr.bf16.mxu0 %v9588_v60  ;;  %v981_v14 = vld [vmem:[#allocation10 + $0x1570] sm:$0xff]  ;;  %v9619_v60 = vcombine.low %v714_v1, %v718_v35  ;;  %v746_v35 = vld [vmem:[#allocation10 + $0xe18] sm:$0xff] }
 0x3cf   :  { %7722 = vmatprep.subr.bf16.mxu1 %v9842_v16  ;;  %v9873_v16 = vcombine.low %v969_v22, %v973_v2  ;;  %v9882_v32 = vcombine.high %v977_v11, %v981_v14 }
 0x3d0   :  { %7970 = vmatmul.mubr.bf16.vlgmr.msra.gmra.mrb[24].mxu0 %v11342_v43  ;;  %v9603_v43 = vcombine.low %v698_v57, %v702_v30  ;;  %v9636_v57 = vcombine.high %v730_v44, %v734_v54  ;;  %v1017_v44 = vld [vmem:[#allocation10 + $0x1690] sm:$0xff] }
 0x3d1   :  { %7712 = vmatmul.mubr.bf16.vlgmr.msra.gmra.mrb[16].mxu1 %v11390_v20  ;;  %7981 = vmatpush1.bf16.msra.mxu0 %v9587_v23  ;;  %v985_v23 = vld [vmem:[#allocation10 + $0x1590] sm:$0xff] }
 0x3d2   :  { %7723 = vmatpush1.bf16.msra.mxu1 %v9841_v24  ;;  %7982 = vmatprep.subr.bf16.mxu0 %v9596_v27  ;;  %v989_v24 = vld [vmem:[#allocation10 + $0x15b0] sm:$0xff]  ;;  %v9627_v27 = vcombine.low %v722_v51, %v726_v10  ;;  %v758_v51 = vld [vmem:[#allocation10 + $0xe78] sm:$0xff] }
 0x3d3   :  { %7724 = vmatprep.subr.bf16.mxu1 %v9850_v26  ;;  %7754 = vmatprep.mubr.bf16.mxu1 %v11392_v31  ;;  %v9881_v26 = vcombine.low %v977_v11, %v981_v14  ;;  %v9890_v37 = vcombine.high %v985_v23, %v989_v24  ;;  %v1009_v10 = vld [vmem:[#allocation10 + $0x1650] sm:$0xff] }
 0x3d4   :  { %8012 = vmatprep.mubr.bf16.mxu0 %v11344_v50  ;;  %v9874_v50 = vcombine.high %v969_v22, %v973_v2  ;;  %v750_v22 = vld [vmem:[#allocation10 + $0xe38] sm:$0xff]  ;;  %v1005_v2 = vld [vmem:[#allocation10 + $0x1630] sm:$0xff] }
 0x3d5   :  { %7983 = vmatpush1.bf16.msra.mxu0 %v9595_v34  ;;  %v742_v34 = vld [vmem:[#allocation10 + $0xdf8] sm:$0xff]  ;;  %v1013_v11 = vld [vmem:[#allocation10 + $0x1670] sm:$0xff] }
 0x3d6   :  { %7725 = vmatpush1.bf16.msra.mxu1 %v9849_v41  ;;  %7984 = vmatprep.subr.bf16.mxu0 %v9604_v45  ;;  %v1021_v54 = vld [vmem:[#allocation10 + $0x16b0] sm:$0xff] }
 0x3d7   :  { %7726 = vmatprep.subr.bf16.mxu1 %v9858_v25  ;;  %v993_v25 = vld [vmem:[#allocation10 + $0x15d0] sm:$0xff] }
 0x3d8   :  { %v9898_v1 = vcombine.high %v993_v25, %v997_v53 }
 0x3d9   :  { %7985 = vmatpush1.bf16.msra.mxu0 %v9603_v43 }
 0x3da   :  { %7727 = vmatpush1.bf16.msra.mxu1 %v9857_v61  ;;  %7986 = vmatprep.subr.bf16.mxu0 %v9612_v19  ;;  %v9889_v19 = vcombine.low %v985_v23, %v989_v24  ;;  %v9913_v24 = vcombine.low %v1009_v10, %v1013_v11 }
 0x3db   :  { %7728 = vmatprep.subr.bf16.mxu1 %v9866_v62  ;;  %v9644_v62 = vcombine.high %v738_v40, %v742_v34 }
 0x3dd   :  { %7987 = vmatpush1.bf16.msra.mxu0 %v9611_v4  ;;  %v9643_v4 = vcombine.low %v738_v40, %v742_v34  ;;  %v1029_v40 = vld [vmem:[#allocation10 + $0x16f0] sm:$0xff] }
 0x3de   :  { %7729 = vmatpush1.bf16.msra.mxu1 %v9865_v18  ;;  %7988 = vmatprep.subr.bf16.mxu0 %v9620_v42  ;;  %v9897_v18 = vcombine.low %v993_v25, %v997_v53 }
 0x3df   :  { %7730 = vmatprep.subr.bf16.mxu1 %v9874_v50  ;;  %v754_v50 = vld [vmem:[#allocation10 + $0xe58] sm:$0xff] }
 0x3e0   :  { %v9659_v23 = vcombine.low %v754_v50, %v758_v51 }
 0x3e1   :  { %7989 = vmatpush1.bf16.msra.mxu0 %v9619_v60  ;;  %v9660_v60 = vcombine.high %v754_v50, %v758_v51 }
 0x3e2   :  { %7731 = vmatpush1.bf16.msra.mxu1 %v9873_v16  ;;  %7990 = vmatprep.subr.bf16.mxu0 %v9628_v46  ;;  %v9914_v16 = vcombine.high %v1009_v10, %v1013_v11  ;;  %v762_v46 = vld [vmem:[#allocation10 + $0xe98] sm:$0xff] }
 0x3e3   :  { %v7498_v30 = vpop.f32.mrb[16].mxu0  ;;  %7732 = vmatprep.subr.bf16.mxu1 %v9882_v32  ;;  %v766_v32 = vld [vmem:[#allocation10 + $0xeb8] sm:$0xff] }
 0x3e4   :  { %v11499_v41 = vadd.f32 %v7498_v30, %v11419_v39  ;;  %v7500_v45 = vpop.f32.mrb[17].mxu0  ;;  %v774_v30 = vld [vmem:[#allocation10 + $0xef8] sm:$0xff]  ;;  %v9667_v34 = vcombine.low %v762_v46, %v766_v32 }
 0x3e5   :  { %v11502_v56 = vadd.f32 %v7500_v45, %v11422_v48  ;;  %v7502_v58 = vpop.f32.mrb[18].mxu0  ;;  %7991 = vmatpush1.bf16.msra.mxu0 %v9627_v27  ;;  %v1001_v48 = vld [vmem:[#allocation10 + $0x1610] sm:$0xff]  ;;  %v9668_v27 = vcombine.high %v762_v46, %v766_v32  ;;  %v9921_v45 = vcombine.low %v1017_v44, %v1021_v54  ;;  %v794_v10 = vld [vmem:[#allocation10 + $0xf98] sm:$0xff] }
 0x3e6   :  { %v11505_v43 = vadd.f32 %v7502_v58, %v11425_v55  ;;  %7733 = vmatpush1.bf16.msra.mxu1 %v9881_v26  ;;  %v7504_v61 = vpop.f32.mrb[19].mxu0  ;;  %7992 = vmatprep.subr.bf16.mxu0 %v9636_v57  ;;  %v9652_v55 = vcombine.high %v746_v35, %v750_v22  ;;  %v9906_v42 = vcombine.high %v1001_v48, %v1005_v2  ;;  %v770_v57 = vld [vmem:[#allocation10 + $0xed8] sm:$0xff] }
 0x3e7   :  { %v11508_v39 = vadd.f32 %v7504_v61, %v11428_v33  ;;  %7734 = vmatprep.subr.bf16.mxu1 %v9890_v37  ;;  %v9651_v33 = vcombine.low %v746_v35, %v750_v22  ;;  %v9905_v14 = vcombine.low %v1001_v48, %v1005_v2  ;;  %v9922_v26 = vcombine.high %v1017_v44, %v1021_v54  ;;  %v1025_v37 = vld [vmem:[#allocation10 + $0x16d0] sm:$0xff]  ;;  %v778_v58 = vld [vmem:[#allocation10 + $0xf18] sm:$0xff] }
 0x3e8   :  { %v9676_v25 = vcombine.high %v770_v57, %v774_v30  ;;  %v9930_v53 = vcombine.high %v1025_v37, %v1029_v40  ;;  %v1033_v61 = vld [vmem:[#allocation10 + $0x1710] sm:$0xff]  ;;  %v786_v48 = vld [vmem:[#allocation10 + $0xf58] sm:$0xff] }
 0x3e9   :  { %7993 = vmatpush1.bf16.msra.mxu0 %v9635_v59  ;;  %v782_v59 = vld [vmem:[#allocation10 + $0xf38] sm:$0xff] }
 0x3ea   :  { %7735 = vmatpush1.bf16.msra.mxu1 %v9889_v19  ;;  %7994 = vmatprep.subr.bf16.mxu0 %v9644_v62  ;;  %v1037_v19 = vld [vmem:[#allocation10 + $0x1730] sm:$0xff]  ;;  %v9675_v62 = vcombine.low %v770_v57, %v774_v30  ;;  %v9684_v35 = vcombine.high %v778_v58, %v782_v59  ;;  %v790_v2 = vld [vmem:[#allocation10 + $0xf78] sm:$0xff] }
 0x3eb   :  { %7736 = vmatprep.subr.bf16.mxu1 %v9898_v1  ;;  %v9929_v1 = vcombine.low %v1025_v37, %v1029_v40  ;;  %v9938_v22 = vcombine.high %v1033_v61, %v1037_v19  ;;  %v9692_v50 = vcombine.high %v786_v48, %v790_v2  ;;  %v798_v11 = vld [vmem:[#allocation10 + $0xfb8] sm:$0xff] }
 0x3ec   :  { %v9700_v46 = vcombine.high %v794_v10, %v798_v11  ;;  %v802_v44 = vld [vmem:[#allocation10 + $0xfd8] sm:$0xff] }
 0x3ed   :  { %7995 = vmatpush1.bf16.msra.mxu0 %v9643_v4  ;;  %v1041_v4 = vld [vmem:[#allocation10 + $0x1750] sm:$0xff]  ;;  %v806_v54 = vld [vmem:[#allocation10 + $0xff8] sm:$0xff] }
 0x3ee   :  { %7737 = vmatpush1.bf16.msra.mxu1 %v9897_v18  ;;  %7996 = vmatprep.subr.bf16.mxu0 %v9652_v55  ;;  %v1045_v18 = vld [vmem:[#allocation10 + $0x1770] sm:$0xff]  ;;  %v9683_v55 = vcombine.low %v778_v58, %v782_v59  ;;  %v9708_v57 = vcombine.high %v802_v44, %v806_v54  ;;  %v810_v37 = vld [vmem:[#allocation10 + $0x1018] sm:$0xff] }
 0x3ef   :  { %7738 = vmatprep.subr.bf16.mxu1 %v9906_v42  ;;  %v9937_v42 = vcombine.low %v1033_v61, %v1037_v19  ;;  %v9946_v51 = vcombine.high %v1041_v4, %v1045_v18  ;;  %v814_v40 = vld [vmem:[#allocation10 + $0x1038] sm:$0xff] }
 0x3f0   :  { %v9716_v58 = vcombine.high %v810_v37, %v814_v40  ;;  %v818_v61 = vld [vmem:[#allocation10 + $0x1058] sm:$0xff] }
 0x3f1   :  { %7997 = vmatpush1.bf16.msra.mxu0 %v9651_v33  ;;  %v1049_v33 = vld [vmem:[#allocation10 + $0x1790] sm:$0xff]  ;;  %v822_v19 = vld [vmem:[#allocation10 + $0x1078] sm:$0xff] }
 0x3f2   :  { %7739 = vmatpush1.bf16.msra.mxu1 %v9905_v14  ;;  %7998 = vmatprep.subr.bf16.mxu0 %v9660_v60  ;;  %v1053_v14 = vld [vmem:[#allocation10 + $0x17b0] sm:$0xff]  ;;  %v9691_v60 = vcombine.low %v786_v48, %v790_v2  ;;  %v9724_v48 = vcombine.high %v818_v61, %v822_v19 }
 0x3f3   :  { %7740 = vmatprep.subr.bf16.mxu1 %v9914_v16  ;;  %v9945_v16 = vcombine.low %v1041_v4, %v1045_v18  ;;  %v9954_v32 = vcombine.high %v1049_v33, %v1053_v14  ;;  %v826_v4 = vld [vmem:[#allocation10 + $0x1098] sm:$0xff] }
 0x3f4   :  { %v830_v18 = vld [vmem:[#allocation10 + $0x10b8] sm:$0xff] }
 0x3f5   :  { %7999 = vmatpush1.bf16.msra.mxu0 %v9659_v23  ;;  %v1057_v23 = vld [vmem:[#allocation10 + $0x17d0] sm:$0xff] }
 0x3f6   :  { %7741 = vmatpush1.bf16.msra.mxu1 %v9913_v24  ;;  %8000 = vmatprep.subr.bf16.mxu0 %v9668_v27  ;;  %v1061_v24 = vld [vmem:[#allocation10 + $0x17f0] sm:$0xff]  ;;  %v9699_v27 = vcombine.low %v794_v10, %v798_v11  ;;  %v9732_v10 = vcombine.high %v826_v4, %v830_v18 }
 0x3f7   :  { %7742 = vmatprep.subr.bf16.mxu1 %v9922_v26  ;;  %v9953_v26 = vcombine.low %v1049_v33, %v1053_v14  ;;  %v9962_v30 = vcombine.high %v1057_v23, %v1061_v24  ;;  %v834_v33 = vld [vmem:[#allocation10 + $0x10d8] sm:$0xff] }
 0x3f8   :  { %v838_v14 = vld [vmem:[#allocation10 + $0x10f8] sm:$0xff] }
 0x3f9   :  { %8001 = vmatpush1.bf16.msra.mxu0 %v9667_v34  ;;  %v1065_v34 = vld [vmem:[#allocation10 + $0x1810] sm:$0xff] }
 0x3fa   :  { %7743 = vmatpush1.bf16.msra.mxu1 %v9921_v45  ;;  %8002 = vmatprep.subr.bf16.mxu0 %v9676_v25  ;;  %v1069_v45 = vld [vmem:[#allocation10 + $0x1830] sm:$0xff]  ;;  %v9707_v25 = vcombine.low %v802_v44, %v806_v54  ;;  %v842_v54 = vld [vmem:[#allocation10 + $0x1118] sm:$0xff] }
 0x3fb   :  { %7744 = vmatprep.subr.bf16.mxu1 %v9930_v53  ;;  %v9961_v53 = vcombine.low %v1057_v23, %v1061_v24  ;;  %v9970_v59 = vcombine.high %v1065_v34, %v1069_v45  ;;  %v846_v23 = vld [vmem:[#allocation10 + $0x1138] sm:$0xff]  ;;  %v1097_v24 = vld [vmem:[#allocation10 + $0x1910] sm:$0xff] }
 0x3fd   :  { %8003 = vmatpush1.bf16.msra.mxu0 %v9675_v62  ;;  %v1073_v62 = vld [vmem:[#allocation10 + $0x1850] sm:$0xff] }
 0x3fe   :  { %7745 = vmatpush1.bf16.msra.mxu1 %v9929_v1  ;;  %8004 = vmatprep.subr.bf16.mxu0 %v9684_v35  ;;  %v1077_v1 = vld [vmem:[#allocation10 + $0x1870] sm:$0xff]  ;;  %v9715_v35 = vcombine.low %v810_v37, %v814_v40  ;;  %v850_v37 = vld [vmem:[#allocation10 + $0x1158] sm:$0xff] }
 0x3ff   :  { %7746 = vmatprep.subr.bf16.mxu1 %v9938_v22  ;;  %v9969_v22 = vcombine.low %v1065_v34, %v1069_v45  ;;  %v9978_v2 = vcombine.high %v1073_v62, %v1077_v1  ;;  %v854_v40 = vld [vmem:[#allocation10 + $0x1178] sm:$0xff]  ;;  %v1105_v34 = vld [vmem:[#allocation10 + $0x1950] sm:$0xff] }
 0x400   :  { %v1109_v45 = vld [vmem:[#allocation10 + $0x1970] sm:$0xff] }
 0x401   :  { %8005 = vmatpush1.bf16.msra.mxu0 %v9683_v55  ;;  %v1081_v55 = vld [vmem:[#allocation10 + $0x1890] sm:$0xff] }
 0x402   :  { %7747 = vmatpush1.bf16.msra.mxu1 %v9937_v42  ;;  %8006 = vmatprep.subr.bf16.mxu0 %v9692_v50  ;;  %v1085_v42 = vld [vmem:[#allocation10 + $0x18b0] sm:$0xff]  ;;  %v9723_v50 = vcombine.low %v818_v61, %v822_v19  ;;  %v858_v61 = vld [vmem:[#allocation10 + $0x1198] sm:$0xff] }
 0x403   :  { %7748 = vmatprep.subr.bf16.mxu1 %v9946_v51  ;;  %v9977_v51 = vcombine.low %v1073_v62, %v1077_v1  ;;  %v9986_v11 = vcombine.high %v1081_v55, %v1085_v42  ;;  %v862_v19 = vld [vmem:[#allocation10 + $0x11b8] sm:$0xff]  ;;  %v1113_v62 = vld [vmem:[#allocation10 + $0x1990] sm:$0xff] }
 0x404   :  { %v1117_v1 = vld [vmem:[#allocation10 + $0x19b0] sm:$0xff] }
 0x405   :  { %8007 = vmatpush1.bf16.msra.mxu0 %v9691_v60  ;;  %v1089_v60 = vld [vmem:[#allocation10 + $0x18d0] sm:$0xff] }
 0x406   :  { %7749 = vmatpush1.bf16.msra.mxu1 %v9945_v16  ;;  %8008 = vmatprep.subr.bf16.mxu0 %v9700_v46  ;;  %v1093_v16 = vld [vmem:[#allocation10 + $0x18f0] sm:$0xff]  ;;  %v9985_v46 = vcombine.low %v1081_v55, %v1085_v42  ;;  %v870_v55 = vld [vmem:[#allocation10 + $0x11f8] sm:$0xff] }
 0x407   :  { %7750 = vmatprep.subr.bf16.mxu1 %v9954_v32  ;;  %v9740_v32 = vcombine.high %v834_v33, %v838_v14  ;;  %v9994_v44 = vcombine.high %v1089_v60, %v1093_v16 }
 0x409   :  { %8009 = vmatpush1.bf16.msra.mxu0 %v9699_v27  ;;  %v1101_v27 = vld [vmem:[#allocation10 + $0x1930] sm:$0xff] }
 0x40a   :  { %7751 = vmatpush1.bf16.msra.mxu1 %v9953_v26  ;;  %8010 = vmatprep.subr.bf16.mxu0 %v9708_v57  ;;  %v9739_v26 = vcombine.low %v834_v33, %v838_v14  ;;  %v9993_v57 = vcombine.low %v1089_v60, %v1093_v16  ;;  %v9763_v14 = vcombine.low %v858_v61, %v862_v19 }
 0x40b   :  { %7752 = vmatprep.subr.bf16.mxu1 %v9962_v30  ;;  %v9748_v30 = vcombine.high %v842_v54, %v846_v23 }
 0x40d   :  { %8011 = vmatpush1.bf16.msra.mxu0 %v9707_v25  ;;  %v9747_v25 = vcombine.low %v842_v54, %v846_v23  ;;  %v878_v54 = vld [vmem:[#allocation10 + $0x1238] sm:$0xff]  ;;  %v1133_v23 = vld [vmem:[#allocation10 + $0x1a30] sm:$0xff] }
 0x40e   :  { %7753 = vmatpush1.bf16.msra.mxu1 %v9961_v53  ;;  %8023 = vmatprep.subr.bf16.mxu0 %v9716_v58  ;;  %v10001_v53 = vcombine.low %v1097_v24, %v1101_v27  ;;  %v9756_v58 = vcombine.high %v850_v37, %v854_v40 }
 0x40f   :  { %7765 = vmatprep.subr.bf16.mxu1 %v9970_v59  ;;  %v10010_v59 = vcombine.high %v1105_v34, %v1109_v45 }
 0x410   :  { %8013 = vmatmul.mubr.bf16.vlgmr.msra.gmra.mrb[24].mxu0 %v11350_v3  ;;  %v9731_v3 = vcombine.low %v826_v4, %v830_v18  ;;  %v10018_v4 = vcombine.high %v1113_v62, %v1117_v1  ;;  %v866_v18 = vld [vmem:[#allocation10 + $0x11d8] sm:$0xff] }
 0x411   :  { %7755 = vmatmul.mubr.bf16.vlgmr.msra.gmra.mrb[16].mxu1 %v11410_v12  ;;  %8024 = vmatpush1.bf16.msra.mxu0 %v9715_v35  ;;  %v9755_v35 = vcombine.low %v850_v37, %v854_v40  ;;  %v1141_v37 = vld [vmem:[#allocation10 + $0x1a70] sm:$0xff] }
 0x412   :  { %7766 = vmatpush1.bf16.msra.mxu1 %v9969_v22  ;;  %8025 = vmatprep.subr.bf16.mxu0 %v9724_v48  ;;  %v10009_v22 = vcombine.low %v1105_v34, %v1109_v45  ;;  %v9764_v48 = vcombine.high %v858_v61, %v862_v19 }
 0x413   :  { %7767 = vmatprep.subr.bf16.mxu1 %v9978_v2  ;;  %7797 = vmatprep.mubr.bf16.mxu1 %v11412_v17 }
 0x414   :  { %8055 = vmatprep.mubr.bf16.mxu0 %v11352_v9  ;;  %v10002_v9 = vcombine.high %v1097_v24, %v1101_v27  ;;  %v9771_v24 = vcombine.low %v866_v18, %v870_v55 }
 0x415   :  { %8026 = vmatpush1.bf16.msra.mxu0 %v9723_v50 }
 0x416   :  { %7768 = vmatpush1.bf16.msra.mxu1 %v9977_v51  ;;  %8027 = vmatprep.subr.bf16.mxu0 %v9732_v10  ;;  %v1121_v51 = vld [vmem:[#allocation10 + $0x19d0] sm:$0xff] }
 0x417   :  { %7769 = vmatprep.subr.bf16.mxu1 %v9986_v11  ;;  %v1125_v10 = vld [vmem:[#allocation10 + $0x19f0] sm:$0xff] }
 0x418   :  { %v10025_v27 = vcombine.low %v1121_v51, %v1125_v10 }
 0x419   :  { %8028 = vmatpush1.bf16.msra.mxu0 %v9731_v3  ;;  %v10017_v3 = vcombine.low %v1113_v62, %v1117_v1 }
 0x41a   :  { %7770 = vmatpush1.bf16.msra.mxu1 %v9985_v46  ;;  %8029 = vmatprep.subr.bf16.mxu0 %v9740_v32  ;;  %v9772_v46 = vcombine.high %v866_v18, %v870_v55  ;;  %v10026_v32 = vcombine.high %v1121_v51, %v1125_v10  ;;  %v906_v51 = vld [vmem:[#allocation10 + $0x1318] sm:$0xff] }
 0x41b   :  { %7771 = vmatprep.subr.bf16.mxu1 %v9994_v44  ;;  %v874_v44 = vld [vmem:[#allocation10 + $0x1218] sm:$0xff] }
 0x41c   :  { %v910_v10 = vld [vmem:[#allocation10 + $0x1338] sm:$0xff] }
 0x41d   :  { %8030 = vmatpush1.bf16.msra.mxu0 %v9739_v26 }
 0x41e   :  { %7772 = vmatpush1.bf16.msra.mxu1 %v9993_v57  ;;  %8031 = vmatprep.subr.bf16.mxu0 %v9748_v30  ;;  %v882_v57 = vld [vmem:[#allocation10 + $0x1258] sm:$0xff] }
 0x41f   :  { %7773 = vmatprep.subr.bf16.mxu1 %v10002_v9  ;;  %v886_v30 = vld [vmem:[#allocation10 + $0x1278] sm:$0xff]  ;;  %v1137_v9 = vld [vmem:[#allocation10 + $0x1a50] sm:$0xff] }
 0x420   :  { %v9788_v34 = vcombine.high %v882_v57, %v886_v30  ;;  %v10042_v45 = vcombine.high %v1137_v9, %v1141_v37  ;;  %v9787_v61 = vcombine.low %v882_v57, %v886_v30  ;;  %v10041_v19 = vcombine.low %v1137_v9, %v1141_v37  ;;  %v922_v57 = vld [vmem:[#allocation10 + $0x1398] sm:$0xff]  ;;  %v1177_v9 = vld [vmem:[#allocation10 + $0x1b90] sm:$0xff] }
 0x421   :  { %8032 = vmatpush1.bf16.msra.mxu0 %v9747_v25  ;;  %v890_v25 = vld [vmem:[#allocation10 + $0x1298] sm:$0xff]  ;;  %v1181_v37 = vld [vmem:[#allocation10 + $0x1bb0] sm:$0xff] }
 0x422   :  { %7774 = vmatpush1.bf16.msra.mxu1 %v10001_v53  ;;  %8033 = vmatprep.subr.bf16.mxu0 %v9756_v58  ;;  %v894_v53 = vld [vmem:[#allocation10 + $0x12b8] sm:$0xff]  ;;  %v1145_v58 = vld [vmem:[#allocation10 + $0x1a90] sm:$0xff] }
 0x423   :  { %v7885_v2 = vpop.f32.mrb[20].mxu0  ;;  %7775 = vmatprep.subr.bf16.mxu1 %v10010_v59  ;;  %v1149_v59 = vld [vmem:[#allocation10 + $0x1ab0] sm:$0xff]  ;;  %v9796_v62 = vcombine.high %v890_v25, %v894_v53  ;;  %v926_v30 = vld [vmem:[#allocation10 + $0x13b8] sm:$0xff] }
 0x424   :  { %v11515_v42 = vadd.f32 %v7885_v2, %v11378_v5  ;;  %v7887_v50 = vpop.f32.mrb[21].mxu0  ;;  %v10050_v1 = vcombine.high %v1145_v58, %v1149_v59  ;;  %v1157_v2 = vld [vmem:[#allocation10 + $0x1af0] sm:$0xff]  ;;  %v10049_v18 = vcombine.low %v1145_v58, %v1149_v59 }
 0x425   :  { %v11518_v11 = vadd.f32 %v7887_v50, %v11380_v8  ;;  %v7889_v33 = vpop.f32.mrb[22].mxu0  ;;  %8034 = vmatpush1.bf16.msra.mxu0 %v9755_v35  ;;  %v1129_v8 = vld [vmem:[#allocation10 + $0x1a10] sm:$0xff]  ;;  %v898_v35 = vld [vmem:[#allocation10 + $0x12d8] sm:$0xff] }
 0x426   :  { %7776 = vmatpush1.bf16.msra.mxu1 %v10009_v22  ;;  %v11521_v60 = vadd.f32 %v7889_v33, %v11384_v28  ;;  %v7891_v16 = vpop.f32.mrb[23].mxu0  ;;  %8035 = vmatprep.subr.bf16.mxu0 %v9764_v48  ;;  %v9780_v28 = vcombine.high %v874_v44, %v878_v54  ;;  %v10034_v26 = vcombine.high %v1129_v8, %v1133_v23  ;;  %v902_v22 = vld [vmem:[#allocation10 + $0x12f8] sm:$0xff]  ;;  %v1153_v48 = vld [vmem:[#allocation10 + $0x1ad0] sm:$0xff] }
 0x427   :  { %v11524_v5 = vadd.f32 %v7891_v16, %v11388_v36  ;;  %7777 = vmatprep.subr.bf16.mxu1 %v10018_v4  ;;  %v9779_v36 = vcombine.low %v874_v44, %v878_v54  ;;  %v10033_v40 = vcombine.low %v1129_v8, %v1133_v23  ;;  %v9795_v4 = vcombine.low %v890_v25, %v894_v53  ;;  %v1161_v33 = vld [vmem:[#allocation10 + $0x1b10] sm:$0xff]  ;;  %v914_v44 = vld [vmem:[#allocation10 + $0x1358] sm:$0xff] }
 0x428   :  { %v9804_v55 = vcombine.high %v898_v35, %v902_v22  ;;  %v10058_v50 = vcombine.high %v1153_v48, %v1157_v2  ;;  %v9803_v16 = vcombine.low %v898_v35, %v902_v22  ;;  %v918_v54 = vld [vmem:[#allocation10 + $0x1378] sm:$0xff]  ;;  %v1169_v8 = vld [vmem:[#allocation10 + $0x1b50] sm:$0xff] }
 0x429   :  { %8036 = vmatpush1.bf16.msra.mxu0 %v9763_v14  ;;  %v1165_v14 = vld [vmem:[#allocation10 + $0x1b30] sm:$0xff]  ;;  %v930_v25 = vld [vmem:[#allocation10 + $0x13d8] sm:$0xff] }
 0x42a   :  { %7778 = vmatpush1.bf16.msra.mxu1 %v10017_v3  ;;  %8037 = vmatprep.subr.bf16.mxu0 %v9772_v46  ;;  %v10057_v3 = vcombine.low %v1153_v48, %v1157_v2  ;;  %v9812_v46 = vcombine.high %v906_v51, %v910_v10  ;;  %v1173_v23 = vld [vmem:[#allocation10 + $0x1b70] sm:$0xff]  ;;  %v934_v53 = vld [vmem:[#allocation10 + $0x13f8] sm:$0xff] }
 0x42b   :  { %7779 = vmatprep.subr.bf16.mxu1 %v10026_v32  ;;  %v10066_v32 = vcombine.high %v1161_v33, %v1165_v14  ;;  %v1185_v58 = vld [vmem:[#allocation10 + $0x1bd0] sm:$0xff]  ;;  %v938_v35 = vld [vmem:[#allocation10 + $0x1418] sm:$0xff] }
 0x42c   :  { %v1189_v59 = vld [vmem:[#allocation10 + $0x1bf0] sm:$0xff]  ;;  %v942_v22 = vld [vmem:[#allocation10 + $0x1438] sm:$0xff] }
 0x42d   :  { %8038 = vmatpush1.bf16.msra.mxu0 %v9771_v24  ;;  %v9811_v24 = vcombine.low %v906_v51, %v910_v10  ;;  %v1193_v48 = vld [vmem:[#allocation10 + $0x1c10] sm:$0xff]  ;;  %v946_v51 = vld [vmem:[#allocation10 + $0x1458] sm:$0xff] }
 0x42e   :  { %7780 = vmatpush1.bf16.msra.mxu1 %v10025_v27  ;;  %8039 = vmatprep.subr.bf16.mxu0 %v9780_v28  ;;  %v10065_v27 = vcombine.low %v1161_v33, %v1165_v14  ;;  %v9820_v28 = vcombine.high %v914_v44, %v918_v54  ;;  %v1197_v2 = vld [vmem:[#allocation10 + $0x1c30] sm:$0xff]  ;;  %v950_v10 = vld [vmem:[#allocation10 + $0x1478] sm:$0xff] }
 0x42f   :  { %7781 = vmatprep.subr.bf16.mxu1 %v10034_v26  ;;  %v10074_v26 = vcombine.high %v1169_v8, %v1173_v23  ;;  %v1201_v33 = vld [vmem:[#allocation10 + $0x1c50] sm:$0xff] }
 0x430   :  { %v1205_v14 = vld [vmem:[#allocation10 + $0x1c70] sm:$0xff] }
 0x431   :  { %8040 = vmatpush1.bf16.msra.mxu0 %v9779_v36  ;;  %v9819_v36 = vcombine.low %v914_v44, %v918_v54  ;;  %v954_v44 = vld [vmem:[#allocation10 + $0x1498] sm:$0xff] }
 0x432   :  { %7782 = vmatpush1.bf16.msra.mxu1 %v10033_v40  ;;  %8041 = vmatprep.subr.bf16.mxu0 %v9788_v34  ;;  %v10073_v40 = vcombine.low %v1169_v8, %v1173_v23  ;;  %v9828_v34 = vcombine.high %v922_v57, %v926_v30  ;;  %v958_v54 = vld [vmem:[#allocation10 + $0x14b8] sm:$0xff]  ;;  %v1209_v8 = vld [vmem:[#allocation10 + $0x1c90] sm:$0xff] }
 0x433   :  { %7783 = vmatprep.subr.bf16.mxu1 %v10042_v45  ;;  %v10082_v45 = vcombine.high %v1177_v9, %v1181_v37  ;;  %v1213_v23 = vld [vmem:[#allocation10 + $0x1cb0] sm:$0xff] }
 0x435   :  { %8042 = vmatpush1.bf16.msra.mxu0 %v9787_v61  ;;  %v9827_v61 = vcombine.low %v922_v57, %v926_v30  ;;  %v962_v57 = vld [vmem:[#allocation10 + $0x14d8] sm:$0xff] }
 0x436   :  { %7784 = vmatpush1.bf16.msra.mxu1 %v10041_v19  ;;  %8043 = vmatprep.subr.bf16.mxu0 %v9796_v62  ;;  %v10081_v19 = vcombine.low %v1177_v9, %v1181_v37  ;;  %v9836_v62 = vcombine.high %v930_v25, %v934_v53  ;;  %v966_v30 = vld [vmem:[#allocation10 + $0x14f8] sm:$0xff]  ;;  %v1217_v9 = vld [vmem:[#allocation10 + $0x1cd0] sm:$0xff] }
 0x437   :  { %7785 = vmatprep.subr.bf16.mxu1 %v10050_v1  ;;  %v10090_v1 = vcombine.high %v1185_v58, %v1189_v59  ;;  %v1221_v37 = vld [vmem:[#allocation10 + $0x1cf0] sm:$0xff] }
 0x439   :  { %8044 = vmatpush1.bf16.msra.mxu0 %v9795_v4  ;;  %v9835_v4 = vcombine.low %v930_v25, %v934_v53  ;;  %v974_v25 = vld [vmem:[#allocation10 + $0x1538] sm:$0xff]  ;;  %v1225_v53 = vld [vmem:[#allocation10 + $0x1d10] sm:$0xff] }
 0x43a   :  { %7786 = vmatpush1.bf16.msra.mxu1 %v10049_v18  ;;  %8045 = vmatprep.subr.bf16.mxu0 %v9804_v55  ;;  %v10089_v18 = vcombine.low %v1185_v58, %v1189_v59  ;;  %v9844_v55 = vcombine.high %v938_v35, %v942_v22  ;;  %v1229_v58 = vld [vmem:[#allocation10 + $0x1d30] sm:$0xff]  ;;  %v9867_v59 = vcombine.low %v962_v57, %v966_v30 }
 0x43b   :  { %7787 = vmatprep.subr.bf16.mxu1 %v10058_v50  ;;  %v10098_v50 = vcombine.high %v1193_v48, %v1197_v2 }
 0x43d   :  { %8046 = vmatpush1.bf16.msra.mxu0 %v9803_v16  ;;  %v9843_v16 = vcombine.low %v938_v35, %v942_v22  ;;  %v1233_v35 = vld [vmem:[#allocation10 + $0x1d50] sm:$0xff] }
 0x43e   :  { %7788 = vmatpush1.bf16.msra.mxu1 %v10057_v3  ;;  %8047 = vmatprep.subr.bf16.mxu0 %v9812_v46  ;;  %v10097_v3 = vcombine.low %v1193_v48, %v1197_v2  ;;  %v9852_v46 = vcombine.high %v946_v51, %v950_v10  ;;  %v1237_v22 = vld [vmem:[#allocation10 + $0x1d70] sm:$0xff]  ;;  %v10129_v2 = vcombine.low %v1225_v53, %v1229_v58 }
 0x43f   :  { %7789 = vmatprep.subr.bf16.mxu1 %v10066_v32  ;;  %v10106_v32 = vcombine.high %v1201_v33, %v1205_v14 }
 0x441   :  { %8048 = vmatpush1.bf16.msra.mxu0 %v9811_v24  ;;  %v9851_v24 = vcombine.low %v946_v51, %v950_v10  ;;  %v1241_v51 = vld [vmem:[#allocation10 + $0x1d90] sm:$0xff] }
 0x442   :  { %7790 = vmatpush1.bf16.msra.mxu1 %v10065_v27  ;;  %8049 = vmatprep.subr.bf16.mxu0 %v9820_v28  ;;  %v10105_v27 = vcombine.low %v1201_v33, %v1205_v14  ;;  %v9860_v28 = vcombine.high %v954_v44, %v958_v54  ;;  %v1245_v10 = vld [vmem:[#allocation10 + $0x1db0] sm:$0xff]  ;;  %v10137_v14 = vcombine.low %v1233_v35, %v1237_v22 }
 0x443   :  { %7791 = vmatprep.subr.bf16.mxu1 %v10074_v26  ;;  %v10114_v26 = vcombine.high %v1209_v8, %v1213_v23 }
 0x445   :  { %8050 = vmatpush1.bf16.msra.mxu0 %v9819_v36  ;;  %v10113_v36 = vcombine.low %v1209_v8, %v1213_v23  ;;  %v10145_v23 = vcombine.low %v1241_v51, %v1245_v10 }
 0x446   :  { %7792 = vmatpush1.bf16.msra.mxu1 %v10073_v40  ;;  %8051 = vmatprep.subr.bf16.mxu0 %v9828_v34  ;;  %v9868_v40 = vcombine.high %v962_v57, %v966_v30  ;;  %v10122_v34 = vcombine.high %v1217_v9, %v1221_v37  ;;  %v1257_v57 = vld [vmem:[#allocation10 + $0x1e10] sm:$0xff] }
 0x447   :  { %7793 = vmatprep.subr.bf16.mxu1 %v10082_v45  ;;  %v970_v45 = vld [vmem:[#allocation10 + $0x1518] sm:$0xff]  ;;  %v1261_v30 = vld [vmem:[#allocation10 + $0x1e30] sm:$0xff] }
 0x448   :  { %v9875_v48 = vcombine.low %v970_v45, %v974_v25 }
 0x449   :  { %8052 = vmatpush1.bf16.msra.mxu0 %v9827_v61  ;;  %v10121_v61 = vcombine.low %v1217_v9, %v1221_v37 }
 0x44a   :  { %7794 = vmatpush1.bf16.msra.mxu1 %v10081_v19  ;;  %8053 = vmatprep.subr.bf16.mxu0 %v9836_v62  ;;  %v9876_v19 = vcombine.high %v970_v45, %v974_v25  ;;  %v978_v62 = vld [vmem:[#allocation10 + $0x1558] sm:$0xff]  ;;  %v1265_v45 = vld [vmem:[#allocation10 + $0x1e50] sm:$0xff] }
 0x44b   :  { %7795 = vmatprep.subr.bf16.mxu1 %v10090_v1  ;;  %v982_v1 = vld [vmem:[#allocation10 + $0x1578] sm:$0xff]  ;;  %v1269_v25 = vld [vmem:[#allocation10 + $0x1e70] sm:$0xff] }
 0x44c   :  { %v9883_v33 = vcombine.low %v978_v62, %v982_v1 }
 0x44d   :  { %8054 = vmatpush1.bf16.msra.mxu0 %v9835_v4  ;;  %v9884_v4 = vcombine.high %v978_v62, %v982_v1  ;;  %v1273_v62 = vld [vmem:[#allocation10 + $0x1e90] sm:$0xff] }
 0x44e   :  { %7796 = vmatpush1.bf16.msra.mxu1 %v10089_v18  ;;  %8066 = vmatprep.subr.bf16.mxu0 %v9844_v55  ;;  %v10138_v18 = vcombine.high %v1233_v35, %v1237_v22  ;;  %v986_v55 = vld [vmem:[#allocation10 + $0x1598] sm:$0xff]  ;;  %v1277_v1 = vld [vmem:[#allocation10 + $0x1eb0] sm:$0xff]  ;;  %v10169_v22 = vcombine.low %v1265_v45, %v1269_v25 }
 0x44f   :  { %7808 = vmatprep.subr.bf16.mxu1 %v10098_v50  ;;  %v990_v50 = vld [vmem:[#allocation10 + $0x15b8] sm:$0xff] }
 0x450   :  { %8056 = vmatmul.mubr.bf16.vlgmr.msra.gmra.mrb[24].mxu0 %v11390_v20  ;;  %v9859_v20 = vcombine.low %v954_v44, %v958_v54  ;;  %v1249_v44 = vld [vmem:[#allocation10 + $0x1dd0] sm:$0xff]  ;;  %v9891_v8 = vcombine.low %v986_v55, %v990_v50 }
 0x451   :  { %7798 = vmatmul.mubr.bf16.vlgmr.msra.gmra.mrb[16].mxu1 %v11430_v13  ;;  %8067 = vmatpush1.bf16.msra.mxu0 %v9843_v16  ;;  %v9892_v16 = vcombine.high %v986_v55, %v990_v50  ;;  %v1253_v54 = vld [vmem:[#allocation10 + $0x1df0] sm:$0xff] }
 0x452   :  { %7809 = vmatpush1.bf16.msra.mxu1 %v10097_v3  ;;  %8068 = vmatprep.subr.bf16.mxu0 %v9852_v46  ;;  %v10146_v3 = vcombine.high %v1241_v51, %v1245_v10  ;;  %v994_v46 = vld [vmem:[#allocation10 + $0x15d8] sm:$0xff]  ;;  %v10153_v37 = vcombine.low %v1249_v44, %v1253_v54  ;;  %v1281_v55 = vld [vmem:[#allocation10 + $0x1ed0] sm:$0xff]  ;;  %v10177_v10 = vcombine.low %v1273_v62, %v1277_v1 }
 0x453   :  { %7810 = vmatprep.subr.bf16.mxu1 %v10106_v32  ;;  %7840 = vmatprep.mubr.bf16.mxu1 %v11432_v21  ;;  %v998_v32 = vld [vmem:[#allocation10 + $0x15f8] sm:$0xff]  ;;  %v1285_v50 = vld [vmem:[#allocation10 + $0x1ef0] sm:$0xff] }
 0x454   :  { %8098 = vmatprep.mubr.bf16.mxu0 %v11392_v31  ;;  %v10130_v31 = vcombine.high %v1225_v53, %v1229_v58  ;;  %v9899_v9 = vcombine.low %v994_v46, %v998_v32  ;;  %v10161_v58 = vcombine.low %v1257_v57, %v1261_v30 }
 0x455   :  { %8069 = vmatpush1.bf16.msra.mxu0 %v9851_v24  ;;  %v9900_v24 = vcombine.high %v994_v46, %v998_v32  ;;  %v1289_v46 = vld [vmem:[#allocation10 + $0x1f10] sm:$0xff] }
 0x456   :  { %7811 = vmatpush1.bf16.msra.mxu1 %v10105_v27  ;;  %8070 = vmatprep.subr.bf16.mxu0 %v9860_v28  ;;  %v10154_v27 = vcombine.high %v1249_v44, %v1253_v54  ;;  %v1002_v28 = vld [vmem:[#allocation10 + $0x1618] sm:$0xff]  ;;  %v1293_v32 = vld [vmem:[#allocation10 + $0x1f30] sm:$0xff]  ;;  %v10185_v54 = vcombine.low %v1281_v55, %v1285_v50 }
 0x457   :  { %7812 = vmatprep.subr.bf16.mxu1 %v10114_v26  ;;  %v1006_v26 = vld [vmem:[#allocation10 + $0x1638] sm:$0xff] }
 0x458   :  { %v9907_v53 = vcombine.low %v1002_v28, %v1006_v26 }
 0x459   :  { %8071 = vmatpush1.bf16.msra.mxu0 %v9859_v20  ;;  %v9908_v20 = vcombine.high %v1002_v28, %v1006_v26  ;;  %v1297_v28 = vld [vmem:[#allocation10 + $0x1f50] sm:$0xff] }
 0x45a   :  { %7813 = vmatpush1.bf16.msra.mxu1 %v10113_v36  ;;  %8072 = vmatprep.subr.bf16.mxu0 %v9868_v40  ;;  %v10162_v36 = vcombine.high %v1257_v57, %v1261_v30  ;;  %v1010_v40 = vld [vmem:[#allocation10 + $0x1658] sm:$0xff]  ;;  %v1301_v26 = vld [vmem:[#allocation10 + $0x1f70] sm:$0xff]  ;;  %v10193_v30 = vcombine.low %v1289_v46, %v1293_v32 }
 0x45b   :  { %7814 = vmatprep.subr.bf16.mxu1 %v10122_v34  ;;  %v1014_v34 = vld [vmem:[#allocation10 + $0x1678] sm:$0xff] }
 0x45c   :  { %v9915_v35 = vcombine.low %v1010_v40, %v1014_v34 }
 0x45d   :  { %8073 = vmatpush1.bf16.msra.mxu0 %v9867_v59  ;;  %v9916_v59 = vcombine.high %v1010_v40, %v1014_v34  ;;  %v1305_v40 = vld [vmem:[#allocation10 + $0x1f90] sm:$0xff] }
 0x45e   :  { %7815 = vmatpush1.bf16.msra.mxu1 %v10121_v61  ;;  %8074 = vmatprep.subr.bf16.mxu0 %v9876_v19  ;;  %v10170_v61 = vcombine.high %v1265_v45, %v1269_v25  ;;  %v1018_v19 = vld [vmem:[#allocation10 + $0x1698] sm:$0xff]  ;;  %v1309_v34 = vld [vmem:[#allocation10 + $0x1fb0] sm:$0xff]  ;;  %v10201_v25 = vcombine.low %v1297_v28, %v1301_v26 }
 0x45f   :  { %7816 = vmatprep.subr.bf16.mxu1 %v10130_v31  ;;  %v1022_v31 = vld [vmem:[#allocation10 + $0x16b8] sm:$0xff] }
 0x460   :  { %v9923_v51 = vcombine.low %v1018_v19, %v1022_v31 }
 0x461   :  { %8075 = vmatpush1.bf16.msra.mxu0 %v9875_v48  ;;  %v9924_v48 = vcombine.high %v1018_v19, %v1022_v31  ;;  %v1313_v19 = vld [vmem:[#allocation10 + $0x1fd0] sm:$0xff] }
 0x462   :  { %7817 = vmatpush1.bf16.msra.mxu1 %v10129_v2  ;;  %8076 = vmatprep.subr.bf16.mxu0 %v9884_v4  ;;  %v10178_v2 = vcombine.high %v1273_v62, %v1277_v1  ;;  %v1026_v4 = vld [vmem:[#allocation10 + $0x16d8] sm:$0xff]  ;;  %v1317_v31 = vld [vmem:[#allocation10 + $0x1ff0] sm:$0xff]  ;;  %v10209_v1 = vcombine.low %v1305_v40, %v1309_v34 }
 0x463   :  { %7818 = vmatprep.subr.bf16.mxu1 %v10138_v18  ;;  %v1030_v18 = vld [vmem:[#allocation10 + $0x16f8] sm:$0xff] }
 0x464   :  { %v9931_v44 = vcombine.low %v1026_v4, %v1030_v18 }
 0x465   :  { %8077 = vmatpush1.bf16.msra.mxu0 %v9883_v33  ;;  %v9932_v33 = vcombine.high %v1026_v4, %v1030_v18  ;;  %v8196_v4 = vld [vmem:[#allocation13 + $0x8] sm:$0xff] }
 0x466   :  { %7819 = vmatpush1.bf16.msra.mxu1 %v10137_v14  ;;  %8078 = vmatprep.subr.bf16.mxu0 %v9892_v16  ;;  %v10186_v14 = vcombine.high %v1281_v55, %v1285_v50  ;;  %v1034_v16 = vld [vmem:[#allocation10 + $0x1718] sm:$0xff]  ;;  %v8204_v18 = vld [vmem:[#allocation13 + $0x48] sm:$0xff]  ;;  %v237_v50 = vlaneseq }
 0x467   :  { %7820 = vmatprep.subr.bf16.mxu1 %v10146_v3  ;;  %v1038_v3 = vld [vmem:[#allocation10 + $0x1738] sm:$0xff] }
 0x468   :  { %v9939_v57 = vcombine.low %v1034_v16, %v1038_v3 }
 0x469   :  { %8079 = vmatpush1.bf16.msra.mxu0 %v9891_v8  ;;  %v9940_v8 = vcombine.high %v1034_v16, %v1038_v3  ;;  %v8203_v16 = vld [vmem:[#allocation13 + $0x40] sm:$0xff]  ;;  %v1074_v3 = vld [vmem:[#allocation10 + $0x1858] sm:$0xff] }
 0x46a   :  { %7821 = vmatpush1.bf16.msra.mxu1 %v10145_v23  ;;  %8080 = vmatprep.subr.bf16.mxu0 %v9900_v24  ;;  %v10194_v23 = vcombine.high %v1289_v46, %v1293_v32  ;;  %v1042_v24 = vld [vmem:[#allocation10 + $0x1758] sm:$0xff]  ;;  %v8212_v32 = vld [vmem:[#allocation13 + $0x88] sm:$0xff] }
 0x46b   :  { %7822 = vmatprep.subr.bf16.mxu1 %v10154_v27  ;;  %v1046_v27 = vld [vmem:[#allocation10 + $0x1778] sm:$0xff] }
 0x46c   :  { %v9947_v45 = vcombine.low %v1042_v24, %v1046_v27  ;;  %v1078_v46 = vld [vmem:[#allocation10 + $0x1878] sm:$0xff] }
 0x46d   :  { %8081 = vmatpush1.bf16.msra.mxu0 %v9899_v9  ;;  %v9948_v9 = vcombine.high %v1042_v24, %v1046_v27  ;;  %v9980_v24 = vcombine.high %v1074_v3, %v1078_v46  ;;  %v8211_v27 = vld [vmem:[#allocation13 + $0x80] sm:$0xff] }
 0x46e   :  { %7823 = vmatpush1.bf16.msra.mxu1 %v10153_v37  ;;  %8082 = vmatprep.subr.bf16.mxu0 %v9908_v20  ;;  %v10202_v37 = vcombine.high %v1297_v28, %v1301_v26  ;;  %v1050_v20 = vld [vmem:[#allocation10 + $0x1798] sm:$0xff]  ;;  %v11532_v28 = vpop.permute.xlu1 %262 }
 0x46f   :  { %7824 = vmatprep.subr.bf16.mxu1 %v10162_v36  ;;  %v1054_v36 = vld [vmem:[#allocation10 + $0x17b8] sm:$0xff] }
 0x470   :  { %v9955_v62 = vcombine.low %v1050_v20, %v1054_v36 }
 0x471   :  { %8083 = vmatpush1.bf16.msra.mxu0 %v9907_v53  ;;  %v9956_v53 = vcombine.high %v1050_v20, %v1054_v36  ;;  %v8236_v20 = vld [vmem:[#allocation13 + $0x148] sm:$0xff]  ;;  %v9979_v36 = vcombine.low %v1074_v3, %v1078_v46 }
 0x472   :  { %7825 = vmatpush1.bf16.msra.mxu1 %v10161_v58  ;;  %8084 = vmatprep.subr.bf16.mxu0 %v9916_v59  ;;  %v10210_v58 = vcombine.high %v1305_v40, %v1309_v34  ;;  %v1058_v59 = vld [vmem:[#allocation10 + $0x17d8] sm:$0xff] }
 0x473   :  { %7826 = vmatprep.subr.bf16.mxu1 %v10170_v61  ;;  %v1062_v61 = vld [vmem:[#allocation10 + $0x17f8] sm:$0xff] }
 0x474   :  { %v9963_v55 = vcombine.low %v1058_v59, %v1062_v61 }
 0x475   :  { %8085 = vmatpush1.bf16.msra.mxu0 %v9915_v35  ;;  %v9964_v35 = vcombine.high %v1058_v59, %v1062_v61  ;;  %v8235_v61 = vld [vmem:[#allocation13 + $0x140] sm:$0xff] }
 0x476   :  { %7827 = vmatpush1.bf16.msra.mxu1 %v10169_v22  ;;  %8086 = vmatprep.subr.bf16.mxu0 %v9924_v48  ;;  %v10218_v22 = vcombine.high %v1313_v19, %v1317_v31  ;;  %v1066_v48 = vld [vmem:[#allocation10 + $0x1818] sm:$0xff] }
 0x477   :  { %7828 = vmatprep.subr.bf16.mxu1 %v10178_v2  ;;  %v1070_v2 = vld [vmem:[#allocation10 + $0x1838] sm:$0xff] }
 0x479   :  { %8087 = vmatpush1.bf16.msra.mxu0 %v9923_v51  ;;  %v10217_v51 = vcombine.low %v1313_v19, %v1317_v31  ;;  %v1094_v19 = vld [vmem:[#allocation10 + $0x18f8] sm:$0xff]  ;;  %v8244_v31 = vld [vmem:[#allocation13 + $0x188] sm:$0xff] }
 0x47a   :  { %7829 = vmatpush1.bf16.msra.mxu1 %v10177_v10  ;;  %8088 = vmatprep.subr.bf16.mxu0 %v9932_v33  ;;  %v9972_v10 = vcombine.high %v1066_v48, %v1070_v2  ;;  %v8195_v33 = vld [vmem:[#allocation13] sm:$0xff] }
 0x47b   :  { %7830 = vmatprep.subr.bf16.mxu1 %v10186_v14  ;;  %v10406_v14 = vpack.c.bf16 %v8204_v18, %v8196_v4  ;;  %v8243_v18 = vld [vmem:[#allocation13 + $0x180] sm:$0xff] }
 0x47d   :  { %8089 = vmatpush1.bf16.msra.mxu0 %v9931_v44  ;;  %v8220_v44 = vld [vmem:[#allocation13 + $0xc8] sm:$0xff] }
 0x47e   :  { %7831 = vmatpush1.bf16.msra.mxu1 %v10185_v54  ;;  %8090 = vmatprep.subr.bf16.mxu0 %v9940_v8  ;;  %v9971_v54 = vcombine.low %v1066_v48, %v1070_v2  ;;  %v11530_v8 = vshrl.u32 %v237_v50, 7  ;;  %v10410_v26 = vpack.c.bf16 %v8220_v44, %v8212_v32  ;;  %v8251_v50 = vld [vmem:[#allocation13 + $0x1c0] sm:$0xff] }
 0x47f   :  { %7832 = vmatprep.subr.bf16.mxu1 %v10194_v23  ;;  %v10408_v23 = vpack.c.bf16 %v8203_v16, %v8195_v33  ;;  %v8260_v33 = vld [vmem:[#allocation13 + $0x208] sm:$0xff]  ;;  %v10420_v44 = vpack.c.bf16 %v8251_v50, %v8243_v18 }
 0x480   :  { %v239_v40 = vsub.s32 0, %v11530_v8  ;;  %v255_v48 = vsub.s32 1, %v11530_v8  ;;  %v271_v3 = vsub.s32 2, %v11530_v8  ;;  %v8292_v50 = vld [vmem:[#allocation13 + $0x308] sm:$0xff] }
 0x481   :  { %8091 = vmatpush1.bf16.msra.mxu0 %v9939_v57  ;;  %v8219_v57 = vld [vmem:[#allocation13 + $0xc0] sm:$0xff] }
 0x482   :  { %7833 = vmatpush1.bf16.msra.mxu1 %v10193_v30  ;;  %8092 = vmatprep.subr.bf16.mxu0 %v9948_v9  ;;  %v1082_v30 = vld [vmem:[#allocation10 + $0x1898] sm:$0xff]  ;;  %v10412_v34 = vpack.c.bf16 %v8219_v57, %v8211_v27  ;;  %v8267_v57 = vld [vmem:[#allocation13 + $0x240] sm:$0xff] }
 0x483   :  { %7834 = vmatprep.subr.bf16.mxu1 %v10202_v37  ;;  %v1086_v9 = vld [vmem:[#allocation10 + $0x18b8] sm:$0xff]  ;;  %v8228_v37 = vld [vmem:[#allocation13 + $0x108] sm:$0xff] }
 0x484   :  { %v10414_v59 = vpack.c.bf16 %v8236_v20, %v8228_v37  ;;  %v287_v20 = vsub.s32 3, %v11530_v8 }
 0x485   :  { %8093 = vmatpush1.bf16.msra.mxu0 %v9947_v45  ;;  %v9988_v45 = vcombine.high %v1082_v30, %v1086_v9 }
 0x486   :  { %7835 = vmatpush1.bf16.msra.mxu1 %v10201_v25  ;;  %8094 = vmatprep.subr.bf16.mxu0 %v9956_v53  ;;  %v8227_v25 = vld [vmem:[#allocation13 + $0x100] sm:$0xff]  ;;  %v11537_v53 = vld [vmem:[#allocation7] sm:$0xf] }
 0x487   :  { %7836 = vmatprep.subr.bf16.mxu1 %v10210_v58  ;;  %v230_v58 = vpop.permute.xlu0 %229  ;;  %v10416_v2 = vpack.c.bf16 %v8235_v61, %v8227_v25  ;;  %v256_v32 = vrot.slane %v11537_v53, %v255_v48  ;;  %v288_v18 = vrot.slane %v11537_v53, %v287_v20 }
 0x489   :  { %8095 = vmatpush1.bf16.msra.mxu0 %v9955_v62  ;;  %v8252_v62 = vld [vmem:[#allocation13 + $0x1c8] sm:$0xff] }
 0x48a   :  { %7837 = vmatpush1.bf16.msra.mxu1 %v10209_v1  ;;  %8096 = vmatprep.subr.bf16.mxu0 %v9964_v35  ;;  %v11540_v1 = vpop.permute.xlu1 %278  ;;  %v9987_v35 = vcombine.low %v1082_v30, %v1086_v9  ;;  %v1106_v30 = vld [vmem:[#allocation10 + $0x1958] sm:$0xff] }
 0x48b   :  { %7838 = vmatprep.subr.bf16.mxu1 %v10218_v22  ;;  %v240_v22 = vrot.slane %v11537_v53, %v239_v40  ;;  %v1110_v9 = vld [vmem:[#allocation10 + $0x1978] sm:$0xff] }
 0x48d   :  { %8097 = vmatpush1.bf16.msra.mxu0 %v9963_v55  ;;  %v10418_v55 = vpack.c.bf16 %v8252_v62, %v8244_v31  ;;  %v241_v46 = vmul.f32 %v240_v22, %v230_v58 }
 0x48e   :  { %7839 = vmatpush1.bf16.msra.mxu1 %v10217_v51  ;;  %8109 = vmatprep.subr.bf16.mxu0 %v9972_v10  ;;  %v1098_v51 = vld [vmem:[#allocation10 + $0x1918] sm:$0xff]  ;;  %v235_v27 = vpop.permute.xlu1 %234 }
 0x48f   :  { %10407 = vmatprep.subr.bf16.mxu1 %v10406_v14  ;;  %v1102_v10 = vld [vmem:[#allocation10 + $0x1938] sm:$0xff]  ;;  %v247_v14 = vpop.permute.xlu0 %246 }
 0x490   :  { %8099 = vmatmul.mubr.bf16.vlgmr.msra.gmra.mrb[24].mxu0 %v11410_v12  ;;  %v1090_v12 = vld [vmem:[#allocation10 + $0x18d8] sm:$0xff]  ;;  %v10003_v37 = vcombine.low %v1098_v51, %v1102_v10  ;;  %v257_v58 = vmul.f32 %v256_v32, %v247_v14 }
 0x491   :  { %7841 = vmatmul.mubr.bf16.vlgmr.msra.gmra.mrb[16].mxu1 %v11438_v47  ;;  %8110 = vmatpush1.bf16.msra.mxu0 %v9971_v54  ;;  %v9996_v4 = vcombine.high %v1090_v12, %v1094_v19  ;;  %v9995_v16 = vcombine.low %v1090_v12, %v1094_v19  ;;  %v9180_v54 = vld [vmem:[#allocation8] ss:$0 sm:$0xff]  ;;  %v10012_v12 = vcombine.high %v1106_v30, %v1110_v9  ;;  %v8275_v19 = vld [vmem:[#allocation13 + $0x280] sm:$0xff] }
 0x492   :  { %10409 = vmatpush1.bf16.msra.mxu1 %v10408_v23  ;;  %8111 = vmatprep.subr.bf16.mxu0 %v9980_v24  ;;  %v10004_v23 = vcombine.high %v1098_v51, %v1102_v10  ;;  %v8259_v24 = vld [vmem:[#allocation13 + $0x200] sm:$0xff]  ;;  %v243_v25 = vadd.f32 %v9180_v54, %v241_v46  ;;  %v8300_v51 = vld [vmem:[#allocation13 + $0x348] sm:$0xff] }
 0x493   :  { %10411 = vmatprep.subr.bf16.mxu1 %v10410_v26  ;;  %8387 = vmatprep.mubr.f32.mxu1 %v11077_v0  ;;  %v10424_v61 = vpack.c.bf16 %v8267_v57, %v8259_v24  ;;  %v251_v31 = vpop.permute.xlu0 %250  ;;  %v8291_v46 = vld [vmem:[#allocation13 + $0x300] sm:$0xff]  ;;  %v8308_v57 = vld [vmem:[#allocation13 + $0x388] sm:$0xff] }
 0x494   :  { %8141 = vmatprep.mubr.bf16.mxu0 %v11412_v17  ;;  %v8268_v17 = vld [vmem:[#allocation13 + $0x248] sm:$0xff]  ;;  %v259_v10 = vadd.f32 %v257_v58, %v243_v25  ;;  %v8299_v24 = vld [vmem:[#allocation13 + $0x340] sm:$0xff] }
 0x495   :  { %8112 = vmatpush1.bf16.msra.mxu0 %v9979_v36  ;;  %v10422_v26 = vpack.c.bf16 %v8268_v17, %v8260_v33  ;;  %v8276_v36 = vld [vmem:[#allocation13 + $0x288] sm:$0xff]  ;;  %v258_v17 = vmul.f32 %v256_v32, %v251_v31  ;;  %v8307_v25 = vld [vmem:[#allocation13 + $0x380] sm:$0xff] }
 0x496   :  { %10413 = vmatpush1.bf16.msra.mxu1 %v10412_v34  ;;  %8113 = vmatprep.subr.bf16.mxu0 %v9988_v45  ;;  %v8284_v34 = vld [vmem:[#allocation13 + $0x2c8] sm:$0xff]  ;;  %v272_v45 = vrot.slane %v11537_v53, %v271_v3  ;;  %v1126_v53 = vld [vmem:[#allocation10 + $0x19f8] sm:$0xff] }
 0x497   :  { %10415 = vmatprep.subr.bf16.mxu1 %v10414_v59  ;;  %v242_v59 = vmul.f32 %v240_v22, %v235_v27  ;;  %v10426_v62 = vpack.c.bf16 %v8284_v34, %v8276_v36  ;;  %v1122_v27 = vld [vmem:[#allocation10 + $0x19d8] sm:$0xff]  ;;  %v283_v36 = vpop.permute.xlu0 %282 }
 0x498   :  { %v273_v22 = vmul.f32 %v272_v45, %v11532_v28  ;;  %v10028_v34 = vcombine.high %v1122_v27, %v1126_v53 }
 0x499   :  { %8114 = vmatpush1.bf16.msra.mxu0 %v9987_v35  ;;  %v8283_v35 = vld [vmem:[#allocation13 + $0x2c0] sm:$0xff]  ;;  %v244_v33 = vadd.f32 %v9180_v54, %v242_v59 }
 0x49a   :  { %10417 = vmatpush1.bf16.msra.mxu1 %v10416_v2  ;;  %8115 = vmatprep.subr.bf16.mxu0 %v9996_v4  ;;  %v1114_v2 = vld [vmem:[#allocation10 + $0x1998] sm:$0xff]  ;;  %v10428_v14 = vpack.c.bf16 %v8283_v35, %v8275_v19  ;;  %v275_v28 = vadd.f32 %v273_v22, %v259_v10  ;;  %v8315_v59 = vld [vmem:[#allocation13 + $0x3c0] sm:$0xff]  ;;  %v290_v35 = vmul.f32 %v288_v18, %v283_v36 }
 0x49b   :  { %10419 = vmatprep.subr.bf16.mxu1 %v10418_v55  ;;  %v1118_v4 = vld [vmem:[#allocation10 + $0x19b8] sm:$0xff]  ;;  %v10011_v55 = vcombine.low %v1106_v30, %v1110_v9  ;;  %v8316_v30 = vld [vmem:[#allocation13 + $0x3c8] sm:$0xff]  ;;  %v260_v9 = vadd.f32 %v258_v17, %v244_v33 }
 0x49c   :  { %v10019_v54 = vcombine.low %v1114_v2, %v1118_v4  ;;  %v10434_v58 = vpack.c.bf16 %v8316_v30, %v8308_v57  ;;  %v8198_v19 = vld [vmem:[#allocation13 + $0x18] sm:$0xff] }
 0x49d   :  { %8116 = vmatpush1.bf16.msra.mxu0 %v9995_v16  ;;  %v10020_v16 = vcombine.high %v1114_v2, %v1118_v4  ;;  %v1138_v22 = vld [vmem:[#allocation10 + $0x1a58] sm:$0xff] }
 0x49e   :  { %10421 = vmatpush1.bf16.msra.mxu1 %v10420_v44  ;;  %8117 = vmatprep.subr.bf16.mxu0 %v10004_v23  ;;  %v267_v44 = vpop.permute.xlu1 %266  ;;  %v10430_v23 = vpack.c.bf16 %v8300_v51, %v8292_v50  ;;  %v8197_v50 = vld [vmem:[#allocation13 + $0x10] sm:$0xff]  ;;  %v1142_v10 = vld [vmem:[#allocation10 + $0x1a78] sm:$0xff] }
 0x49f   :  { %10423 = vmatprep.subr.bf16.mxu1 %v10422_v26  ;;  %v289_v26 = vmul.f32 %v288_v18, %v11540_v1  ;;  %v274_v32 = vmul.f32 %v272_v45, %v267_v44  ;;  %v8206_v1 = vld [vmem:[#allocation13 + $0x58] sm:$0xff]  ;;  %v10436_v45 = vpack.c.bf16 %v8315_v59, %v8307_v25  ;;  %v8205_v51 = vld [vmem:[#allocation13 + $0x50] sm:$0xff] }
 0x4a0   :  { %v10438_v4 = vpack.c.bf16 %v8206_v1, %v8198_v19  ;;  %v8214_v33 = vld [vmem:[#allocation13 + $0x98] sm:$0xff]  ;;  %v10440_v18 = vpack.c.bf16 %v8205_v51, %v8197_v50  ;;  %v8213_v44 = vld [vmem:[#allocation13 + $0x90] sm:$0xff] }
 0x4a1   :  { %8118 = vmatpush1.bf16.msra.mxu0 %v10003_v37  ;;  %v10432_v37 = vpack.c.bf16 %v8299_v24, %v8291_v46  ;;  %v291_v31 = vadd.f32 %v289_v26, %v275_v28  ;;  %v8222_v17 = vld [vmem:[#allocation13 + $0xd8] sm:$0xff] }
 0x4a2   :  { %10425 = vmatpush1.bf16.msra.mxu1 %v10424_v61  ;;  %8119 = vmatprep.subr.bf16.mxu0 %v10012_v12  ;;  %v1130_v61 = vld [vmem:[#allocation10 + $0x1a18] sm:$0xff]  ;;  %v10442_v24 = vpack.c.bf16 %v8222_v17, %v8214_v33  ;;  %v8269_v17 = vld [vmem:[#allocation13 + $0x250] sm:$0xff] }
 0x4a3   :  { %10427 = vmatprep.subr.bf16.mxu1 %v10426_v62  ;;  %v1134_v12 = vld [vmem:[#allocation10 + $0x1a38] sm:$0xff]  ;;  %v276_v62 = vadd.f32 %v274_v32, %v260_v9  ;;  %v10043_v9 = vcombine.low %v1138_v22, %v1142_v10 }
 0x4a4   :  { %v10036_v2 = vcombine.high %v1130_v61, %v1134_v12  ;;  %v10035_v46 = vcombine.low %v1130_v61, %v1134_v12  ;;  %v1150_v26 = vld [vmem:[#allocation10 + $0x1ab8] sm:$0xff] }
 0x4a5   :  { %8120 = vmatpush1.bf16.msra.mxu0 %v10011_v55  ;;  %v10027_v55 = vcombine.low %v1122_v27, %v1126_v53  ;;  %v8221_v27 = vld [vmem:[#allocation13 + $0xd0] sm:$0xff]  ;;  %v1146_v53 = vld [vmem:[#allocation10 + $0x1a98] sm:$0xff] }
 0x4a6   :  { %10429 = vmatpush1.bf16.msra.mxu1 %v10428_v14  ;;  %8121 = vmatprep.subr.bf16.mxu0 %v10020_v16  ;;  %v11560_v14 = vmax.f32 %v291_v31, 0.0  ;;  %v292_v16 = vadd.f32 %v290_v35, %v276_v62  ;;  %v8230_v57 = vld [vmem:[#allocation13 + $0x118] sm:$0xff]  ;;  %v10052_v32 = vcombine.high %v1146_v53, %v1150_v26  ;;  %v10051_v12 = vcombine.low %v1146_v53, %v1150_v26  ;;  %v8245_v31 = vld [vmem:[#allocation13 + $0x190] sm:$0xff] }
 0x4a7   :  { %10431 = vmatprep.subr.bf16.mxu1 %v10430_v23  ;;  %v10044_v23 = vcombine.high %v1138_v22, %v1142_v10  ;;  %v8238_v30 = vld [vmem:[#allocation13 + $0x158] sm:$0xff]  ;;  %v8253_v35 = vld [vmem:[#allocation13 + $0x1d0] sm:$0xff] }
 0x4a8   :  { %v11562_v28 = vmax.f32 %v292_v16, 0.0  ;;  %v10446_v36 = vpack.c.bf16 %v8238_v30, %v8230_v57  ;;  %v1154_v25 = vld [vmem:[#allocation10 + $0x1ad8] sm:$0xff]  ;;  %v10452_v51 = vpack.c.bf16 %v8253_v35, %v8245_v31  ;;  %v8261_v10 = vld [vmem:[#allocation13 + $0x210] sm:$0xff] }
 0x4a9   :  { %8122 = vmatpush1.bf16.msra.mxu0 %v10019_v54  ;;  %v10444_v54 = vpack.c.bf16 %v8221_v27, %v8213_v44  ;;  %v8246_v59 = vld [vmem:[#allocation13 + $0x198] sm:$0xff]  ;;  %v8277_v53 = vld [vmem:[#allocation13 + $0x290] sm:$0xff] }
 0x4aa   :  { %10433 = vmatpush1.bf16.msra.mxu1 %v10432_v37  ;;  %8123 = vmatprep.subr.bf16.mxu0 %v10028_v34  ;;  %v8229_v37 = vld [vmem:[#allocation13 + $0x110] sm:$0xff]  ;;  %v8254_v61 = vld [vmem:[#allocation13 + $0x1d8] sm:$0xff] }
 0x4ab   :  { %10435 = vmatprep.subr.bf16.mxu1 %v10434_v58  ;;  %v8237_v34 = vld [vmem:[#allocation13 + $0x150] sm:$0xff]  ;;  %v1158_v58 = vld [vmem:[#allocation10 + $0x1af8] sm:$0xff]  ;;  %v10450_v62 = vpack.c.bf16 %v8254_v61, %v8246_v59 }
 0x4ac   :  { %v10448_v19 = vpack.c.bf16 %v8237_v34, %v8229_v37  ;;  %v10060_v1 = vcombine.high %v1154_v25, %v1158_v58  ;;  %v10059_v50 = vcombine.low %v1154_v25, %v1158_v58  ;;  %v1170_v16 = vld [vmem:[#allocation10 + $0x1b58] sm:$0xff]  ;;  %v8285_v57 = vld [vmem:[#allocation13 + $0x2d0] sm:$0xff] }
 0x4ad   :  { %8124 = vmatpush1.bf16.msra.mxu0 %v10027_v55  ;;  %v1162_v55 = vld [vmem:[#allocation10 + $0x1b18] sm:$0xff]  ;;  %v8293_v25 = vld [vmem:[#allocation13 + $0x310] sm:$0xff] }
 0x4ae   :  { %10437 = vmatpush1.bf16.msra.mxu1 %v10436_v45  ;;  %8125 = vmatprep.subr.bf16.mxu0 %v10036_v2  ;;  %v1166_v45 = vld [vmem:[#allocation10 + $0x1b38] sm:$0xff]  ;;  %v8301_v59 = vld [vmem:[#allocation13 + $0x350] sm:$0xff] }
 0x4af   :  { %10439 = vmatprep.subr.bf16.mxu1 %v10438_v4  ;;  %v8262_v2 = vld [vmem:[#allocation13 + $0x218] sm:$0xff]  ;;  %v10068_v22 = vcombine.high %v1162_v55, %v1166_v45 }
 0x4b0   :  { %v8270_v4 = vld [vmem:[#allocation13 + $0x258] sm:$0xff] }
 0x4b1   :  { %8388 = vmatmul.mubr.f32.vlgmr.msra.gmra.mrb[20].mxu1 %v11560_v14  ;;  %8126 = vmatpush1.bf16.msra.mxu0 %v10035_v46  ;;  %v10454_v33 = vpack.c.bf16 %v8270_v4, %v8262_v2  ;;  %v1174_v46 = vld [vmem:[#allocation10 + $0x1b78] sm:$0xff]  ;;  %v8317_v2 = vld [vmem:[#allocation13 + $0x3d0] sm:$0xff] }
 0x4b2   :  { %10441 = vmatpush1.bf16.msra.mxu1 %v10440_v18  ;;  %8393 = vmatprep.mubr.f32.mxu1 %v11077_v0  ;;  %v8278_v18 = vld [vmem:[#allocation13 + $0x298] sm:$0xff]  ;;  %v10076_v27 = vcombine.high %v1170_v16, %v1174_v46  ;;  %v10075_v37 = vcombine.low %v1170_v16, %v1174_v46  ;;  %v8199_v46 = vld [vmem:[#allocation13 + $0x20] sm:$0xff] }
 0x4b3   :  { %8127 = vmatprep.subr.bf16.mxu0 %v10044_v23  ;;  %10443 = vmatprep.subr.bf16.mxu1 %v10442_v24  ;;  %v8286_v44 = vld [vmem:[#allocation13 + $0x2d8] sm:$0xff]  ;;  %v10067_v23 = vcombine.low %v1162_v55, %v1166_v45  ;;  %v10456_v24 = vpack.c.bf16 %v8269_v17, %v8261_v10  ;;  %v8309_v55 = vld [vmem:[#allocation13 + $0x390] sm:$0xff] }
 0x4b4   :  { %v10458_v26 = vpack.c.bf16 %v8286_v44, %v8278_v18  ;;  %v1178_v30 = vld [vmem:[#allocation10 + $0x1b98] sm:$0xff]  ;;  %v8207_v18 = vld [vmem:[#allocation13 + $0x60] sm:$0xff] }
 0x4b5   :  { %8394 = vmatmul.mubr.f32.gmra.mrb[22].mxu1 %v11562_v28  ;;  %8128 = vmatpush1.bf16.msra.mxu0 %v10043_v9  ;;  %v1182_v9 = vld [vmem:[#allocation10 + $0x1bb8] sm:$0xff] }
 0x4b6   :  { %10445 = vmatpush1.bf16.msra.mxu1 %v10444_v54  ;;  %8129 = vmatprep.subr.bf16.mxu0 %v10052_v32  ;;  %v8294_v54 = vld [vmem:[#allocation13 + $0x318] sm:$0xff]  ;;  %v10084_v34 = vcombine.high %v1178_v30, %v1182_v9  ;;  %v10083_v31 = vcombine.low %v1178_v30, %v1182_v9 }
 0x4b7   :  { %10447 = vmatprep.subr.bf16.mxu1 %v10446_v36  ;;  %8464 = vmatprep.mubr.f32.mxu1 %v11077_v0  ;;  %v8302_v32 = vld [vmem:[#allocation13 + $0x358] sm:$0xff]  ;;  %v10460_v36 = vpack.c.bf16 %v8285_v57, %v8277_v53  ;;  %v8215_v57 = vld [vmem:[#allocation13 + $0xa0] sm:$0xff] }
 0x4b8   :  { %v10462_v58 = vpack.c.bf16 %v8302_v32, %v8294_v54  ;;  %v1186_v61 = vld [vmem:[#allocation10 + $0x1bd8] sm:$0xff]  ;;  %v8223_v54 = vld [vmem:[#allocation13 + $0xe0] sm:$0xff] }
 0x4b9   :  { %8130 = vmatpush1.bf16.msra.mxu0 %v10051_v12  ;;  %v1190_v12 = vld [vmem:[#allocation10 + $0x1bf8] sm:$0xff] }
 0x4ba   :  { %10449 = vmatpush1.bf16.msra.mxu1 %v10448_v19  ;;  %8131 = vmatprep.subr.bf16.mxu0 %v10060_v1  ;;  %v8310_v19 = vld [vmem:[#allocation13 + $0x398] sm:$0xff]  ;;  %v10092_v35 = vcombine.high %v1186_v61, %v1190_v12  ;;  %v10091_v10 = vcombine.low %v1186_v61, %v1190_v12  ;;  %v8231_v61 = vld [vmem:[#allocation13 + $0x120] sm:$0xff] }
 0x4bb   :  { %10451 = vmatprep.subr.bf16.mxu1 %v10450_v62  ;;  %v8318_v1 = vld [vmem:[#allocation13 + $0x3d8] sm:$0xff]  ;;  %v10464_v62 = vpack.c.bf16 %v8301_v59, %v8293_v25 }
 0x4bc   :  { %v10466_v45 = vpack.c.bf16 %v8318_v1, %v8310_v19  ;;  %v1194_v4 = vld [vmem:[#allocation10 + $0x1c18] sm:$0xff]  ;;  %v8239_v19 = vld [vmem:[#allocation13 + $0x160] sm:$0xff] }
 0x4bd   :  { %8132 = vmatpush1.bf16.msra.mxu0 %v10059_v50  ;;  %v1198_v50 = vld [vmem:[#allocation10 + $0x1c38] sm:$0xff] }
 0x4be   :  { %10453 = vmatpush1.bf16.msra.mxu1 %v10452_v51  ;;  %8133 = vmatprep.subr.bf16.mxu0 %v10068_v22  ;;  %v8200_v51 = vld [vmem:[#allocation13 + $0x28] sm:$0xff]  ;;  %v10100_v17 = vcombine.high %v1194_v4, %v1198_v50  ;;  %v1202_v44 = vld [vmem:[#allocation10 + $0x1c58] sm:$0xff]  ;;  %v10099_v53 = vcombine.low %v1194_v4, %v1198_v50  ;;  %v8255_v50 = vld [vmem:[#allocation13 + $0x1e0] sm:$0xff] }
 0x4bf   :  { %10455 = vmatprep.subr.bf16.mxu1 %v10454_v33  ;;  %v8208_v22 = vld [vmem:[#allocation13 + $0x68] sm:$0xff]  ;;  %v10468_v33 = vpack.c.bf16 %v8317_v2, %v8309_v55  ;;  %v1210_v32 = vld [vmem:[#allocation10 + $0x1c98] sm:$0xff]  ;;  %v10480_v55 = vpack.c.bf16 %v8239_v19, %v8231_v61  ;;  %v8247_v2 = vld [vmem:[#allocation13 + $0x1a0] sm:$0xff] }
 0x4c0   :  { %v10470_v16 = vpack.c.bf16 %v8208_v22, %v8200_v51  ;;  %v1218_v1 = vld [vmem:[#allocation10 + $0x1cd8] sm:$0xff] }
 0x4c1   :  { %8134 = vmatpush1.bf16.msra.mxu0 %v10067_v23  ;;  %v1206_v23 = vld [vmem:[#allocation10 + $0x1c78] sm:$0xff] }
 0x4c2   :  { %10457 = vmatpush1.bf16.msra.mxu1 %v10456_v24  ;;  %8135 = vmatprep.subr.bf16.mxu0 %v10076_v27  ;;  %v8216_v24 = vld [vmem:[#allocation13 + $0xa8] sm:$0xff]  ;;  %v10108_v30 = vcombine.high %v1202_v44, %v1206_v23  ;;  %v10107_v25 = vcombine.low %v1202_v44, %v1206_v23  ;;  %v1226_v51 = vld [vmem:[#allocation10 + $0x1d18] sm:$0xff]  ;;  %v8271_v44 = vld [vmem:[#allocation13 + $0x260] sm:$0xff] }
 0x4c3   :  { %10459 = vmatprep.subr.bf16.mxu1 %v10458_v26  ;;  %v8224_v27 = vld [vmem:[#allocation13 + $0xe8] sm:$0xff]  ;;  %v10472_v26 = vpack.c.bf16 %v8207_v18, %v8199_v46  ;;  %v1230_v22 = vld [vmem:[#allocation10 + $0x1d38] sm:$0xff]  ;;  %v8263_v46 = vld [vmem:[#allocation13 + $0x220] sm:$0xff] }
 0x4c4   :  { %v10474_v9 = vpack.c.bf16 %v8224_v27, %v8216_v24  ;;  %v1234_v23 = vld [vmem:[#allocation10 + $0x1d58] sm:$0xff]  ;;  %v8280_v27 = vld [vmem:[#allocation13 + $0x2a8] sm:$0xff] }
 0x4c5   :  { %8136 = vmatpush1.bf16.msra.mxu0 %v10075_v37  ;;  %v1214_v37 = vld [vmem:[#allocation10 + $0x1cb8] sm:$0xff] }
 0x4c6   :  { %10461 = vmatpush1.bf16.msra.mxu1 %v10460_v36  ;;  %8137 = vmatprep.subr.bf16.mxu0 %v10084_v34  ;;  %v8232_v36 = vld [vmem:[#allocation13 + $0x128] sm:$0xff]  ;;  %v10116_v59 = vcombine.high %v1210_v32, %v1214_v37  ;;  %v1238_v24 = vld [vmem:[#allocation10 + $0x1d78] sm:$0xff] }
 0x4c7   :  { %10463 = vmatprep.subr.bf16.mxu1 %v10462_v58  ;;  %v8240_v34 = vld [vmem:[#allocation13 + $0x168] sm:$0xff]  ;;  %v10476_v58 = vpack.c.bf16 %v8223_v54, %v8215_v57  ;;  %v10488_v57 = vpack.c.bf16 %v8271_v44, %v8263_v46  ;;  %v8201_v44 = vld [vmem:[#allocation13 + $0x30] sm:$0xff] }
 0x4c8   :  { %v10478_v12 = vpack.c.bf16 %v8240_v34, %v8232_v36  ;;  %v1246_v36 = vld [vmem:[#allocation10 + $0x1db8] sm:$0xff]  ;;  %v8296_v34 = vld [vmem:[#allocation13 + $0x328] sm:$0xff] }
 0x4c9   :  { %8138 = vmatpush1.bf16.msra.mxu0 %v10083_v31  ;;  %v1222_v31 = vld [vmem:[#allocation10 + $0x1cf8] sm:$0xff] }
 0x4ca   :  { %10465 = vmatpush1.bf16.msra.mxu1 %v10464_v62  ;;  %8139 = vmatprep.subr.bf16.mxu0 %v10092_v35  ;;  %v8248_v62 = vld [vmem:[#allocation13 + $0x1a8] sm:$0xff]  ;;  %v10115_v35 = vcombine.low %v1210_v32, %v1214_v37  ;;  %v8287_v32 = vld [vmem:[#allocation13 + $0x2e0] sm:$0xff]  ;;  %v1242_v37 = vld [vmem:[#allocation10 + $0x1d98] sm:$0xff] }
 0x4cb   :  { %10467 = vmatprep.subr.bf16.mxu1 %v10466_v45  ;;  %v10124_v45 = vcombine.high %v1218_v1, %v1222_v31  ;;  %v10148_v61 = vcombine.high %v1242_v37, %v1246_v36 }
 0x4cd   :  { %8140 = vmatpush1.bf16.msra.mxu0 %v10091_v10  ;;  %v8264_v10 = vld [vmem:[#allocation13 + $0x228] sm:$0xff] }
 0x4ce   :  { %10469 = vmatpush1.bf16.msra.mxu1 %v10468_v33  ;;  %8152 = vmatprep.subr.bf16.mxu0 %v10100_v17  ;;  %v8272_v33 = vld [vmem:[#allocation13 + $0x268] sm:$0xff]  ;;  %v10484_v17 = vpack.c.bf16 %v8255_v50, %v8247_v2 }
 0x4cf   :  { %10471 = vmatprep.subr.bf16.mxu1 %v10470_v16  ;;  %v10132_v16 = vcombine.high %v1226_v51, %v1230_v22  ;;  %v10486_v18 = vpack.c.bf16 %v8272_v33, %v8264_v10  ;;  %v1262_v10 = vld [vmem:[#allocation10 + $0x1e38] sm:$0xff] }
 0x4d0   :  { %8142 = vmatmul.mubr.bf16.vlgmr.msra.gmra.mrb[24].mxu0 %v11430_v13  ;;  %v8256_v13 = vld [vmem:[#allocation13 + $0x1e8] sm:$0xff]  ;;  %v8202_v33 = vld [vmem:[#allocation13 + $0x38] sm:$0xff] }
 0x4d1   :  { %8465 = vmatmul.mubr.f32.vlgmr.msra.gmra.mrb[24].mxu1 %v11560_v14  ;;  %8153 = vmatpush1.bf16.msra.mxu0 %v10099_v53  ;;  %v10482_v4 = vpack.c.bf16 %v8256_v13, %v8248_v62  ;;  %v8288_v53 = vld [vmem:[#allocation13 + $0x2e8] sm:$0xff]  ;;  %v1254_v62 = vld [vmem:[#allocation10 + $0x1df8] sm:$0xff] }
 0x4d2   :  { %10473 = vmatpush1.bf16.msra.mxu1 %v10472_v26  ;;  %8470 = vmatprep.mubr.f32.mxu1 %v11077_v0  ;;  %v10131_v26 = vcombine.low %v1226_v51, %v1230_v22  ;;  %v10490_v54 = vpack.c.bf16 %v8288_v53, %v8280_v27  ;;  %v8312_v13 = vld [vmem:[#allocation13 + $0x3a8] sm:$0xff]  ;;  %v8319_v51 = vld [vmem:[#allocation13 + $0x3e0] sm:$0xff]  ;;  %v1258_v22 = vld [vmem:[#allocation10 + $0x1e18] sm:$0xff] }
 0x4d3   :  { %8154 = vmatprep.subr.bf16.mxu0 %v10108_v30  ;;  %10475 = vmatprep.subr.bf16.mxu1 %v10474_v9  ;;  %v10140_v30 = vcombine.high %v1234_v23, %v1238_v24  ;;  %v8279_v9 = vld [vmem:[#allocation13 + $0x2a0] sm:$0xff]  ;;  %v10164_v46 = vcombine.high %v1258_v22, %v1262_v10  ;;  %v1270_v27 = vld [vmem:[#allocation10 + $0x1e78] sm:$0xff] }
 0x4d4   :  { %8184 = vmatprep.mubr.bf16.mxu0 %v11432_v21  ;;  %v10123_v21 = vcombine.low %v1218_v1, %v1222_v31  ;;  %v8303_v1 = vld [vmem:[#allocation13 + $0x360] sm:$0xff]  ;;  %v1250_v31 = vld [vmem:[#allocation10 + $0x1dd8] sm:$0xff] }
 0x4d5   :  { %8471 = vmatmul.mubr.f32.gmra.mrb[26].mxu1 %v11562_v28  ;;  %8155 = vmatpush1.bf16.msra.mxu0 %v10107_v25  ;;  %v8304_v25 = vld [vmem:[#allocation13 + $0x368] sm:$0xff]  ;;  %v10156_v2 = vcombine.high %v1250_v31, %v1254_v62  ;;  %v8218_v53 = vld [vmem:[#allocation13 + $0xb8] sm:$0xff] }
 0x4d6   :  { %10477 = vmatpush1.bf16.msra.mxu1 %v10476_v58  ;;  %8156 = vmatprep.subr.bf16.mxu0 %v10116_v59  ;;  %v10139_v58 = vcombine.low %v1234_v23, %v1238_v24  ;;  %v10492_v59 = vpack.c.bf16 %v8287_v32, %v8279_v9  ;;  %v10494_v19 = vpack.c.bf16 %v8304_v25, %v8296_v34  ;;  %v8209_v23 = vld [vmem:[#allocation13 + $0x70] sm:$0xff]  ;;  %v1266_v24 = vld [vmem:[#allocation10 + $0x1e58] sm:$0xff] }
 0x4d7   :  { %10479 = vmatprep.subr.bf16.mxu1 %v10478_v12  ;;  %8541 = vmatprep.mubr.f32.mxu1 %v11077_v0  ;;  %v8295_v12 = vld [vmem:[#allocation13 + $0x320] sm:$0xff]  ;;  %v8217_v9 = vld [vmem:[#allocation13 + $0xb0] sm:$0xff]  ;;  %v1278_v34 = vld [vmem:[#allocation10 + $0x1eb8] sm:$0xff] }
 0x4d8   :  { %v8234_v25 = vld [vmem:[#allocation13 + $0x138] sm:$0xff] }
 0x4d9   :  { %8157 = vmatpush1.bf16.msra.mxu0 %v10115_v35  ;;  %v8320_v35 = vld [vmem:[#allocation13 + $0x3e8] sm:$0xff] }
 0x4da   :  { %10481 = vmatpush1.bf16.msra.mxu1 %v10480_v55  ;;  %8158 = vmatprep.subr.bf16.mxu0 %v10124_v45  ;;  %v10147_v55 = vcombine.low %v1242_v37, %v1246_v36  ;;  %v10496_v45 = vpack.c.bf16 %v8303_v1, %v8295_v12  ;;  %v10498_v50 = vpack.c.bf16 %v8320_v35, %v8312_v13  ;;  %v8225_v37 = vld [vmem:[#allocation13 + $0xf0] sm:$0xff]  ;;  %v1274_v36 = vld [vmem:[#allocation10 + $0x1e98] sm:$0xff] }
 0x4db   :  { %10483 = vmatprep.subr.bf16.mxu1 %v10482_v4  ;;  %v8311_v4 = vld [vmem:[#allocation13 + $0x3a0] sm:$0xff]  ;;  %v10180_v12 = vcombine.high %v1274_v36, %v1278_v34  ;;  %v1286_v13 = vld [vmem:[#allocation10 + $0x1ef8] sm:$0xff] }
 0x4dc   :  { %v8250_v35 = vld [vmem:[#allocation13 + $0x1b8] sm:$0xff] }
 0x4dd   :  { %8159 = vmatpush1.bf16.msra.mxu0 %v10123_v21  ;;  %v8210_v21 = vld [vmem:[#allocation13 + $0x78] sm:$0xff] }
 0x4de   :  { %10485 = vmatpush1.bf16.msra.mxu1 %v10484_v17  ;;  %8160 = vmatprep.subr.bf16.mxu0 %v10132_v16  ;;  %v10155_v17 = vcombine.low %v1250_v31, %v1254_v62  ;;  %v10500_v16 = vpack.c.bf16 %v8319_v51, %v8311_v4  ;;  %v8241_v31 = vld [vmem:[#allocation13 + $0x170] sm:$0xff]  ;;  %v1282_v62 = vld [vmem:[#allocation10 + $0x1ed8] sm:$0xff] }
 0x4df   :  { %10487 = vmatprep.subr.bf16.mxu1 %v10486_v18  ;;  %v10502_v18 = vpack.c.bf16 %v8210_v21, %v8202_v33  ;;  %v10188_v4 = vcombine.high %v1282_v62, %v1286_v13  ;;  %v1294_v33 = vld [vmem:[#allocation10 + $0x1f38] sm:$0xff] }
 0x4e0   :  { %v8266_v21 = vld [vmem:[#allocation13 + $0x238] sm:$0xff] }
 0x4e1   :  { %8161 = vmatpush1.bf16.msra.mxu0 %v10131_v26  ;;  %v8226_v26 = vld [vmem:[#allocation13 + $0xf8] sm:$0xff] }
 0x4e2   :  { %10489 = vmatpush1.bf16.msra.mxu1 %v10488_v57  ;;  %8162 = vmatprep.subr.bf16.mxu0 %v10140_v30  ;;  %v10163_v57 = vcombine.low %v1258_v22, %v1262_v10  ;;  %v10504_v30 = vpack.c.bf16 %v8209_v23, %v8201_v44  ;;  %v10506_v32 = vpack.c.bf16 %v8226_v26, %v8218_v53  ;;  %v8257_v22 = vld [vmem:[#allocation13 + $0x1f0] sm:$0xff]  ;;  %v1290_v10 = vld [vmem:[#allocation10 + $0x1f18] sm:$0xff] }
 0x4e3   :  { %10491 = vmatprep.subr.bf16.mxu1 %v10490_v54  ;;  %v10172_v54 = vcombine.high %v1266_v24, %v1270_v27  ;;  %v8265_v44 = vld [vmem:[#allocation13 + $0x230] sm:$0xff]  ;;  %v1302_v53 = vld [vmem:[#allocation10 + $0x1f78] sm:$0xff] }
 0x4e4   :  { %v8282_v26 = vld [vmem:[#allocation13 + $0x2b8] sm:$0xff] }
 0x4e5   :  { %8163 = vmatpush1.bf16.msra.mxu0 %v10139_v58  ;;  %v8242_v58 = vld [vmem:[#allocation13 + $0x178] sm:$0xff] }
 0x4e6   :  { %10493 = vmatpush1.bf16.msra.mxu1 %v10492_v59  ;;  %8164 = vmatprep.subr.bf16.mxu0 %v10148_v61  ;;  %v10171_v59 = vcombine.low %v1266_v24, %v1270_v27  ;;  %v10508_v61 = vpack.c.bf16 %v8225_v37, %v8217_v9  ;;  %v10510_v1 = vpack.c.bf16 %v8242_v58, %v8234_v25  ;;  %v8273_v24 = vld [vmem:[#allocation13 + $0x270] sm:$0xff]  ;;  %v1298_v27 = vld [vmem:[#allocation10 + $0x1f58] sm:$0xff] }
 0x4e7   :  { %10495 = vmatprep.subr.bf16.mxu1 %v10494_v19  ;;  %v8233_v19 = vld [vmem:[#allocation13 + $0x130] sm:$0xff]  ;;  %v10520_v9 = vpack.c.bf16 %v8273_v24, %v8265_v44  ;;  %v1310_v25 = vld [vmem:[#allocation10 + $0x1fb8] sm:$0xff] }
 0x4e8   :  { %v8298_v58 = vld [vmem:[#allocation13 + $0x338] sm:$0xff]  ;;  %v8722_v44 = vld [vmem:[#allocation16 + $0x8] sm:$0xff] }
 0x4e9   :  { %8165 = vmatpush1.bf16.msra.mxu0 %v10147_v55  ;;  %v8258_v55 = vld [vmem:[#allocation13 + $0x1f8] sm:$0xff]  ;;  %v8770_v24 = vld [vmem:[#allocation16 + $0x188] sm:$0xff] }
 0x4ea   :  { %10497 = vmatpush1.bf16.msra.mxu1 %v10496_v45  ;;  %8166 = vmatprep.subr.bf16.mxu0 %v10156_v2  ;;  %v10179_v45 = vcombine.low %v1274_v36, %v1278_v34  ;;  %v10512_v2 = vpack.c.bf16 %v8241_v31, %v8233_v19  ;;  %v10514_v51 = vpack.c.bf16 %v8258_v55, %v8250_v35  ;;  %v8289_v36 = vld [vmem:[#allocation13 + $0x2f0] sm:$0xff]  ;;  %v1306_v34 = vld [vmem:[#allocation10 + $0x1f98] sm:$0xff] }
 0x4eb   :  { %10499 = vmatprep.subr.bf16.mxu1 %v10498_v50  ;;  %v8249_v50 = vld [vmem:[#allocation13 + $0x1b0] sm:$0xff]  ;;  %v10212_v19 = vcombine.high %v1306_v34, %v1310_v25  ;;  %v1318_v35 = vld [vmem:[#allocation10 + $0x1ff8] sm:$0xff] }
 0x4ec   :  { %v8314_v55 = vld [vmem:[#allocation13 + $0x3b8] sm:$0xff] }
 0x4ed   :  { %8167 = vmatpush1.bf16.msra.mxu0 %v10155_v17  ;;  %v8274_v17 = vld [vmem:[#allocation13 + $0x278] sm:$0xff] }
 0x4ee   :  { %10501 = vmatpush1.bf16.msra.mxu1 %v10500_v16  ;;  %8168 = vmatprep.subr.bf16.mxu0 %v10164_v46  ;;  %v10187_v16 = vcombine.low %v1282_v62, %v1286_v13  ;;  %v10516_v46 = vpack.c.bf16 %v8257_v22, %v8249_v50  ;;  %v10518_v23 = vpack.c.bf16 %v8274_v17, %v8266_v21  ;;  %v8305_v62 = vld [vmem:[#allocation13 + $0x370] sm:$0xff]  ;;  %v1314_v13 = vld [vmem:[#allocation10 + $0x1fd8] sm:$0xff] }
 0x4ef   :  { %10503 = vmatprep.subr.bf16.mxu1 %v10502_v18  ;;  %v10196_v18 = vcombine.high %v1290_v10, %v1294_v33  ;;  %v10220_v50 = vcombine.high %v1314_v13, %v1318_v35  ;;  %v8738_v21 = vld [vmem:[#allocation16 + $0x88] sm:$0xff]  ;;  %v10219_v17 = vcombine.low %v1314_v13, %v1318_v35  ;;  %v8725_v35 = vld [vmem:[#allocation16 + $0x20] sm:$0xff] }
 0x4f1   :  { %8542 = vmatmul.mubr.f32.vlgmr.msra.gmra.mrb[28].mxu1 %v11560_v14  ;;  %8169 = vmatpush1.bf16.msra.mxu0 %v10163_v57  ;;  %v8290_v57 = vld [vmem:[#allocation13 + $0x2f8] sm:$0xff] }
 0x4f2   :  { %10505 = vmatpush1.bf16.msra.mxu1 %v10504_v30  ;;  %8547 = vmatprep.mubr.f32.mxu1 %v11077_v0  ;;  %v10195_v30 = vcombine.low %v1290_v10, %v1294_v33  ;;  %v10522_v37 = vpack.c.bf16 %v8290_v57, %v8282_v26  ;;  %v8321_v10 = vld [vmem:[#allocation13 + $0x3f0] sm:$0xff]  ;;  %v8737_v33 = vld [vmem:[#allocation16 + $0x80] sm:$0xff] }
 0x4f3   :  { %8170 = vmatprep.subr.bf16.mxu0 %v10172_v54  ;;  %10507 = vmatprep.subr.bf16.mxu1 %v10506_v32  ;;  %v10204_v54 = vcombine.high %v1298_v27, %v1302_v53  ;;  %v8281_v32 = vld [vmem:[#allocation13 + $0x2b0] sm:$0xff]  ;;  %v8753_v57 = vld [vmem:[#allocation16 + $0x100] sm:$0xff] }
 0x4f5   :  { %8548 = vmatmul.mubr.f32.gmra.mrb[30].mxu1 %v11562_v28  ;;  %8171 = vmatpush1.bf16.msra.mxu0 %v10171_v59  ;;  %v8306_v59 = vld [vmem:[#allocation13 + $0x378] sm:$0xff] }
 0x4f6   :  { %10509 = vmatpush1.bf16.msra.mxu1 %v10508_v61  ;;  %8172 = vmatprep.subr.bf16.mxu0 %v10180_v12  ;;  %v10203_v61 = vcombine.low %v1298_v27, %v1302_v53  ;;  %v10524_v12 = vpack.c.bf16 %v8289_v36, %v8281_v32  ;;  %v10526_v31 = vpack.c.bf16 %v8306_v59, %v8298_v58  ;;  %v8739_v27 = vld [vmem:[#allocation16 + $0x90] sm:$0xff]  ;;  %v8740_v53 = vld [vmem:[#allocation16 + $0x98] sm:$0xff]  ;;  %v8742_v58 = vld [vmem:[#allocation16 + $0xa8] sm:$0xff] }
 0x4f7   :  { %10511 = vmatprep.subr.bf16.mxu1 %v10510_v1  ;;  %8618 = vmatprep.mubr.f32.mxu1 %v11077_v0  ;;  %v8297_v1 = vld [vmem:[#allocation13 + $0x330] sm:$0xff]  ;;  %v10538_v32 = vpack.c.bf16 %v8740_v53, %v8739_v27  ;;  %v8771_v36 = vld [vmem:[#allocation16 + $0x190] sm:$0xff]  ;;  %v8777_v27 = vld [vmem:[#allocation16 + $0x1c0] sm:$0xff] }
 0x4f9   :  { %8173 = vmatpush1.bf16.msra.mxu0 %v10179_v45  ;;  %v8322_v45 = vld [vmem:[#allocation13 + $0x3f8] sm:$0xff] }
 0x4fa   :  { %10513 = vmatpush1.bf16.msra.mxu1 %v10512_v2  ;;  %8174 = vmatprep.subr.bf16.mxu0 %v10188_v4  ;;  %v10211_v2 = vcombine.low %v1306_v34, %v1310_v25  ;;  %v10528_v4 = vpack.c.bf16 %v8305_v62, %v8297_v1  ;;  %v10530_v22 = vpack.c.bf16 %v8322_v45, %v8314_v55  ;;  %v8772_v34 = vld [vmem:[#allocation16 + $0x198] sm:$0xff]  ;;  %v8741_v25 = vld [vmem:[#allocation16 + $0xa0] sm:$0xff]  ;;  %v8774_v62 = vld [vmem:[#allocation16 + $0x1a8] sm:$0xff] }
 0x4fb   :  { %10515 = vmatprep.subr.bf16.mxu1 %v10514_v51  ;;  %v8313_v51 = vld [vmem:[#allocation13 + $0x3b0] sm:$0xff]  ;;  %v10542_v13 = vpack.c.bf16 %v8742_v58, %v8741_v25  ;;  %v8743_v45 = vld [vmem:[#allocation16 + $0xb0] sm:$0xff]  ;;  %v8780_v58 = vld [vmem:[#allocation16 + $0x1d8] sm:$0xff] }
 0x4fc   :  { %v8726_v55 = vld [vmem:[#allocation16 + $0x28] sm:$0xff]  ;;  %v8779_v25 = vld [vmem:[#allocation16 + $0x1d0] sm:$0xff] }
 0x4fd   :  { %8175 = vmatpush1.bf16.msra.mxu0 %v10187_v16  ;;  %v8721_v16 = vld [vmem:[#allocation16] sm:$0xff] }
 0x4fe   :  { %10517 = vmatpush1.bf16.msra.mxu1 %v10516_v46  ;;  %8176 = vmatprep.subr.bf16.mxu0 %v10196_v18  ;;  %v10532_v46 = vpack.c.bf16 %v8321_v10, %v8313_v51  ;;  %v10534_v18 = vpack.c.bf16 %v8738_v21, %v8737_v33  ;;  %v8758_v51 = vld [vmem:[#allocation16 + $0x128] sm:$0xff]  ;;  %v8776_v10 = vld [vmem:[#allocation16 + $0x1b8] sm:$0xff]  ;;  %v8727_v33 = vld [vmem:[#allocation16 + $0x30] sm:$0xff] }
 0x4ff   :  { %10519 = vmatprep.subr.bf16.mxu1 %v10518_v23  ;;  %v8769_v23 = vld [vmem:[#allocation16 + $0x180] sm:$0xff]  ;;  %v8728_v21 = vld [vmem:[#allocation16 + $0x38] sm:$0xff] }
 0x500   :  { %v10566_v26 = vpack.c.bf16 %v8770_v24, %v8769_v23  ;;  %v8760_v23 = vld [vmem:[#allocation16 + $0x138] sm:$0xff]  ;;  %v10548_v24 = vpack.c.bf16 %v8728_v21, %v8727_v33  ;;  %v8766_v33 = vld [vmem:[#allocation16 + $0x168] sm:$0xff] }
 0x501   :  { %8177 = vmatpush1.bf16.msra.mxu0 %v10195_v30  ;;  %v8754_v30 = vld [vmem:[#allocation16 + $0x108] sm:$0xff] }
 0x502   :  { %10521 = vmatpush1.bf16.msra.mxu1 %v10520_v9  ;;  %8178 = vmatprep.subr.bf16.mxu0 %v10204_v54  ;;  %v10536_v9 = vpack.c.bf16 %v8722_v44, %v8721_v16  ;;  %v8723_v54 = vld [vmem:[#allocation16 + $0x10] sm:$0xff]  ;;  %v10568_v59 = vpack.c.bf16 %v8754_v30, %v8753_v57  ;;  %v8746_v16 = vld [vmem:[#allocation16 + $0xc8] sm:$0xff] }
 0x503   :  { %10523 = vmatprep.subr.bf16.mxu1 %v10522_v37  ;;  %v8724_v37 = vld [vmem:[#allocation16 + $0x18] sm:$0xff]  ;;  %v8759_v44 = vld [vmem:[#allocation16 + $0x130] sm:$0xff]  ;;  %v8730_v57 = vld [vmem:[#allocation16 + $0x48] sm:$0xff] }
 0x504   :  { %v10540_v1 = vpack.c.bf16 %v8724_v37, %v8723_v54  ;;  %v8747_v30 = vld [vmem:[#allocation16 + $0xd0] sm:$0xff]  ;;  %v10580_v54 = vpack.c.bf16 %v8760_v23, %v8759_v44  ;;  %v8761_v37 = vld [vmem:[#allocation16 + $0x140] sm:$0xff]  ;;  %v8784_v44 = vld [vmem:[#allocation16 + $0x1f8] sm:$0xff] }
 0x505   :  { %8179 = vmatpush1.bf16.msra.mxu0 %v10203_v61  ;;  %v10570_v61 = vpack.c.bf16 %v8772_v34, %v8771_v36  ;;  %v8762_v36 = vld [vmem:[#allocation16 + $0x148] sm:$0xff] }
 0x506   :  { %10525 = vmatpush1.bf16.msra.mxu1 %v10524_v12  ;;  %8180 = vmatprep.subr.bf16.mxu0 %v10212_v19  ;;  %v8755_v12 = vld [vmem:[#allocation16 + $0x110] sm:$0xff]  ;;  %v8756_v19 = vld [vmem:[#allocation16 + $0x118] sm:$0xff] }
 0x507   :  { %10527 = vmatprep.subr.bf16.mxu1 %v10526_v31  ;;  %v8773_v31 = vld [vmem:[#allocation16 + $0x1a0] sm:$0xff] }
 0x509   :  { %8181 = vmatpush1.bf16.msra.mxu0 %v10211_v2  ;;  %v8744_v2 = vld [vmem:[#allocation16 + $0xb8] sm:$0xff] }
 0x50a   :  { %10529 = vmatpush1.bf16.msra.mxu1 %v10528_v4  ;;  %8182 = vmatprep.subr.bf16.mxu0 %v10220_v50  ;;  %v10572_v4 = vpack.c.bf16 %v8756_v19, %v8755_v12  ;;  %v8757_v50 = vld [vmem:[#allocation16 + $0x120] sm:$0xff]  ;;  %v8732_v12 = vld [vmem:[#allocation16 + $0x58] sm:$0xff] }
 0x50b   :  { %10531 = vmatprep.subr.bf16.mxu1 %v10530_v22  ;;  %v8775_v22 = vld [vmem:[#allocation16 + $0x1b0] sm:$0xff]  ;;  %v8749_v19 = vld [vmem:[#allocation16 + $0xe0] sm:$0xff] }
 0x50d   :  { %8183 = vmatpush1.bf16.msra.mxu0 %v10219_v17  ;;  %v8745_v17 = vld [vmem:[#allocation16 + $0xc0] sm:$0xff] }
 0x50e   :  { %10533 = vmatpush1.bf16.msra.mxu1 %v10532_v46  ;;  %10535 = vmatprep.subr.bf16.mxu0 %v10534_v18  ;;  %v10576_v46 = vpack.c.bf16 %v8758_v51, %v8757_v50  ;;  %v10578_v18 = vpack.c.bf16 %v8776_v10, %v8775_v22  ;;  %v10550_v53 = vpack.c.bf16 %v8746_v16, %v8745_v17  ;;  %v8782_v50 = vld [vmem:[#allocation16 + $0x1e8] sm:$0xff]  ;;  %v8751_v51 = vld [vmem:[#allocation16 + $0xf0] sm:$0xff] }
 0x50f   :  { %10567 = vmatprep.subr.bf16.mxu1 %v10566_v26  ;;  %v8729_v26 = vld [vmem:[#allocation16 + $0x40] sm:$0xff]  ;;  %v8735_v17 = vld [vmem:[#allocation16 + $0x70] sm:$0xff] }
 0x510   :  { %8185 = vmatmul.mubr.bf16.vlgmr.msra.gmra.mrb[24].mxu0 %v11438_v47  ;;  %v10574_v47 = vpack.c.bf16 %v8774_v62, %v8773_v31  ;;  %v10552_v34 = vpack.c.bf16 %v8730_v57, %v8729_v26  ;;  %v10584_v31 = vpack.c.bf16 %v8762_v36, %v8761_v37  ;;  %v10586_v62 = vpack.c.bf16 %v8780_v58, %v8779_v25  ;;  %v8801_v26 = vld [vmem:[#allocation16 + $0x280] sm:$0xff]  ;;  %v8802_v57 = vld [vmem:[#allocation16 + $0x288] sm:$0xff] }
 0x511   :  { %8619 = vmatmul.mubr.f32.vlgmr.msra.gmra.mrb[32].mxu1 %v11560_v14  ;;  %10537 = vmatpush3.bf16.msra.mxu0 %v10536_v9  ;;  %v10544_v14 = vpack.c.bf16 %v8726_v55, %v8725_v35  ;;  %v8748_v9 = vld [vmem:[#allocation16 + $0xd8] sm:$0xff] }
 0x512   :  { %8624 = vmatprep.mubr.f32.mxu1 %v11077_v0  ;;  %10539 = vmatprep.subr.bf16.mxu0 %v10538_v32  ;;  %v10546_v0 = vpack.c.bf16 %v8744_v2, %v8743_v45  ;;  %v8764_v35 = vld [vmem:[#allocation16 + $0x158] sm:$0xff]  ;;  %v8733_v45 = vld [vmem:[#allocation16 + $0x60] sm:$0xff] }
 0x513   :  { %10569 = vmatpush3.bf16.msra.mxu1 %v10568_v59  ;;  %v10554_v59 = vpack.c.bf16 %v8748_v9, %v8747_v30  ;;  %v10598_v9 = vpack.c.bf16 %v8802_v57, %v8801_v26  ;;  %v8792_v26 = vld [vmem:[#allocation16 + $0x238] sm:$0xff]  ;;  %v8809_v57 = vld [vmem:[#allocation16 + $0x2c0] sm:$0xff] }
 0x514   :  { %10571 = vmatprep.subr.bf16.mxu1 %v10570_v61  ;;  %v8731_v61 = vld [vmem:[#allocation16 + $0x50] sm:$0xff] }
 0x515   :  { %8625 = vmatmul.mubr.f32.gmra.mrb[34].mxu1 %v11562_v28  ;;  %10541 = vmatpush3.bf16.msra.mxu0 %v10540_v1  ;;  %v8778_v28 = vld [vmem:[#allocation16 + $0x1c8] sm:$0xff]  ;;  %v10556_v55 = vpack.c.bf16 %v8732_v12, %v8731_v61 }
 0x516   :  { %10543 = vmatprep.subr.bf16.mxu0 %v10542_v13  ;;  %v10582_v32 = vpack.c.bf16 %v8778_v28, %v8777_v27  ;;  %v8750_v1 = vld [vmem:[#allocation16 + $0xe8] sm:$0xff]  ;;  %v8763_v13 = vld [vmem:[#allocation16 + $0x150] sm:$0xff]  ;;  %v8768_v28 = vld [vmem:[#allocation16 + $0x178] sm:$0xff] }
 0x517   :  { %10573 = vmatpush3.bf16.msra.mxu1 %v10572_v4  ;;  %v10558_v2 = vpack.c.bf16 %v8750_v1, %v8749_v19  ;;  %v8734_v4 = vld [vmem:[#allocation16 + $0x68] sm:$0xff]  ;;  %v10588_v22 = vpack.c.bf16 %v8764_v35, %v8763_v13  ;;  %v8767_v27 = vld [vmem:[#allocation16 + $0x170] sm:$0xff]  ;;  %v11594_v1 = vld [vmem:[#allocation14] sm:$0xff] }
 0x518   :  { %10575 = vmatprep.subr.bf16.mxu1 %v10574_v47  ;;  %v8781_v47 = vld [vmem:[#allocation16 + $0x1e0] sm:$0xff]  ;;  %v10560_v21 = vpack.c.bf16 %v8734_v4, %v8733_v45  ;;  %v10596_v30 = vpack.c.bf16 %v8768_v28, %v8767_v27  ;;  %v8803_v4 = vld [vmem:[#allocation16 + $0x290] sm:$0xff] }
 0x519   :  { %10545 = vmatpush3.bf16.msra.mxu0 %v10544_v14  ;;  %v8752_v14 = vld [vmem:[#allocation16 + $0xf8] sm:$0xff]  ;;  %v10590_v10 = vpack.c.bf16 %v8782_v50, %v8781_v47 }
 0x51a   :  { %10547 = vmatprep.subr.bf16.mxu0 %v10546_v0  ;;  %v8765_v0 = vld [vmem:[#allocation16 + $0x160] sm:$0xff]  ;;  %v10562_v16 = vpack.c.bf16 %v8752_v14, %v8751_v51  ;;  %v8804_v47 = vld [vmem:[#allocation16 + $0x298] sm:$0xff] }
 0x51b   :  { %10577 = vmatpush3.bf16.msra.mxu1 %v10576_v46  ;;  %v8736_v46 = vld [vmem:[#allocation16 + $0x78] sm:$0xff]  ;;  %v10592_v23 = vpack.c.bf16 %v8766_v33, %v8765_v0  ;;  %v8787_v0 = vld [vmem:[#allocation16 + $0x210] sm:$0xff] }
 0x51c   :  { %10579 = vmatprep.subr.bf16.mxu1 %v10578_v18  ;;  %v8783_v18 = vld [vmem:[#allocation16 + $0x1f0] sm:$0xff]  ;;  %v8788_v33 = vld [vmem:[#allocation16 + $0x218] sm:$0xff] }
 0x51d   :  { %10549 = vmatpush3.bf16.msra.mxu0 %v10548_v24  ;;  %v10594_v24 = vpack.c.bf16 %v8784_v44, %v8783_v18  ;;  %v8789_v44 = vld [vmem:[#allocation16 + $0x220] sm:$0xff] }
 0x51e   :  { %10551 = vmatprep.subr.bf16.mxu0 %v10550_v53  ;;  %v10564_v53 = vpack.c.bf16 %v8736_v46, %v8735_v17  ;;  %v8806_v17 = vld [vmem:[#allocation16 + $0x2a8] sm:$0xff]  ;;  %v10604_v46 = vpack.c.bf16 %v8788_v33, %v8787_v0  ;;  %v8817_v33 = vld [vmem:[#allocation16 + $0x300] sm:$0xff] }
 0x51f   :  { %10581 = vmatpush3.bf16.msra.mxu1 %v10580_v54  ;;  %v8833_v54 = vld [vmem:[#allocation16 + $0x380] sm:$0xff] }
 0x520   :  { %10583 = vmatprep.subr.bf16.mxu1 %v10582_v32  ;;  %v8834_v32 = vld [vmem:[#allocation16 + $0x388] sm:$0xff] }
 0x521   :  { %10553 = vmatpush3.bf16.msra.mxu0 %v10552_v34  ;;  %v10630_v37 = vpack.c.bf16 %v8834_v32, %v8833_v54  ;;  %v8793_v32 = vld [vmem:[#allocation16 + $0x240] sm:$0xff] }
 0x522   :  { %10555 = vmatprep.subr.bf16.mxu0 %v10554_v59 }
 0x523   :  { %10585 = vmatpush3.bf16.msra.mxu1 %v10584_v31  ;;  %v8652_v31 = vrot.slane %v11594_v1, %v239_v40 }
 0x524   :  { %10587 = vmatprep.subr.bf16.mxu1 %v10586_v62 }
 0x525   :  { %10557 = vmatpush3.bf16.msra.mxu0 %v10556_v55  ;;  %v8785_v55 = vld [vmem:[#allocation16 + $0x200] sm:$0xff] }
 0x526   :  { %10559 = vmatprep.subr.bf16.mxu0 %v10558_v2 }
 0x527   :  { %10589 = vmatpush3.bf16.msra.mxu1 %v10588_v22 }
 0x528   :  { %10591 = vmatprep.subr.bf16.mxu1 %v10590_v10 }
 0x529   :  { %10561 = vmatpush3.bf16.msra.mxu0 %v10560_v21  ;;  %v8805_v21 = vld [vmem:[#allocation16 + $0x2a0] sm:$0xff] }
 0x52a   :  { %10563 = vmatprep.subr.bf16.mxu0 %v10562_v16 }
 0x52b   :  { %10593 = vmatpush3.bf16.msra.mxu1 %v10592_v23  ;;  %v8790_v23 = vld [vmem:[#allocation16 + $0x228] sm:$0xff] }
 0x52c   :  { %10595 = vmatprep.subr.bf16.mxu1 %v10594_v24  ;;  %v8808_v24 = vld [vmem:[#allocation16 + $0x2b8] sm:$0xff]  ;;  %v10608_v27 = vpack.c.bf16 %v8790_v23, %v8789_v44 }
 0x52d   :  { %10565 = vmatpush3.bf16.msra.mxu0 %v10564_v53  ;;  %v8791_v53 = vld [vmem:[#allocation16 + $0x230] sm:$0xff] }
 0x52e   :  { %10599 = vmatprep.subr.bf16.mxu0 %v10598_v9  ;;  %v10612_v9 = vpack.c.bf16 %v8792_v26, %v8791_v53  ;;  %v8838_v53 = vld [vmem:[#allocation16 + $0x3a8] sm:$0xff] }
 0x52f   :  { %10597 = vmatpush3.bf16.msra.mxu1 %v10596_v30  ;;  %v8810_v30 = vld [vmem:[#allocation16 + $0x2c8] sm:$0xff] }
 0x530   :  { %10631 = vmatprep.subr.bf16.mxu1 %v10630_v37  ;;  %v10614_v54 = vpack.c.bf16 %v8810_v30, %v8809_v57  ;;  %v8794_v37 = vld [vmem:[#allocation16 + $0x248] sm:$0xff] }
 0x564   :  { %v7842_v36 = vpop.f32.mrb[16].mxu1 }
 0x565   :  { %v11583_v34 = vadd.f32 %v7842_v36, %v11478_v29  ;;  %v7844_v25 = vpop.f32.mrb[17].mxu1  ;;  %v8811_v36 = vld [vmem:[#allocation16 + $0x2d0] sm:$0xff] }
 0x566   :  { %v11586_v58 = vadd.f32 %v7844_v25, %v11481_v6  ;;  %v7846_v59 = vpop.f32.mrb[18].mxu1  ;;  %v8656_v6 = vrot.slane %v11594_v1, %v255_v48  ;;  %v8812_v25 = vld [vmem:[#allocation16 + $0x2d8] sm:$0xff] }
 0x567   :  { %v11589_v61 = vadd.f32 %v7846_v59, %v11487_v15  ;;  %v7848_v12 = vpop.f32.mrb[19].mxu1  ;;  %v10616_v59 = vpack.c.bf16 %v8794_v37, %v8793_v32  ;;  %v8840_v32 = vld [vmem:[#allocation16 + $0x3b8] sm:$0xff] }
 0x568   :  { %v11592_v19 = vadd.f32 %v7848_v12, %v11490_v63  ;;  %v8786_v63 = vld [vmem:[#allocation16 + $0x208] sm:$0xff]  ;;  %v10618_v12 = vpack.c.bf16 %v8812_v25, %v8811_v36  ;;  %v8823_v25 = vld [vmem:[#allocation16 + $0x330] sm:$0xff] }
 0x569   :  { %v10600_v22 = vpack.c.bf16 %v8786_v63, %v8785_v55  ;;  %v8798_v55 = vld [vmem:[#allocation16 + $0x268] sm:$0xff]  ;;  %v8815_v63 = vld [vmem:[#allocation16 + $0x2f0] sm:$0xff] }
 0x584   :  { %v8389_v29 = vpop.f32.mrb[20].mxu1 }
 0x585   :  { %v8631_v62 = vadd.f32 %v11457_v49, %v8389_v29  ;;  %v8391_v13 = vpop.f32.mrb[21].mxu1  ;;  %v10602_v49 = vpack.c.bf16 %v8804_v47, %v8803_v4  ;;  %v8796_v29 = vld [vmem:[#allocation16 + $0x258] sm:$0xff]  ;;  %v8660_v4 = vrot.slane %v11594_v1, %v271_v3  ;;  %v8818_v3 = vld [vmem:[#allocation16 + $0x308] sm:$0xff] }
 0x586   :  { %v8632_v15 = vadd.f32 %v11460_v7, %v8391_v13 }
 0x587   :  { %v8689_v35 = vadd.f32 %v8652_v31, %v8631_v62  ;;  %v8814_v62 = vld [vmem:[#allocation16 + $0x2e8] sm:$0xff] }
 0x588   :  { %v8690_v45 = vadd.f32 %v8656_v6, %v8632_v15  ;;  %v8395_v2 = vpop.f32.mrb[22].mxu1 }
 0x589   :  { %v8639_v50 = vadd.f32 %v11463_v52, %v8395_v2  ;;  %v8397_v40 = vpop.f32.mrb[23].mxu1  ;;  %v8705_v48 = vmax.f32 %v8689_v35, 0.0  ;;  %v10606_v52 = vpack.c.bf16 %v8806_v17, %v8805_v21  ;;  %v8797_v35 = vld [vmem:[#allocation16 + $0x260] sm:$0xff]  ;;  %v8835_v17 = vld [vmem:[#allocation16 + $0x390] sm:$0xff] }
 0x58a   :  { %v8706_v51 = vmax.f32 %v8690_v45, 0.0  ;;  %v8640_v14 = vadd.f32 %v11466_v38, %v8397_v40  ;;  %v8807_v38 = vld [vmem:[#allocation16 + $0x2b0] sm:$0xff]  ;;  %v8816_v45 = vld [vmem:[#allocation16 + $0x2f8] sm:$0xff]  ;;  %v10624_v2 = vpack.c.bf16 %v8798_v55, %v8797_v35 }
 0x58b   :  { %v8697_v10 = vadd.f32 %v8652_v31, %v8639_v50  ;;  %v10610_v28 = vpack.c.bf16 %v8808_v24, %v8807_v38  ;;  %v8795_v31 = vld [vmem:[#allocation16 + $0x250] sm:$0xff]  ;;  %v10626_v47 = vpack.c.bf16 %v8816_v45, %v8815_v63  ;;  %v8800_v40 = vld [vmem:[#allocation16 + $0x278] sm:$0xff] }
 0x58c   :  { %v8698_v7 = vadd.f32 %v8656_v6, %v8640_v14  ;;  %8920 = vmatprep.mubr.f32.mxu0 %v8706_v51  ;;  %v8813_v6 = vld [vmem:[#allocation16 + $0x2e0] sm:$0xff]  ;;  %v10620_v13 = vpack.c.bf16 %v8796_v29, %v8795_v31  ;;  %v8799_v50 = vld [vmem:[#allocation16 + $0x270] sm:$0xff]  ;;  %v8664_v14 = vrot.slane %v11594_v1, %v287_v20  ;;  %v8820_v24 = vld [vmem:[#allocation16 + $0x318] sm:$0xff] }
 0x58d   :  { %8921 = vmatmul.mubr.f32.vlgmr.msra.gmra.mrb[28].mxu0 %v8705_v48  ;;  %v8713_v18 = vmax.f32 %v8697_v10, 0.0  ;;  %v10622_v15 = vpack.c.bf16 %v8814_v62, %v8813_v6  ;;  %v8819_v38 = vld [vmem:[#allocation16 + $0x310] sm:$0xff]  ;;  %v8842_v31 = vld [vmem:[#allocation16 + $0x3c8] sm:$0xff]  ;;  %v8825_v62 = vld [vmem:[#allocation16 + $0x340] sm:$0xff] }
 0x58e   :  { %v8714_v16 = vmax.f32 %v8698_v7, 0.0  ;;  %10601 = vmatpush3.bf16.msra.mxu0 %v10600_v22  ;;  %v10636_v57 = vpack.c.bf16 %v8820_v24, %v8819_v38  ;;  %v8844_v35 = vld [vmem:[#allocation16 + $0x3d8] sm:$0xff]  ;;  %v8827_v45 = vld [vmem:[#allocation16 + $0x350] sm:$0xff] }
 0x58f   :  { %10603 = vmatprep.subr.bf16.mxu0 %v10602_v49  ;;  %v10628_v49 = vpack.c.bf16 %v8800_v40, %v8799_v50  ;;  %v8667_v40 = vsub.s32 4, %v11530_v8 }
 0x590   :  { %8925 = vmatprep.mubr.f32.mxu0 %v8714_v16  ;;  %v8836_v16 = vld [vmem:[#allocation16 + $0x398] sm:$0xff] }
 0x591   :  { %8926 = vmatmul.mubr.f32.gmra.mrb[30].mxu0 %v8713_v18  ;;  %v10634_v23 = vpack.c.bf16 %v8836_v16, %v8835_v17 }
 0x592   :  { %10605 = vmatpush3.bf16.msra.mxu0 %v10604_v46 }
 0x593   :  { %10607 = vmatprep.subr.bf16.mxu0 %v10606_v52 }
 0x596   :  { %10609 = vmatpush3.bf16.msra.mxu0 %v10608_v27 }
 0x597   :  { %10611 = vmatprep.subr.bf16.mxu0 %v10610_v28  ;;  %v8837_v28 = vld [vmem:[#allocation16 + $0x3a0] sm:$0xff] }
 0x598   :  { %v10638_v30 = vpack.c.bf16 %v8838_v53, %v8837_v28 }
 0x59a   :  { %10613 = vmatpush3.bf16.msra.mxu0 %v10612_v9  ;;  %v8821_v9 = vld [vmem:[#allocation16 + $0x320] sm:$0xff] }
 0x59b   :  { %10615 = vmatprep.subr.bf16.mxu0 %v10614_v54  ;;  %v8839_v54 = vld [vmem:[#allocation16 + $0x3b0] sm:$0xff] }
 0x59c   :  { %v10642_v36 = vpack.c.bf16 %v8840_v32, %v8839_v54 }
 0x59e   :  { %10617 = vmatpush3.bf16.msra.mxu0 %v10616_v59  ;;  %v8824_v59 = vld [vmem:[#allocation16 + $0x338] sm:$0xff] }
 0x59f   :  { %10619 = vmatprep.subr.bf16.mxu0 %v10618_v12  ;;  %v8841_v12 = vld [vmem:[#allocation16 + $0x3c0] sm:$0xff]  ;;  %v10644_v29 = vpack.c.bf16 %v8824_v59, %v8823_v25 }
 0x5a0   :  { %v10646_v6 = vpack.c.bf16 %v8842_v31, %v8841_v12 }
 0x5a2   :  { %10621 = vmatpush3.bf16.msra.mxu0 %v10620_v13  ;;  %v8826_v13 = vld [vmem:[#allocation16 + $0x348] sm:$0xff] }
 0x5a3   :  { %10623 = vmatprep.subr.bf16.mxu0 %v10622_v15  ;;  %v8843_v15 = vld [vmem:[#allocation16 + $0x3d0] sm:$0xff]  ;;  %v10648_v55 = vpack.c.bf16 %v8826_v13, %v8825_v62 }
 0x5a4   :  { %v8466_v51 = vpop.f32.mrb[24].mxu1  ;;  %v10650_v63 = vpack.c.bf16 %v8844_v35, %v8843_v15 }
 0x5a5   :  { %v8633_v22 = vadd.f32 %v11499_v41, %v8466_v51  ;;  %v8468_v48 = vpop.f32.mrb[25].mxu1  ;;  %v10632_v41 = vpack.c.bf16 %v8818_v3, %v8817_v33  ;;  %v8668_v33 = vrot.slane %v11594_v1, %v8667_v40  ;;  %v10221_v40 = vld [vmem:[#allocation17] ss:$0 sm:$0xff] }
 0x5a6   :  { %v8634_v10 = vadd.f32 %v11502_v56, %v8468_v48  ;;  %10625 = vmatpush3.bf16.msra.mxu0 %v10624_v2  ;;  %v8828_v2 = vld [vmem:[#allocation16 + $0x358] sm:$0xff]  ;;  %v8671_v48 = vsub.s32 5, %v11530_v8 }
 0x5a7   :  { %v8691_v0 = vadd.f32 %v8660_v4, %v8633_v22  ;;  %10627 = vmatprep.subr.bf16.mxu0 %v10626_v47  ;;  %v8846_v47 = vld [vmem:[#allocation16 + $0x3e8] sm:$0xff]  ;;  %v10652_v50 = vpack.c.bf16 %v8828_v2, %v8827_v45 }
 0x5a8   :  { %v8692_v7 = vadd.f32 %v8664_v14, %v8634_v10  ;;  %v8472_v21 = vpop.f32.mrb[26].mxu1  ;;  %v8830_v22 = vld [vmem:[#allocation16 + $0x368] sm:$0xff]  ;;  %v8847_v10 = vld [vmem:[#allocation16 + $0x3f0] sm:$0xff]  ;;  %v8672_v16 = vrot.slane %v11594_v1, %v8671_v48 }
 0x5a9   :  { %v8641_v46 = vadd.f32 %v11505_v43, %v8472_v21  ;;  %v8474_v18 = vpop.f32.mrb[27].mxu1  ;;  %v8707_v44 = vmax.f32 %v8691_v0, 0.0  ;;  %v8832_v21 = vld [vmem:[#allocation16 + $0x378] sm:$0xff] }
 0x5aa   :  { %v8708_v52 = vmax.f32 %v8692_v7, 0.0  ;;  %v8642_v20 = vadd.f32 %v11508_v39, %v8474_v18  ;;  %10629 = vmatpush3.bf16.msra.mxu0 %v10628_v49  ;;  %v8822_v39 = vld [vmem:[#allocation16 + $0x328] sm:$0xff]  ;;  %v8848_v49 = vld [vmem:[#allocation16 + $0x3f8] sm:$0xff]  ;;  %v8831_v7 = vld [vmem:[#allocation16 + $0x370] sm:$0xff] }
 0x5ab   :  { %v8699_v56 = vadd.f32 %v8660_v4, %v8641_v46  ;;  %v10640_v37 = vpack.c.bf16 %v8822_v39, %v8821_v9  ;;  %v8845_v4 = vld [vmem:[#allocation16 + $0x3e0] sm:$0xff]  ;;  %v10658_v3 = vpack.c.bf16 %v8848_v49, %v8847_v10 }
 0x5ac   :  { %v8700_v27 = vadd.f32 %v8664_v14, %v8642_v20  ;;  %8995 = vmatprep.mubr.f32.mxu1 %v8708_v52  ;;  %v10654_v51 = vpack.c.bf16 %v8846_v47, %v8845_v4  ;;  %v8829_v14 = vld [vmem:[#allocation16 + $0x360] sm:$0xff]  ;;  %v10660_v20 = vpack.c.bf16 %v8832_v21, %v8831_v7 }
 0x5ad   :  { %8996 = vmatmul.mubr.f32.vlgmr.msra.gmra.mrb[36].mxu1 %v8707_v44  ;;  %v8715_v43 = vmax.f32 %v8699_v56, 0.0  ;;  %v10656_v0 = vpack.c.bf16 %v8830_v22, %v8829_v14 }
 0x5ae   :  { %v8716_v26 = vmax.f32 %v8700_v27, 0.0  ;;  %10633 = vmatpush3.bf16.msra.mxu1 %v10632_v41 }
 0x5af   :  { %10635 = vmatprep.subr.bf16.mxu1 %v10634_v23 }
 0x5b0   :  { %9000 = vmatprep.mubr.f32.mxu1 %v8716_v26 }
 0x5b1   :  { %9001 = vmatmul.mubr.f32.gmra.mrb[38].mxu1 %v8715_v43  ;;  %v8679_v43 = vsub.s32 7, %v11530_v8 }
 0x5b2   :  { %10637 = vmatpush3.bf16.msra.mxu1 %v10636_v57  ;;  %v8675_v57 = vsub.s32 6, %v11530_v8 }
 0x5b3   :  { %10639 = vmatprep.subr.bf16.mxu1 %v10638_v30 }
 0x5b6   :  { %10641 = vmatpush3.bf16.msra.mxu1 %v10640_v37  ;;  %v8680_v37 = vrot.slane %v11594_v1, %v8679_v43 }
 0x5b7   :  { %10643 = vmatprep.subr.bf16.mxu1 %v10642_v36 }
 0x5ba   :  { %10645 = vmatpush3.bf16.msra.mxu1 %v10644_v29 }
 0x5bb   :  { %10647 = vmatprep.subr.bf16.mxu1 %v10646_v6 }
 0x5be   :  { %10649 = vmatpush3.bf16.msra.mxu1 %v10648_v55 }
 0x5bf   :  { %10651 = vmatprep.subr.bf16.mxu1 %v10650_v63 }
 0x5c2   :  { %10653 = vmatpush3.bf16.msra.mxu1 %v10652_v50 }
 0x5c3   :  { %10655 = vmatprep.subr.bf16.mxu1 %v10654_v51 }
 0x5c4   :  { %v8543_v17 = vpop.f32.mrb[28].mxu1 }
 0x5c5   :  { %v8635_v46 = vadd.f32 %v11583_v34, %v8543_v17  ;;  %v8545_v18 = vpop.f32.mrb[29].mxu1 }
 0x5c6   :  { %v8636_v52 = vadd.f32 %v11586_v58, %v8545_v18  ;;  %10657 = vmatpush3.bf16.msra.mxu1 %v10656_v0 }
 0x5c7   :  { %v8693_v41 = vadd.f32 %v8668_v33, %v8635_v46  ;;  %10659 = vmatprep.subr.bf16.mxu1 %v10658_v3 }
 0x5c8   :  { %v8694_v44 = vadd.f32 %v8672_v16, %v8636_v52  ;;  %v8549_v56 = vpop.f32.mrb[30].mxu1 }
 0x5c9   :  { %v8643_v23 = vadd.f32 %v11589_v61, %v8549_v56  ;;  %v8551_v38 = vpop.f32.mrb[31].mxu1  ;;  %v8709_v28 = vmax.f32 %v8693_v41, 0.0 }
 0x5ca   :  { %v8710_v24 = vmax.f32 %v8694_v44, 0.0  ;;  %v8644_v27 = vadd.f32 %v11592_v19, %v8551_v38  ;;  %10661 = vmatpush3.bf16.msra.mxu1 %v10660_v20  ;;  %v8676_v19 = vrot.slane %v11594_v1, %v8675_v57 }
 0x5cb   :  { %v8701_v53 = vadd.f32 %v8668_v33, %v8643_v23 }
 0x5cc   :  { %v8702_v26 = vadd.f32 %v8672_v16, %v8644_v27  ;;  %9070 = vmatprep.mubr.f32.mxu0 %v8710_v24 }
 0x5cd   :  { %9071 = vmatmul.mubr.f32.vlgmr.msra.gmra.mrb[32].mxu0 %v8709_v28  ;;  %v8717_v58 = vmax.f32 %v8701_v53, 0.0 }
 0x5ce   :  { %v8718_v34 = vmax.f32 %v8702_v26, 0.0 }
 0x5d0   :  { %9075 = vmatprep.mubr.f32.mxu0 %v8718_v34 }
 0x5d1   :  { %9076 = vmatmul.mubr.f32.gmra.mrb[34].mxu0 %v8717_v58 }
 0x5e3   :  { %v8186_v30 = vpop.f32.mrb[24].mxu0 }
 0x5e4   :  { %v10674_v61 = vadd.f32 %v8186_v30, %v11515_v42  ;;  %v8620_v9 = vpop.f32.mrb[32].mxu1  ;;  %v8188_v39 = vpop.f32.mrb[25].mxu0 }
 0x5e5   :  { %v10675_v54 = vadd.f32 %v8188_v39, %v11518_v11  ;;  %v8622_v32 = vpop.f32.mrb[33].mxu1  ;;  %v8190_v36 = vpop.f32.mrb[26].mxu0 }
 0x5e6   :  { %v8637_v25 = vadd.f32 %v10674_v61, %v8620_v9  ;;  %v10676_v59 = vadd.f32 %v8190_v36, %v11521_v60  ;;  %v8192_v12 = vpop.f32.mrb[27].mxu0 }
 0x5e7   :  { %v8638_v31 = vadd.f32 %v10675_v54, %v8622_v32  ;;  %v10677_v8 = vadd.f32 %v8192_v12, %v11524_v5 }
 0x5e8   :  { %v8695_v29 = vadd.f32 %v8676_v19, %v8637_v25  ;;  %v8626_v6 = vpop.f32.mrb[34].mxu1 }
 0x5e9   :  { %v8696_v42 = vadd.f32 %v8680_v37, %v8638_v31  ;;  %v8645_v62 = vadd.f32 %v10676_v59, %v8626_v6  ;;  %v8628_v13 = vpop.f32.mrb[35].mxu1 }
 0x5ea   :  { %v8646_v15 = vadd.f32 %v10677_v8, %v8628_v13  ;;  %v8711_v55 = vmax.f32 %v8695_v29, 0.0 }
 0x5eb   :  { %v8712_v35 = vmax.f32 %v8696_v42, 0.0  ;;  %v8703_v11 = vadd.f32 %v8676_v19, %v8645_v62 }
 0x5ec   :  { %v8704_v63 = vadd.f32 %v8680_v37, %v8646_v15 }
 0x5ed   :  { %9145 = vmatprep.mubr.f32.mxu1 %v8712_v35  ;;  %v8719_v45 = vmax.f32 %v8703_v11, 0.0 }
 0x5ee   :  { %v8720_v1 = vmax.f32 %v8704_v63, 0.0  ;;  %9146 = vmatmul.mubr.f32.vlgmr.msra.gmra.mrb[40].mxu1 %v8711_v55 }
 0x5f0   :  { %9150 = vmatprep.mubr.f32.mxu1 %v8720_v1 }
 0x5f2   :  { %9151 = vmatmul.mubr.f32.gmra.mrb[42].mxu1 %v8719_v45 }
 0x660   :  { %v10254_v60 = vpop.f32.mrb[28].mxu0 }
 0x661   :  { %v10255_v2 = vpop.f32.mrb[29].mxu0 }
 0x662   :  { %v10256_v4 = vadd.f32 %v10255_v2, %v10254_v60 }
 0x664   :  { %v10257_v5 = vpop.f32.mrb[30].mxu0  ;;  %v8923_v22 = vadd.f32 %v10256_v4, %v10221_v40 }
 0x665   :  { %v10258_v47 = vpop.f32.mrb[31].mxu0 }
 0x666   :  { %v10259_v50 = vadd.f32 %v10258_v47, %v10257_v5 }
 0x668   :  { %v8928_v33 = vadd.f32 %v10259_v50, %v10221_v40 }
 0x680   :  { %v10292_v51 = vpop.f32.mrb[36].mxu1 }
 0x681   :  { %v10293_v14 = vpop.f32.mrb[37].mxu1 }
 0x682   :  { %v10294_v48 = vadd.f32 %v10293_v14, %v10292_v51 }
 0x684   :  { %v8998_v10 = vadd.f32 %v10294_v48, %v8923_v22  ;;  %v10295_v49 = vpop.f32.mrb[38].mxu1 }
 0x685   :  { %v10296_v0 = vpop.f32.mrb[39].mxu1 }
 0x686   :  { %v10297_v3 = vadd.f32 %v10296_v0, %v10295_v49 }
 0x688   :  { %v9003_v7 = vadd.f32 %v10297_v3, %v8928_v33 }
 0x6a0   :  { %v10330_v21 = vpop.f32.mrb[32].mxu0 }
 0x6a1   :  { %v10331_v17 = vpop.f32.mrb[33].mxu0 }
 0x6a2   :  { %v10332_v16 = vadd.f32 %v10331_v17, %v10330_v21 }
 0x6a4   :  { %v9073_v46 = vadd.f32 %v10332_v16, %v8998_v10  ;;  %v10333_v18 = vpop.f32.mrb[34].mxu0 }
 0x6a5   :  { %v10334_v52 = vpop.f32.mrb[35].mxu0 }
 0x6a6   :  { %v10335_v20 = vadd.f32 %v10334_v52, %v10333_v18 }
 0x6a8   :  { %v9078_v41 = vadd.f32 %v10335_v20, %v9003_v7 }
 0x6c1   :  { %v10368_v44 = vpop.f32.mrb[40].mxu1 }
 0x6c2   :  { %v10369_v56 = vpop.f32.mrb[41].mxu1 }
 0x6c3   :  { %v10370_v23 = vadd.f32 %v10369_v56, %v10368_v44 }
 0x6c5   :  { %v9148_v38 = vadd.f32 %v10370_v23, %v9073_v46  ;;  %v10371_v24 = vpop.f32.mrb[42].mxu1 }
 0x6c6   :  { %v10372_v27 = vpop.f32.mrb[43].mxu1 }
 0x6c7   :  { %9156 = vst [vmem:[#allocation19] sm:$0xff] %v9148_v38  ;;  %v10373_v28 = vadd.f32 %v10372_v27, %v10371_v24 }
 0x6c9   :  { %v9153_v53 = vadd.f32 %v10373_v28, %v9078_v41 }
 0x6cb   :  { %9157 = vst [vmem:[#allocation19 + $0x8] sm:$0xff] %v9153_v53 }
 0x6cc   :  { %11035 = shalt.err (!%p11032_p0)
}
 0x6cd   :  { %s11036_s3 = scalar_lea.hbm %s11658_s11, 256 }
 0x6ce   :  { %p11037_p1 = scmp.ne.s32.totalorder %s11658_s11, %s11036_s3  ;;  %p11040_p2 = scmp.lt.u32.totalorder %s11036_s3, %s11658_s11 }
 0x6d0   :  { %p11042_p3 = pnand %p11040_p2, %p11037_p1 }
 0x6d2   :  { %11045 = shalt.err (!%p11042_p3)
}
 0x6d3   :  { %9169 = dma.vmem_to_hbm [thread:$0]  %s9164_s23, 256, %s11658_s11, [#allocation4], %s11061_s27, %s11061_s27, %s11062_s28  }
 0x6d4   :  { %11058 = dma.done.wait [#allocation4], 256  }
 0x6d5   :  { %11059 = vsyncadd [#allocation4], 4294967040 }
 0x6d6   :  { %9173 = vsyncpa [#allocation3], 1 }
 0x6d7   :  { %9174 = vsyncpa [#allocation6], 1 }
 0x6d8   :  { %9175 = vsyncpa [#allocation9], 1 }
 0x6d9   :  { %9176 = vsyncpa [#allocation12], 1 }
 0x6da   :  { %9177 = vsyncpa [#allocation15], 1 }
 0x6db   :  { %9178 = vsyncpa [#allocation18], 1 }
 0x6dc   :  { %9179 = vsyncpa [#allocation4], 1 }

</bundles_post_ra>
